<compile_context>
chip_gen: v5e
topology: v5e:2x2
jax: 0.10.0
libtpu: 0.0.40
codegen_flags: <defaults>
</compile_context>

<pallas_src>
import functools

import jax
import jax.numpy as jnp
from jax import lax
from jax.experimental import pallas as pl
from jax.experimental.pallas import tpu as pltpu


# ---------------------------------------------------------------------------
# In-kernel helpers (all shapes / offsets static at trace time)
# ---------------------------------------------------------------------------
def _conv3x3(apad_ref, w_ref, b_ref, H, W):
    """3x3 / stride-1 / pad-1 conv + bias + ReLU on a flattened spatial slab.

    apad_ref : (H*W + 2*W + 2, Cin) bf16 zero-padded flat activation; valid
               rows live at [W+1, W+1+H*W), row index p = h*W + w.
    w_ref    : (9, Cin, Cout) bf16, taps flattened as t = dy*3 + dx.
    b_ref    : (1, Cout) f32
    returns  : (H*W, Cout) f32, post bias + ReLU.
    """
    HW = H * W
    pt = W + 1  # top zero-pad rows

    def tap_group(dx):
        part = None
        for dy in range(3):
            off = (dy - 1) * W + (dx - 1)
            lhs = apad_ref[pl.ds(pt + off, HW), :]        # bf16, no per-tap cast
            t = jnp.dot(lhs, w_ref[dy * 3 + dx],
                        preferred_element_type=jnp.float32)
            part = t if part is None else part + t
        return part

    # column index of every flat row; masks kill the wrap-around contamination
    # of the left/right tap groups at the image borders.
    col = lax.broadcasted_iota(jnp.int32, (HW, 1), 0) % W
    acc = tap_group(1)                                       # center column
    acc = acc + jnp.where(col != 0, tap_group(0), 0.0)       # left taps
    acc = acc + jnp.where(col != W - 1, tap_group(2), 0.0)   # right taps
    return jnp.maximum(acc + b_ref[...], 0.0)


def _maxpool2x2_into(y_ref, H, W, apad_next_ref):
    """2x2 max-pool the (H*W, C) f32 slab in y_ref; write pooled rows (cast to
    the slab dtype, bf16) into the interior of the next layer's padded slab."""
    HW = H * W
    H2, W2 = H // 2, W // 2
    pt_next = W2 + 1
    # horizontal max: even/odd flat rows pair up (W is even)
    even = y_ref[pl.ds(0, HW // 2, 2), :]
    odd = y_ref[pl.ds(1, HW // 2, 2), :]
    hmax = jnp.maximum(even, odd)                  # rows: h*W2 + w2, h in [0,H)
    # vertical max, vectorized: row r pairs with row r + W2 (same column,
    # next image row).  Only even-h blocks are stored below.
    vmax = jnp.maximum(hmax[:(H - 1) * W2, :], hmax[W2:, :])
    out_dt = apad_next_ref.dtype
    # TODO(synk): at realistic map sizes replace this store loop with an
    # XLU-roll + block-strided store scheme to cut vst bundle count further.
    for h2 in range(H2):
        apad_next_ref[pl.ds(pt_next + h2 * W2, W2), :] = (
            vmax[2 * h2 * W2:(2 * h2 + 1) * W2, :].astype(out_dt))


# ---------------------------------------------------------------------------
# Kernel 1: actor CNN for one image (grid over batch)
# ---------------------------------------------------------------------------
def _ans_cnn_kernel(x_ref,
                    cw1, cb1, cw2, cb2, cw3, cb3, cw4, cb4, cw5, cb5,
                    feat_ref,
                    apad1, apad2, apad3, apad4, apad5, y1, y2, y3,
                    *, H, W):
    H1, W1 = H, W
    H2_, W2_ = H // 2, W // 2
    H3_, W3_ = H // 4, W // 4
    H4_, W4_ = H // 8, W // 8

    def zero_pad_rows(apad_ref, Wl):
        # Only the border pad rows need zeros; the interior is fully rewritten
        # every grid step.  Re-zeroed each step (cheap) so grid iterations stay
        # independent (safe if the batch axis is sharded CORE_PARALLEL on v7x).
        pad = Wl + 1
        n = apad_ref.shape[0]
        z = jnp.zeros((pad, apad_ref.shape[1]), apad_ref.dtype)
        apad_ref[pl.ds(0, pad), :] = z
        apad_ref[pl.ds(n - pad, pad), :] = z

    def set_interior(apad_ref, Wl, val):
        # single f32 -> bf16 cast when the activation enters a slab
        apad_ref[pl.ds(Wl + 1, val.shape[0]), :] = val.astype(apad_ref.dtype)

    zero_pad_rows(apad1, W1)
    zero_pad_rows(apad2, W2_)
    zero_pad_rows(apad3, W3_)
    zero_pad_rows(apad4, W4_)
    zero_pad_rows(apad5, W4_)

    # ------------------------- actor CNN -------------------------
    set_interior(apad1, W1, x_ref[0])                   # (H*W, 9) -> bf16 slab

    y1[...] = _conv3x3(apad1, cw1, cb1, H1, W1)         # (H*W, 32) f32
    _maxpool2x2_into(y1, H1, W1, apad2)

    y2[...] = _conv3x3(apad2, cw2, cb2, H2_, W2_)       # (H*W/4, 64)
    _maxpool2x2_into(y2, H2_, W2_, apad3)

    y3[...] = _conv3x3(apad3, cw3, cb3, H3_, W3_)       # (H*W/16, 128)
    _maxpool2x2_into(y3, H3_, W3_, apad4)

    y4 = _conv3x3(apad4, cw4, cb4, H4_, W4_)            # (P, 64)
    set_interior(apad5, W4_, y4)

    feat_ref[0] = _conv3x3(apad5, cw5, cb5, H4_, W4_)   # (P, 32) f32


# ---------------------------------------------------------------------------
# Kernel 2: critic MLP, batched over all B images (single grid step)
# ---------------------------------------------------------------------------
def _critic_mlp_kernel(x_ref, w1_ref, b1_ref, w2_ref, b2_ref, w3_ref, b3_ref,
                       val_ref, hid_ref):
    bf16 = jnp.bfloat16
    # h1 = relu(concat(feat_flat, orient) @ W1 + b1) -- the concat and the
    # flatten-order permutation are folded into x_ref / w1_ref by the wrapper,
    # so the whole first layer is ONE (B, K) @ (K, 512) MXU contraction.
    h1 = jnp.dot(x_ref[...].astype(bf16), w1_ref[...],
                 preferred_element_type=jnp.float32) + b1_ref[...]
    h1 = jnp.maximum(h1, 0.0)                                    # (B, 512)
    h2 = jnp.dot(h1.astype(bf16), w2_ref[...],
                 preferred_element_type=jnp.float32) + b2_ref[...]
    h2 = jnp.maximum(h2, 0.0)                                    # (B, 256)
    v = jnp.dot(h2.astype(bf16), w3_ref[...],
                preferred_element_type=jnp.float32) + b3_ref[...]
    hid_ref[...] = h2
    val_ref[...] = v                                             # (B, 1)


# ---------------------------------------------------------------------------
# Wrapper
# ---------------------------------------------------------------------------
def ans_policy_forward(params, inputs, rnn_hxs, masks, extras):
    """inputs: (B, 9, H, W) NCHW f32; extras: (B, K) int32 (last col < 72)."""
    del masks                                      # unused by the reference forward
    B, Cin0, H, W = inputs.shape
    assert H % 8 == 0 and W % 8 == 0, "H and W must be divisible by 8"
    P = (H // 8) * (W // 8)
    F = P * 32
    hid_dim = params["w2"].shape[1]
    bf16 = jnp.bfloat16

    # NCHW -> flattened-spatial, channel-minor slab (B, H*W, Cin)  (layout glue)
    x = jnp.transpose(inputs, (0, 2, 3, 1)).reshape(B, H * W, Cin0)

    # conv weights: (3,3,Cin,Cout) HWIO -> (9,Cin,Cout) bf16
    def cw(name):
        w = params[name]
        return w.reshape(9, w.shape[2], w.shape[3]).astype(bf16)

    conv_ops = [cw("c1_w"), params["c1_b"], cw("c2_w"), params["c2_b"],
                cw("c3_w"), params["c3_b"], cw("c4_w"), params["c4_b"],
                cw("c5_w"), params["c5_b"]]

    def rep(arr):                                  # grid-invariant VMEM block
        nd = arr.ndim
        return pl.BlockSpec(arr.shape, lambda g, _nd=nd: (0,) * _nd)

    def slab(HW, Wl, C):                           # padded flat activation scratch
        return pltpu.VMEM((HW + 2 * Wl + 2, C), jnp.bfloat16)

    # TODO(synk): for realistic ANS map sizes (H=W~240, out_size~900) the
    # channel-minor slabs lane-pad heavily and w1 grows to tens of MiB: tile
    # the grid over spatial row blocks with a 1-row pooled halo, mark the
    # grid-invariant weights pl.Buffered(1), set vmem_limit_bytes, and K-tile
    # the first critic matmul before deploying on v7x (64 MiB VMEM).
    cnn_kernel = functools.partial(_ans_cnn_kernel, H=H, W=W)
    feat = pl.pallas_call(
        cnn_kernel,
        out_shape=jax.ShapeDtypeStruct((B, P, 32), jnp.float32),
        grid=(B,),
        in_specs=[pl.BlockSpec((1, H * W, Cin0), lambda b: (b, 0, 0))]
                 + [rep(a) for a in conv_ops],
        out_specs=pl.BlockSpec((1, P, 32), lambda b: (b, 0, 0)),
        scratch_shapes=[
            slab(H * W, W, Cin0),                          # padded input slab
            slab((H // 2) * (W // 2), W // 2, 32),         # after pool1
            slab((H // 4) * (W // 4), W // 4, 64),         # after pool2
            slab(P, W // 8, 128),                          # after pool3
            slab(P, W // 8, 64),                           # conv4 output
            pltpu.VMEM((H * W, 32), jnp.float32),          # conv1 out (pre-pool)
            pltpu.VMEM(((H // 2) * (W // 2), 64), jnp.float32),
            pltpu.VMEM(((H // 4) * (W // 4), 128), jnp.float32),
        ],
        # each grid step is now fully independent -> on v7x this axis can be
        # flipped to pltpu.CORE_PARALLEL (keep B even) to use both TensorCores.
        compiler_params=pltpu.CompilerParams(
            dimension_semantics=("parallel",)),
    )(x, *conv_ops)

    # ---------------- critic MLP (stage 2, batched over B) ----------------
    # nn.Embedding(72, 8) lookup on extras[:, -1]  (tiny gather -> glue)
    orient = jnp.take(params["emb"], extras[:, -1], axis=0)       # (B, 8)
    # fold the PyTorch NCHW flatten ordering (c*P + p) into the first critic
    # weight's rows so the p-major (P, 32) features are used directly.
    w1 = params["w1"]
    w1f = w1[:F].reshape(32, P, w1.shape[1]).transpose(1, 0, 2).reshape(F, -1)
    w1_cat = jnp.concatenate([w1f, w1[F:]], axis=0).astype(bf16)  # (F+8, 512)
    w2 = params["w2"].astype(bf16)
    w3 = params["w3"].astype(bf16)
    xcat = jnp.concatenate([feat.reshape(B, F), orient], axis=1)  # (B, F+8)

    mlp_ops = [xcat, w1_cat, params["b1"], w2, params["b2"], w3, params["b3"]]
    value, hidden = pl.pallas_call(
        _critic_mlp_kernel,
        out_shape=(jax.ShapeDtypeStruct((B, 1), jnp.float32),
                   jax.ShapeDtypeStruct((B, hid_dim), jnp.float32)),
        grid=(1,),
        in_specs=[rep(a) for a in mlp_ops],
        out_specs=(pl.BlockSpec((B, 1), lambda g: (0, 0)),
                   pl.BlockSpec((B, hid_dim), lambda g: (0, 0))),
        compiler_params=pltpu.CompilerParams(
            dimension_semantics=("arbitrary",)),
    )(*mlp_ops)

    return value[:, 0], hidden, rnn_hxs


# ---------------------------------------------------------------------------
# Deterministic synthetic parameter init (shapes follow ANS_Policy.__init__)
# ---------------------------------------------------------------------------
def init_params(key, input_shape):
    cin0, H, W = input_shape
    out_size = (H // 8) * (W // 8)
    keys = jax.random.split(key, 9)

    def conv_p(k, cin, cout):
        scale = (2.0 / (cin * 9)) ** 0.5
        return (jax.random.normal(k, (3, 3, cin, cout), jnp.float32) * scale,
                jnp.zeros((1, cout), jnp.float32))

    def lin_p(k, fin, fout):
        scale = (2.0 / fin) ** 0.5
        return (jax.random.normal(k, (fin, fout), jnp.float32) * scale,
                jnp.zeros((1, fout), jnp.float32))

    p = {}
    p["c1_w"], p["c1_b"] = conv_p(keys[0], cin0, 32)
    p["c2_w"], p["c2_b"] = conv_p(keys[1], 32, 64)
    p["c3_w"], p["c3_b"] = conv_p(keys[2], 64, 128)
    p["c4_w"], p["c4_b"] = conv_p(keys[3], 128, 64)
    p["c5_w"], p["c5_b"] = conv_p(keys[4], 64, 32)
    p["w1"], p["b1"] = lin_p(keys[5], out_size * 32 + 8, 512)
    p["w2"], p["b2"] = lin_p(keys[6], 512, 256)
    p["w3"], p["b3"] = lin_p(keys[7], 256, 1)
    p["emb"] = jax.random.normal(keys[8], (72, 8), jnp.float32) * 0.1
    return p


if __name__ == "__main__":
    B, C, H, W = 2, 9, 16, 16                      # input_shape = (9, 16, 16)
    key = jax.random.PRNGKey(0)
    k_in, k_ex = jax.random.split(key)
    inputs = jax.random.normal(k_in, (B, C, H, W), jnp.float32)
    rnn_hxs = jnp.zeros((B, 1), jnp.float32)
    masks = jnp.ones((B, 1), jnp.float32)
    extras = jax.random.randint(k_ex, (B, 2), 0, 72, dtype=jnp.int32)

    params = init_params(jax.random.PRNGKey(1), (C, H, W))

    fwd = jax.jit(ans_policy_forward)
    value, hidden, rnn_out = fwd(params, inputs, rnn_hxs, masks, extras)
    jax.block_until_ready((value, hidden, rnn_out))

    assert value.shape == (B,), value.shape
    assert hidden.shape == (B, 256), hidden.shape
    assert rnn_out.shape == rnn_hxs.shape
    assert jnp.all(jnp.isfinite(value)) and jnp.all(jnp.isfinite(hidden))
    print("KERNEL_OK")
</pallas_src>

<mosaic_0001>
module attributes {stable_mosaic.version = 11 : i64} {
  func.func @_ans_cnn_kernel(%arg0: i32, %arg1: memref<1x256x9xf32, #tpu.memory_space<vmem>>, %arg2: memref<9x9x32xbf16, #tpu.memory_space<vmem>>, %arg3: memref<1x32xf32, #tpu.memory_space<vmem>>, %arg4: memref<9x32x64xbf16, #tpu.memory_space<vmem>>, %arg5: memref<1x64xf32, #tpu.memory_space<vmem>>, %arg6: memref<9x64x128xbf16, #tpu.memory_space<vmem>>, %arg7: memref<1x128xf32, #tpu.memory_space<vmem>>, %arg8: memref<9x128x64xbf16, #tpu.memory_space<vmem>>, %arg9: memref<1x64xf32, #tpu.memory_space<vmem>>, %arg10: memref<9x64x32xbf16, #tpu.memory_space<vmem>>, %arg11: memref<1x32xf32, #tpu.memory_space<vmem>>, %arg12: memref<1x4x32xf32, #tpu.memory_space<vmem>>, %arg13: memref<290x9xbf16, #tpu.memory_space<vmem>>, %arg14: memref<82x32xbf16, #tpu.memory_space<vmem>>, %arg15: memref<26x64xbf16, #tpu.memory_space<vmem>>, %arg16: memref<10x128xbf16, #tpu.memory_space<vmem>>, %arg17: memref<10x64xbf16, #tpu.memory_space<vmem>>, %arg18: memref<256x32xf32, #tpu.memory_space<vmem>>, %arg19: memref<64x64xf32, #tpu.memory_space<vmem>>, %arg20: memref<16x128xf32, #tpu.memory_space<vmem>>) attributes {dimension_semantics = [#tpu.dimension_semantics<parallel>], iteration_bounds = array<i64: 2>, scalar_prefetch = 0 : i64, scratch_operands = 8 : i64, tpu.core_type = #tpu.core_type<tc>, window_params = [{transform_indices = @transform_0, window_bounds = array<i64: 1, 256, 9>}, {pipeline_mode = #tpu.pipeline_mode<synchronous>, transform_indices = @transform_1, window_bounds = array<i64: 9, 9, 32>}, {pipeline_mode = #tpu.pipeline_mode<synchronous>, transform_indices = @transform_2, window_bounds = array<i64: 1, 32>}, {pipeline_mode = #tpu.pipeline_mode<synchronous>, transform_indices = @transform_3, window_bounds = array<i64: 9, 32, 64>}, {pipeline_mode = #tpu.pipeline_mode<synchronous>, transform_indices = @transform_4, window_bounds = array<i64: 1, 64>}, {pipeline_mode = #tpu.pipeline_mode<synchronous>, transform_indices = @transform_5, window_bounds = array<i64: 9, 64, 128>}, {pipeline_mode = #tpu.pipeline_mode<synchronous>, transform_indices = @transform_6, window_bounds = array<i64: 1, 128>}, {pipeline_mode = #tpu.pipeline_mode<synchronous>, transform_indices = @transform_7, window_bounds = array<i64: 9, 128, 64>}, {pipeline_mode = #tpu.pipeline_mode<synchronous>, transform_indices = @transform_8, window_bounds = array<i64: 1, 64>}, {pipeline_mode = #tpu.pipeline_mode<synchronous>, transform_indices = @transform_9, window_bounds = array<i64: 9, 64, 32>}, {pipeline_mode = #tpu.pipeline_mode<synchronous>, transform_indices = @transform_10, window_bounds = array<i64: 1, 32>}, {transform_indices = @transform_11, window_bounds = array<i64: 1, 4, 32>}]} {
    %cst = arith.constant 0.000000e+00 : bf16
    %0 = vector.broadcast %cst : bf16 to vector<17x9xbf16>
    %c0 = arith.constant 0 : index
    %c0_0 = arith.constant 0 : index
    %1 = vector.load %arg13[%c0, %c0_0] : memref<290x9xbf16, #tpu.memory_space<vmem>>, vector<17x9xbf16>
    tpu.vector_store %arg13[%c0, %c0_0], %0 {strides = array<i32>} : memref<290x9xbf16, #tpu.memory_space<vmem>>, vector<17x9xbf16>,
    %c273 = arith.constant 273 : index
    %c0_1 = arith.constant 0 : index
    %2 = vector.load %arg13[%c273, %c0_1] : memref<290x9xbf16, #tpu.memory_space<vmem>>, vector<17x9xbf16>
    tpu.vector_store %arg13[%c273, %c0_1], %0 {strides = array<i32>} : memref<290x9xbf16, #tpu.memory_space<vmem>>, vector<17x9xbf16>,
    %cst_2 = arith.constant 0.000000e+00 : bf16
    %3 = vector.broadcast %cst_2 : bf16 to vector<9x32xbf16>
    %c0_3 = arith.constant 0 : index
    %c0_4 = arith.constant 0 : index
    %4 = vector.load %arg14[%c0_3, %c0_4] : memref<82x32xbf16, #tpu.memory_space<vmem>>, vector<9x32xbf16>
    tpu.vector_store %arg14[%c0_3, %c0_4], %3 {strides = array<i32>} : memref<82x32xbf16, #tpu.memory_space<vmem>>, vector<9x32xbf16>,
    %c73 = arith.constant 73 : index
    %c0_5 = arith.constant 0 : index
    %5 = vector.load %arg14[%c73, %c0_5] : memref<82x32xbf16, #tpu.memory_space<vmem>>, vector<9x32xbf16>
    tpu.vector_store %arg14[%c73, %c0_5], %3 {strides = array<i32>} : memref<82x32xbf16, #tpu.memory_space<vmem>>, vector<9x32xbf16>,
    %cst_6 = arith.constant 0.000000e+00 : bf16
    %6 = vector.broadcast %cst_6 : bf16 to vector<5x64xbf16>
    %c0_7 = arith.constant 0 : index
    %c0_8 = arith.constant 0 : index
    %7 = vector.load %arg15[%c0_7, %c0_8] : memref<26x64xbf16, #tpu.memory_space<vmem>>, vector<5x64xbf16>
    tpu.vector_store %arg15[%c0_7, %c0_8], %6 {strides = array<i32>} : memref<26x64xbf16, #tpu.memory_space<vmem>>, vector<5x64xbf16>,
    %c21 = arith.constant 21 : index
    %c0_9 = arith.constant 0 : index
    %8 = vector.load %arg15[%c21, %c0_9] : memref<26x64xbf16, #tpu.memory_space<vmem>>, vector<5x64xbf16>
    tpu.vector_store %arg15[%c21, %c0_9], %6 {strides = array<i32>} : memref<26x64xbf16, #tpu.memory_space<vmem>>, vector<5x64xbf16>,
    %cst_10 = arith.constant 0.000000e+00 : bf16
    %9 = vector.broadcast %cst_10 : bf16 to vector<3x128xbf16>
    %c0_11 = arith.constant 0 : index
    %c0_12 = arith.constant 0 : index
    %10 = vector.load %arg16[%c0_11, %c0_12] : memref<10x128xbf16, #tpu.memory_space<vmem>>, vector<3x128xbf16>
    tpu.vector_store %arg16[%c0_11, %c0_12], %9 {strides = array<i32>} : memref<10x128xbf16, #tpu.memory_space<vmem>>, vector<3x128xbf16>,
    %c7 = arith.constant 7 : index
    %c0_13 = arith.constant 0 : index
    %11 = vector.load %arg16[%c7, %c0_13] : memref<10x128xbf16, #tpu.memory_space<vmem>>, vector<3x128xbf16>
    tpu.vector_store %arg16[%c7, %c0_13], %9 {strides = array<i32>} : memref<10x128xbf16, #tpu.memory_space<vmem>>, vector<3x128xbf16>,
    %cst_14 = arith.constant 0.000000e+00 : bf16
    %12 = vector.broadcast %cst_14 : bf16 to vector<3x64xbf16>
    %c0_15 = arith.constant 0 : index
    %c0_16 = arith.constant 0 : index
    %13 = vector.load %arg17[%c0_15, %c0_16] : memref<10x64xbf16, #tpu.memory_space<vmem>>, vector<3x64xbf16>
    tpu.vector_store %arg17[%c0_15, %c0_16], %12 {strides = array<i32>} : memref<10x64xbf16, #tpu.memory_space<vmem>>, vector<3x64xbf16>,
    %c7_17 = arith.constant 7 : index
    %c0_18 = arith.constant 0 : index
    %14 = vector.load %arg17[%c7_17, %c0_18] : memref<10x64xbf16, #tpu.memory_space<vmem>>, vector<3x64xbf16>
    tpu.vector_store %arg17[%c7_17, %c0_18], %12 {strides = array<i32>} : memref<10x64xbf16, #tpu.memory_space<vmem>>, vector<3x64xbf16>,
    %c0_19 = arith.constant 0 : index
    %c0_20 = arith.constant 0 : index
    %c0_21 = arith.constant 0 : index
    %15 = vector.load %arg1[%c0_19, %c0_20, %c0_21] : memref<1x256x9xf32, #tpu.memory_space<vmem>>, vector<1x256x9xf32>
    %16 = vector.shape_cast %15 : vector<1x256x9xf32> to vector<256x9xf32>
    %17 = arith.truncf %16 : vector<256x9xf32> to vector<256x9xbf16>
    %c17 = arith.constant 17 : index
    %c0_22 = arith.constant 0 : index
    %18 = vector.load %arg13[%c17, %c0_22] : memref<290x9xbf16, #tpu.memory_space<vmem>>, vector<256x9xbf16>
    tpu.vector_store %arg13[%c17, %c0_22], %17 {strides = array<i32>} : memref<290x9xbf16, #tpu.memory_space<vmem>>, vector<256x9xbf16>,
    %19 = tpu.iota {dimensions = array<i32: 0>} : vector<256x1xi32>
    %c16_i32 = arith.constant 16 : i32
    %c0_i32 = arith.constant 0 : i32
    %20 = arith.cmpi eq, %c16_i32, %c0_i32 : i32
    %c1_i32 = arith.constant 1 : i32
    %21 = arith.select %20, %c1_i32, %c16_i32 : i32
    %22 = vector.broadcast %21 : i32 to vector<256x1xi32>
    %23 = arith.remsi %19, %22 : vector<256x1xi32>
    %c0_i32_23 = arith.constant 0 : i32
    %24 = vector.broadcast %c0_i32_23 : i32 to vector<256x1xi32>
    %25 = arith.cmpi ne, %23, %24 : vector<256x1xi32>
    %c0_i32_24 = arith.constant 0 : i32
    %26 = vector.broadcast %c0_i32_24 : i32 to vector<256x1xi32>
    %27 = arith.cmpi slt, %23, %26 : vector<256x1xi32>
    %c0_i32_25 = arith.constant 0 : i32
    %28 = arith.cmpi slt, %21, %c0_i32_25 : i32
    %29 = vector.broadcast %28 : i1 to vector<256x1xi1>
    %30 = vector.broadcast %29 : vector<256x1xi1> to vector<256x1xi1>
    %31 = arith.xori %27, %30 : vector<256x1xi1>
    %32 = arith.andi %31, %25 : vector<256x1xi1>
    %33 = vector.broadcast %21 : i32 to vector<256x1xi32>
    %34 = arith.addi %23, %33 : vector<256x1xi32>
    %35 = arith.select %32, %34, %23 : vector<256x1xi1>, vector<256x1xi32>
    %c1 = arith.constant 1 : index
    %c0_26 = arith.constant 0 : index
    %36 = vector.load %arg13[%c1, %c0_26] : memref<290x9xbf16, #tpu.memory_space<vmem>>, vector<256x9xbf16>
    %c1_27 = arith.constant 1 : index
    %c0_28 = arith.constant 0 : index
    %c0_29 = arith.constant 0 : index
    %37 = vector.load %arg2[%c1_27, %c0_28, %c0_29] : memref<9x9x32xbf16, #tpu.memory_space<vmem>>, vector<1x9x32xbf16>
    %38 = vector.shape_cast %37 : vector<1x9x32xbf16> to vector<9x32xbf16>
    %cst_30 = arith.constant dense<0.000000e+00> : vector<256x32xf32>
    %39 = tpu.matmul %36, %38, %cst_30 {dimension_numbers = #tpu.dot_dimension_numbers<[1], [0], [0], [1], [0, 0, 1, 1], [], []>} : vector<256x9xbf16>, vector<9x32xbf16>, vector<256x32xf32> -> vector<256x32xf32>
    %c17_31 = arith.constant 17 : index
    %c0_32 = arith.constant 0 : index
    %40 = vector.load %arg13[%c17_31, %c0_32] : memref<290x9xbf16, #tpu.memory_space<vmem>>, vector<256x9xbf16>
    %c4 = arith.constant 4 : index
    %c0_33 = arith.constant 0 : index
    %c0_34 = arith.constant 0 : index
    %41 = vector.load %arg2[%c4, %c0_33, %c0_34] : memref<9x9x32xbf16, #tpu.memory_space<vmem>>, vector<1x9x32xbf16>
    %42 = vector.shape_cast %41 : vector<1x9x32xbf16> to vector<9x32xbf16>
    %cst_35 = arith.constant dense<0.000000e+00> : vector<256x32xf32>
    %43 = tpu.matmul %40, %42, %cst_35 {dimension_numbers = #tpu.dot_dimension_numbers<[1], [0], [0], [1], [0, 0, 1, 1], [], []>} : vector<256x9xbf16>, vector<9x32xbf16>, vector<256x32xf32> -> vector<256x32xf32>
    %44 = arith.addf %39, %43 : vector<256x32xf32>
    %c33 = arith.constant 33 : index
    %c0_36 = arith.constant 0 : index
    %45 = vector.load %arg13[%c33, %c0_36] : memref<290x9xbf16, #tpu.memory_space<vmem>>, vector<256x9xbf16>
    %c7_37 = arith.constant 7 : index
    %c0_38 = arith.constant 0 : index
    %c0_39 = arith.constant 0 : index
    %46 = vector.load %arg2[%c7_37, %c0_38, %c0_39] : memref<9x9x32xbf16, #tpu.memory_space<vmem>>, vector<1x9x32xbf16>
    %47 = vector.shape_cast %46 : vector<1x9x32xbf16> to vector<9x32xbf16>
    %cst_40 = arith.constant dense<0.000000e+00> : vector<256x32xf32>
    %48 = tpu.matmul %45, %47, %cst_40 {dimension_numbers = #tpu.dot_dimension_numbers<[1], [0], [0], [1], [0, 0, 1, 1], [], []>} : vector<256x9xbf16>, vector<9x32xbf16>, vector<256x32xf32> -> vector<256x32xf32>
    %49 = arith.addf %44, %48 : vector<256x32xf32>
    %c0_i32_41 = arith.constant 0 : i32
    %50 = vector.broadcast %c0_i32_41 : i32 to vector<256x1xi32>
    %51 = arith.cmpi ne, %35, %50 : vector<256x1xi32>
    %c0_42 = arith.constant 0 : index
    %c0_43 = arith.constant 0 : index
    %52 = vector.load %arg13[%c0_42, %c0_43] : memref<290x9xbf16, #tpu.memory_space<vmem>>, vector<256x9xbf16>
    %c0_44 = arith.constant 0 : index
    %c0_45 = arith.constant 0 : index
    %c0_46 = arith.constant 0 : index
    %53 = vector.load %arg2[%c0_44, %c0_45, %c0_46] : memref<9x9x32xbf16, #tpu.memory_space<vmem>>, vector<1x9x32xbf16>
    %54 = vector.shape_cast %53 : vector<1x9x32xbf16> to vector<9x32xbf16>
    %cst_47 = arith.constant dense<0.000000e+00> : vector<256x32xf32>
    %55 = tpu.matmul %52, %54, %cst_47 {dimension_numbers = #tpu.dot_dimension_numbers<[1], [0], [0], [1], [0, 0, 1, 1], [], []>} : vector<256x9xbf16>, vector<9x32xbf16>, vector<256x32xf32> -> vector<256x32xf32>
    %c16 = arith.constant 16 : index
    %c0_48 = arith.constant 0 : index
    %56 = vector.load %arg13[%c16, %c0_48] : memref<290x9xbf16, #tpu.memory_space<vmem>>, vector<256x9xbf16>
    %c3 = arith.constant 3 : index
    %c0_49 = arith.constant 0 : index
    %c0_50 = arith.constant 0 : index
    %57 = vector.load %arg2[%c3, %c0_49, %c0_50] : memref<9x9x32xbf16, #tpu.memory_space<vmem>>, vector<1x9x32xbf16>
    %58 = vector.shape_cast %57 : vector<1x9x32xbf16> to vector<9x32xbf16>
    %cst_51 = arith.constant dense<0.000000e+00> : vector<256x32xf32>
    %59 = tpu.matmul %56, %58, %cst_51 {dimension_numbers = #tpu.dot_dimension_numbers<[1], [0], [0], [1], [0, 0, 1, 1], [], []>} : vector<256x9xbf16>, vector<9x32xbf16>, vector<256x32xf32> -> vector<256x32xf32>
    %60 = arith.addf %55, %59 : vector<256x32xf32>
    %c32 = arith.constant 32 : index
    %c0_52 = arith.constant 0 : index
    %61 = vector.load %arg13[%c32, %c0_52] : memref<290x9xbf16, #tpu.memory_space<vmem>>, vector<256x9xbf16>
    %c6 = arith.constant 6 : index
    %c0_53 = arith.constant 0 : index
    %c0_54 = arith.constant 0 : index
    %62 = vector.load %arg2[%c6, %c0_53, %c0_54] : memref<9x9x32xbf16, #tpu.memory_space<vmem>>, vector<1x9x32xbf16>
    %63 = vector.shape_cast %62 : vector<1x9x32xbf16> to vector<9x32xbf16>
    %cst_55 = arith.constant dense<0.000000e+00> : vector<256x32xf32>
    %64 = tpu.matmul %61, %63, %cst_55 {dimension_numbers = #tpu.dot_dimension_numbers<[1], [0], [0], [1], [0, 0, 1, 1], [], []>} : vector<256x9xbf16>, vector<9x32xbf16>, vector<256x32xf32> -> vector<256x32xf32>
    %65 = arith.addf %60, %64 : vector<256x32xf32>
    %cst_56 = arith.constant 0.000000e+00 : f32
    %66 = vector.shape_cast %51 : vector<256x1xi1> to vector<256x1xi1>
    %67 = vector.broadcast %66 : vector<256x1xi1> to vector<256x32xi1>
    %68 = vector.broadcast %cst_56 : f32 to vector<256x32xf32>
    %69 = arith.select %67, %65, %68 : vector<256x32xi1>, vector<256x32xf32>
    %70 = arith.addf %49, %69 : vector<256x32xf32>
    %c15_i32 = arith.constant 15 : i32
    %71 = vector.broadcast %c15_i32 : i32 to vector<256x1xi32>
    %72 = arith.cmpi ne, %35, %71 : vector<256x1xi32>
    %c2 = arith.constant 2 : index
    %c0_57 = arith.constant 0 : index
    %73 = vector.load %arg13[%c2, %c0_57] : memref<290x9xbf16, #tpu.memory_space<vmem>>, vector<256x9xbf16>
    %c2_58 = arith.constant 2 : index
    %c0_59 = arith.constant 0 : index
    %c0_60 = arith.constant 0 : index
    %74 = vector.load %arg2[%c2_58, %c0_59, %c0_60] : memref<9x9x32xbf16, #tpu.memory_space<vmem>>, vector<1x9x32xbf16>
    %75 = vector.shape_cast %74 : vector<1x9x32xbf16> to vector<9x32xbf16>
    %cst_61 = arith.constant dense<0.000000e+00> : vector<256x32xf32>
    %76 = tpu.matmul %73, %75, %cst_61 {dimension_numbers = #tpu.dot_dimension_numbers<[1], [0], [0], [1], [0, 0, 1, 1], [], []>} : vector<256x9xbf16>, vector<9x32xbf16>, vector<256x32xf32> -> vector<256x32xf32>
    %c18 = arith.constant 18 : index
    %c0_62 = arith.constant 0 : index
    %77 = vector.load %arg13[%c18, %c0_62] : memref<290x9xbf16, #tpu.memory_space<vmem>>, vector<256x9xbf16>
    %c5 = arith.constant 5 : index
    %c0_63 = arith.constant 0 : index
    %c0_64 = arith.constant 0 : index
    %78 = vector.load %arg2[%c5, %c0_63, %c0_64] : memref<9x9x32xbf16, #tpu.memory_space<vmem>>, vector<1x9x32xbf16>
    %79 = vector.shape_cast %78 : vector<1x9x32xbf16> to vector<9x32xbf16>
    %cst_65 = arith.constant dense<0.000000e+00> : vector<256x32xf32>
    %80 = tpu.matmul %77, %79, %cst_65 {dimension_numbers = #tpu.dot_dimension_numbers<[1], [0], [0], [1], [0, 0, 1, 1], [], []>} : vector<256x9xbf16>, vector<9x32xbf16>, vector<256x32xf32> -> vector<256x32xf32>
    %81 = arith.addf %76, %80 : vector<256x32xf32>
    %c34 = arith.constant 34 : index
    %c0_66 = arith.constant 0 : index
    %82 = vector.load %arg13[%c34, %c0_66] : memref<290x9xbf16, #tpu.memory_space<vmem>>, vector<256x9xbf16>
    %c8 = arith.constant 8 : index
    %c0_67 = arith.constant 0 : index
    %c0_68 = arith.constant 0 : index
    %83 = vector.load %arg2[%c8, %c0_67, %c0_68] : memref<9x9x32xbf16, #tpu.memory_space<vmem>>, vector<1x9x32xbf16>
    %84 = vector.shape_cast %83 : vector<1x9x32xbf16> to vector<9x32xbf16>
    %cst_69 = arith.constant dense<0.000000e+00> : vector<256x32xf32>
    %85 = tpu.matmul %82, %84, %cst_69 {dimension_numbers = #tpu.dot_dimension_numbers<[1], [0], [0], [1], [0, 0, 1, 1], [], []>} : vector<256x9xbf16>, vector<9x32xbf16>, vector<256x32xf32> -> vector<256x32xf32>
    %86 = arith.addf %81, %85 : vector<256x32xf32>
    %cst_70 = arith.constant 0.000000e+00 : f32
    %87 = vector.shape_cast %72 : vector<256x1xi1> to vector<256x1xi1>
    %88 = vector.broadcast %87 : vector<256x1xi1> to vector<256x32xi1>
    %89 = vector.broadcast %cst_70 : f32 to vector<256x32xf32>
    %90 = arith.select %88, %86, %89 : vector<256x32xi1>, vector<256x32xf32>
    %91 = arith.addf %70, %90 : vector<256x32xf32>
    %c0_71 = arith.constant 0 : index
    %c0_72 = arith.constant 0 : index
    %92 = vector.load %arg3[%c0_71, %c0_72] : memref<1x32xf32, #tpu.memory_space<vmem>>, vector<1x32xf32>
    %93 = vector.broadcast %92 : vector<1x32xf32> to vector<256x32xf32>
    %94 = arith.addf %91, %93 : vector<256x32xf32>
    %cst_73 = arith.constant 0.000000e+00 : f32
    %95 = vector.broadcast %cst_73 : f32 to vector<256x32xf32>
    %96 = arith.maximumf %94, %95 : vector<256x32xf32>
    %c0_74 = arith.constant 0 : index
    %c0_75 = arith.constant 0 : index
    %97 = vector.load %arg18[%c0_74, %c0_75] : memref<256x32xf32, #tpu.memory_space<vmem>>, vector<256x32xf32>
    tpu.vector_store %arg18[%c0_74, %c0_75], %96 {strides = array<i32>} : memref<256x32xf32, #tpu.memory_space<vmem>>, vector<256x32xf32>,
    %c0_76 = arith.constant 0 : index
    %c0_77 = arith.constant 0 : index
    %98 = tpu.strided_load %arg18[%c0_76, %c0_77] {strides = array<i32: 2, 1>} : memref<256x32xf32, #tpu.memory_space<vmem>>, vector<128x32xf32>
    %c1_78 = arith.constant 1 : index
    %c0_79 = arith.constant 0 : index
    %99 = tpu.strided_load %arg18[%c1_78, %c0_79] {strides = array<i32: 2, 1>} : memref<256x32xf32, #tpu.memory_space<vmem>>, vector<128x32xf32>
    %100 = arith.maximumf %98, %99 : vector<128x32xf32>
    %101 = vector.extract_strided_slice %100 {offsets = [0, 0], sizes = [120, 32], strides = [1, 1]} : vector<128x32xf32> to vector<120x32xf32>
    %102 = vector.extract_strided_slice %100 {offsets = [8, 0], sizes = [120, 32], strides = [1, 1]} : vector<128x32xf32> to vector<120x32xf32>
    %103 = arith.maximumf %101, %102 : vector<120x32xf32>
    %104 = vector.extract_strided_slice %103 {offsets = [0, 0], sizes = [8, 32], strides = [1, 1]} : vector<120x32xf32> to vector<8x32xf32>
    %105 = arith.truncf %104 : vector<8x32xf32> to vector<8x32xbf16>
    %c9 = arith.constant 9 : index
    %c0_80 = arith.constant 0 : index
    %106 = vector.load %arg14[%c9, %c0_80] : memref<82x32xbf16, #tpu.memory_space<vmem>>, vector<8x32xbf16>
    tpu.vector_store %arg14[%c9, %c0_80], %105 {strides = array<i32>} : memref<82x32xbf16, #tpu.memory_space<vmem>>, vector<8x32xbf16>,
    %107 = vector.extract_strided_slice %103 {offsets = [16, 0], sizes = [8, 32], strides = [1, 1]} : vector<120x32xf32> to vector<8x32xf32>
    %108 = arith.truncf %107 : vector<8x32xf32> to vector<8x32xbf16>
    %c17_81 = arith.constant 17 : index
    %c0_82 = arith.constant 0 : index
    %109 = vector.load %arg14[%c17_81, %c0_82] : memref<82x32xbf16, #tpu.memory_space<vmem>>, vector<8x32xbf16>
    tpu.vector_store %arg14[%c17_81, %c0_82], %108 {strides = array<i32>} : memref<82x32xbf16, #tpu.memory_space<vmem>>, vector<8x32xbf16>,
    %110 = vector.extract_strided_slice %103 {offsets = [32, 0], sizes = [8, 32], strides = [1, 1]} : vector<120x32xf32> to vector<8x32xf32>
    %111 = arith.truncf %110 : vector<8x32xf32> to vector<8x32xbf16>
    %c25 = arith.constant 25 : index
    %c0_83 = arith.constant 0 : index
    %112 = vector.load %arg14[%c25, %c0_83] : memref<82x32xbf16, #tpu.memory_space<vmem>>, vector<8x32xbf16>
    tpu.vector_store %arg14[%c25, %c0_83], %111 {strides = array<i32>} : memref<82x32xbf16, #tpu.memory_space<vmem>>, vector<8x32xbf16>,
    %113 = vector.extract_strided_slice %103 {offsets = [48, 0], sizes = [8, 32], strides = [1, 1]} : vector<120x32xf32> to vector<8x32xf32>
    %114 = arith.truncf %113 : vector<8x32xf32> to vector<8x32xbf16>
    %c33_84 = arith.constant 33 : index
    %c0_85 = arith.constant 0 : index
    %115 = vector.load %arg14[%c33_84, %c0_85] : memref<82x32xbf16, #tpu.memory_space<vmem>>, vector<8x32xbf16>
    tpu.vector_store %arg14[%c33_84, %c0_85], %114 {strides = array<i32>} : memref<82x32xbf16, #tpu.memory_space<vmem>>, vector<8x32xbf16>,
    %116 = vector.extract_strided_slice %103 {offsets = [64, 0], sizes = [8, 32], strides = [1, 1]} : vector<120x32xf32> to vector<8x32xf32>
    %117 = arith.truncf %116 : vector<8x32xf32> to vector<8x32xbf16>
    %c41 = arith.constant 41 : index
    %c0_86 = arith.constant 0 : index
    %118 = vector.load %arg14[%c41, %c0_86] : memref<82x32xbf16, #tpu.memory_space<vmem>>, vector<8x32xbf16>
    tpu.vector_store %arg14[%c41, %c0_86], %117 {strides = array<i32>} : memref<82x32xbf16, #tpu.memory_space<vmem>>, vector<8x32xbf16>,
    %119 = vector.extract_strided_slice %103 {offsets = [80, 0], sizes = [8, 32], strides = [1, 1]} : vector<120x32xf32> to vector<8x32xf32>
    %120 = arith.truncf %119 : vector<8x32xf32> to vector<8x32xbf16>
    %c49 = arith.constant 49 : index
    %c0_87 = arith.constant 0 : index
    %121 = vector.load %arg14[%c49, %c0_87] : memref<82x32xbf16, #tpu.memory_space<vmem>>, vector<8x32xbf16>
    tpu.vector_store %arg14[%c49, %c0_87], %120 {strides = array<i32>} : memref<82x32xbf16, #tpu.memory_space<vmem>>, vector<8x32xbf16>,
    %122 = vector.extract_strided_slice %103 {offsets = [96, 0], sizes = [8, 32], strides = [1, 1]} : vector<120x32xf32> to vector<8x32xf32>
    %123 = arith.truncf %122 : vector<8x32xf32> to vector<8x32xbf16>
    %c57 = arith.constant 57 : index
    %c0_88 = arith.constant 0 : index
    %124 = vector.load %arg14[%c57, %c0_88] : memref<82x32xbf16, #tpu.memory_space<vmem>>, vector<8x32xbf16>
    tpu.vector_store %arg14[%c57, %c0_88], %123 {strides = array<i32>} : memref<82x32xbf16, #tpu.memory_space<vmem>>, vector<8x32xbf16>,
    %125 = vector.extract_strided_slice %103 {offsets = [112, 0], sizes = [8, 32], strides = [1, 1]} : vector<120x32xf32> to vector<8x32xf32>
    %126 = arith.truncf %125 : vector<8x32xf32> to vector<8x32xbf16>
    %c65 = arith.constant 65 : index
    %c0_89 = arith.constant 0 : index
    %127 = vector.load %arg14[%c65, %c0_89] : memref<82x32xbf16, #tpu.memory_space<vmem>>, vector<8x32xbf16>
    tpu.vector_store %arg14[%c65, %c0_89], %126 {strides = array<i32>} : memref<82x32xbf16, #tpu.memory_space<vmem>>, vector<8x32xbf16>,
    %128 = tpu.iota {dimensions = array<i32: 0>} : vector<64x1xi32>
    %c8_i32 = arith.constant 8 : i32
    %c0_i32_90 = arith.constant 0 : i32
    %129 = arith.cmpi eq, %c8_i32, %c0_i32_90 : i32
    %c1_i32_91 = arith.constant 1 : i32
    %130 = arith.select %129, %c1_i32_91, %c8_i32 : i32
    %131 = vector.broadcast %130 : i32 to vector<64x1xi32>
    %132 = arith.remsi %128, %131 : vector<64x1xi32>
    %c0_i32_92 = arith.constant 0 : i32
    %133 = vector.broadcast %c0_i32_92 : i32 to vector<64x1xi32>
    %134 = arith.cmpi ne, %132, %133 : vector<64x1xi32>
    %c0_i32_93 = arith.constant 0 : i32
    %135 = vector.broadcast %c0_i32_93 : i32 to vector<64x1xi32>
    %136 = arith.cmpi slt, %132, %135 : vector<64x1xi32>
    %c0_i32_94 = arith.constant 0 : i32
    %137 = arith.cmpi slt, %130, %c0_i32_94 : i32
    %138 = vector.broadcast %137 : i1 to vector<64x1xi1>
    %139 = vector.broadcast %138 : vector<64x1xi1> to vector<64x1xi1>
    %140 = arith.xori %136, %139 : vector<64x1xi1>
    %141 = arith.andi %140, %134 : vector<64x1xi1>
    %142 = vector.broadcast %130 : i32 to vector<64x1xi32>
    %143 = arith.addi %132, %142 : vector<64x1xi32>
    %144 = arith.select %141, %143, %132 : vector<64x1xi1>, vector<64x1xi32>
    %c1_95 = arith.constant 1 : index
    %c0_96 = arith.constant 0 : index
    %145 = vector.load %arg14[%c1_95, %c0_96] : memref<82x32xbf16, #tpu.memory_space<vmem>>, vector<64x32xbf16>
    %c1_97 = arith.constant 1 : index
    %c0_98 = arith.constant 0 : index
    %c0_99 = arith.constant 0 : index
    %146 = vector.load %arg4[%c1_97, %c0_98, %c0_99] : memref<9x32x64xbf16, #tpu.memory_space<vmem>>, vector<1x32x64xbf16>
    %147 = vector.shape_cast %146 : vector<1x32x64xbf16> to vector<32x64xbf16>
    %cst_100 = arith.constant dense<0.000000e+00> : vector<64x64xf32>
    %148 = tpu.matmul %145, %147, %cst_100 {dimension_numbers = #tpu.dot_dimension_numbers<[1], [0], [0], [1], [0, 0, 1, 1], [], []>} : vector<64x32xbf16>, vector<32x64xbf16>, vector<64x64xf32> -> vector<64x64xf32>
    %c9_101 = arith.constant 9 : index
    %c0_102 = arith.constant 0 : index
    %149 = vector.load %arg14[%c9_101, %c0_102] : memref<82x32xbf16, #tpu.memory_space<vmem>>, vector<64x32xbf16>
    %c4_103 = arith.constant 4 : index
    %c0_104 = arith.constant 0 : index
    %c0_105 = arith.constant 0 : index
    %150 = vector.load %arg4[%c4_103, %c0_104, %c0_105] : memref<9x32x64xbf16, #tpu.memory_space<vmem>>, vector<1x32x64xbf16>
    %151 = vector.shape_cast %150 : vector<1x32x64xbf16> to vector<32x64xbf16>
    %cst_106 = arith.constant dense<0.000000e+00> : vector<64x64xf32>
    %152 = tpu.matmul %149, %151, %cst_106 {dimension_numbers = #tpu.dot_dimension_numbers<[1], [0], [0], [1], [0, 0, 1, 1], [], []>} : vector<64x32xbf16>, vector<32x64xbf16>, vector<64x64xf32> -> vector<64x64xf32>
    %153 = arith.addf %148, %152 : vector<64x64xf32>
    %c17_107 = arith.constant 17 : index
    %c0_108 = arith.constant 0 : index
    %154 = vector.load %arg14[%c17_107, %c0_108] : memref<82x32xbf16, #tpu.memory_space<vmem>>, vector<64x32xbf16>
    %c7_109 = arith.constant 7 : index
    %c0_110 = arith.constant 0 : index
    %c0_111 = arith.constant 0 : index
    %155 = vector.load %arg4[%c7_109, %c0_110, %c0_111] : memref<9x32x64xbf16, #tpu.memory_space<vmem>>, vector<1x32x64xbf16>
    %156 = vector.shape_cast %155 : vector<1x32x64xbf16> to vector<32x64xbf16>
    %cst_112 = arith.constant dense<0.000000e+00> : vector<64x64xf32>
    %157 = tpu.matmul %154, %156, %cst_112 {dimension_numbers = #tpu.dot_dimension_numbers<[1], [0], [0], [1], [0, 0, 1, 1], [], []>} : vector<64x32xbf16>, vector<32x64xbf16>, vector<64x64xf32> -> vector<64x64xf32>
    %158 = arith.addf %153, %157 : vector<64x64xf32>
    %c0_i32_113 = arith.constant 0 : i32
    %159 = vector.broadcast %c0_i32_113 : i32 to vector<64x1xi32>
    %160 = arith.cmpi ne, %144, %159 : vector<64x1xi32>
    %c0_114 = arith.constant 0 : index
    %c0_115 = arith.constant 0 : index
    %161 = vector.load %arg14[%c0_114, %c0_115] : memref<82x32xbf16, #tpu.memory_space<vmem>>, vector<64x32xbf16>
    %c0_116 = arith.constant 0 : index
    %c0_117 = arith.constant 0 : index
    %c0_118 = arith.constant 0 : index
    %162 = vector.load %arg4[%c0_116, %c0_117, %c0_118] : memref<9x32x64xbf16, #tpu.memory_space<vmem>>, vector<1x32x64xbf16>
    %163 = vector.shape_cast %162 : vector<1x32x64xbf16> to vector<32x64xbf16>
    %cst_119 = arith.constant dense<0.000000e+00> : vector<64x64xf32>
    %164 = tpu.matmul %161, %163, %cst_119 {dimension_numbers = #tpu.dot_dimension_numbers<[1], [0], [0], [1], [0, 0, 1, 1], [], []>} : vector<64x32xbf16>, vector<32x64xbf16>, vector<64x64xf32> -> vector<64x64xf32>
    %c8_120 = arith.constant 8 : index
    %c0_121 = arith.constant 0 : index
    %165 = vector.load %arg14[%c8_120, %c0_121] : memref<82x32xbf16, #tpu.memory_space<vmem>>, vector<64x32xbf16>
    %c3_122 = arith.constant 3 : index
    %c0_123 = arith.constant 0 : index
    %c0_124 = arith.constant 0 : index
    %166 = vector.load %arg4[%c3_122, %c0_123, %c0_124] : memref<9x32x64xbf16, #tpu.memory_space<vmem>>, vector<1x32x64xbf16>
    %167 = vector.shape_cast %166 : vector<1x32x64xbf16> to vector<32x64xbf16>
    %cst_125 = arith.constant dense<0.000000e+00> : vector<64x64xf32>
    %168 = tpu.matmul %165, %167, %cst_125 {dimension_numbers = #tpu.dot_dimension_numbers<[1], [0], [0], [1], [0, 0, 1, 1], [], []>} : vector<64x32xbf16>, vector<32x64xbf16>, vector<64x64xf32> -> vector<64x64xf32>
    %169 = arith.addf %164, %168 : vector<64x64xf32>
    %c16_126 = arith.constant 16 : index
    %c0_127 = arith.constant 0 : index
    %170 = vector.load %arg14[%c16_126, %c0_127] : memref<82x32xbf16, #tpu.memory_space<vmem>>, vector<64x32xbf16>
    %c6_128 = arith.constant 6 : index
    %c0_129 = arith.constant 0 : index
    %c0_130 = arith.constant 0 : index
    %171 = vector.load %arg4[%c6_128, %c0_129, %c0_130] : memref<9x32x64xbf16, #tpu.memory_space<vmem>>, vector<1x32x64xbf16>
    %172 = vector.shape_cast %171 : vector<1x32x64xbf16> to vector<32x64xbf16>
    %cst_131 = arith.constant dense<0.000000e+00> : vector<64x64xf32>
    %173 = tpu.matmul %170, %172, %cst_131 {dimension_numbers = #tpu.dot_dimension_numbers<[1], [0], [0], [1], [0, 0, 1, 1], [], []>} : vector<64x32xbf16>, vector<32x64xbf16>, vector<64x64xf32> -> vector<64x64xf32>
    %174 = arith.addf %169, %173 : vector<64x64xf32>
    %cst_132 = arith.constant 0.000000e+00 : f32
    %175 = vector.shape_cast %160 : vector<64x1xi1> to vector<64x1xi1>
    %176 = vector.broadcast %175 : vector<64x1xi1> to vector<64x64xi1>
    %177 = vector.broadcast %cst_132 : f32 to vector<64x64xf32>
    %178 = arith.select %176, %174, %177 : vector<64x64xi1>, vector<64x64xf32>
    %179 = arith.addf %158, %178 : vector<64x64xf32>
    %c7_i32 = arith.constant 7 : i32
    %180 = vector.broadcast %c7_i32 : i32 to vector<64x1xi32>
    %181 = arith.cmpi ne, %144, %180 : vector<64x1xi32>
    %c2_133 = arith.constant 2 : index
    %c0_134 = arith.constant 0 : index
    %182 = vector.load %arg14[%c2_133, %c0_134] : memref<82x32xbf16, #tpu.memory_space<vmem>>, vector<64x32xbf16>
    %c2_135 = arith.constant 2 : index
    %c0_136 = arith.constant 0 : index
    %c0_137 = arith.constant 0 : index
    %183 = vector.load %arg4[%c2_135, %c0_136, %c0_137] : memref<9x32x64xbf16, #tpu.memory_space<vmem>>, vector<1x32x64xbf16>
    %184 = vector.shape_cast %183 : vector<1x32x64xbf16> to vector<32x64xbf16>
    %cst_138 = arith.constant dense<0.000000e+00> : vector<64x64xf32>
    %185 = tpu.matmul %182, %184, %cst_138 {dimension_numbers = #tpu.dot_dimension_numbers<[1], [0], [0], [1], [0, 0, 1, 1], [], []>} : vector<64x32xbf16>, vector<32x64xbf16>, vector<64x64xf32> -> vector<64x64xf32>
    %c10 = arith.constant 10 : index
    %c0_139 = arith.constant 0 : index
    %186 = vector.load %arg14[%c10, %c0_139] : memref<82x32xbf16, #tpu.memory_space<vmem>>, vector<64x32xbf16>
    %c5_140 = arith.constant 5 : index
    %c0_141 = arith.constant 0 : index
    %c0_142 = arith.constant 0 : index
    %187 = vector.load %arg4[%c5_140, %c0_141, %c0_142] : memref<9x32x64xbf16, #tpu.memory_space<vmem>>, vector<1x32x64xbf16>
    %188 = vector.shape_cast %187 : vector<1x32x64xbf16> to vector<32x64xbf16>
    %cst_143 = arith.constant dense<0.000000e+00> : vector<64x64xf32>
    %189 = tpu.matmul %186, %188, %cst_143 {dimension_numbers = #tpu.dot_dimension_numbers<[1], [0], [0], [1], [0, 0, 1, 1], [], []>} : vector<64x32xbf16>, vector<32x64xbf16>, vector<64x64xf32> -> vector<64x64xf32>
    %190 = arith.addf %185, %189 : vector<64x64xf32>
    %c18_144 = arith.constant 18 : index
    %c0_145 = arith.constant 0 : index
    %191 = vector.load %arg14[%c18_144, %c0_145] : memref<82x32xbf16, #tpu.memory_space<vmem>>, vector<64x32xbf16>
    %c8_146 = arith.constant 8 : index
    %c0_147 = arith.constant 0 : index
    %c0_148 = arith.constant 0 : index
    %192 = vector.load %arg4[%c8_146, %c0_147, %c0_148] : memref<9x32x64xbf16, #tpu.memory_space<vmem>>, vector<1x32x64xbf16>
    %193 = vector.shape_cast %192 : vector<1x32x64xbf16> to vector<32x64xbf16>
    %cst_149 = arith.constant dense<0.000000e+00> : vector<64x64xf32>
    %194 = tpu.matmul %191, %193, %cst_149 {dimension_numbers = #tpu.dot_dimension_numbers<[1], [0], [0], [1], [0, 0, 1, 1], [], []>} : vector<64x32xbf16>, vector<32x64xbf16>, vector<64x64xf32> -> vector<64x64xf32>
    %195 = arith.addf %190, %194 : vector<64x64xf32>
    %cst_150 = arith.constant 0.000000e+00 : f32
    %196 = vector.shape_cast %181 : vector<64x1xi1> to vector<64x1xi1>
    %197 = vector.broadcast %196 : vector<64x1xi1> to vector<64x64xi1>
    %198 = vector.broadcast %cst_150 : f32 to vector<64x64xf32>
    %199 = arith.select %197, %195, %198 : vector<64x64xi1>, vector<64x64xf32>
    %200 = arith.addf %179, %199 : vector<64x64xf32>
    %c0_151 = arith.constant 0 : index
    %c0_152 = arith.constant 0 : index
    %201 = vector.load %arg5[%c0_151, %c0_152] : memref<1x64xf32, #tpu.memory_space<vmem>>, vector<1x64xf32>
    %202 = vector.broadcast %201 : vector<1x64xf32> to vector<64x64xf32>
    %203 = arith.addf %200, %202 : vector<64x64xf32>
    %cst_153 = arith.constant 0.000000e+00 : f32
    %204 = vector.broadcast %cst_153 : f32 to vector<64x64xf32>
    %205 = arith.maximumf %203, %204 : vector<64x64xf32>
    %c0_154 = arith.constant 0 : index
    %c0_155 = arith.constant 0 : index
    %206 = vector.load %arg19[%c0_154, %c0_155] : memref<64x64xf32, #tpu.memory_space<vmem>>, vector<64x64xf32>
    tpu.vector_store %arg19[%c0_154, %c0_155], %205 {strides = array<i32>} : memref<64x64xf32, #tpu.memory_space<vmem>>, vector<64x64xf32>,
    %c0_156 = arith.constant 0 : index
    %c0_157 = arith.constant 0 : index
    %207 = tpu.strided_load %arg19[%c0_156, %c0_157] {strides = array<i32: 2, 1>} : memref<64x64xf32, #tpu.memory_space<vmem>>, vector<32x64xf32>
    %c1_158 = arith.constant 1 : index
    %c0_159 = arith.constant 0 : index
    %208 = tpu.strided_load %arg19[%c1_158, %c0_159] {strides = array<i32: 2, 1>} : memref<64x64xf32, #tpu.memory_space<vmem>>, vector<32x64xf32>
    %209 = arith.maximumf %207, %208 : vector<32x64xf32>
    %210 = vector.extract_strided_slice %209 {offsets = [0, 0], sizes = [28, 64], strides = [1, 1]} : vector<32x64xf32> to vector<28x64xf32>
    %211 = vector.extract_strided_slice %209 {offsets = [4, 0], sizes = [28, 64], strides = [1, 1]} : vector<32x64xf32> to vector<28x64xf32>
    %212 = arith.maximumf %210, %211 : vector<28x64xf32>
    %213 = vector.extract_strided_slice %212 {offsets = [0, 0], sizes = [4, 64], strides = [1, 1]} : vector<28x64xf32> to vector<4x64xf32>
    %214 = arith.truncf %213 : vector<4x64xf32> to vector<4x64xbf16>
    %c5_160 = arith.constant 5 : index
    %c0_161 = arith.constant 0 : index
    %215 = vector.load %arg15[%c5_160, %c0_161] : memref<26x64xbf16, #tpu.memory_space<vmem>>, vector<4x64xbf16>
    tpu.vector_store %arg15[%c5_160, %c0_161], %214 {strides = array<i32>} : memref<26x64xbf16, #tpu.memory_space<vmem>>, vector<4x64xbf16>,
    %216 = vector.extract_strided_slice %212 {offsets = [8, 0], sizes = [4, 64], strides = [1, 1]} : vector<28x64xf32> to vector<4x64xf32>
    %217 = arith.truncf %216 : vector<4x64xf32> to vector<4x64xbf16>
    %c9_162 = arith.constant 9 : index
    %c0_163 = arith.constant 0 : index
    %218 = vector.load %arg15[%c9_162, %c0_163] : memref<26x64xbf16, #tpu.memory_space<vmem>>, vector<4x64xbf16>
    tpu.vector_store %arg15[%c9_162, %c0_163], %217 {strides = array<i32>} : memref<26x64xbf16, #tpu.memory_space<vmem>>, vector<4x64xbf16>,
    %219 = vector.extract_strided_slice %212 {offsets = [16, 0], sizes = [4, 64], strides = [1, 1]} : vector<28x64xf32> to vector<4x64xf32>
    %220 = arith.truncf %219 : vector<4x64xf32> to vector<4x64xbf16>
    %c13 = arith.constant 13 : index
    %c0_164 = arith.constant 0 : index
    %221 = vector.load %arg15[%c13, %c0_164] : memref<26x64xbf16, #tpu.memory_space<vmem>>, vector<4x64xbf16>
    tpu.vector_store %arg15[%c13, %c0_164], %220 {strides = array<i32>} : memref<26x64xbf16, #tpu.memory_space<vmem>>, vector<4x64xbf16>,
    %222 = vector.extract_strided_slice %212 {offsets = [24, 0], sizes = [4, 64], strides = [1, 1]} : vector<28x64xf32> to vector<4x64xf32>
    %223 = arith.truncf %222 : vector<4x64xf32> to vector<4x64xbf16>
    %c17_165 = arith.constant 17 : index
    %c0_166 = arith.constant 0 : index
    %224 = vector.load %arg15[%c17_165, %c0_166] : memref<26x64xbf16, #tpu.memory_space<vmem>>, vector<4x64xbf16>
    tpu.vector_store %arg15[%c17_165, %c0_166], %223 {strides = array<i32>} : memref<26x64xbf16, #tpu.memory_space<vmem>>, vector<4x64xbf16>,
    %225 = tpu.iota {dimensions = array<i32: 0>} : vector<16x1xi32>
    %c4_i32 = arith.constant 4 : i32
    %c0_i32_167 = arith.constant 0 : i32
    %226 = arith.cmpi eq, %c4_i32, %c0_i32_167 : i32
    %c1_i32_168 = arith.constant 1 : i32
    %227 = arith.select %226, %c1_i32_168, %c4_i32 : i32
    %228 = vector.broadcast %227 : i32 to vector<16x1xi32>
    %229 = arith.remsi %225, %228 : vector<16x1xi32>
    %c0_i32_169 = arith.constant 0 : i32
    %230 = vector.broadcast %c0_i32_169 : i32 to vector<16x1xi32>
    %231 = arith.cmpi ne, %229, %230 : vector<16x1xi32>
    %c0_i32_170 = arith.constant 0 : i32
    %232 = vector.broadcast %c0_i32_170 : i32 to vector<16x1xi32>
    %233 = arith.cmpi slt, %229, %232 : vector<16x1xi32>
    %c0_i32_171 = arith.constant 0 : i32
    %234 = arith.cmpi slt, %227, %c0_i32_171 : i32
    %235 = vector.broadcast %234 : i1 to vector<16x1xi1>
    %236 = vector.broadcast %235 : vector<16x1xi1> to vector<16x1xi1>
    %237 = arith.xori %233, %236 : vector<16x1xi1>
    %238 = arith.andi %237, %231 : vector<16x1xi1>
    %239 = vector.broadcast %227 : i32 to vector<16x1xi32>
    %240 = arith.addi %229, %239 : vector<16x1xi32>
    %241 = arith.select %238, %240, %229 : vector<16x1xi1>, vector<16x1xi32>
    %c1_172 = arith.constant 1 : index
    %c0_173 = arith.constant 0 : index
    %242 = vector.load %arg15[%c1_172, %c0_173] : memref<26x64xbf16, #tpu.memory_space<vmem>>, vector<16x64xbf16>
    %c1_174 = arith.constant 1 : index
    %c0_175 = arith.constant 0 : index
    %c0_176 = arith.constant 0 : index
    %243 = vector.load %arg6[%c1_174, %c0_175, %c0_176] : memref<9x64x128xbf16, #tpu.memory_space<vmem>>, vector<1x64x128xbf16>
    %244 = vector.shape_cast %243 : vector<1x64x128xbf16> to vector<64x128xbf16>
    %cst_177 = arith.constant dense<0.000000e+00> : vector<16x128xf32>
    %245 = tpu.matmul %242, %244, %cst_177 {dimension_numbers = #tpu.dot_dimension_numbers<[1], [0], [0], [1], [0, 0, 1, 1], [], []>} : vector<16x64xbf16>, vector<64x128xbf16>, vector<16x128xf32> -> vector<16x128xf32>
    %c5_178 = arith.constant 5 : index
    %c0_179 = arith.constant 0 : index
    %246 = vector.load %arg15[%c5_178, %c0_179] : memref<26x64xbf16, #tpu.memory_space<vmem>>, vector<16x64xbf16>
    %c4_180 = arith.constant 4 : index
    %c0_181 = arith.constant 0 : index
    %c0_182 = arith.constant 0 : index
    %247 = vector.load %arg6[%c4_180, %c0_181, %c0_182] : memref<9x64x128xbf16, #tpu.memory_space<vmem>>, vector<1x64x128xbf16>
    %248 = vector.shape_cast %247 : vector<1x64x128xbf16> to vector<64x128xbf16>
    %cst_183 = arith.constant dense<0.000000e+00> : vector<16x128xf32>
    %249 = tpu.matmul %246, %248, %cst_183 {dimension_numbers = #tpu.dot_dimension_numbers<[1], [0], [0], [1], [0, 0, 1, 1], [], []>} : vector<16x64xbf16>, vector<64x128xbf16>, vector<16x128xf32> -> vector<16x128xf32>
    %250 = arith.addf %245, %249 : vector<16x128xf32>
    %c9_184 = arith.constant 9 : index
    %c0_185 = arith.constant 0 : index
    %251 = vector.load %arg15[%c9_184, %c0_185] : memref<26x64xbf16, #tpu.memory_space<vmem>>, vector<16x64xbf16>
    %c7_186 = arith.constant 7 : index
    %c0_187 = arith.constant 0 : index
    %c0_188 = arith.constant 0 : index
    %252 = vector.load %arg6[%c7_186, %c0_187, %c0_188] : memref<9x64x128xbf16, #tpu.memory_space<vmem>>, vector<1x64x128xbf16>
    %253 = vector.shape_cast %252 : vector<1x64x128xbf16> to vector<64x128xbf16>
    %cst_189 = arith.constant dense<0.000000e+00> : vector<16x128xf32>
    %254 = tpu.matmul %251, %253, %cst_189 {dimension_numbers = #tpu.dot_dimension_numbers<[1], [0], [0], [1], [0, 0, 1, 1], [], []>} : vector<16x64xbf16>, vector<64x128xbf16>, vector<16x128xf32> -> vector<16x128xf32>
    %255 = arith.addf %250, %254 : vector<16x128xf32>
    %c0_i32_190 = arith.constant 0 : i32
    %256 = vector.broadcast %c0_i32_190 : i32 to vector<16x1xi32>
    %257 = arith.cmpi ne, %241, %256 : vector<16x1xi32>
    %c0_191 = arith.constant 0 : index
    %c0_192 = arith.constant 0 : index
    %258 = vector.load %arg15[%c0_191, %c0_192] : memref<26x64xbf16, #tpu.memory_space<vmem>>, vector<16x64xbf16>
    %c0_193 = arith.constant 0 : index
    %c0_194 = arith.constant 0 : index
    %c0_195 = arith.constant 0 : index
    %259 = vector.load %arg6[%c0_193, %c0_194, %c0_195] : memref<9x64x128xbf16, #tpu.memory_space<vmem>>, vector<1x64x128xbf16>
    %260 = vector.shape_cast %259 : vector<1x64x128xbf16> to vector<64x128xbf16>
    %cst_196 = arith.constant dense<0.000000e+00> : vector<16x128xf32>
    %261 = tpu.matmul %258, %260, %cst_196 {dimension_numbers = #tpu.dot_dimension_numbers<[1], [0], [0], [1], [0, 0, 1, 1], [], []>} : vector<16x64xbf16>, vector<64x128xbf16>, vector<16x128xf32> -> vector<16x128xf32>
    %c4_197 = arith.constant 4 : index
    %c0_198 = arith.constant 0 : index
    %262 = vector.load %arg15[%c4_197, %c0_198] : memref<26x64xbf16, #tpu.memory_space<vmem>>, vector<16x64xbf16>
    %c3_199 = arith.constant 3 : index
    %c0_200 = arith.constant 0 : index
    %c0_201 = arith.constant 0 : index
    %263 = vector.load %arg6[%c3_199, %c0_200, %c0_201] : memref<9x64x128xbf16, #tpu.memory_space<vmem>>, vector<1x64x128xbf16>
    %264 = vector.shape_cast %263 : vector<1x64x128xbf16> to vector<64x128xbf16>
    %cst_202 = arith.constant dense<0.000000e+00> : vector<16x128xf32>
    %265 = tpu.matmul %262, %264, %cst_202 {dimension_numbers = #tpu.dot_dimension_numbers<[1], [0], [0], [1], [0, 0, 1, 1], [], []>} : vector<16x64xbf16>, vector<64x128xbf16>, vector<16x128xf32> -> vector<16x128xf32>
    %266 = arith.addf %261, %265 : vector<16x128xf32>
    %c8_203 = arith.constant 8 : index
    %c0_204 = arith.constant 0 : index
    %267 = vector.load %arg15[%c8_203, %c0_204] : memref<26x64xbf16, #tpu.memory_space<vmem>>, vector<16x64xbf16>
    %c6_205 = arith.constant 6 : index
    %c0_206 = arith.constant 0 : index
    %c0_207 = arith.constant 0 : index
    %268 = vector.load %arg6[%c6_205, %c0_206, %c0_207] : memref<9x64x128xbf16, #tpu.memory_space<vmem>>, vector<1x64x128xbf16>
    %269 = vector.shape_cast %268 : vector<1x64x128xbf16> to vector<64x128xbf16>
    %cst_208 = arith.constant dense<0.000000e+00> : vector<16x128xf32>
    %270 = tpu.matmul %267, %269, %cst_208 {dimension_numbers = #tpu.dot_dimension_numbers<[1], [0], [0], [1], [0, 0, 1, 1], [], []>} : vector<16x64xbf16>, vector<64x128xbf16>, vector<16x128xf32> -> vector<16x128xf32>
    %271 = arith.addf %266, %270 : vector<16x128xf32>
    %cst_209 = arith.constant 0.000000e+00 : f32
    %272 = vector.shape_cast %257 : vector<16x1xi1> to vector<16x1xi1>
    %273 = vector.broadcast %272 : vector<16x1xi1> to vector<16x128xi1>
    %274 = vector.broadcast %cst_209 : f32 to vector<16x128xf32>
    %275 = arith.select %273, %271, %274 : vector<16x128xi1>, vector<16x128xf32>
    %276 = arith.addf %255, %275 : vector<16x128xf32>
    %c3_i32 = arith.constant 3 : i32
    %277 = vector.broadcast %c3_i32 : i32 to vector<16x1xi32>
    %278 = arith.cmpi ne, %241, %277 : vector<16x1xi32>
    %c2_210 = arith.constant 2 : index
    %c0_211 = arith.constant 0 : index
    %279 = vector.load %arg15[%c2_210, %c0_211] : memref<26x64xbf16, #tpu.memory_space<vmem>>, vector<16x64xbf16>
    %c2_212 = arith.constant 2 : index
    %c0_213 = arith.constant 0 : index
    %c0_214 = arith.constant 0 : index
    %280 = vector.load %arg6[%c2_212, %c0_213, %c0_214] : memref<9x64x128xbf16, #tpu.memory_space<vmem>>, vector<1x64x128xbf16>
    %281 = vector.shape_cast %280 : vector<1x64x128xbf16> to vector<64x128xbf16>
    %cst_215 = arith.constant dense<0.000000e+00> : vector<16x128xf32>
    %282 = tpu.matmul %279, %281, %cst_215 {dimension_numbers = #tpu.dot_dimension_numbers<[1], [0], [0], [1], [0, 0, 1, 1], [], []>} : vector<16x64xbf16>, vector<64x128xbf16>, vector<16x128xf32> -> vector<16x128xf32>
    %c6_216 = arith.constant 6 : index
    %c0_217 = arith.constant 0 : index
    %283 = vector.load %arg15[%c6_216, %c0_217] : memref<26x64xbf16, #tpu.memory_space<vmem>>, vector<16x64xbf16>
    %c5_218 = arith.constant 5 : index
    %c0_219 = arith.constant 0 : index
    %c0_220 = arith.constant 0 : index
    %284 = vector.load %arg6[%c5_218, %c0_219, %c0_220] : memref<9x64x128xbf16, #tpu.memory_space<vmem>>, vector<1x64x128xbf16>
    %285 = vector.shape_cast %284 : vector<1x64x128xbf16> to vector<64x128xbf16>
    %cst_221 = arith.constant dense<0.000000e+00> : vector<16x128xf32>
    %286 = tpu.matmul %283, %285, %cst_221 {dimension_numbers = #tpu.dot_dimension_numbers<[1], [0], [0], [1], [0, 0, 1, 1], [], []>} : vector<16x64xbf16>, vector<64x128xbf16>, vector<16x128xf32> -> vector<16x128xf32>
    %287 = arith.addf %282, %286 : vector<16x128xf32>
    %c10_222 = arith.constant 10 : index
    %c0_223 = arith.constant 0 : index
    %288 = vector.load %arg15[%c10_222, %c0_223] : memref<26x64xbf16, #tpu.memory_space<vmem>>, vector<16x64xbf16>
    %c8_224 = arith.constant 8 : index
    %c0_225 = arith.constant 0 : index
    %c0_226 = arith.constant 0 : index
    %289 = vector.load %arg6[%c8_224, %c0_225, %c0_226] : memref<9x64x128xbf16, #tpu.memory_space<vmem>>, vector<1x64x128xbf16>
    %290 = vector.shape_cast %289 : vector<1x64x128xbf16> to vector<64x128xbf16>
    %cst_227 = arith.constant dense<0.000000e+00> : vector<16x128xf32>
    %291 = tpu.matmul %288, %290, %cst_227 {dimension_numbers = #tpu.dot_dimension_numbers<[1], [0], [0], [1], [0, 0, 1, 1], [], []>} : vector<16x64xbf16>, vector<64x128xbf16>, vector<16x128xf32> -> vector<16x128xf32>
    %292 = arith.addf %287, %291 : vector<16x128xf32>
    %cst_228 = arith.constant 0.000000e+00 : f32
    %293 = vector.shape_cast %278 : vector<16x1xi1> to vector<16x1xi1>
    %294 = vector.broadcast %293 : vector<16x1xi1> to vector<16x128xi1>
    %295 = vector.broadcast %cst_228 : f32 to vector<16x128xf32>
    %296 = arith.select %294, %292, %295 : vector<16x128xi1>, vector<16x128xf32>
    %297 = arith.addf %276, %296 : vector<16x128xf32>
    %c0_229 = arith.constant 0 : index
    %c0_230 = arith.constant 0 : index
    %298 = vector.load %arg7[%c0_229, %c0_230] : memref<1x128xf32, #tpu.memory_space<vmem>>, vector<1x128xf32>
    %299 = vector.broadcast %298 : vector<1x128xf32> to vector<16x128xf32>
    %300 = arith.addf %297, %299 : vector<16x128xf32>
    %cst_231 = arith.constant 0.000000e+00 : f32
    %301 = vector.broadcast %cst_231 : f32 to vector<16x128xf32>
    %302 = arith.maximumf %300, %301 : vector<16x128xf32>
    %c0_232 = arith.constant 0 : index
    %c0_233 = arith.constant 0 : index
    %303 = vector.load %arg20[%c0_232, %c0_233] : memref<16x128xf32, #tpu.memory_space<vmem>>, vector<16x128xf32>
    tpu.vector_store %arg20[%c0_232, %c0_233], %302 {strides = array<i32>} : memref<16x128xf32, #tpu.memory_space<vmem>>, vector<16x128xf32>,
    %c0_234 = arith.constant 0 : index
    %c0_235 = arith.constant 0 : index
    %304 = tpu.strided_load %arg20[%c0_234, %c0_235] {strides = array<i32: 2, 1>} : memref<16x128xf32, #tpu.memory_space<vmem>>, vector<8x128xf32>
    %c1_236 = arith.constant 1 : index
    %c0_237 = arith.constant 0 : index
    %305 = tpu.strided_load %arg20[%c1_236, %c0_237] {strides = array<i32: 2, 1>} : memref<16x128xf32, #tpu.memory_space<vmem>>, vector<8x128xf32>
    %306 = arith.maximumf %304, %305 : vector<8x128xf32>
    %307 = vector.extract_strided_slice %306 {offsets = [0, 0], sizes = [6, 128], strides = [1, 1]} : vector<8x128xf32> to vector<6x128xf32>
    %308 = vector.extract_strided_slice %306 {offsets = [2, 0], sizes = [6, 128], strides = [1, 1]} : vector<8x128xf32> to vector<6x128xf32>
    %309 = arith.maximumf %307, %308 : vector<6x128xf32>
    %310 = vector.extract_strided_slice %309 {offsets = [0, 0], sizes = [2, 128], strides = [1, 1]} : vector<6x128xf32> to vector<2x128xf32>
    %311 = arith.truncf %310 : vector<2x128xf32> to vector<2x128xbf16>
    %c3_238 = arith.constant 3 : index
    %c0_239 = arith.constant 0 : index
    %312 = vector.load %arg16[%c3_238, %c0_239] : memref<10x128xbf16, #tpu.memory_space<vmem>>, vector<2x128xbf16>
    tpu.vector_store %arg16[%c3_238, %c0_239], %311 {strides = array<i32>} : memref<10x128xbf16, #tpu.memory_space<vmem>>, vector<2x128xbf16>,
    %313 = vector.extract_strided_slice %309 {offsets = [4, 0], sizes = [2, 128], strides = [1, 1]} : vector<6x128xf32> to vector<2x128xf32>
    %314 = arith.truncf %313 : vector<2x128xf32> to vector<2x128xbf16>
    %c5_240 = arith.constant 5 : index
    %c0_241 = arith.constant 0 : index
    %315 = vector.load %arg16[%c5_240, %c0_241] : memref<10x128xbf16, #tpu.memory_space<vmem>>, vector<2x128xbf16>
    tpu.vector_store %arg16[%c5_240, %c0_241], %314 {strides = array<i32>} : memref<10x128xbf16, #tpu.memory_space<vmem>>, vector<2x128xbf16>,
    %316 = tpu.iota {dimensions = array<i32: 0>} : vector<4x1xi32>
    %c2_i32 = arith.constant 2 : i32
    %c0_i32_242 = arith.constant 0 : i32
    %317 = arith.cmpi eq, %c2_i32, %c0_i32_242 : i32
    %c1_i32_243 = arith.constant 1 : i32
    %318 = arith.select %317, %c1_i32_243, %c2_i32 : i32
    %319 = vector.broadcast %318 : i32 to vector<4x1xi32>
    %320 = arith.remsi %316, %319 : vector<4x1xi32>
    %c0_i32_244 = arith.constant 0 : i32
    %321 = vector.broadcast %c0_i32_244 : i32 to vector<4x1xi32>
    %322 = arith.cmpi ne, %320, %321 : vector<4x1xi32>
    %c0_i32_245 = arith.constant 0 : i32
    %323 = vector.broadcast %c0_i32_245 : i32 to vector<4x1xi32>
    %324 = arith.cmpi slt, %320, %323 : vector<4x1xi32>
    %c0_i32_246 = arith.constant 0 : i32
    %325 = arith.cmpi slt, %318, %c0_i32_246 : i32
    %326 = vector.broadcast %325 : i1 to vector<4x1xi1>
    %327 = vector.broadcast %326 : vector<4x1xi1> to vector<4x1xi1>
    %328 = arith.xori %324, %327 : vector<4x1xi1>
    %329 = arith.andi %328, %322 : vector<4x1xi1>
    %330 = vector.broadcast %318 : i32 to vector<4x1xi32>
    %331 = arith.addi %320, %330 : vector<4x1xi32>
    %332 = arith.select %329, %331, %320 : vector<4x1xi1>, vector<4x1xi32>
    %c1_247 = arith.constant 1 : index
    %c0_248 = arith.constant 0 : index
    %333 = vector.load %arg16[%c1_247, %c0_248] : memref<10x128xbf16, #tpu.memory_space<vmem>>, vector<4x128xbf16>
    %c1_249 = arith.constant 1 : index
    %c0_250 = arith.constant 0 : index
    %c0_251 = arith.constant 0 : index
    %334 = vector.load %arg8[%c1_249, %c0_250, %c0_251] : memref<9x128x64xbf16, #tpu.memory_space<vmem>>, vector<1x128x64xbf16>
    %335 = vector.shape_cast %334 : vector<1x128x64xbf16> to vector<128x64xbf16>
    %cst_252 = arith.constant dense<0.000000e+00> : vector<4x64xf32>
    %336 = tpu.matmul %333, %335, %cst_252 {dimension_numbers = #tpu.dot_dimension_numbers<[1], [0], [0], [1], [0, 0, 1, 1], [], []>} : vector<4x128xbf16>, vector<128x64xbf16>, vector<4x64xf32> -> vector<4x64xf32>
    %c3_253 = arith.constant 3 : index
    %c0_254 = arith.constant 0 : index
    %337 = vector.load %arg16[%c3_253, %c0_254] : memref<10x128xbf16, #tpu.memory_space<vmem>>, vector<4x128xbf16>
    %c4_255 = arith.constant 4 : index
    %c0_256 = arith.constant 0 : index
    %c0_257 = arith.constant 0 : index
    %338 = vector.load %arg8[%c4_255, %c0_256, %c0_257] : memref<9x128x64xbf16, #tpu.memory_space<vmem>>, vector<1x128x64xbf16>
    %339 = vector.shape_cast %338 : vector<1x128x64xbf16> to vector<128x64xbf16>
    %cst_258 = arith.constant dense<0.000000e+00> : vector<4x64xf32>
    %340 = tpu.matmul %337, %339, %cst_258 {dimension_numbers = #tpu.dot_dimension_numbers<[1], [0], [0], [1], [0, 0, 1, 1], [], []>} : vector<4x128xbf16>, vector<128x64xbf16>, vector<4x64xf32> -> vector<4x64xf32>
    %341 = arith.addf %336, %340 : vector<4x64xf32>
    %c5_259 = arith.constant 5 : index
    %c0_260 = arith.constant 0 : index
    %342 = vector.load %arg16[%c5_259, %c0_260] : memref<10x128xbf16, #tpu.memory_space<vmem>>, vector<4x128xbf16>
    %c7_261 = arith.constant 7 : index
    %c0_262 = arith.constant 0 : index
    %c0_263 = arith.constant 0 : index
    %343 = vector.load %arg8[%c7_261, %c0_262, %c0_263] : memref<9x128x64xbf16, #tpu.memory_space<vmem>>, vector<1x128x64xbf16>
    %344 = vector.shape_cast %343 : vector<1x128x64xbf16> to vector<128x64xbf16>
    %cst_264 = arith.constant dense<0.000000e+00> : vector<4x64xf32>
    %345 = tpu.matmul %342, %344, %cst_264 {dimension_numbers = #tpu.dot_dimension_numbers<[1], [0], [0], [1], [0, 0, 1, 1], [], []>} : vector<4x128xbf16>, vector<128x64xbf16>, vector<4x64xf32> -> vector<4x64xf32>
    %346 = arith.addf %341, %345 : vector<4x64xf32>
    %c0_i32_265 = arith.constant 0 : i32
    %347 = vector.broadcast %c0_i32_265 : i32 to vector<4x1xi32>
    %348 = arith.cmpi ne, %332, %347 : vector<4x1xi32>
    %c0_266 = arith.constant 0 : index
    %c0_267 = arith.constant 0 : index
    %349 = vector.load %arg16[%c0_266, %c0_267] : memref<10x128xbf16, #tpu.memory_space<vmem>>, vector<4x128xbf16>
    %c0_268 = arith.constant 0 : index
    %c0_269 = arith.constant 0 : index
    %c0_270 = arith.constant 0 : index
    %350 = vector.load %arg8[%c0_268, %c0_269, %c0_270] : memref<9x128x64xbf16, #tpu.memory_space<vmem>>, vector<1x128x64xbf16>
    %351 = vector.shape_cast %350 : vector<1x128x64xbf16> to vector<128x64xbf16>
    %cst_271 = arith.constant dense<0.000000e+00> : vector<4x64xf32>
    %352 = tpu.matmul %349, %351, %cst_271 {dimension_numbers = #tpu.dot_dimension_numbers<[1], [0], [0], [1], [0, 0, 1, 1], [], []>} : vector<4x128xbf16>, vector<128x64xbf16>, vector<4x64xf32> -> vector<4x64xf32>
    %c2_272 = arith.constant 2 : index
    %c0_273 = arith.constant 0 : index
    %353 = vector.load %arg16[%c2_272, %c0_273] : memref<10x128xbf16, #tpu.memory_space<vmem>>, vector<4x128xbf16>
    %c3_274 = arith.constant 3 : index
    %c0_275 = arith.constant 0 : index
    %c0_276 = arith.constant 0 : index
    %354 = vector.load %arg8[%c3_274, %c0_275, %c0_276] : memref<9x128x64xbf16, #tpu.memory_space<vmem>>, vector<1x128x64xbf16>
    %355 = vector.shape_cast %354 : vector<1x128x64xbf16> to vector<128x64xbf16>
    %cst_277 = arith.constant dense<0.000000e+00> : vector<4x64xf32>
    %356 = tpu.matmul %353, %355, %cst_277 {dimension_numbers = #tpu.dot_dimension_numbers<[1], [0], [0], [1], [0, 0, 1, 1], [], []>} : vector<4x128xbf16>, vector<128x64xbf16>, vector<4x64xf32> -> vector<4x64xf32>
    %357 = arith.addf %352, %356 : vector<4x64xf32>
    %c4_278 = arith.constant 4 : index
    %c0_279 = arith.constant 0 : index
    %358 = vector.load %arg16[%c4_278, %c0_279] : memref<10x128xbf16, #tpu.memory_space<vmem>>, vector<4x128xbf16>
    %c6_280 = arith.constant 6 : index
    %c0_281 = arith.constant 0 : index
    %c0_282 = arith.constant 0 : index
    %359 = vector.load %arg8[%c6_280, %c0_281, %c0_282] : memref<9x128x64xbf16, #tpu.memory_space<vmem>>, vector<1x128x64xbf16>
    %360 = vector.shape_cast %359 : vector<1x128x64xbf16> to vector<128x64xbf16>
    %cst_283 = arith.constant dense<0.000000e+00> : vector<4x64xf32>
    %361 = tpu.matmul %358, %360, %cst_283 {dimension_numbers = #tpu.dot_dimension_numbers<[1], [0], [0], [1], [0, 0, 1, 1], [], []>} : vector<4x128xbf16>, vector<128x64xbf16>, vector<4x64xf32> -> vector<4x64xf32>
    %362 = arith.addf %357, %361 : vector<4x64xf32>
    %cst_284 = arith.constant 0.000000e+00 : f32
    %363 = vector.shape_cast %348 : vector<4x1xi1> to vector<4x1xi1>
    %364 = vector.broadcast %363 : vector<4x1xi1> to vector<4x64xi1>
    %365 = vector.broadcast %cst_284 : f32 to vector<4x64xf32>
    %366 = arith.select %364, %362, %365 : vector<4x64xi1>, vector<4x64xf32>
    %367 = arith.addf %346, %366 : vector<4x64xf32>
    %c1_i32_285 = arith.constant 1 : i32
    %368 = vector.broadcast %c1_i32_285 : i32 to vector<4x1xi32>
    %369 = arith.cmpi ne, %332, %368 : vector<4x1xi32>
    %c2_286 = arith.constant 2 : index
    %c0_287 = arith.constant 0 : index
    %370 = vector.load %arg16[%c2_286, %c0_287] : memref<10x128xbf16, #tpu.memory_space<vmem>>, vector<4x128xbf16>
    %c2_288 = arith.constant 2 : index
    %c0_289 = arith.constant 0 : index
    %c0_290 = arith.constant 0 : index
    %371 = vector.load %arg8[%c2_288, %c0_289, %c0_290] : memref<9x128x64xbf16, #tpu.memory_space<vmem>>, vector<1x128x64xbf16>
    %372 = vector.shape_cast %371 : vector<1x128x64xbf16> to vector<128x64xbf16>
    %cst_291 = arith.constant dense<0.000000e+00> : vector<4x64xf32>
    %373 = tpu.matmul %370, %372, %cst_291 {dimension_numbers = #tpu.dot_dimension_numbers<[1], [0], [0], [1], [0, 0, 1, 1], [], []>} : vector<4x128xbf16>, vector<128x64xbf16>, vector<4x64xf32> -> vector<4x64xf32>
    %c4_292 = arith.constant 4 : index
    %c0_293 = arith.constant 0 : index
    %374 = vector.load %arg16[%c4_292, %c0_293] : memref<10x128xbf16, #tpu.memory_space<vmem>>, vector<4x128xbf16>
    %c5_294 = arith.constant 5 : index
    %c0_295 = arith.constant 0 : index
    %c0_296 = arith.constant 0 : index
    %375 = vector.load %arg8[%c5_294, %c0_295, %c0_296] : memref<9x128x64xbf16, #tpu.memory_space<vmem>>, vector<1x128x64xbf16>
    %376 = vector.shape_cast %375 : vector<1x128x64xbf16> to vector<128x64xbf16>
    %cst_297 = arith.constant dense<0.000000e+00> : vector<4x64xf32>
    %377 = tpu.matmul %374, %376, %cst_297 {dimension_numbers = #tpu.dot_dimension_numbers<[1], [0], [0], [1], [0, 0, 1, 1], [], []>} : vector<4x128xbf16>, vector<128x64xbf16>, vector<4x64xf32> -> vector<4x64xf32>
    %378 = arith.addf %373, %377 : vector<4x64xf32>
    %c6_298 = arith.constant 6 : index
    %c0_299 = arith.constant 0 : index
    %379 = vector.load %arg16[%c6_298, %c0_299] : memref<10x128xbf16, #tpu.memory_space<vmem>>, vector<4x128xbf16>
    %c8_300 = arith.constant 8 : index
    %c0_301 = arith.constant 0 : index
    %c0_302 = arith.constant 0 : index
    %380 = vector.load %arg8[%c8_300, %c0_301, %c0_302] : memref<9x128x64xbf16, #tpu.memory_space<vmem>>, vector<1x128x64xbf16>
    %381 = vector.shape_cast %380 : vector<1x128x64xbf16> to vector<128x64xbf16>
    %cst_303 = arith.constant dense<0.000000e+00> : vector<4x64xf32>
    %382 = tpu.matmul %379, %381, %cst_303 {dimension_numbers = #tpu.dot_dimension_numbers<[1], [0], [0], [1], [0, 0, 1, 1], [], []>} : vector<4x128xbf16>, vector<128x64xbf16>, vector<4x64xf32> -> vector<4x64xf32>
    %383 = arith.addf %378, %382 : vector<4x64xf32>
    %cst_304 = arith.constant 0.000000e+00 : f32
    %384 = vector.shape_cast %369 : vector<4x1xi1> to vector<4x1xi1>
    %385 = vector.broadcast %384 : vector<4x1xi1> to vector<4x64xi1>
    %386 = vector.broadcast %cst_304 : f32 to vector<4x64xf32>
    %387 = arith.select %385, %383, %386 : vector<4x64xi1>, vector<4x64xf32>
    %388 = arith.addf %367, %387 : vector<4x64xf32>
    %c0_305 = arith.constant 0 : index
    %c0_306 = arith.constant 0 : index
    %389 = vector.load %arg9[%c0_305, %c0_306] : memref<1x64xf32, #tpu.memory_space<vmem>>, vector<1x64xf32>
    %390 = vector.broadcast %389 : vector<1x64xf32> to vector<4x64xf32>
    %391 = arith.addf %388, %390 : vector<4x64xf32>
    %cst_307 = arith.constant 0.000000e+00 : f32
    %392 = vector.broadcast %cst_307 : f32 to vector<4x64xf32>
    %393 = arith.maximumf %391, %392 : vector<4x64xf32>
    %394 = arith.truncf %393 : vector<4x64xf32> to vector<4x64xbf16>
    %c3_308 = arith.constant 3 : index
    %c0_309 = arith.constant 0 : index
    %395 = vector.load %arg17[%c3_308, %c0_309] : memref<10x64xbf16, #tpu.memory_space<vmem>>, vector<4x64xbf16>
    tpu.vector_store %arg17[%c3_308, %c0_309], %394 {strides = array<i32>} : memref<10x64xbf16, #tpu.memory_space<vmem>>, vector<4x64xbf16>,
    %396 = tpu.iota {dimensions = array<i32: 0>} : vector<4x1xi32>
    %c2_i32_310 = arith.constant 2 : i32
    %c0_i32_311 = arith.constant 0 : i32
    %397 = arith.cmpi eq, %c2_i32_310, %c0_i32_311 : i32
    %c1_i32_312 = arith.constant 1 : i32
    %398 = arith.select %397, %c1_i32_312, %c2_i32_310 : i32
    %399 = vector.broadcast %398 : i32 to vector<4x1xi32>
    %400 = arith.remsi %396, %399 : vector<4x1xi32>
    %c0_i32_313 = arith.constant 0 : i32
    %401 = vector.broadcast %c0_i32_313 : i32 to vector<4x1xi32>
    %402 = arith.cmpi ne, %400, %401 : vector<4x1xi32>
    %c0_i32_314 = arith.constant 0 : i32
    %403 = vector.broadcast %c0_i32_314 : i32 to vector<4x1xi32>
    %404 = arith.cmpi slt, %400, %403 : vector<4x1xi32>
    %c0_i32_315 = arith.constant 0 : i32
    %405 = arith.cmpi slt, %398, %c0_i32_315 : i32
    %406 = vector.broadcast %405 : i1 to vector<4x1xi1>
    %407 = vector.broadcast %406 : vector<4x1xi1> to vector<4x1xi1>
    %408 = arith.xori %404, %407 : vector<4x1xi1>
    %409 = arith.andi %408, %402 : vector<4x1xi1>
    %410 = vector.broadcast %398 : i32 to vector<4x1xi32>
    %411 = arith.addi %400, %410 : vector<4x1xi32>
    %412 = arith.select %409, %411, %400 : vector<4x1xi1>, vector<4x1xi32>
    %c1_316 = arith.constant 1 : index
    %c0_317 = arith.constant 0 : index
    %413 = vector.load %arg17[%c1_316, %c0_317] : memref<10x64xbf16, #tpu.memory_space<vmem>>, vector<4x64xbf16>
    %c1_318 = arith.constant 1 : index
    %c0_319 = arith.constant 0 : index
    %c0_320 = arith.constant 0 : index
    %414 = vector.load %arg10[%c1_318, %c0_319, %c0_320] : memref<9x64x32xbf16, #tpu.memory_space<vmem>>, vector<1x64x32xbf16>
    %415 = vector.shape_cast %414 : vector<1x64x32xbf16> to vector<64x32xbf16>
    %cst_321 = arith.constant dense<0.000000e+00> : vector<4x32xf32>
    %416 = tpu.matmul %413, %415, %cst_321 {dimension_numbers = #tpu.dot_dimension_numbers<[1], [0], [0], [1], [0, 0, 1, 1], [], []>} : vector<4x64xbf16>, vector<64x32xbf16>, vector<4x32xf32> -> vector<4x32xf32>
    %c3_322 = arith.constant 3 : index
    %c0_323 = arith.constant 0 : index
    %417 = vector.load %arg17[%c3_322, %c0_323] : memref<10x64xbf16, #tpu.memory_space<vmem>>, vector<4x64xbf16>
    %c4_324 = arith.constant 4 : index
    %c0_325 = arith.constant 0 : index
    %c0_326 = arith.constant 0 : index
    %418 = vector.load %arg10[%c4_324, %c0_325, %c0_326] : memref<9x64x32xbf16, #tpu.memory_space<vmem>>, vector<1x64x32xbf16>
    %419 = vector.shape_cast %418 : vector<1x64x32xbf16> to vector<64x32xbf16>
    %cst_327 = arith.constant dense<0.000000e+00> : vector<4x32xf32>
    %420 = tpu.matmul %417, %419, %cst_327 {dimension_numbers = #tpu.dot_dimension_numbers<[1], [0], [0], [1], [0, 0, 1, 1], [], []>} : vector<4x64xbf16>, vector<64x32xbf16>, vector<4x32xf32> -> vector<4x32xf32>
    %421 = arith.addf %416, %420 : vector<4x32xf32>
    %c5_328 = arith.constant 5 : index
    %c0_329 = arith.constant 0 : index
    %422 = vector.load %arg17[%c5_328, %c0_329] : memref<10x64xbf16, #tpu.memory_space<vmem>>, vector<4x64xbf16>
    %c7_330 = arith.constant 7 : index
    %c0_331 = arith.constant 0 : index
    %c0_332 = arith.constant 0 : index
    %423 = vector.load %arg10[%c7_330, %c0_331, %c0_332] : memref<9x64x32xbf16, #tpu.memory_space<vmem>>, vector<1x64x32xbf16>
    %424 = vector.shape_cast %423 : vector<1x64x32xbf16> to vector<64x32xbf16>
    %cst_333 = arith.constant dense<0.000000e+00> : vector<4x32xf32>
    %425 = tpu.matmul %422, %424, %cst_333 {dimension_numbers = #tpu.dot_dimension_numbers<[1], [0], [0], [1], [0, 0, 1, 1], [], []>} : vector<4x64xbf16>, vector<64x32xbf16>, vector<4x32xf32> -> vector<4x32xf32>
    %426 = arith.addf %421, %425 : vector<4x32xf32>
    %c0_i32_334 = arith.constant 0 : i32
    %427 = vector.broadcast %c0_i32_334 : i32 to vector<4x1xi32>
    %428 = arith.cmpi ne, %412, %427 : vector<4x1xi32>
    %c0_335 = arith.constant 0 : index
    %c0_336 = arith.constant 0 : index
    %429 = vector.load %arg17[%c0_335, %c0_336] : memref<10x64xbf16, #tpu.memory_space<vmem>>, vector<4x64xbf16>
    %c0_337 = arith.constant 0 : index
    %c0_338 = arith.constant 0 : index
    %c0_339 = arith.constant 0 : index
    %430 = vector.load %arg10[%c0_337, %c0_338, %c0_339] : memref<9x64x32xbf16, #tpu.memory_space<vmem>>, vector<1x64x32xbf16>
    %431 = vector.shape_cast %430 : vector<1x64x32xbf16> to vector<64x32xbf16>
    %cst_340 = arith.constant dense<0.000000e+00> : vector<4x32xf32>
    %432 = tpu.matmul %429, %431, %cst_340 {dimension_numbers = #tpu.dot_dimension_numbers<[1], [0], [0], [1], [0, 0, 1, 1], [], []>} : vector<4x64xbf16>, vector<64x32xbf16>, vector<4x32xf32> -> vector<4x32xf32>
    %c2_341 = arith.constant 2 : index
    %c0_342 = arith.constant 0 : index
    %433 = vector.load %arg17[%c2_341, %c0_342] : memref<10x64xbf16, #tpu.memory_space<vmem>>, vector<4x64xbf16>
    %c3_343 = arith.constant 3 : index
    %c0_344 = arith.constant 0 : index
    %c0_345 = arith.constant 0 : index
    %434 = vector.load %arg10[%c3_343, %c0_344, %c0_345] : memref<9x64x32xbf16, #tpu.memory_space<vmem>>, vector<1x64x32xbf16>
    %435 = vector.shape_cast %434 : vector<1x64x32xbf16> to vector<64x32xbf16>
    %cst_346 = arith.constant dense<0.000000e+00> : vector<4x32xf32>
    %436 = tpu.matmul %433, %435, %cst_346 {dimension_numbers = #tpu.dot_dimension_numbers<[1], [0], [0], [1], [0, 0, 1, 1], [], []>} : vector<4x64xbf16>, vector<64x32xbf16>, vector<4x32xf32> -> vector<4x32xf32>
    %437 = arith.addf %432, %436 : vector<4x32xf32>
    %c4_347 = arith.constant 4 : index
    %c0_348 = arith.constant 0 : index
    %438 = vector.load %arg17[%c4_347, %c0_348] : memref<10x64xbf16, #tpu.memory_space<vmem>>, vector<4x64xbf16>
    %c6_349 = arith.constant 6 : index
    %c0_350 = arith.constant 0 : index
    %c0_351 = arith.constant 0 : index
    %439 = vector.load %arg10[%c6_349, %c0_350, %c0_351] : memref<9x64x32xbf16, #tpu.memory_space<vmem>>, vector<1x64x32xbf16>
    %440 = vector.shape_cast %439 : vector<1x64x32xbf16> to vector<64x32xbf16>
    %cst_352 = arith.constant dense<0.000000e+00> : vector<4x32xf32>
    %441 = tpu.matmul %438, %440, %cst_352 {dimension_numbers = #tpu.dot_dimension_numbers<[1], [0], [0], [1], [0, 0, 1, 1], [], []>} : vector<4x64xbf16>, vector<64x32xbf16>, vector<4x32xf32> -> vector<4x32xf32>
    %442 = arith.addf %437, %441 : vector<4x32xf32>
    %cst_353 = arith.constant 0.000000e+00 : f32
    %443 = vector.shape_cast %428 : vector<4x1xi1> to vector<4x1xi1>
    %444 = vector.broadcast %443 : vector<4x1xi1> to vector<4x32xi1>
    %445 = vector.broadcast %cst_353 : f32 to vector<4x32xf32>
    %446 = arith.select %444, %442, %445 : vector<4x32xi1>, vector<4x32xf32>
    %447 = arith.addf %426, %446 : vector<4x32xf32>
    %c1_i32_354 = arith.constant 1 : i32
    %448 = vector.broadcast %c1_i32_354 : i32 to vector<4x1xi32>
    %449 = arith.cmpi ne, %412, %448 : vector<4x1xi32>
    %c2_355 = arith.constant 2 : index
    %c0_356 = arith.constant 0 : index
    %450 = vector.load %arg17[%c2_355, %c0_356] : memref<10x64xbf16, #tpu.memory_space<vmem>>, vector<4x64xbf16>
    %c2_357 = arith.constant 2 : index
    %c0_358 = arith.constant 0 : index
    %c0_359 = arith.constant 0 : index
    %451 = vector.load %arg10[%c2_357, %c0_358, %c0_359] : memref<9x64x32xbf16, #tpu.memory_space<vmem>>, vector<1x64x32xbf16>
    %452 = vector.shape_cast %451 : vector<1x64x32xbf16> to vector<64x32xbf16>
    %cst_360 = arith.constant dense<0.000000e+00> : vector<4x32xf32>
    %453 = tpu.matmul %450, %452, %cst_360 {dimension_numbers = #tpu.dot_dimension_numbers<[1], [0], [0], [1], [0, 0, 1, 1], [], []>} : vector<4x64xbf16>, vector<64x32xbf16>, vector<4x32xf32> -> vector<4x32xf32>
    %c4_361 = arith.constant 4 : index
    %c0_362 = arith.constant 0 : index
    %454 = vector.load %arg17[%c4_361, %c0_362] : memref<10x64xbf16, #tpu.memory_space<vmem>>, vector<4x64xbf16>
    %c5_363 = arith.constant 5 : index
    %c0_364 = arith.constant 0 : index
    %c0_365 = arith.constant 0 : index
    %455 = vector.load %arg10[%c5_363, %c0_364, %c0_365] : memref<9x64x32xbf16, #tpu.memory_space<vmem>>, vector<1x64x32xbf16>
    %456 = vector.shape_cast %455 : vector<1x64x32xbf16> to vector<64x32xbf16>
    %cst_366 = arith.constant dense<0.000000e+00> : vector<4x32xf32>
    %457 = tpu.matmul %454, %456, %cst_366 {dimension_numbers = #tpu.dot_dimension_numbers<[1], [0], [0], [1], [0, 0, 1, 1], [], []>} : vector<4x64xbf16>, vector<64x32xbf16>, vector<4x32xf32> -> vector<4x32xf32>
    %458 = arith.addf %453, %457 : vector<4x32xf32>
    %c6_367 = arith.constant 6 : index
    %c0_368 = arith.constant 0 : index
    %459 = vector.load %arg17[%c6_367, %c0_368] : memref<10x64xbf16, #tpu.memory_space<vmem>>, vector<4x64xbf16>
    %c8_369 = arith.constant 8 : index
    %c0_370 = arith.constant 0 : index
    %c0_371 = arith.constant 0 : index
    %460 = vector.load %arg10[%c8_369, %c0_370, %c0_371] : memref<9x64x32xbf16, #tpu.memory_space<vmem>>, vector<1x64x32xbf16>
    %461 = vector.shape_cast %460 : vector<1x64x32xbf16> to vector<64x32xbf16>
    %cst_372 = arith.constant dense<0.000000e+00> : vector<4x32xf32>
    %462 = tpu.matmul %459, %461, %cst_372 {dimension_numbers = #tpu.dot_dimension_numbers<[1], [0], [0], [1], [0, 0, 1, 1], [], []>} : vector<4x64xbf16>, vector<64x32xbf16>, vector<4x32xf32> -> vector<4x32xf32>
    %463 = arith.addf %458, %462 : vector<4x32xf32>
    %cst_373 = arith.constant 0.000000e+00 : f32
    %464 = vector.shape_cast %449 : vector<4x1xi1> to vector<4x1xi1>
    %465 = vector.broadcast %464 : vector<4x1xi1> to vector<4x32xi1>
    %466 = vector.broadcast %cst_373 : f32 to vector<4x32xf32>
    %467 = arith.select %465, %463, %466 : vector<4x32xi1>, vector<4x32xf32>
    %468 = arith.addf %447, %467 : vector<4x32xf32>
    %c0_374 = arith.constant 0 : index
    %c0_375 = arith.constant 0 : index
    %469 = vector.load %arg11[%c0_374, %c0_375] : memref<1x32xf32, #tpu.memory_space<vmem>>, vector<1x32xf32>
    %470 = vector.broadcast %469 : vector<1x32xf32> to vector<4x32xf32>
    %471 = arith.addf %468, %470 : vector<4x32xf32>
    %cst_376 = arith.constant 0.000000e+00 : f32
    %472 = vector.broadcast %cst_376 : f32 to vector<4x32xf32>
    %473 = arith.maximumf %471, %472 : vector<4x32xf32>
    %c0_377 = arith.constant 0 : index
    %c0_378 = arith.constant 0 : index
    %c0_379 = arith.constant 0 : index
    %474 = vector.load %arg12[%c0_377, %c0_378, %c0_379] : memref<1x4x32xf32, #tpu.memory_space<vmem>>, vector<1x4x32xf32>
    %475 = vector.shape_cast %474 : vector<1x4x32xf32> to vector<4x32xf32>
    %476 = vector.shape_cast %473 : vector<4x32xf32> to vector<1x4x32xf32>
    tpu.vector_store %arg12[%c0_377, %c0_378, %c0_379], %476 {strides = array<i32>} : memref<1x4x32xf32, #tpu.memory_space<vmem>>, vector<1x4x32xf32>,
    return
  }
  func.func @transform_0(%arg0: i32) -> (i32, i32, i32) {
    %c0_i32 = arith.constant 0 : i32
    %c0_i32_0 = arith.constant 0 : i32
    %c0_i32_1 = arith.constant 0 : i32
    return %arg0, %c0_i32, %c0_i32_0 : i32, i32, i32
  }
  func.func @transform_1(%arg0: i32) -> (i32, i32, i32) {
    %c0_i32 = arith.constant 0 : i32
    %c0_i32_0 = arith.constant 0 : i32
    %c0_i32_1 = arith.constant 0 : i32
    %c0_i32_2 = arith.constant 0 : i32
    return %c0_i32, %c0_i32_0, %c0_i32_1 : i32, i32, i32
  }
  func.func @transform_2(%arg0: i32) -> (i32, i32) {
    %c0_i32 = arith.constant 0 : i32
    %c0_i32_0 = arith.constant 0 : i32
    %c0_i32_1 = arith.constant 0 : i32
    return %c0_i32, %c0_i32_0 : i32, i32
  }
  func.func @transform_3(%arg0: i32) -> (i32, i32, i32) {
    %c0_i32 = arith.constant 0 : i32
    %c0_i32_0 = arith.constant 0 : i32
    %c0_i32_1 = arith.constant 0 : i32
    %c0_i32_2 = arith.constant 0 : i32
    return %c0_i32, %c0_i32_0, %c0_i32_1 : i32, i32, i32
  }
  func.func @transform_4(%arg0: i32) -> (i32, i32) {
    %c0_i32 = arith.constant 0 : i32
    %c0_i32_0 = arith.constant 0 : i32
    %c0_i32_1 = arith.constant 0 : i32
    return %c0_i32, %c0_i32_0 : i32, i32
  }
  func.func @transform_5(%arg0: i32) -> (i32, i32, i32) {
    %c0_i32 = arith.constant 0 : i32
    %c0_i32_0 = arith.constant 0 : i32
    %c0_i32_1 = arith.constant 0 : i32
    %c0_i32_2 = arith.constant 0 : i32
    return %c0_i32, %c0_i32_0, %c0_i32_1 : i32, i32, i32
  }
  func.func @transform_6(%arg0: i32) -> (i32, i32) {
    %c0_i32 = arith.constant 0 : i32
    %c0_i32_0 = arith.constant 0 : i32
    %c0_i32_1 = arith.constant 0 : i32
    return %c0_i32, %c0_i32_0 : i32, i32
  }
  func.func @transform_7(%arg0: i32) -> (i32, i32, i32) {
    %c0_i32 = arith.constant 0 : i32
    %c0_i32_0 = arith.constant 0 : i32
    %c0_i32_1 = arith.constant 0 : i32
    %c0_i32_2 = arith.constant 0 : i32
    return %c0_i32, %c0_i32_0, %c0_i32_1 : i32, i32, i32
  }
  func.func @transform_8(%arg0: i32) -> (i32, i32) {
    %c0_i32 = arith.constant 0 : i32
    %c0_i32_0 = arith.constant 0 : i32
    %c0_i32_1 = arith.constant 0 : i32
    return %c0_i32, %c0_i32_0 : i32, i32
  }
  func.func @transform_9(%arg0: i32) -> (i32, i32, i32) {
    %c0_i32 = arith.constant 0 : i32
    %c0_i32_0 = arith.constant 0 : i32
    %c0_i32_1 = arith.constant 0 : i32
    %c0_i32_2 = arith.constant 0 : i32
    return %c0_i32, %c0_i32_0, %c0_i32_1 : i32, i32, i32
  }
  func.func @transform_10(%arg0: i32) -> (i32, i32) {
    %c0_i32 = arith.constant 0 : i32
    %c0_i32_0 = arith.constant 0 : i32
    %c0_i32_1 = arith.constant 0 : i32
    return %c0_i32, %c0_i32_0 : i32, i32
  }
  func.func @transform_11(%arg0: i32) -> (i32, i32, i32) {
    %c0_i32 = arith.constant 0 : i32
    %c0_i32_0 = arith.constant 0 : i32
    %c0_i32_1 = arith.constant 0 : i32
    return %arg0, %c0_i32, %c0_i32_0 : i32, i32, i32
  }
}

module attributes {stable_mosaic.version = 11 : i64} {
  func.func @_critic_mlp_kernel(%arg0: i32, %arg1: memref<2x136xf32, #tpu.memory_space<vmem>>, %arg2: memref<136x512xbf16, #tpu.memory_space<vmem>>, %arg3: memref<1x512xf32, #tpu.memory_space<vmem>>, %arg4: memref<512x256xbf16, #tpu.memory_space<vmem>>, %arg5: memref<1x256xf32, #tpu.memory_space<vmem>>, %arg6: memref<256x1xbf16, #tpu.memory_space<vmem>>, %arg7: memref<1x1xf32, #tpu.memory_space<vmem>>, %arg8: memref<2x1xf32, #tpu.memory_space<vmem>>, %arg9: memref<2x256xf32, #tpu.memory_space<vmem>>) attributes {dimension_semantics = [#tpu.dimension_semantics<arbitrary>], iteration_bounds = array<i64: 1>, scalar_prefetch = 0 : i64, scratch_operands = 0 : i64, tpu.core_type = #tpu.core_type<tc>, window_params = [{pipeline_mode = #tpu.pipeline_mode<synchronous>, transform_indices = @transform_0, window_bounds = array<i64: 2, 136>}, {pipeline_mode = #tpu.pipeline_mode<synchronous>, transform_indices = @transform_1, window_bounds = array<i64: 136, 512>}, {pipeline_mode = #tpu.pipeline_mode<synchronous>, transform_indices = @transform_2, window_bounds = array<i64: 1, 512>}, {pipeline_mode = #tpu.pipeline_mode<synchronous>, transform_indices = @transform_3, window_bounds = array<i64: 512, 256>}, {pipeline_mode = #tpu.pipeline_mode<synchronous>, transform_indices = @transform_4, window_bounds = array<i64: 1, 256>}, {pipeline_mode = #tpu.pipeline_mode<synchronous>, transform_indices = @transform_5, window_bounds = array<i64: 256, 1>}, {pipeline_mode = #tpu.pipeline_mode<synchronous>, transform_indices = @transform_6, window_bounds = array<i64: 1, 1>}, {pipeline_mode = #tpu.pipeline_mode<synchronous>, transform_indices = @transform_7, window_bounds = array<i64: 2, 1>}, {pipeline_mode = #tpu.pipeline_mode<synchronous>, transform_indices = @transform_8, window_bounds = array<i64: 2, 256>}]} {
    %c0 = arith.constant 0 : index
    %c0_0 = arith.constant 0 : index
    %0 = vector.load %arg1[%c0, %c0_0] : memref<2x136xf32, #tpu.memory_space<vmem>>, vector<2x136xf32>
    %1 = arith.truncf %0 : vector<2x136xf32> to vector<2x136xbf16>
    %c0_1 = arith.constant 0 : index
    %c0_2 = arith.constant 0 : index
    %2 = vector.load %arg2[%c0_1, %c0_2] : memref<136x512xbf16, #tpu.memory_space<vmem>>, vector<136x512xbf16>
    %cst = arith.constant dense<0.000000e+00> : vector<2x512xf32>
    %3 = tpu.matmul %1, %2, %cst {dimension_numbers = #tpu.dot_dimension_numbers<[1], [0], [0], [1], [0, 0, 1, 1], [], []>} : vector<2x136xbf16>, vector<136x512xbf16>, vector<2x512xf32> -> vector<2x512xf32>
    %c0_3 = arith.constant 0 : index
    %c0_4 = arith.constant 0 : index
    %4 = vector.load %arg3[%c0_3, %c0_4] : memref<1x512xf32, #tpu.memory_space<vmem>>, vector<1x512xf32>
    %5 = vector.broadcast %4 : vector<1x512xf32> to vector<2x512xf32>
    %6 = arith.addf %3, %5 : vector<2x512xf32>
    %cst_5 = arith.constant 0.000000e+00 : f32
    %7 = vector.broadcast %cst_5 : f32 to vector<2x512xf32>
    %8 = arith.maximumf %6, %7 : vector<2x512xf32>
    %9 = arith.truncf %8 : vector<2x512xf32> to vector<2x512xbf16>
    %c0_6 = arith.constant 0 : index
    %c0_7 = arith.constant 0 : index
    %10 = vector.load %arg4[%c0_6, %c0_7] : memref<512x256xbf16, #tpu.memory_space<vmem>>, vector<512x256xbf16>
    %cst_8 = arith.constant dense<0.000000e+00> : vector<2x256xf32>
    %11 = tpu.matmul %9, %10, %cst_8 {dimension_numbers = #tpu.dot_dimension_numbers<[1], [0], [0], [1], [0, 0, 1, 1], [], []>} : vector<2x512xbf16>, vector<512x256xbf16>, vector<2x256xf32> -> vector<2x256xf32>
    %c0_9 = arith.constant 0 : index
    %c0_10 = arith.constant 0 : index
    %12 = vector.load %arg5[%c0_9, %c0_10] : memref<1x256xf32, #tpu.memory_space<vmem>>, vector<1x256xf32>
    %13 = vector.broadcast %12 : vector<1x256xf32> to vector<2x256xf32>
    %14 = arith.addf %11, %13 : vector<2x256xf32>
    %cst_11 = arith.constant 0.000000e+00 : f32
    %15 = vector.broadcast %cst_11 : f32 to vector<2x256xf32>
    %16 = arith.maximumf %14, %15 : vector<2x256xf32>
    %17 = arith.truncf %16 : vector<2x256xf32> to vector<2x256xbf16>
    %c0_12 = arith.constant 0 : index
    %c0_13 = arith.constant 0 : index
    %18 = vector.load %arg6[%c0_12, %c0_13] : memref<256x1xbf16, #tpu.memory_space<vmem>>, vector<256x1xbf16>
    %cst_14 = arith.constant dense<0.000000e+00> : vector<2x1xf32>
    %19 = tpu.matmul %17, %18, %cst_14 {dimension_numbers = #tpu.dot_dimension_numbers<[1], [0], [0], [1], [0, 0, 1, 1], [], []>} : vector<2x256xbf16>, vector<256x1xbf16>, vector<2x1xf32> -> vector<2x1xf32>
    %c0_15 = arith.constant 0 : index
    %c0_16 = arith.constant 0 : index
    %20 = vector.load %arg7[%c0_15, %c0_16] : memref<1x1xf32, #tpu.memory_space<vmem>>, vector<1x1xf32>
    %21 = vector.broadcast %20 : vector<1x1xf32> to vector<2x1xf32>
    %22 = arith.addf %19, %21 : vector<2x1xf32>
    %c0_17 = arith.constant 0 : index
    %c0_18 = arith.constant 0 : index
    %23 = vector.load %arg9[%c0_17, %c0_18] : memref<2x256xf32, #tpu.memory_space<vmem>>, vector<2x256xf32>
    tpu.vector_store %arg9[%c0_17, %c0_18], %16 {strides = array<i32>} : memref<2x256xf32, #tpu.memory_space<vmem>>, vector<2x256xf32>,
    %c0_19 = arith.constant 0 : index
    %c0_20 = arith.constant 0 : index
    %24 = vector.load %arg8[%c0_19, %c0_20] : memref<2x1xf32, #tpu.memory_space<vmem>>, vector<2x1xf32>
    tpu.vector_store %arg8[%c0_19, %c0_20], %22 {strides = array<i32>} : memref<2x1xf32, #tpu.memory_space<vmem>>, vector<2x1xf32>,
    return
  }
  func.func @transform_0(%arg0: i32) -> (i32, i32) {
    %c0_i32 = arith.constant 0 : i32
    %c0_i32_0 = arith.constant 0 : i32
    %c0_i32_1 = arith.constant 0 : i32
    return %c0_i32, %c0_i32_0 : i32, i32
  }
  func.func @transform_1(%arg0: i32) -> (i32, i32) {
    %c0_i32 = arith.constant 0 : i32
    %c0_i32_0 = arith.constant 0 : i32
    %c0_i32_1 = arith.constant 0 : i32
    return %c0_i32, %c0_i32_0 : i32, i32
  }
  func.func @transform_2(%arg0: i32) -> (i32, i32) {
    %c0_i32 = arith.constant 0 : i32
    %c0_i32_0 = arith.constant 0 : i32
    %c0_i32_1 = arith.constant 0 : i32
    return %c0_i32, %c0_i32_0 : i32, i32
  }
  func.func @transform_3(%arg0: i32) -> (i32, i32) {
    %c0_i32 = arith.constant 0 : i32
    %c0_i32_0 = arith.constant 0 : i32
    %c0_i32_1 = arith.constant 0 : i32
    return %c0_i32, %c0_i32_0 : i32, i32
  }
  func.func @transform_4(%arg0: i32) -> (i32, i32) {
    %c0_i32 = arith.constant 0 : i32
    %c0_i32_0 = arith.constant 0 : i32
    %c0_i32_1 = arith.constant 0 : i32
    return %c0_i32, %c0_i32_0 : i32, i32
  }
  func.func @transform_5(%arg0: i32) -> (i32, i32) {
    %c0_i32 = arith.constant 0 : i32
    %c0_i32_0 = arith.constant 0 : i32
    %c0_i32_1 = arith.constant 0 : i32
    return %c0_i32, %c0_i32_0 : i32, i32
  }
  func.func @transform_6(%arg0: i32) -> (i32, i32) {
    %c0_i32 = arith.constant 0 : i32
    %c0_i32_0 = arith.constant 0 : i32
    %c0_i32_1 = arith.constant 0 : i32
    return %c0_i32, %c0_i32_0 : i32, i32
  }
  func.func @transform_7(%arg0: i32) -> (i32, i32) {
    %c0_i32 = arith.constant 0 : i32
    %c0_i32_0 = arith.constant 0 : i32
    %c0_i32_1 = arith.constant 0 : i32
    return %c0_i32, %c0_i32_0 : i32, i32
  }
  func.func @transform_8(%arg0: i32) -> (i32, i32) {
    %c0_i32 = arith.constant 0 : i32
    %c0_i32_0 = arith.constant 0 : i32
    %c0_i32_1 = arith.constant 0 : i32
    return %c0_i32, %c0_i32_0 : i32, i32
  }
}

</mosaic_0001>

<bundles_post_ra>
// kernel: ans_policy_forward.3
= control target key start
LH: loop header
LB: loop body
LE: loop exit
PB: predicated region body
PF: predicated region fallthrough
CT: control target
= control target key end

     0   :  { %s2386_s0 = inlined_call_operand.vmem [shape: f32[2,136], index: 0, kind: input, shape index: {}]   ;;  %s2387_s1 = inlined_call_operand.vmem [shape: bf16[136,512], index: 1, kind: input, shape index: {}]   ;;  %s2388_s2 = inlined_call_operand.vmem [shape: f32[1,512], index: 2, kind: input, shape index: {}]   ;;  %s2389_s3 = inlined_call_operand.vmem [shape: bf16[512,256], index: 3, kind: input, shape index: {}]   ;;  %s2390_s4 = inlined_call_operand.vmem [shape: f32[1,256], index: 4, kind: input, shape index: {}]   ;;  %s2391_s5 = inlined_call_operand.vmem [shape: bf16[256,1], index: 5, kind: input, shape index: {}]   ;;  %s2392_s6 = inlined_call_operand.<no memory space> [shape: f32[1,1], index: 6, kind: input, shape index: {}]   ;;  %s2393_s7 = inlined_call_operand.vmem [shape: f32[2,1], index: 7, kind: output, shape index: {0}]   ;;  %s2394_s8 = inlined_call_operand.hbm [shape: f32[2,256], index: 8, kind: output, shape index: {1}]  }
   0x1   :  { %v14_v0 = vstv %s2392_s6 }
   0x2   :  { %15 = vst [vmem:[#allocation2] sm:$0x1] %v14_v0 }
   0x3   :  { %v1183_v1 = vld [vmem:[%s2387_s1 + $0xe0] sm:$0xf]  ;;  %v1551_v2 = vld [vmem:[%s2387_s1 + $0xec] sm:$0xf0]  ;;  %v1549_v3 = vld [vmem:[%s2387_s1 + $0xe4] sm:$0xf] }
   0x4   :  { %v1184_v4 = vor.u32 %v1551_v2, %v1183_v1  ;;  %v1185_v5 = vld [vmem:[%s2387_s1 + $0xf0] sm:$0xf0]  ;;  %v1191_v6 = vld [vmem:[%s2387_s1 + $0xe8] sm:$0xf]  ;;  %v1552_v7 = vld [vmem:[%s2387_s1 + $0xf4] sm:$0xf0] }
   0x5   :  { %v1188_v8 = vor.u32 %v1549_v3, %v1185_v5  ;;  %v1192_v9 = vor.u32 %v1552_v7, %v1191_v6  ;;  %v1167_v10 = vld [vmem:[%s2387_s1 + $0xc0] sm:$0xf]  ;;  %v1547_v11 = vld [vmem:[%s2387_s1 + $0xcc] sm:$0xf0]  ;;  %v1545_v12 = vld [vmem:[%s2387_s1 + $0xc4] sm:$0xf] }
   0x6   :  { %272 = vmatpush.bf16.msra.mxu0 %v1184_v4  ;;  %v1168_v13 = vor.u32 %v1547_v11, %v1167_v10  ;;  %v1169_v14 = vld [vmem:[%s2387_s1 + $0xd0] sm:$0xf0]  ;;  %v1175_v15 = vld [vmem:[%s2387_s1 + $0xc8] sm:$0xf]  ;;  %v1548_v16 = vld [vmem:[%s2387_s1 + $0xd4] sm:$0xf0] }
   0x7   :  { %298 = vmatpush.bf16.msra.mxu2 %v1188_v8  ;;  %324 = vmatpush.bf16.msra.mxu1 %v1192_v9  ;;  %v1172_v17 = vor.u32 %v1545_v12, %v1169_v14  ;;  %v1176_v18 = vor.u32 %v1548_v16, %v1175_v15  ;;  %v1151_v19 = vld [vmem:[%s2387_s1 + $0xa0] sm:$0xf]  ;;  %v1543_v20 = vld [vmem:[%s2387_s1 + $0xac] sm:$0xf0]  ;;  %v1541_v21 = vld [vmem:[%s2387_s1 + $0xa4] sm:$0xf] }
   0x8   :  { %v1153_v22 = vld [vmem:[%s2387_s1 + $0xb0] sm:$0xf0]  ;;  %v1761_v23 = vld [vmem:[%s2387_s1 + $0x100] sm:$0xff]  ;;  %v1159_v24 = vld [vmem:[%s2387_s1 + $0xa8] sm:$0xf]  ;;  %v1152_v29 = vor.u32 %v1543_v20, %v1151_v19  ;;  %vm259_vm0 = vcmask 1043456  }
   0x9   :  { %v184_v25 = vunpack.c.h.b16 %v1761_v23  ;;  %v1544_v26 = vld [vmem:[%s2387_s1 + $0xb4] sm:$0xf0]  ;;  %v32_v27 = vld [vmem:[%s2386_s0] sm:$0xf]  ;;  %v1776_v28 = vld [vmem:[%s2387_s1 + $0x108] sm:$0xff]  ;;  %v1156_v31 = vor.u32 %v1541_v21, %v1153_v22  ;;  %vm255_vm1 = vcmask 64512  }
   0xa   :  { %273 = vmatpush.bf16.msra.mxu0 %v1168_v13  ;;  %34 = vst [vmem:[#allocation1] ss:$4 sm:$0xff] %v32_v27  ;;  %v185_v30 = vunpack.c.l.b16 %v1776_v28  ;;  %v1160_v33 = vor.u32 %v1544_v26, %v1159_v24  ;;  %v1135_v34 = vld [vmem:[%s2387_s1 + $0x80] sm:$0xf]  ;;  %v1539_v35 = vld [vmem:[%s2387_s1 + $0x8c] sm:$0xf0]  ;;  %v186_v27 = vunpack.c.h.b16 %v1776_v28 }
   0xb   :  { %299 = vmatpush.bf16.msra.mxu2 %v1172_v17  ;;  %325 = vmatpush.bf16.msra.mxu1 %v1176_v18  ;;  %v220_v32 = vpack.c.b16 %v184_v25, %v184_v25  ;;  %v1537_v36 = vld [vmem:[%s2387_s1 + $0x84] sm:$0xf]  ;;  %v1137_v37 = vld [vmem:[%s2387_s1 + $0x90] sm:$0xf0]  ;;  %v1143_v38 = vld [vmem:[%s2387_s1 + $0x88] sm:$0xf]  ;;  %v1136_v42 = vor.u32 %v1539_v35, %v1135_v34  ;;  %v183_v18 = vunpack.c.l.b16 %v1761_v23 }
   0xc   :  { %v1540_v39 = vld [vmem:[%s2387_s1 + $0x94] sm:$0xf0]  ;;  %v221_v40 = vpack.c.b16 %v185_v30, %v185_v30  ;;  %v1119_v44 = vld [vmem:[%s2387_s1 + $0x60] sm:$0xf]  ;;  %v1535_v45 = vld [vmem:[%s2387_s1 + $0x6c] sm:$0xf0]  ;;  %v1140_v46 = vor.u32 %v1537_v36, %v1137_v37 }
   0xd   :  { %v264_v41 = vsel %vm259_vm0, %v220_v32, 0  ;;  %v1144_v47 = vor.u32 %v1540_v39, %v1143_v38  ;;  %v1533_v48 = vld [vmem:[%s2387_s1 + $0x64] sm:$0xf]  ;;  %v1550_v49 = vld [vmem:[%s2387_s1 + $0xec] sm:$0xf]  ;;  %v1120_v57 = vor.u32 %v1535_v45, %v1119_v44 }
   0xe   :  { %274 = vmatpush.bf16.msra.mxu0 %v1152_v29  ;;  %318 = vmatpush.bf16.msra.mxu3 %v264_v41  ;;  %v267_v43 = vsel %vm259_vm0, %v221_v40, 0  ;;  %v1193_v50 = vld [vmem:[%s2387_s1 + $0xf8] sm:$0xf0]  ;;  %v1121_v51 = vld [vmem:[%s2387_s1 + $0x70] sm:$0xf0] }
   0xf   :  { %300 = vmatpush.bf16.msra.mxu2 %v1156_v31  ;;  %326 = vmatpush.bf16.msra.mxu1 %v1160_v33  ;;  %v1127_v52 = vld [vmem:[%s2387_s1 + $0x68] sm:$0xf]  ;;  %v1536_v53 = vld [vmem:[%s2387_s1 + $0x74] sm:$0xf0]  ;;  %v1196_v55 = vor.u32 %v1550_v49, %v1193_v50  ;;  %v1546_v58 = vld [vmem:[%s2387_s1 + $0xcc] sm:$0xf]  ;;  %v1124_v60 = vor.u32 %v1533_v48, %v1121_v51 }
  0x10   :  { %v1177_v59 = vld [vmem:[%s2387_s1 + $0xd8] sm:$0xf0]  ;;  %v1128_v61 = vor.u32 %v1536_v53, %v1127_v52  ;;  %v1103_v62 = vld [vmem:[%s2387_s1 + $0x40] sm:$0xf]  ;;  %v1531_v63 = vld [vmem:[%s2387_s1 + $0x4c] sm:$0xf0] }
  0x11   :  { %v36_v54 = vld.sshfl [vmem:[#allocation1 + $0x8] sm:$0xff pattern:$0x73625140]  ;;  %v1529_v0 = vld [vmem:[%s2387_s1 + $0x44] sm:$0xf]  ;;  %v1180_v4 = vor.u32 %v1546_v58, %v1177_v59  ;;  %v1104_v5 = vor.u32 %v1531_v63, %v1103_v62 }
  0x12   :  { %344 = vmatpush.bf16.msrb.mxu3 %v267_v43  ;;  %v1823_v56 = vpack.c.bf16 %v36_v54, %v36_v54  ;;  %275 = vmatpush.bf16.msra.mxu0 %v1136_v42  ;;  %v1105_v1 = vld [vmem:[%s2387_s1 + $0x50] sm:$0xf0]  ;;  %v1111_v2 = vld [vmem:[%s2387_s1 + $0x48] sm:$0xf]  ;;  %v1532_v3 = vld [vmem:[%s2387_s1 + $0x54] sm:$0xf0] }
  0x13   :  { %301 = vmatpush.bf16.msra.mxu2 %v1140_v46  ;;  %327 = vmatpush.bf16.msra.mxu1 %v1144_v47  ;;  %v1542_v6 = vld [vmem:[%s2387_s1 + $0xac] sm:$0xf]  ;;  %v1161_v7 = vld [vmem:[%s2387_s1 + $0xb8] sm:$0xf0]  ;;  %v1108_v8 = vor.u32 %v1529_v0, %v1105_v1  ;;  %v1112_v9 = vor.u32 %v1532_v3, %v1111_v2  ;;  %v1087_v10 = vld [vmem:[%s2387_s1 + $0x20] sm:$0xf] }
  0x14   :  { %1198 = vmatmul.msk.bf16.vlgmr.msra.gmra.mxu3 %vm255_vm1, %v1823_v56  ;;  %v1527_v11 = vld [vmem:[%s2387_s1 + $0x2c] sm:$0xf0]  ;;  %v1525_v12 = vld [vmem:[%s2387_s1 + $0x24] sm:$0xf]  ;;  %v1089_v13 = vld [vmem:[%s2387_s1 + $0x30] sm:$0xf0]  ;;  %v1164_v16 = vor.u32 %v1542_v6, %v1161_v7 }
  0x15   :  { %v1095_v14 = vld [vmem:[%s2387_s1 + $0x28] sm:$0xf]  ;;  %v1528_v15 = vld [vmem:[%s2387_s1 + $0x34] sm:$0xf0]  ;;  %v1071_v17 = vld [vmem:[%s2387_s1] sm:$0xf]  ;;  %v1088_v19 = vor.u32 %v1527_v11, %v1087_v10  ;;  %v1092_v24 = vor.u32 %v1525_v12, %v1089_v13 }
  0x16   :  { %350 = vmatpush.bf16.msra.mxu3 %v1196_v55  ;;  %276 = vmatpush.bf16.msra.mxu0 %v1120_v57  ;;  %v1523_v20 = vld [vmem:[%s2387_s1 + $0xc] sm:$0xf0]  ;;  %v1538_v21 = vld [vmem:[%s2387_s1 + $0x8c] sm:$0xf]  ;;  %v1145_v22 = vld [vmem:[%s2387_s1 + $0x98] sm:$0xf0]  ;;  %v1096_v25 = vor.u32 %v1528_v15, %v1095_v14 }
  0x17   :  { %302 = vmatpush.bf16.msra.mxu2 %v1124_v60  ;;  %328 = vmatpush.bf16.msra.mxu1 %v1128_v61  ;;  %v1521_v23 = vld [vmem:[%s2387_s1 + $0x4] sm:$0xf]  ;;  %v1073_v26 = vld [vmem:[%s2387_s1 + $0x10] sm:$0xf0]  ;;  %v1079_v29 = vld [vmem:[%s2387_s1 + $0x8] sm:$0xf] }
  0x18   :  { %v1524_v30 = vld [vmem:[%s2387_s1 + $0x14] sm:$0xf0] }
  0x1a   :  { %351 = vmatpush.bf16.msra.mxu3 %v1180_v4  ;;  %277 = vmatpush.bf16.msra.mxu0 %v1104_v5 }
  0x1b   :  { %303 = vmatpush.bf16.msra.mxu2 %v1108_v8  ;;  %329 = vmatpush.bf16.msra.mxu1 %v1112_v9 }
  0x1c   :  { %16 = vsyncpa [#allocation4], 0  ;;  %v1148_v31 = vor.u32 %v1538_v21, %v1145_v22  ;;  %v35_v32 = vld.sshfl [vmem:[#allocation1] sm:$0xff pattern:$0x73625140]  ;;  %v219_v33 = vpack.c.b16 %v183_v18, %v183_v18  ;;  %v1072_v34 = vor.u32 %v1523_v20, %v1071_v17  ;;  %v1076_v36 = vor.u32 %v1521_v23, %v1073_v26  ;;  %s1058_s10 = sshll.u32 %s2394_s8, 4  ;;  %s1059_s10 = int_to_ptr.hbm [resolvable:$true] %s1058_s10 }
  0x1d   :  { %v1534_v35 = vld [vmem:[%s2387_s1 + $0x6c] sm:$0xf]  ;;  %v1129_v28 = vld [vmem:[%s2387_s1 + $0x78] sm:$0xf0]  ;;  %v1080_v37 = vor.u32 %v1524_v30, %v1079_v29  ;;  %v222_v38 = vpack.c.b16 %v186_v27, %v186_v27  ;;  %v39_v39 = vpack.c.bf16 %v35_v32, %v35_v32  ;;  %v1323_v48 = vld [vmem:[%s2389_s3 + $0xf0] sm:$0xf] }
  0x1e   :  { %352 = vmatpush.bf16.msra.mxu3 %v1164_v16  ;;  %278 = vmatpush.bf16.msra.mxu0 %v1088_v19  ;;  %v261_v40 = vsel %vm259_vm0, %v219_v33, 0  ;;  %v1132_v41 = vor.u32 %v1534_v35, %v1129_v28  ;;  %v1530_v42 = vld [vmem:[%s2387_s1 + $0x4c] sm:$0xf]  ;;  %v1113_v43 = vld [vmem:[%s2387_s1 + $0x58] sm:$0xf0]  ;;  %vm1043_vm2 = vcmask 1041408  }
  0x1f   :  { %304 = vmatpush.bf16.msra.mxu2 %v1092_v24  ;;  %330 = vmatpush.bf16.msra.mxu1 %v1096_v25  ;;  %v270_v44 = vsel %vm259_vm0, %v222_v38, 0  ;;  %v1116_v45 = vor.u32 %v1530_v42, %v1113_v43  ;;  %v1526_v46 = vld [vmem:[%s2387_s1 + $0x2c] sm:$0xf]  ;;  %v1097_v47 = vld [vmem:[%s2387_s1 + $0x38] sm:$0xf0]  ;;  %s1661_s11 = smov [#allocation3]  }
  0x20   :  { %v1584_v49 = vld [vmem:[%s2389_s3 + $0xf4] sm:$0xf0]  ;;  %v1315_v51 = vld [vmem:[%s2389_s3 + $0xe0] sm:$0xf]  ;;  %v1582_v52 = vld [vmem:[%s2389_s3 + $0xe4] sm:$0xf0]  ;;  %v1100_v53 = vor.u32 %v1526_v46, %v1097_v47 }
  0x21   :  { %v1324_v50 = vor.u32 %v1584_v49, %v1323_v48  ;;  %v1522_v54 = vld [vmem:[%s2387_s1 + $0xc] sm:$0xf]  ;;  %v1316_v55 = vor.u32 %v1582_v52, %v1315_v51  ;;  %v1259_v57 = vld [vmem:[%s2389_s3 + $0x70] sm:$0xf]  ;;  %v1568_v58 = vld [vmem:[%s2389_s3 + $0x74] sm:$0xf0] }
  0x22   :  { %353 = vmatpush.bf16.msra.mxu3 %v1148_v31  ;;  %279 = vmatpush.bf16.msra.mxu0 %v1072_v34  ;;  %v1081_v59 = vld [vmem:[%s2387_s1 + $0x18] sm:$0xf0]  ;;  %v1260_v60 = vor.u32 %v1568_v58, %v1259_v57  ;;  %v1307_v61 = vld [vmem:[%s2389_s3 + $0xd0] sm:$0xf]  ;;  %v1580_v62 = vld [vmem:[%s2389_s3 + $0xd4] sm:$0xf0] }
  0x23   :  { %305 = vmatpush.bf16.msra.mxu2 %v1076_v36  ;;  %331 = vmatpush.bf16.msra.mxu1 %v1080_v37  ;;  %v1251_v63 = vld [vmem:[%s2389_s3 + $0x60] sm:$0xf]  ;;  %v1566_v0 = vld [vmem:[%s2389_s3 + $0x64] sm:$0xf0]  ;;  %v1084_v2 = vor.u32 %v1522_v54, %v1081_v59  ;;  %v1308_v3 = vor.u32 %v1580_v62, %v1307_v61  ;;  %v1387_v6 = vld [vmem:[%s2389_s3 + $0x170] sm:$0xf] }
  0x24   :  { %1199 = vmatmul.msk.bf16.vlgmr.msrb.gmra.mxu3 %vm255_vm1, %v1823_v56  ;;  %v1252_v1 = vor.u32 %v1566_v0, %v1251_v63  ;;  %v1299_v4 = vld [vmem:[%s2389_s3 + $0xc0] sm:$0xf]  ;;  %v1578_v5 = vld [vmem:[%s2389_s3 + $0xc4] sm:$0xf0]  ;;  %v1600_v7 = vld [vmem:[%s2389_s3 + $0x174] sm:$0xf0] }
  0x25   :  { %280 = vmatmul.bf16.vlgmr.msra.gmra.mxu0 %v39_v39  ;;  %v1300_v8 = vor.u32 %v1578_v5, %v1299_v4  ;;  %v1388_v9 = vor.u32 %v1600_v7, %v1387_v6  ;;  %v1379_v10 = vld [vmem:[%s2389_s3 + $0x160] sm:$0xf]  ;;  %v1598_v11 = vld [vmem:[%s2389_s3 + $0x164] sm:$0xf0]  ;;  %v1371_v13 = vld [vmem:[%s2389_s3 + $0x150] sm:$0xf] }
  0x26   :  { %292 = vmatpush.bf16.msrb.mxu0 %v261_v40  ;;  %354 = vmatpush.bf16.msra.mxu3 %v1132_v41  ;;  %v1380_v12 = vor.u32 %v1598_v11, %v1379_v10  ;;  %v1596_v14 = vld [vmem:[%s2389_s3 + $0x154] sm:$0xf0]  ;;  %v1363_v16 = vld [vmem:[%s2389_s3 + $0x140] sm:$0xf]  ;;  %v1594_v17 = vld [vmem:[%s2389_s3 + $0x144] sm:$0xf0] }
  0x27   :  { %306 = vmatmul.bf16.vlgmr.msra.gmra.mxu2 %v39_v39  ;;  %332 = vmatmul.bf16.vlgmr.msra.gmra.mxu1 %v39_v39  ;;  %v1372_v15 = vor.u32 %v1596_v14, %v1371_v13  ;;  %v1364_v18 = vor.u32 %v1594_v17, %v1363_v16  ;;  %v1355_v19 = vld [vmem:[%s2389_s3 + $0x130] sm:$0xf]  ;;  %v1592_v20 = vld [vmem:[%s2389_s3 + $0x134] sm:$0xf0]  ;;  %v1347_v22 = vld [vmem:[%s2389_s3 + $0x120] sm:$0xf] }
  0x28   :  { %787 = vmatpush.bf16.msrb.mxu1 %v1324_v50  ;;  %774 = vmatpush.bf16.msrb.mxu2 %v1260_v60  ;;  %v1356_v21 = vor.u32 %v1592_v20, %v1355_v19  ;;  %v1590_v24 = vld [vmem:[%s2389_s3 + $0x124] sm:$0xf0]  ;;  %v1243_v23 = vld [vmem:[%s2389_s3 + $0x50] sm:$0xf]  ;;  %v1564_v26 = vld [vmem:[%s2389_s3 + $0x54] sm:$0xf0] }
  0x29   :  { %v1348_v25 = vor.u32 %v1590_v24, %v1347_v22  ;;  %v1291_v27 = vld [vmem:[%s2389_s3 + $0xb0] sm:$0xf]  ;;  %v1244_v29 = vor.u32 %v1564_v26, %v1243_v23  ;;  %v1588_v32 = vld [vmem:[%s2389_s3 + $0x114] sm:$0xf0]  ;;  %v1235_v33 = vld [vmem:[%s2389_s3 + $0x40] sm:$0xf] }
  0x2a   :  { %370 = vmatpush.bf16.msra.mxu0 %v270_v44  ;;  %355 = vmatpush.bf16.msra.mxu3 %v1116_v45  ;;  %v1339_v31 = vld [vmem:[%s2389_s3 + $0x110] sm:$0xf]  ;;  %v1562_v35 = vld [vmem:[%s2389_s3 + $0x44] sm:$0xf0]  ;;  %v1283_v28 = vld [vmem:[%s2389_s3 + $0xa0] sm:$0xf] }
  0x2b   :  { %v1340_v34 = vor.u32 %v1588_v32, %v1339_v31  ;;  %v1574_v36 = vld [vmem:[%s2389_s3 + $0xa4] sm:$0xf0]  ;;  %v1236_v37 = vor.u32 %v1562_v35, %v1235_v33  ;;  %v1599_v42 = vld [vmem:[%s2389_s3 + $0x174] sm:$0xf]  ;;  %v1389_v43 = vld [vmem:[%s2389_s3 + $0x178] sm:$0xf0] }
  0x2c   :  { %788 = vmatpush.bf16.msrb.mxu1 %v1316_v55  ;;  %775 = vmatpush.bf16.msrb.mxu2 %v1252_v1  ;;  %v1284_v38 = vor.u32 %v1574_v36, %v1283_v28  ;;  %v1586_v40 = vld [vmem:[%s2389_s3 + $0x104] sm:$0xf0]  ;;  %v1392_v44 = vor.u32 %v1599_v42, %v1389_v43  ;;  %v1227_v45 = vld [vmem:[%s2389_s3 + $0x30] sm:$0xf]  ;;  %v1560_v46 = vld [vmem:[%s2389_s3 + $0x34] sm:$0xf0] }
  0x2d   :  { %v1275_v47 = vld [vmem:[%s2389_s3 + $0x90] sm:$0xf]  ;;  %v1228_v48 = vor.u32 %v1560_v46, %v1227_v45  ;;  %v1572_v49 = vld [vmem:[%s2389_s3 + $0x94] sm:$0xf0]  ;;  %v1597_v54 = vld [vmem:[%s2389_s3 + $0x164] sm:$0xf] }
  0x2e   :  { %356 = vmatpush.bf16.msra.mxu3 %v1100_v53  ;;  %v1451_v50 = vld [vmem:[%s2389_s3 + $0x1f0] sm:$0xf]  ;;  %v1616_v51 = vld [vmem:[%s2389_s3 + $0x1f4] sm:$0xf0]  ;;  %v1276_v52 = vor.u32 %v1572_v49, %v1275_v47  ;;  %v1381_v55 = vld [vmem:[%s2389_s3 + $0x168] sm:$0xf0] }
  0x2f   :  { %v1452_v53 = vor.u32 %v1616_v51, %v1451_v50  ;;  %v1219_v57 = vld [vmem:[%s2389_s3 + $0x20] sm:$0xf]  ;;  %v1384_v58 = vor.u32 %v1597_v54, %v1381_v55  ;;  %v1558_v59 = vld [vmem:[%s2389_s3 + $0x24] sm:$0xf0]  ;;  %v1325_v4 = vld [vmem:[%s2389_s3 + $0xf8] sm:$0xf0] }
  0x30   :  { %789 = vmatpush.bf16.msrb.mxu1 %v1308_v3  ;;  %776 = vmatpush.bf16.msrb.mxu2 %v1244_v29  ;;  %v1267_v60 = vld [vmem:[%s2389_s3 + $0x80] sm:$0xf]  ;;  %v1570_v61 = vld [vmem:[%s2389_s3 + $0x84] sm:$0xf0]  ;;  %v1220_v62 = vor.u32 %v1558_v59, %v1219_v57  ;;  %v1583_v3 = vld [vmem:[%s2389_s3 + $0xf4] sm:$0xf] }
  0x31   :  { %v1268_v63 = vor.u32 %v1570_v61, %v1267_v60  ;;  %v1443_v0 = vld [vmem:[%s2389_s3 + $0x1e0] sm:$0xf]  ;;  %v1614_v1 = vld [vmem:[%s2389_s3 + $0x1e4] sm:$0xf0]  ;;  %v1328_v5 = vor.u32 %v1583_v3, %v1325_v4  ;;  %v1595_v6 = vld [vmem:[%s2389_s3 + $0x154] sm:$0xf] }
  0x32   :  { %357 = vmatpush.bf16.msra.mxu3 %v1084_v2  ;;  %v1444_v2 = vor.u32 %v1614_v1, %v1443_v0  ;;  %v1373_v7 = vld [vmem:[%s2389_s3 + $0x158] sm:$0xf0]  ;;  %v1556_v10 = vld [vmem:[%s2389_s3 + $0x14] sm:$0xf0]  ;;  %v1435_v11 = vld [vmem:[%s2389_s3 + $0x1d0] sm:$0xf] }
  0x33   :  { %v1612_v13 = vld [vmem:[%s2389_s3 + $0x1d4] sm:$0xf0]  ;;  %v1581_v14 = vld [vmem:[%s2389_s3 + $0xe4] sm:$0xf]  ;;  %v1365_v19 = vld [vmem:[%s2389_s3 + $0x148] sm:$0xf0] }
  0x34   :  { %790 = vmatpush.bf16.msrb.mxu1 %v1300_v8  ;;  %777 = vmatpush.bf16.msrb.mxu2 %v1236_v37  ;;  %v1376_v8 = vor.u32 %v1595_v6, %v1373_v7  ;;  %v1436_v16 = vor.u32 %v1612_v13, %v1435_v11  ;;  %v1554_v22 = vld [vmem:[%s2389_s3 + $0x4] sm:$0xf0]  ;;  %v1427_v24 = vld [vmem:[%s2389_s3 + $0x1c0] sm:$0xf]  ;;  %v1567_v26 = vld [vmem:[%s2389_s3 + $0x74] sm:$0xf] }
  0x35   :  { %358 = vmatmul.bf16.vlgmr.msra.gmra.mxu3 %v39_v39  ;;  %1197 = vmatmul.msk.bf16.vlgmr.msrb.gmra.mxu0 %vm255_vm1, %v1823_v56  ;;  %v1331_v39 = vld [vmem:[%s2389_s3 + $0x100] sm:$0xf]  ;;  %v1610_v23 = vld [vmem:[%s2389_s3 + $0x1c4] sm:$0xf0]  ;;  %v1261_v29 = vld [vmem:[%s2389_s3 + $0x78] sm:$0xf0] }
  0x36   :  { %800 = vmatpush.bf16.msrb.mxu0 %v1388_v9  ;;  %v1332_v41 = vor.u32 %v1586_v40, %v1331_v39  ;;  %813 = vmatpush.bf16.msrb.mxu3 %v1452_v53  ;;  %v1211_v9 = vld [vmem:[%s2389_s3 + $0x10] sm:$0xf]  ;;  %v1264_v31 = vor.u32 %v1567_v26, %v1261_v29  ;;  %v1591_v33 = vld [vmem:[%s2389_s3 + $0x134] sm:$0xf]  ;;  %v1608_v36 = vld [vmem:[%s2389_s3 + $0x1b4] sm:$0xf0] }
  0x37   :  { %v1419_v28 = vld [vmem:[%s2389_s3 + $0x1b0] sm:$0xf]  ;;  %v1253_v39 = vld [vmem:[%s2389_s3 + $0x68] sm:$0xf0]  ;;  %v1577_v40 = vld [vmem:[%s2389_s3 + $0xc4] sm:$0xf] }
  0x38   :  { %778 = vmatpush.bf16.msrb.mxu2 %v1228_v48  ;;  %v1420_v37 = vor.u32 %v1608_v36, %v1419_v28  ;;  %v1301_v42 = vld [vmem:[%s2389_s3 + $0xc8] sm:$0xf0]  ;;  %v1411_v47 = vld [vmem:[%s2389_s3 + $0x1a0] sm:$0xf]  ;;  %v1606_v48 = vld [vmem:[%s2389_s3 + $0x1a4] sm:$0xf0] }
  0x39   :  { %v1304_v43 = vor.u32 %v1577_v40, %v1301_v42  ;;  %v1349_v45 = vld [vmem:[%s2389_s3 + $0x128] sm:$0xf0]  ;;  %v1412_v49 = vor.u32 %v1606_v48, %v1411_v47  ;;  %v1563_v50 = vld [vmem:[%s2389_s3 + $0x54] sm:$0xf]  ;;  %v1245_v51 = vld [vmem:[%s2389_s3 + $0x58] sm:$0xf0] }
  0x3a   :  { %801 = vmatpush.bf16.msrb.mxu0 %v1380_v12  ;;  %814 = vmatpush.bf16.msrb.mxu3 %v1444_v2  ;;  %v1212_v12 = vor.u32 %v1556_v10, %v1211_v9  ;;  %v1248_v53 = vor.u32 %v1563_v50, %v1245_v51  ;;  %v1293_v54 = vld [vmem:[%s2389_s3 + $0xb8] sm:$0xf0]  ;;  %v1587_v57 = vld [vmem:[%s2389_s3 + $0x114] sm:$0xf]  ;;  %v1403_v60 = vld [vmem:[%s2389_s3 + $0x190] sm:$0xf] }
  0x3b   :  { %v1604_v61 = vld [vmem:[%s2389_s3 + $0x194] sm:$0xf0]  ;;  %v1237_v0 = vld [vmem:[%s2389_s3 + $0x48] sm:$0xf0]  ;;  %v1573_v1 = vld [vmem:[%s2389_s3 + $0xa4] sm:$0xf] }
  0x3c   :  { %779 = vmatpush.bf16.msrb.mxu2 %v1220_v62  ;;  %v1404_v62 = vor.u32 %v1604_v61, %v1403_v60  ;;  %v1285_v4 = vld [vmem:[%s2389_s3 + $0xa8] sm:$0xf0]  ;;  %v1585_v6 = vld [vmem:[%s2389_s3 + $0x104] sm:$0xf]  ;;  %v1395_v9 = vld [vmem:[%s2389_s3 + $0x180] sm:$0xf] }
  0x3d   :  { %v1333_v7 = vld [vmem:[%s2389_s3 + $0x108] sm:$0xf0]  ;;  %v1602_v10 = vld [vmem:[%s2389_s3 + $0x184] sm:$0xf0]  ;;  %v1229_v13 = vld [vmem:[%s2389_s3 + $0x38] sm:$0xf0] }
  0x3e   :  { %802 = vmatpush.bf16.msrb.mxu0 %v1372_v15  ;;  %v1317_v15 = vld [vmem:[%s2389_s3 + $0xe8] sm:$0xf0]  ;;  %815 = vmatpush.bf16.msrb.mxu3 %v1436_v16  ;;  %v1396_v11 = vor.u32 %v1602_v10, %v1395_v9  ;;  %v1277_v16 = vld [vmem:[%s2389_s3 + $0x98] sm:$0xf0]  ;;  %v1613_v29 = vld [vmem:[%s2389_s3 + $0x1e4] sm:$0xf] }
  0x3f   :  { %v1320_v17 = vor.u32 %v1581_v14, %v1317_v15  ;;  %v1571_v14 = vld [vmem:[%s2389_s3 + $0x94] sm:$0xf]  ;;  %v1553_v42 = vld [vmem:[%s2389_s3 + $0x4] sm:$0xf]  ;;  %v1429_v47 = vld [vmem:[%s2389_s3 + $0x1c8] sm:$0xf0] }
  0x40   :  { %780 = vmatpush.bf16.msrb.mxu2 %v1212_v12  ;;  %v1559_v12 = vld [vmem:[%s2389_s3 + $0x34] sm:$0xf]  ;;  %v1605_v61 = vld [vmem:[%s2389_s3 + $0x1a4] sm:$0xf]  ;;  %s1056_s12 = sshll.u32 %s1661_s11, 4  ;;  %vm1047_vm3 = vcmask 1024   ;;  %s1057_s12 = int_to_ptr.vmem [resolvable:$true] %s1056_s12 }
  0x41   :  { %v1232_v15 = vor.u32 %v1559_v12, %v1229_v13  ;;  %v1611_v28 = vld [vmem:[%s2389_s3 + $0x1d4] sm:$0xf]  ;;  %v1397_v12 = vld [vmem:[%s2389_s3 + $0x188] sm:$0xf0] }
  0x42   :  { %803 = vmatpush.bf16.msrb.mxu0 %v1364_v18  ;;  %v1593_v18 = vld [vmem:[%s2389_s3 + $0x144] sm:$0xf] }
  0x43   :  { %v1368_v20 = vor.u32 %v1593_v18, %v1365_v19  ;;  %v1453_v18 = vld [vmem:[%s2389_s3 + $0x1f8] sm:$0xf0]  ;;  %v1280_v19 = vor.u32 %v1571_v14, %v1277_v16 }
  0x45   :  { %1200 = vmatmul.msk.bf16.vlgmr.msra.gmra.mxu0 %vm255_vm1, %v1823_v56  ;;  %v1576_v56 = vld [vmem:[%s2389_s3 + $0xb4] sm:$0xf0] }
  0x46   :  { %804 = vmatpush.bf16.msrb.mxu0 %v1356_v21  ;;  %v1292_v30 = vor.u32 %v1576_v56, %v1291_v27  ;;  %v1203_v21 = vld [vmem:[%s2389_s3] sm:$0xf]  ;;  %v1428_v27 = vor.u32 %v1610_v23, %v1427_v24  ;;  %v1579_v56 = vld [vmem:[%s2389_s3 + $0xd4] sm:$0xf]  ;;  %v1221_v24 = vld [vmem:[%s2389_s3 + $0x28] sm:$0xf0] }
  0x48   :  { %791 = vmatpush.bf16.msrb.mxu1 %v1292_v30  ;;  %v1309_v30 = vld [vmem:[%s2389_s3 + $0xd8] sm:$0xf0]  ;;  %816 = vmatpush.bf16.msrb.mxu3 %v1428_v27  ;;  %v1269_v27 = vld [vmem:[%s2389_s3 + $0x88] sm:$0xf0] }
  0x49   :  { %v1312_v32 = vor.u32 %v1579_v56, %v1309_v30  ;;  %v1445_v56 = vld [vmem:[%s2389_s3 + $0x1e8] sm:$0xf0] }
  0x4a   :  { %805 = vmatpush.bf16.msrb.mxu0 %v1348_v25  ;;  %v1204_v25 = vor.u32 %v1554_v22, %v1203_v21  ;;  %v2256_v21 = vld [vmem:[%s2388_s2] sm:$0xf]  ;;  %v1557_v22 = vld [vmem:[%s2389_s3 + $0x24] sm:$0xf] }
  0x4b   :  { %v1224_v26 = vor.u32 %v1557_v22, %v1221_v24  ;;  %v79_v30 = vperm.slane %v2256_v21, 2 }
  0x4c   :  { %792 = vmatpush.bf16.msrb.mxu1 %v1284_v38  ;;  %781 = vmatpush.bf16.msrb.mxu2 %v1204_v25  ;;  %v1565_v38 = vld [vmem:[%s2389_s3 + $0x64] sm:$0xf] }
  0x4d   :  { %817 = vmatpush.bf16.msrb.mxu3 %v1420_v37  ;;  %v1569_v25 = vld [vmem:[%s2389_s3 + $0x84] sm:$0xf] }
  0x4e   :  { %806 = vmatpush.bf16.msrb.mxu0 %v1340_v34  ;;  %v1357_v34 = vld [vmem:[%s2389_s3 + $0x138] sm:$0xf0] }
  0x4f   :  { %v1360_v35 = vor.u32 %v1591_v33, %v1357_v34  ;;  %v1555_v34 = vld [vmem:[%s2389_s3 + $0x14] sm:$0xf] }
  0x50   :  { %793 = vmatpush.bf16.msrb.mxu1 %v1276_v52  ;;  %826 = vmatpush.bf16.msra.mxu2 %v1264_v31  ;;  %v1575_v52 = vld [vmem:[%s2389_s3 + $0xb4] sm:$0xf]  ;;  %v1272_v31 = vor.u32 %v1569_v25, %v1269_v27  ;;  %v1624_v27 = vld [vmem:[%s2391_s5 + $0x38] sm:$0xff] }
  0x51   :  { %v1296_v55 = vor.u32 %v1575_v52, %v1293_v54  ;;  %818 = vmatpush.bf16.msrb.mxu3 %v1412_v49  ;;  %v1607_v54 = vld [vmem:[%s2389_s3 + $0x1b4] sm:$0xf] }
  0x52   :  { %807 = vmatpush.bf16.msrb.mxu0 %v1332_v41  ;;  %v1256_v41 = vor.u32 %v1565_v38, %v1253_v39  ;;  %v1437_v38 = vld [vmem:[%s2389_s3 + $0x1d8] sm:$0xf0] }
  0x53   :  { %v1440_v40 = vor.u32 %v1611_v28, %v1437_v38  ;;  %v1630_v28 = vld [vmem:[%s2391_s5 + $0x68] sm:$0xff]  ;;  %v1629_v38 = vld [vmem:[%s2391_s5 + $0x60] sm:$0xff] }
  0x54   :  { %794 = vmatpush.bf16.msrb.mxu1 %v1268_v63  ;;  %827 = vmatpush.bf16.msra.mxu2 %v1256_v41  ;;  %v1561_v63 = vld [vmem:[%s2389_s3 + $0x44] sm:$0xf]  ;;  %v78_v41 = vperm.slane %v2256_v21, 1 }
  0x55   :  { %v1240_v3 = vor.u32 %v1561_v63, %v1237_v0  ;;  %819 = vmatpush.bf16.msrb.mxu3 %v1404_v62  ;;  %v1413_v62 = vld [vmem:[%s2389_s3 + $0x1a8] sm:$0xf0]  ;;  %v77_v63 = vperm.slane %v2256_v21, 0 }
  0x56   :  { %852 = vmatpush.bf16.msra.mxu0 %v1392_v44  ;;  %v1589_v44 = vld [vmem:[%s2389_s3 + $0x124] sm:$0xf] }
  0x57   :  { %v1352_v46 = vor.u32 %v1589_v44, %v1349_v45  ;;  %v1609_v44 = vld [vmem:[%s2389_s3 + $0x1c4] sm:$0xf] }
  0x58   :  { %839 = vmatpush.bf16.msra.mxu1 %v1328_v5  ;;  %828 = vmatpush.bf16.msra.mxu2 %v1248_v53  ;;  %v1288_v5 = vor.u32 %v1573_v1, %v1285_v4  ;;  %v1432_v49 = vor.u32 %v1609_v44, %v1429_v47  ;;  %v448_v44 = vld [vmem:[%s2390_s4] sm:$0x3] }
  0x59   :  { %820 = vmatpush.bf16.msrb.mxu3 %v1396_v11  ;;  %v1601_v11 = vld [vmem:[%s2389_s3 + $0x184] sm:$0xf]  ;;  %v450_v47 = vperm.slane %v448_v44, 0 }
  0x5a   :  { %853 = vmatpush.bf16.msra.mxu0 %v1384_v58  ;;  %v1341_v58 = vld [vmem:[%s2389_s3 + $0x118] sm:$0xf0]  ;;  %v1400_v16 = vor.u32 %v1601_v11, %v1397_v12  ;;  %v1634_v12 = vld [vmem:[#allocation2] ss:$0 sm:$0xff] }
  0x5b   :  { %v1344_v59 = vor.u32 %v1587_v57, %v1341_v58 }
  0x5c   :  { %840 = vmatpush.bf16.msra.mxu1 %v1320_v17  ;;  %829 = vmatpush.bf16.msra.mxu2 %v1240_v3  ;;  %v1615_v17 = vld [vmem:[%s2389_s3 + $0x1f4] sm:$0xf]  ;;  %v1416_v3 = vor.u32 %v1605_v61, %v1413_v62  ;;  %v451_v61 = vperm.slane %v448_v44, 1 }
  0x5e   :  { %854 = vmatpush.bf16.msra.mxu0 %v1376_v8  ;;  %v1336_v8 = vor.u32 %v1585_v6, %v1333_v7 }
  0x60   :  { %841 = vmatpush.bf16.msra.mxu1 %v1312_v32  ;;  %830 = vmatpush.bf16.msra.mxu2 %v1232_v15  ;;  %v1448_v32 = vor.u32 %v1613_v29, %v1445_v56  ;;  %v1622_v29 = vld [vmem:[%s2391_s5 + $0x28] sm:$0xff]  ;;  %v1621_v56 = vld [vmem:[%s2391_s5 + $0x20] sm:$0xff] }
  0x62   :  { %855 = vmatpush.bf16.msra.mxu0 %v1368_v20  ;;  %v1456_v20 = vor.u32 %v1615_v17, %v1453_v18  ;;  %v80_v18 = vperm.slane %v2256_v21, 3  ;;  %v1623_v21 = vld [vmem:[%s2391_s5 + $0x30] sm:$0xff] }
  0x64   :  { %842 = vmatpush.bf16.msra.mxu1 %v1304_v43  ;;  %865 = vmatpush.bf16.msra.mxu3 %v1456_v20  ;;  %v1205_v43 = vld [vmem:[%s2389_s3 + $0x8] sm:$0xf0] }
  0x65   :  { %831 = vmatpush.bf16.msra.mxu2 %v1224_v26 }
  0x66   :  { %856 = vmatpush.bf16.msra.mxu0 %v1360_v35  ;;  %v1213_v35 = vld [vmem:[%s2389_s3 + $0x18] sm:$0xf0] }
  0x67   :  { %v1216_v37 = vor.u32 %v1555_v34, %v1213_v35  ;;  %v1618_v35 = vld [vmem:[%s2391_s5 + $0x8] sm:$0xff] }
  0x68   :  { %843 = vmatpush.bf16.msra.mxu1 %v1296_v55  ;;  %866 = vmatpush.bf16.msra.mxu3 %v1448_v32  ;;  %v1421_v55 = vld [vmem:[%s2389_s3 + $0x1b8] sm:$0xf0]  ;;  %v1619_v32 = vld [vmem:[%s2391_s5 + $0x10] sm:$0xff] }
  0x69   :  { %832 = vmatpush.bf16.msra.mxu2 %v1216_v37  ;;  %v1424_v58 = vor.u32 %v1607_v54, %v1421_v55  ;;  %v1617_v37 = vld [vmem:[%s2391_s5] sm:$0xff] }
  0x6a   :  { %857 = vmatpush.bf16.msra.mxu0 %v1352_v46  ;;  %v1208_v46 = vor.u32 %v1553_v42, %v1205_v43  ;;  %v1627_v42 = vld [vmem:[%s2391_s5 + $0x50] sm:$0xff] }
  0x6c   :  { %844 = vmatpush.bf16.msra.mxu1 %v1288_v5  ;;  %867 = vmatpush.bf16.msra.mxu3 %v1440_v40  ;;  %v1405_v5 = vld [vmem:[%s2389_s3 + $0x198] sm:$0xf0] }
  0x6d   :  { %833 = vmatpush.bf16.msra.mxu2 %v1208_v46  ;;  %v1628_v40 = vld [vmem:[%s2391_s5 + $0x58] sm:$0xff]  ;;  %v1626_v46 = vld [vmem:[%s2391_s5 + $0x48] sm:$0xff] }
  0x6e   :  { %858 = vmatpush.bf16.msra.mxu0 %v1344_v59 }
  0x70   :  { %845 = vmatpush.bf16.msra.mxu1 %v1280_v19  ;;  %868 = vmatpush.bf16.msra.mxu3 %v1432_v49  ;;  %v1625_v49 = vld [vmem:[%s2391_s5 + $0x40] sm:$0xff] }
  0x72   :  { %859 = vmatpush.bf16.msra.mxu0 %v1336_v8 }
  0x74   :  { %846 = vmatpush.bf16.msra.mxu1 %v1272_v31  ;;  %869 = vmatpush.bf16.msra.mxu3 %v1424_v58  ;;  %v1632_v31 = vld [vmem:[%s2391_s5 + $0x78] sm:$0xff] }
  0x78   :  { %870 = vmatpush.bf16.msra.mxu3 %v1416_v3 }
  0x97   :  { %v2218_v2 = vpop.f32.mrf.mxu3 }
  0x9f   :  { %v322_v23 = vpop.f32.mrf.mxu3 }
  0xa2   :  { %v281_v33 = vpop.f32.mrf.mxu0 }
  0xa3   :  { %v282_v6 = vadd.f32 %v281_v33, %v77_v63  ;;  %v1631_v33 = vld [vmem:[%s2391_s5 + $0x70] sm:$0xff] }
  0xa4   :  { %v333_v36 = vpop.f32.mrf.mxu1 }
  0xa5   :  { %v334_v39 = vadd.f32 %v333_v36, %v79_v30  ;;  %v1620_v30 = vld [vmem:[%s2391_s5 + $0x18] sm:$0xff] }
  0xa7   :  { %v346_v45 = vpop.f32.mrf.mxu3 }
  0xa8   :  { %v347_v48 = vadd.f32 %v346_v45, %v334_v39 }
  0xaa   :  { %v307_v50 = vpop.f32.mrf.mxu2  ;;  %v378_v51 = vmax.f32 %v347_v48, 0.0  ;;  %v283_v53 = vpop.f32.mrf.mxu0 }
  0xab   :  { %v308_v52 = vadd.f32 %v307_v50, %v78_v41 }
  0xac   :  { %v335_v57 = vpop.f32.mrf.mxu1  ;;  %v382_v59 = vpack.c.bf16 %v378_v51, %v378_v51 }
  0xad   :  { %v321_v60 = vadd.f32 %v2218_v2, %v308_v52  ;;  %v1603_v2 = vld [vmem:[%s2389_s3 + $0x194] sm:$0xf] }
  0xae   :  { %808 = vmatmul.bf16.vlgmr.msrb.gmra.mxu0 %v382_v59  ;;  %v1408_v10 = vor.u32 %v1603_v2, %v1405_v5 }
  0xaf   :  { %v377_v0 = vmax.f32 %v321_v60, 0.0  ;;  %v348_v1 = vpop.f32.mrf.mxu3 }
  0xb0   :  { %871 = vmatpush.bf16.msra.mxu3 %v1408_v10 }
  0xb1   :  { %v381_v4 = vpack.c.bf16 %v377_v0, %v377_v0 }
  0xb2   :  { %v309_v7 = vpop.f32.mrf.mxu2  ;;  %v294_v8 = vpop.f32.mrf.mxu0 }
  0xb3   :  { %795 = vmatmul.bf16.vlgmr.msrb.gmra.mxu1 %v381_v4  ;;  %v295_v9 = vadd.f32 %v294_v8, %v282_v6 }
  0xb4   :  { %872 = vmatpush.bf16.msra.mxu3 %v1400_v16  ;;  %1027 = vmatpush.bf16.msrb.mxu1 %v1632_v31 }
  0xb5   :  { %v376_v13 = vmax.f32 %v295_v9, 0.0 }
  0xb7   :  { %v380_v14 = vpack.c.bf16 %v376_v13, %v376_v13 }
  0xb8   :  { %v359_v15 = vpop.f32.mrf.mxu3  ;;  %1028 = vmatpush.bf16.msrb.mxu1 %v1631_v33 }
  0xb9   :  { %782 = vmatmul.bf16.vlgmr.msrb.gmra.mxu2 %v380_v14  ;;  %v360_v19 = vadd.f32 %v359_v15, %v80_v18 }
  0xba   :  { %v296_v17 = vpop.f32.mrf.mxu0  ;;  %1014 = vmatpush.bf16.msrb.mxu2 %v1624_v27 }
  0xbc   :  { %1029 = vmatpush.bf16.msrb.mxu1 %v1630_v28 }
  0xbe   :  { %860 = vmatmul.bf16.vlgmr.msra.gmra.mxu0 %v382_v59  ;;  %1015 = vmatpush.bf16.msrb.mxu2 %v1623_v21 }
  0xc0   :  { %v361_v20 = vpop.f32.mrf.mxu3  ;;  %1030 = vmatpush.bf16.msrb.mxu1 %v1629_v38 }
  0xc2   :  { %v372_v22 = vpop.f32.mrf.mxu0  ;;  %1016 = vmatpush.bf16.msrb.mxu2 %v1622_v29 }
  0xc3   :  { %847 = vmatmul.bf16.vlgmr.msra.gmra.mxu1 %v381_v4  ;;  %v373_v24 = vadd.f32 %v372_v22, %v360_v19 }
  0xc4   :  { %1031 = vmatpush.bf16.msrb.mxu1 %v1628_v40 }
  0xc5   :  { %v379_v25 = vmax.f32 %v373_v24, 0.0 }
  0xc6   :  { %1017 = vmatpush.bf16.msrb.mxu2 %v1621_v56 }
  0xc7   :  { %v383_v23 = vpack.c.bf16 %v379_v25, %v379_v25 }
  0xc8   :  { %1032 = vmatpush.bf16.msrb.mxu1 %v1627_v42 }
  0xc9   :  { %821 = vmatmul.bf16.vlgmr.msrb.gmra.mxu3 %v383_v23  ;;  %834 = vmatmul.bf16.vlgmr.msra.gmra.mxu2 %v380_v14 }
  0xca   :  { %v374_v26 = vpop.f32.mrf.mxu0  ;;  %1018 = vmatpush.bf16.msrb.mxu2 %v1620_v30 }
  0xcc   :  { %1033 = vmatpush.bf16.msrb.mxu1 %v1626_v46 }
  0xce   :  { %1019 = vmatpush.bf16.msrb.mxu2 %v1619_v32 }
  0xd0   :  { %1034 = vmatpush.bf16.msrb.mxu1 %v1625_v49 }
  0xd2   :  { %1020 = vmatpush.bf16.msrb.mxu2 %v1618_v35 }
  0xd6   :  { %1021 = vmatpush.bf16.msrb.mxu2 %v1617_v37 }
  0xd9   :  { %873 = vmatmul.bf16.vlgmr.msra.gmra.mxu3 %v383_v23 }
 0x12b   :  { %v809_v34 = vpop.f32.mrf.mxu0 }
 0x130   :  { %v796_v36 = vpop.f32.mrf.mxu1 }
 0x133   :  { %v811_v39 = vpop.f32.mrf.mxu0 }
 0x138   :  { %v798_v41 = vpop.f32.mrf.mxu1 }
 0x13b   :  { %v861_v43 = vpop.f32.mrf.mxu0 }
 0x13c   :  { %v783_v45 = vpop.f32.mrf.mxu2 }
 0x13d   :  { %v784_v50 = vadd.f32 %v783_v45, %v450_v47 }
 0x13f   :  { %v797_v53 = vadd.f32 %v796_v36, %v784_v50 }
 0x140   :  { %v848_v48 = vpop.f32.mrf.mxu1 }
 0x141   :  { %v810_v55 = vadd.f32 %v809_v34, %v797_v53 }
 0x143   :  { %v863_v51 = vpop.f32.mrf.mxu0 }
 0x144   :  { %v785_v52 = vpop.f32.mrf.mxu2 }
 0x148   :  { %v850_v54 = vpop.f32.mrf.mxu1 }
 0x14c   :  { %v822_v57 = vpop.f32.mrf.mxu3  ;;  %v835_v58 = vpop.f32.mrf.mxu2 }
 0x14d   :  { %v823_v59 = vadd.f32 %v822_v57, %v810_v55  ;;  %v836_v63 = vadd.f32 %v835_v58, %v451_v61 }
 0x14f   :  { %v878_v60 = vmax.f32 %v823_v59, 0.0  ;;  %v849_v3 = vadd.f32 %v848_v48, %v836_v63 }
 0x151   :  { %v880_v62 = vpack.c.bf16 %v878_v60, %v878_v60  ;;  %v862_v4 = vadd.f32 %v861_v43, %v849_v3 }
 0x153   :  { %1022 = vmatmul.bf16.vlgmr.msrb.gmra.mxu2 %v880_v62 }
 0x154   :  { %v824_v0 = vpop.f32.mrf.mxu3  ;;  %v837_v1 = vpop.f32.mrf.mxu2 }
 0x15c   :  { %v874_v2 = vpop.f32.mrf.mxu3 }
 0x15d   :  { %v875_v5 = vadd.f32 %v874_v2, %v862_v4 }
 0x15f   :  { %v879_v6 = vmax.f32 %v875_v5, 0.0 }
 0x161   :  { %v881_v7 = vpack.c.bf16 %v879_v6, %v879_v6  ;;  %v1042_v8 = vrot.slane %v879_v6, 6 }
 0x163   :  { %1035 = vmatmul.bf16.vlgmr.msrb.gmra.mxu1 %v881_v7  ;;  %v1044_v9 = vsel %vm1043_vm2, %v878_v60, %v1042_v8 }
 0x164   :  { %v876_v10 = vpop.f32.mrf.mxu3  ;;  %1046 = vst [vmem:[#allocation3] sm:$0xf] %v1044_v9 }
 0x165   :  { %1061 = dma.vmem_to_hbm [thread:$0]  %s1057_s12, 64, %s1059_s10, [#allocation4]  }
 0x1d6   :  { %v1023_v11 = vpop.f32.mrf.mxu2 }
 0x1d7   :  { %v1024_v14 = vadd.f32 %v1634_v12, %v1023_v11 }
 0x1de   :  { %v1025_v13 = vpop.f32.mrf.mxu2 }
 0x1e0   :  { %v1036_v15 = vpop.f32.mrf.mxu1 }
 0x1e1   :  { %v1037_v16 = vadd.f32 %v1036_v15, %v1024_v14 }
 0x1e3   :  { %1048 = vst.msk [vmem:[%s2393_s7] sm:$0x3] %vm1047_vm3, %v1037_v16 }
 0x1e8   :  { %v1038_v17 = vpop.f32.mrf.mxu1 }
 0x1e9   :  { %1659 = dma.done.wait [#allocation4], 64  }
 0x1ea   :  { %1660 = vsyncadd [#allocation4], 4294967232 }
 0x1eb   :  { %1068 = vsyncpa [#allocation4], 1 }

// kernel: ans_policy_forward.2
= control target key start
LH: loop header
LB: loop body
LE: loop exit
PB: predicated region body
PF: predicated region fallthrough
CT: control target
= control target key end

     0   :  { %s9116_s17 = smov 0   ;;  %s11160_s0 = inlined_call_operand.vmem [shape: f32[2,256,9], index: 0, kind: input, shape index: {}]   ;;  %s11161_s1 = inlined_call_operand.vmem [shape: bf16[9,9,32], index: 1, kind: input, shape index: {}]   ;;  %s11162_s2 = inlined_call_operand.vmem [shape: f32[1,32], index: 2, kind: input, shape index: {}]   ;;  %s11163_s3 = inlined_call_operand.vmem [shape: bf16[9,32,64], index: 3, kind: input, shape index: {}]   ;;  %s11164_s4 = inlined_call_operand.vmem [shape: f32[1,64], index: 4, kind: input, shape index: {}]   ;;  %s11165_s5 = inlined_call_operand.vmem [shape: bf16[9,64,128], index: 5, kind: input, shape index: {}]   ;;  %s11166_s6 = inlined_call_operand.vmem [shape: f32[1,128], index: 6, kind: input, shape index: {}]   ;;  %s11167_s7 = inlined_call_operand.vmem [shape: bf16[9,128,64], index: 7, kind: input, shape index: {}]   ;;  %s11168_s8 = inlined_call_operand.vmem [shape: f32[1,64], index: 8, kind: input, shape index: {}]   ;;  %s11169_s9 = inlined_call_operand.vmem [shape: bf16[9,64,32], index: 9, kind: input, shape index: {}]   ;;  %s11170_s10 = inlined_call_operand.vmem [shape: f32[1,32], index: 10, kind: input, shape index: {}]   ;;  %s11171_s11 = inlined_call_operand.vmem [shape: f32[2,4,32], index: 11, kind: output, shape index: {}]  }
   0x1 LB: > { %s7205_s18 = sadd.s32 4294967295, %s9052_s17   ;;  %p7209_p0 = scmp.ge.s32.totalorder %s9052_s17, 1  ;;  %s9052_s17 = sphi %s9116_s17, %s21_s17  }
   0x2   : > { %p337_p1 = scmp.lt.s32.totalorder %s9052_s17, 3 }
   0x4   : > { %p338_p2 = pnand %p7209_p0, %p337_p1 }
   0x6   : > { %341 = sbr.rel (%p338_p2) target bundleno = 1923 (0x783), region = 64 }
   0xb   : > { %v7279_v0 = vld [vmem:[%s11161_s1 + $0x20] sm:$0xf]  ;;  %v8702_v1 = vld [vmem:[%s11161_s1 + $0x20] sm:$0x10]  ;;  %vm1608_vm0 = vcmask 1043456   ;;  %vm1609_vm1 = vcmask 1044480  }
   0xc   : > { %v7280_v2 = vor.u32 %v8702_v1, %v7279_v0  ;;  %v7299_v3 = vld [vmem:[%s11161_s1 + $0x8] sm:$0xf]  ;;  %v8700_v4 = vld [vmem:[%s11161_s1 + $0x8] sm:$0x10]  ;;  %p376_p3 = scmp.lt.s32.totalorder %s7205_s18, 1  ;;  %v9054_v5 = vmov 65535  }
   0xd   : > { %v1610_v6 = vsel %vm1608_vm0, 4294967295, %v9054_v5  ;;  %v7300_v7 = vor.u32 %v8700_v4, %v7299_v3  ;;  %v7381_v8 = vld [vmem:[%s11161_s1 + $0x38] sm:$0xf]  ;;  %v8718_v9 = vld [vmem:[%s11161_s1 + $0x38] sm:$0x10]  ;;  %vm389_vm2 = vcmask 65536  }
   0xe   : > { %v9144_v10 = vsel %vm1609_vm1, %v1610_v6, 0  ;;  %v7382_v11 = vor.u32 %v8718_v9, %v7381_v8  ;;  %s11247_s18 = smov (!%p376_p3, %s7205_s18), 1  ;;  %vm390_vm3 = vsmask.f32 256  ;;  %v392_v15 = vld [vmem:[#allocation2 + $0x8] sm:$0x1] }
   0xf   : > { %v1613_v12 = vand.u32 %v7280_v2, %v9144_v10  ;;  %v1737_v13 = vand.u32 %v7300_v7, %v9144_v10  ;;  %vm9152_vm4 = vmand %vm389_vm2, %vm390_vm3  ;;  %s8685_s12 = sshll.u32 %s11247_s18, 8  ;;  %vm406_vm5 = vcmask 253952   ;;  %v11184_v18 = vmov 0  ;;  %v7491_v48 = vld [vmem:[%s11161_s1] sm:$0xf]  ;;  %s7212_s21 = sshll.u32 %s11247_s18, 2 }
  0x10   : > { %v2133_v16 = vand.u32 %v7382_v11, %v9144_v10  ;;  %v393_v17 = vsel %vm9152_vm4, 0, %v392_v15  ;;  %s9163_s15 = scalar_lea.vmem %s11160_s0, %s8685_s12  ;;  %vm9167_vm6 = vmand %vm406_vm5, %vm390_vm3  ;;  %vm430_vm7 = vcmask 516096   ;;  %vm386_vm8 = vcmask 68608   ;;  %v8735_v53 = vld [vmem:[%s11161_s1] sm:$0x10]  ;;  %s384_s24 = scalar_lea.vmem %s11171_s11, %s7212_s21 }
  0x11   : > { %1622 = vmatpush.bf16.msra.mxu0 %v1613_v12  ;;  %1746 = vmatpush.bf16.msra.mxu1 %v1737_v13  ;;  %394 = vst [vmem:[#allocation2 + $0x8] sm:$0x1] %v393_v17  ;;  %v11185_v18 = vsel %vm9167_vm6, 4294967295, %v11184_v18  ;;  %vm396_vm9 = vsmask.f32 7938  ;;  %v456_v19 = vld [vmem:[%s9163_s15] sm:$0xff]  ;;  %vm9178_vm12 = vmand %vm430_vm7, %vm390_vm3  ;;  %v7492_v9 = vor.u32 %v8735_v53, %v7491_v48 }
  0x12   : > { %11186 = vst [vmem:[#allocation10_spill] sm:$0xff] %v11185_v18  ;;  %2142 = vmatpush.bf16.msra.mxu2 %v2133_v16  ;;  %v457_v20 = vld [vmem:[%s9163_s15 + $0x8] sm:$0xff]  ;;  %vm404_vm10 = vcmask 257024   ;;  %v458_v21 = vld [vmem:[%s9163_s15 + $0x10] sm:$0xff]  ;;  %v459_v22 = vld [vmem:[%s9163_s15 + $0x18] sm:$0xff]  ;;  %v488_v23 = vpack.c.bf16 %v456_v19, %v456_v19  ;;  %v9055_v25 = vmov 0  }
  0x13   : > { %v489_v24 = vpack.c.bf16 %v457_v20, %v457_v20  ;;  %387 = vst.msk [vmem:[#allocation2] sm:$0xf] %vm386_vm8, %v9055_v25  ;;  %v490_v26 = vpack.c.bf16 %v458_v21, %v458_v21  ;;  %v491_v27 = vpack.c.bf16 %v459_v22, %v459_v22  ;;  %vm520_vm11 = vsmask.f32 4368  ;;  %v460_v29 = vld [vmem:[%s9163_s15 + $0x20] sm:$0xff]  ;;  %v461_v30 = vld [vmem:[%s9163_s15 + $0x28] sm:$0xff]  ;;  %vm9189_vm13 = vmand %vm386_vm8, %vm396_vm9 }
  0x14   : > { %v11187_v28 = vmov 0  ;;  %388 = vst.msk [vmem:[#allocation2 + $0x4] sm:$0xf] %vm386_vm8, %v9055_v25  ;;  %v523_v31 = vshrl.u32 %v488_v23, 16  ;;  %v526_v32 = vshll.u32 %v488_v23, 16  ;;  %v492_v42 = vpack.c.bf16 %v460_v29, %v460_v29  ;;  %vm9196_vm14 = vmor %vm390_vm3, %vm520_vm11  ;;  %v462_v58 = vld [vmem:[%s9163_s15 + $0x30] sm:$0xff] }
  0x15   : > { %v11188_v28 = vsel %vm9178_vm12, 4294967295, %v11187_v28  ;;  %v531_v33 = vshrl.u32 %v489_v24, 16  ;;  %v534_v34 = vshll.u32 %v489_v24, 16  ;;  %401 = vst.msk [vmem:[#allocation2 + $0x8c] sm:$0xf] %vm386_vm8, %v9055_v25  ;;  %v540_v35 = vshrl.u32 %v490_v26, 16 }
  0x16   : > { %11189 = vst [vmem:[#allocation11_spill] sm:$0xff] %v11188_v28  ;;  %v543_v36 = vshll.u32 %v490_v26, 16  ;;  %v549_v37 = vshrl.u32 %v491_v27, 16  ;;  %v552_v38 = vshll.u32 %v491_v27, 16  ;;  %v525_v40 = vrot.slane %v523_v31, 7  ;;  %v463_v59 = vld [vmem:[%s9163_s15 + $0x38] sm:$0xff] }
  0x17   : > { %403 = vst.msk [vmem:[#allocation2 + $0x90] sm:$0x1] %vm389_vm2, %v9055_v25  ;;  %v533_v41 = vrot.slane %v531_v33, 7  ;;  %v542_v44 = vrot.slane %v540_v35, 7  ;;  %v493_v47 = vpack.c.bf16 %v461_v30, %v461_v30  ;;  %v558_v63 = vshrl.u32 %v492_v42, 16  ;;  %v464_v1 = vld [vmem:[%s9163_s15 + $0x40] sm:$0xff] }
  0x18   : > { %405 = vst.msk [vmem:[#allocation3] sm:$0xf] %vm404_vm10, %v9055_v25  ;;  %v551_v45 = vrot.slane %v549_v37, 7  ;;  %v842_v46 = vld [vmem:[#allocation2 + $0x8] sm:$0xf]  ;;  %v528_v49 = vor.u32 %v526_v32, %v525_v40  ;;  %v529_v50 = vrot.slane %v525_v40, 4  ;;  %v494_v12 = vpack.c.bf16 %v462_v58, %v462_v58 }
  0x19   : > { %417 = vst.msk [vmem:[#allocation3 + $0x28] sm:$0x1] %vm406_vm5, %v9055_v25  ;;  %v536_v51 = vor.u32 %v534_v34, %v533_v41  ;;  %v538_v52 = vrot.slane %v533_v41, 4  ;;  %v545_v54 = vor.u32 %v543_v36, %v542_v44  ;;  %v547_v55 = vrot.slane %v542_v44, 4  ;;  %v465_v15 = vld [vmem:[%s9163_s15 + $0x48] sm:$0xff] }
  0x1a   : > { %431 = vst.msk [vmem:[#allocation4 + $0xc] sm:$0x1] %vm430_vm7, %v9055_v25  ;;  %v554_v56 = vor.u32 %v552_v38, %v551_v45  ;;  %v556_v57 = vrot.slane %v551_v45, 4  ;;  %v843_v61 = vsel %vm9189_vm13, %v528_v49, %v842_v46  ;;  %v561_v0 = vshll.u32 %v492_v42, 16 }
  0x1b   : > { %444 = vst [vmem:[#allocation5 + $0x4] sm:$0x1] %v9055_v25  ;;  %v537_v60 = vsel %vm9196_vm14, %v529_v50, %v536_v51  ;;  %v8929_v62 = vld [vmem:[#allocation2] sm:$0xff]   ;;  %v546_v2 = vsel %vm9196_vm14, %v538_v52, %v545_v54  ;;  %v560_v6 = vrot.slane %v558_v63, 7  ;;  %v567_v7 = vshrl.u32 %v493_v47, 16 }
  0x1c   : > { %455 = vst.msk [vmem:[#allocation6 + $0x4] sm:$0x1] %vm430_vm7, %v9055_v25  ;;  %v555_v3 = vsel %vm9196_vm14, %v547_v55, %v554_v56  ;;  %v1713_v4 = vshrl.u32 %v8929_v62, 16  ;;  %v1715_v5 = vshll.u32 %v8929_v62, 16  ;;  %v570_v8 = vshll.u32 %v493_v47, 16 }
  0x1d   : > { %844 = vst [vmem:[#allocation2 + $0x8] sm:$0xf] %v843_v61  ;;  %v495_v13 = vpack.c.bf16 %v463_v59, %v463_v59  ;;  %v496_v16 = vpack.c.bf16 %v464_v1, %v464_v1  ;;  %v563_v17 = vor.u32 %v561_v0, %v560_v6  ;;  %v565_v19 = vrot.slane %v560_v6, 4 }
  0x1e   : > { %845 = vst.msk [vmem:[#allocation2 + $0xc] sm:$0xf] %vm386_vm8, %v537_v60  ;;  %v1717_v11 = vrot.slane %v1715_v5, 1  ;;  %v569_v20 = vrot.slane %v567_v7, 7  ;;  %v2566_v21 = vand.u32 %v7492_v9, %v9144_v10  ;;  %v576_v22 = vshrl.u32 %v494_v12, 16 }
  0x1f   : > { %846 = vst.msk [vmem:[#allocation2 + $0x10] sm:$0xf] %vm386_vm8, %v546_v2  ;;  %v579_v23 = vshll.u32 %v494_v12, 16  ;;  %v585_v24 = vshrl.u32 %v495_v13, 16  ;;  %v564_v25 = vsel %vm9196_vm14, %v556_v57, %v563_v17  ;;  %v588_v29 = vshll.u32 %v495_v13, 16  ;;  %v466_v2 = vld [vmem:[%s9163_s15 + $0x50] sm:$0xff] }
  0x20   : > { %847 = vst.msk [vmem:[#allocation2 + $0x14] sm:$0xf] %vm386_vm8, %v555_v3  ;;  %v572_v26 = vor.u32 %v570_v8, %v569_v20  ;;  %2575 = vmatpush.bf16.msrb.mxu0 %v2566_v21  ;;  %v574_v27 = vrot.slane %v569_v20, 4  ;;  %v578_v30 = vrot.slane %v576_v22, 7  ;;  %v497_v32 = vpack.c.bf16 %v465_v15, %v465_v15  ;;  %v467_v3 = vld [vmem:[%s9163_s15 + $0x58] sm:$0xff] }
  0x21   : > { %848 = vst.msk [vmem:[#allocation2 + $0x18] sm:$0xf] %vm386_vm8, %v564_v25  ;;  %v587_v31 = vrot.slane %v585_v24, 7  ;;  %v594_v33 = vshrl.u32 %v496_v16, 16  ;;  %v1718_v34 = vor.u32 %v1717_v11, %v1713_v4  ;;  %v597_v36 = vshll.u32 %v496_v16, 16 }
  0x22   : > { %v573_v35 = vsel %vm9196_vm14, %v565_v19, %v572_v26  ;;  %v581_v38 = vor.u32 %v579_v23, %v578_v30  ;;  %v583_v40 = vrot.slane %v578_v30, 4  ;;  %v603_v47 = vshrl.u32 %v497_v32, 16 }
  0x23   : > { %849 = vst.msk [vmem:[#allocation2 + $0x1c] sm:$0xf] %vm386_vm8, %v573_v35  ;;  %v590_v41 = vor.u32 %v588_v29, %v587_v31  ;;  %v592_v42 = vrot.slane %v587_v31, 4  ;;  %v596_v46 = vrot.slane %v594_v33, 7  ;;  %vm1421_vm15 = vsmask.f32 7424 }
  0x24   : > { %v582_v50 = vsel %vm9196_vm14, %v574_v27, %v581_v38  ;;  %v606_v52 = vshll.u32 %v497_v32, 16  ;;  %vm1559_vm2 = vcmask 72704   ;;  %v605_v59 = vrot.slane %v603_v47, 7  ;;  %v468_v38 = vld [vmem:[%s9163_s15 + $0x60] sm:$0xff] }
  0x25   : > { %v8964_v37 = vld [vmem:[#allocation2 + $0x8] sm:$0xff]   ;;  %v591_v51 = vsel %vm9196_vm14, %v583_v40, %v590_v41  ;;  %850 = vst.msk [vmem:[#allocation2 + $0x20] sm:$0xf] %vm386_vm8, %v582_v50  ;;  %v599_v55 = vor.u32 %v597_v36, %v596_v46  ;;  %v601_v58 = vrot.slane %v596_v46, 4  ;;  %v498_v5 = vpack.c.bf16 %v466_v2, %v466_v2 }
  0x26   : > { %v1423_v44 = vshrl.u32 %v8964_v37, 16  ;;  %v1425_v45 = vshll.u32 %v8964_v37, 16  ;;  %851 = vst.msk [vmem:[#allocation2 + $0x24] sm:$0xf] %vm386_vm8, %v591_v51  ;;  %v608_v1 = vor.u32 %v606_v52, %v605_v59  ;;  %v499_v6 = vpack.c.bf16 %v467_v3, %v467_v3  ;;  %v469_v40 = vld [vmem:[%s9163_s15 + $0x68] sm:$0xff] }
  0x27   : > { %v8686_v48 = vld [vmem:[#allocation2 + $0x10] sm:$0xff]  ;;  %v600_v63 = vsel %vm9196_vm14, %v592_v42, %v599_v55  ;;  %v612_v13 = vshrl.u32 %v498_v5, 16  ;;  %v615_v17 = vshll.u32 %v498_v5, 16  ;;  %v610_v26 = vrot.slane %v605_v59, 4  ;;  %v471_v5 = vld [vmem:[%s9163_s15 + $0x78] sm:$0xff] }
  0x28   : > { %v8965_v49 = vld [vmem:[#allocation2 + $0x10] sm:$0xff]   ;;  %v1427_v53 = vrot.slane %v1425_v45, 1  ;;  %v1430_v56 = vshll.u32 %v8686_v48, 16  ;;  %852 = vst.msk [vmem:[#allocation2 + $0x28] sm:$0xf] %vm386_vm8, %v600_v63  ;;  %v609_v8 = vsel %vm9196_vm14, %v601_v58, %v608_v1  ;;  %v621_v15 = vshrl.u32 %v499_v6, 16 }
  0x29   : > { %v1950_v54 = vshll.u32 %v8965_v49, 16  ;;  %v1948_v57 = vshrl.u32 %v8965_v49, 16  ;;  %853 = vst.msk [vmem:[#allocation2 + $0x2c] sm:$0xf] %vm386_vm8, %v609_v8  ;;  %v614_v19 = vrot.slane %v612_v13, 7  ;;  %v624_v21 = vshll.u32 %v499_v6, 16 }
  0x2a   : > { %v1428_v60 = vor.u32 %v1427_v53, %v1423_v44  ;;  %v1719_v61 = vsel %vm1421_vm15, %v1718_v34, %v1427_v53  ;;  %v1432_v0 = vrot.slane %v1430_v56, 1  ;;  %v8703_v4 = vld [vmem:[#allocation2 + $0x18] sm:$0xff]  ;;  %v623_v20 = vrot.slane %v621_v15, 7 }
  0x2b   : > { %v1952_v62 = vrot.slane %v1950_v54, 1  ;;  %7301 = vmatmul.msk.bf16.vlgmr.msra.gmra.mxu1 %vm1559_vm2, %v1719_v61  ;;  %v1955_v11 = vshll.u32 %v8703_v4, 16  ;;  %v8687_v12 = vld [vmem:[#allocation2 + $0x18] sm:$0xff]  ;;  %v1434_v23 = vshrl.u32 %v8686_v48, 16  ;;  %v617_v27 = vor.u32 %v615_v17, %v614_v19 }
  0x2c   : > { %v1433_v7 = vsel %vm1421_vm15, %v1428_v60, %v1432_v0  ;;  %v1438_v24 = vshll.u32 %v8687_v12, 16  ;;  %v619_v29 = vrot.slane %v614_v19, 4  ;;  %v626_v30 = vor.u32 %v624_v21, %v623_v20 }
  0x2d   : > { %7281 = vmatmul.msk.bf16.vlgmr.msra.gmra.mxu0 %vm1559_vm2, %v1433_v7  ;;  %v1953_v9 = vor.u32 %v1952_v62, %v1948_v57  ;;  %v1957_v16 = vrot.slane %v1955_v11, 1  ;;  %v8704_v25 = vld [vmem:[#allocation2 + $0x20] sm:$0xff]  ;;  %v618_v31 = vsel %vm9196_vm14, %v610_v26, %v617_v27  ;;  %v1436_v32 = vor.u32 %v1434_v23, %v1432_v0 }
  0x2e   : > { %v1440_v33 = vrot.slane %v1438_v24, 1  ;;  %854 = vst.msk [vmem:[#allocation2 + $0x30] sm:$0xf] %vm386_vm8, %v618_v31  ;;  %v1959_v34 = vshrl.u32 %v8703_v4, 16  ;;  %v1963_v35 = vshll.u32 %v8704_v25, 16  ;;  %v627_v36 = vsel %vm9196_vm14, %v619_v29, %v626_v30  ;;  %v8688_v48 = vld [vmem:[#allocation2 + $0x20] sm:$0xff] }
  0x2f   : > { %v1958_v22 = vsel %vm1421_vm15, %v1953_v9, %v1957_v16  ;;  %855 = vst.msk [vmem:[#allocation2 + $0x34] sm:$0xf] %vm386_vm8, %v627_v36  ;;  %v500_v44 = vpack.c.bf16 %v468_v38, %v468_v38  ;;  %v501_v45 = vpack.c.bf16 %v469_v40, %v469_v40  ;;  %v628_v54 = vrot.slane %v623_v20, 4  ;;  %v470_v4 = vld [vmem:[%s9163_s15 + $0x70] sm:$0xff]  ;;  %v472_v36 = vld [vmem:[%s9163_s15 + $0x80] sm:$0xff] }
  0x30   : > { %7383 = vmatmul.msk.bf16.vlgmr.msra.gmra.mxu2 %vm1559_vm2, %v1958_v22  ;;  %v1441_v37 = vsel %vm1421_vm15, %v1436_v32, %v1440_v33  ;;  %v1961_v41 = vor.u32 %v1959_v34, %v1957_v16  ;;  %v1965_v42 = vrot.slane %v1963_v35, 1  ;;  %v1442_v57 = vshrl.u32 %v8687_v12, 16  ;;  %v8705_v60 = vld [vmem:[#allocation2 + $0x28] sm:$0xff] }
  0x31   : > { %v630_v46 = vshrl.u32 %v500_v44, 16  ;;  %v639_v47 = vshrl.u32 %v501_v45, 16  ;;  %v633_v51 = vshll.u32 %v500_v44, 16  ;;  %v642_v53 = vshll.u32 %v501_v45, 16  ;;  %v8689_v13 = vld [vmem:[#allocation2 + $0x28] sm:$0xff] }
  0x32   : > { %v1966_v49 = vsel %vm1421_vm15, %v1961_v41, %v1965_v42  ;;  %v1446_v58 = vshll.u32 %v8688_v48, 16  ;;  %v1444_v63 = vor.u32 %v1442_v57, %v1440_v33  ;;  %v1967_v1 = vshrl.u32 %v8704_v25, 16 }
  0x33   : > { %v632_v50 = vrot.slane %v630_v46, 7  ;;  %v641_v52 = vrot.slane %v639_v47, 7  ;;  %v1971_v2 = vshll.u32 %v8705_v60, 16  ;;  %v502_v8 = vpack.c.bf16 %v470_v4, %v470_v4 }
  0x34   : > { %v1448_v0 = vrot.slane %v1446_v58, 1  ;;  %v1969_v6 = vor.u32 %v1967_v1, %v1965_v42  ;;  %v503_v9 = vpack.c.bf16 %v471_v5, %v471_v5  ;;  %v1450_v24 = vshrl.u32 %v8688_v48, 16 }
  0x35   : > { %v635_v55 = vor.u32 %v633_v51, %v632_v50  ;;  %v637_v56 = vrot.slane %v632_v50, 4  ;;  %v644_v59 = vor.u32 %v642_v53, %v641_v52  ;;  %v648_v11 = vshrl.u32 %v502_v8, 16 }
  0x36   : > { %v1449_v3 = vsel %vm1421_vm15, %v1444_v63, %v1448_v0  ;;  %v657_v12 = vshrl.u32 %v503_v9, 16  ;;  %v651_v17 = vshll.u32 %v502_v8, 16  ;;  %v660_v20 = vshll.u32 %v503_v9, 16  ;;  %v8706_v27 = vld [vmem:[#allocation2 + $0x30] sm:$0xff] }
  0x37   : > { %v636_v61 = vsel %vm9196_vm14, %v628_v54, %v635_v55  ;;  %v645_v62 = vsel %vm9196_vm14, %v637_v56, %v644_v59  ;;  %v650_v16 = vrot.slane %v648_v11, 7  ;;  %v646_v21 = vrot.slane %v641_v52, 4  ;;  %v8690_v46 = vld [vmem:[#allocation2 + $0x30] sm:$0xff] }
  0x38   : > { %856 = vst.msk [vmem:[#allocation2 + $0x38] sm:$0xf] %vm386_vm8, %v636_v61  ;;  %v659_v19 = vrot.slane %v657_v12, 7  ;;  %v1454_v25 = vshll.u32 %v8689_v13, 16  ;;  %v1452_v31 = vor.u32 %v1450_v24, %v1448_v0  ;;  %v1975_v33 = vshrl.u32 %v8705_v60, 16 }
  0x39   : > { %857 = vst.msk [vmem:[#allocation2 + $0x3c] sm:$0xf] %vm386_vm8, %v645_v62  ;;  %v653_v22 = vor.u32 %v651_v17, %v650_v16  ;;  %v655_v23 = vrot.slane %v650_v16, 4  ;;  %v1979_v34 = vshll.u32 %v8706_v27, 16  ;;  %v504_v41 = vpack.c.bf16 %v472_v36, %v472_v36 }
  0x3a   : > { %v662_v26 = vor.u32 %v660_v20, %v659_v19  ;;  %v1456_v32 = vrot.slane %v1454_v25, 1  ;;  %v664_v52 = vrot.slane %v659_v19, 4  ;;  %v1458_v55 = vshrl.u32 %v8689_v13, 16 }
  0x3b   : > { %7302 = vmatmul.msk.bf16.gmra.mxu1 %vm1559_vm2, %v1433_v7  ;;  %v1973_v7 = vrot.slane %v1971_v2, 1  ;;  %v654_v29 = vsel %vm9196_vm14, %v646_v21, %v653_v22  ;;  %v1981_v40 = vrot.slane %v1979_v34, 1  ;;  %v666_v44 = vshrl.u32 %v504_v41, 16  ;;  %v474_v2 = vld [vmem:[%s9163_s15 + $0x90] sm:$0xff]  ;;  %v476_v34 = vld [vmem:[%s9163_s15 + $0xa0] sm:$0xff] }
  0x3c   : > { %v663_v30 = vsel %vm9196_vm14, %v655_v23, %v662_v26  ;;  %858 = vst.msk [vmem:[#allocation2 + $0x40] sm:$0xf] %vm386_vm8, %v654_v29  ;;  %v1457_v35 = vsel %vm1421_vm15, %v1452_v31, %v1456_v32  ;;  %v1462_v56 = vshll.u32 %v8690_v46, 16  ;;  %v1460_v61 = vor.u32 %v1458_v55, %v1456_v32 }
  0x3d   : > { %7282 = vmatmul.msk.bf16.gmra.mxu0 %vm1559_vm2, %v1441_v37  ;;  %v1974_v15 = vsel %vm1421_vm15, %v1969_v6, %v1973_v7  ;;  %859 = vst.msk [vmem:[#allocation2 + $0x44] sm:$0xf] %vm386_vm8, %v663_v30  ;;  %v1977_v38 = vor.u32 %v1975_v33, %v1973_v7  ;;  %v668_v48 = vrot.slane %v666_v44, 7  ;;  %v1983_v63 = vshrl.u32 %v8706_v27, 16 }
  0x3e   : > { %v1464_v62 = vrot.slane %v1462_v56, 1  ;;  %v506_v6 = vpack.c.bf16 %v474_v2, %v474_v2  ;;  %v1466_v22 = vshrl.u32 %v8690_v46, 16 }
  0x3f   : > { %v1982_v47 = vsel %vm1421_vm15, %v1977_v38, %v1981_v40  ;;  %v673_v54 = vrot.slane %v668_v48, 4  ;;  %v1985_v4 = vor.u32 %v1983_v63, %v1981_v40  ;;  %v508_v38 = vpack.c.bf16 %v476_v34, %v476_v34 }
  0x40   : > { %7384 = vmatmul.msk.bf16.gmra.mxu2 %vm1559_vm2, %v1966_v49  ;;  %v669_v49 = vshll.u32 %v504_v41, 16  ;;  %v8707_v58 = vld [vmem:[#allocation2 + $0x38] sm:$0xff]  ;;  %v1465_v1 = vsel %vm1421_vm15, %v1460_v61, %v1464_v62  ;;  %v684_v8 = vshrl.u32 %v506_v6, 16  ;;  %v1468_v29 = vor.u32 %v1466_v22, %v1464_v62 }
  0x41   : > { %v1987_v0 = vshll.u32 %v8707_v58, 16  ;;  %v8691_v11 = vld [vmem:[#allocation2 + $0x38] sm:$0xff]  ;;  %v1991_v31 = vshrl.u32 %v8707_v58, 16  ;;  %v702_v41 = vshrl.u32 %v508_v38, 16 }
  0x42   : > { %v671_v53 = vor.u32 %v669_v49, %v668_v48  ;;  %v686_v13 = vrot.slane %v684_v8, 7  ;;  %v1470_v23 = vshll.u32 %v8691_v11, 16 }
  0x43   : > { %v1989_v5 = vrot.slane %v1987_v0, 1  ;;  %v704_v46 = vrot.slane %v702_v41, 7  ;;  %v478_v0 = vld [vmem:[%s9163_s15 + $0xb0] sm:$0xff] }
  0x44   : > { %v672_v59 = vsel %vm9196_vm14, %v664_v52, %v671_v53  ;;  %v691_v21 = vrot.slane %v686_v13, 4  ;;  %v8708_v25 = vld [vmem:[#allocation2 + $0x40] sm:$0xff]  ;;  %v1472_v30 = vrot.slane %v1470_v23, 1  ;;  %v1474_v53 = vshrl.u32 %v8691_v11, 16 }
  0x45   : > { %860 = vst.msk [vmem:[#allocation2 + $0x48] sm:$0xf] %vm386_vm8, %v672_v59  ;;  %v1990_v12 = vsel %vm1421_vm15, %v1985_v4, %v1989_v5  ;;  %v1995_v32 = vshll.u32 %v8708_v25, 16  ;;  %v1993_v36 = vor.u32 %v1991_v31, %v1989_v5  ;;  %v8692_v44 = vld [vmem:[#allocation2 + $0x40] sm:$0xff]  ;;  %v709_v52 = vrot.slane %v704_v46, 4 }
  0x46   : > { %v1473_v33 = vsel %vm1421_vm15, %v1468_v29, %v1472_v30  ;;  %v1476_v59 = vor.u32 %v1474_v53, %v1472_v30  ;;  %v1999_v61 = vshrl.u32 %v8708_v25, 16  ;;  %v510_v4 = vpack.c.bf16 %v478_v0, %v478_v0 }
  0x4b   : > { %7303 = vmatmul.msk.bf16.gmra.mxu1 %vm1559_vm2, %v1441_v37  ;;  %v473_v37 = vld [vmem:[%s9163_s15 + $0x88] sm:$0xff] }
  0x4c   : > { %v505_v42 = vpack.c.bf16 %v473_v37, %v473_v37  ;;  %v1997_v37 = vrot.slane %v1995_v32, 1  ;;  %v480_v32 = vld [vmem:[%s9163_s15 + $0xc0] sm:$0xff] }
  0x4d   : > { %7283 = vmatmul.msk.bf16.gmra.mxu0 %vm1559_vm2, %v1449_v3 }
  0x4e   : > { %v675_v45 = vshrl.u32 %v505_v42, 16  ;;  %v678_v51 = vshll.u32 %v505_v42, 16  ;;  %v2001_v2 = vor.u32 %v1999_v61, %v1997_v37 }
  0x50   : > { %7385 = vmatmul.msk.bf16.gmra.mxu2 %vm1559_vm2, %v1974_v15  ;;  %v677_v50 = vrot.slane %v675_v45, 7  ;;  %v687_v15 = vshll.u32 %v506_v6, 16  ;;  %v1998_v45 = vsel %vm1421_vm15, %v1993_v36, %v1997_v37  ;;  %v720_v6 = vshrl.u32 %v510_v4, 16 }
  0x51   : > { %v512_v36 = vpack.c.bf16 %v480_v32, %v480_v32 }
  0x52   : > { %v680_v57 = vor.u32 %v678_v51, %v677_v50  ;;  %v682_v19 = vrot.slane %v677_v50, 4  ;;  %v689_v20 = vor.u32 %v687_v15, %v686_v13  ;;  %v722_v11 = vrot.slane %v720_v6, 7 }
  0x54   : > { %v681_v60 = vsel %vm9196_vm14, %v673_v54, %v680_v57  ;;  %v690_v26 = vsel %vm9196_vm14, %v682_v19, %v689_v20  ;;  %v1478_v54 = vshll.u32 %v8692_v44, 16  ;;  %v727_v19 = vrot.slane %v722_v11, 4 }
  0x55   : > { %861 = vst.msk [vmem:[#allocation2 + $0x4c] sm:$0xf] %vm386_vm8, %v681_v60  ;;  %v1482_v20 = vshrl.u32 %v8692_v44, 16 }
  0x56   : > { %862 = vst.msk [vmem:[#allocation2 + $0x50] sm:$0xf] %vm386_vm8, %v690_v26  ;;  %v1480_v60 = vrot.slane %v1478_v54, 1 }
  0x58   : > { %v1481_v63 = vsel %vm1421_vm15, %v1476_v59, %v1480_v60  ;;  %v1484_v26 = vor.u32 %v1482_v20, %v1480_v60 }
  0x5b   : > { %7304 = vmatmul.msk.bf16.gmra.mxu1 %vm1559_vm2, %v1449_v3  ;;  %v475_v3 = vld [vmem:[%s9163_s15 + $0x98] sm:$0xff] }
  0x5c   : > { %v507_v7 = vpack.c.bf16 %v475_v3, %v475_v3  ;;  %v8709_v56 = vld [vmem:[#allocation2 + $0x48] sm:$0xff] }
  0x5d   : > { %7284 = vmatmul.msk.bf16.gmra.mxu0 %vm1559_vm2, %v1457_v35  ;;  %v2003_v62 = vshll.u32 %v8709_v56, 16  ;;  %v2007_v29 = vshrl.u32 %v8709_v56, 16 }
  0x5e   : > { %v693_v9 = vshrl.u32 %v507_v7, 16  ;;  %v696_v17 = vshll.u32 %v507_v7, 16  ;;  %v8693_v7 = vld [vmem:[#allocation2 + $0x48] sm:$0xff] }
  0x5f   : > { %v2005_v3 = vrot.slane %v2003_v62, 1 }
  0x60   : > { %7386 = vmatmul.msk.bf16.gmra.mxu2 %vm1559_vm2, %v1982_v47  ;;  %v695_v16 = vrot.slane %v693_v9, 7  ;;  %v705_v47 = vshll.u32 %v508_v38, 16  ;;  %v738_v38 = vshrl.u32 %v512_v36, 16 }
  0x61   : > { %v2006_v9 = vsel %vm1421_vm15, %v2001_v2, %v2005_v3  ;;  %v2009_v34 = vor.u32 %v2007_v29, %v2005_v3  ;;  %v483_v2 = vld [vmem:[%s9163_s15 + $0xd8] sm:$0xff] }
  0x62   : > { %v698_v24 = vor.u32 %v696_v17, %v695_v16  ;;  %v700_v50 = vrot.slane %v695_v16, 4  ;;  %v707_v51 = vor.u32 %v705_v47, %v704_v46  ;;  %v740_v44 = vrot.slane %v738_v38, 7 }
  0x63   : > { %v515_v6 = vpack.c.bf16 %v483_v2, %v483_v2 }
  0x64   : > { %v699_v27 = vsel %vm9196_vm14, %v691_v21, %v698_v24  ;;  %v708_v57 = vsel %vm9196_vm14, %v700_v50, %v707_v51  ;;  %v1486_v21 = vshll.u32 %v8693_v7, 16  ;;  %v1490_v50 = vshrl.u32 %v8693_v7, 16 }
  0x65   : > { %863 = vst.msk [vmem:[#allocation2 + $0x54] sm:$0xf] %vm386_vm8, %v699_v27 }
  0x66   : > { %864 = vst.msk [vmem:[#allocation2 + $0x58] sm:$0xf] %vm386_vm8, %v708_v57  ;;  %v1488_v27 = vrot.slane %v1486_v21, 1 }
  0x68   : > { %v1489_v31 = vsel %vm1421_vm15, %v1484_v26, %v1488_v27  ;;  %v1492_v57 = vor.u32 %v1490_v50, %v1488_v27 }
  0x6b   : > { %7305 = vmatmul.msk.bf16.gmra.mxu1 %vm1559_vm2, %v1457_v35  ;;  %v477_v35 = vld [vmem:[%s9163_s15 + $0xa8] sm:$0xff] }
  0x6c   : > { %v509_v40 = vpack.c.bf16 %v477_v35, %v477_v35  ;;  %v8710_v23 = vld [vmem:[#allocation2 + $0x50] sm:$0xff] }
  0x6d   : > { %7285 = vmatmul.msk.bf16.gmra.mxu0 %vm1559_vm2, %v1465_v1  ;;  %v2011_v30 = vshll.u32 %v8710_v23, 16  ;;  %v2015_v59 = vshrl.u32 %v8710_v23, 16 }
  0x6e   : > { %v711_v42 = vshrl.u32 %v509_v40, 16  ;;  %v714_v49 = vshll.u32 %v509_v40, 16  ;;  %v8694_v40 = vld [vmem:[#allocation2 + $0x50] sm:$0xff] }
  0x6f   : > { %v2013_v35 = vrot.slane %v2011_v30, 1  ;;  %v1494_v51 = vshll.u32 %v8694_v40, 16 }
  0x70   : > { %7387 = vmatmul.msk.bf16.gmra.mxu2 %vm1559_vm2, %v1990_v12  ;;  %v713_v48 = vrot.slane %v711_v42, 7  ;;  %v723_v12 = vshll.u32 %v510_v4, 16 }
  0x71   : > { %v2014_v42 = vsel %vm1421_vm15, %v2009_v34, %v2013_v35  ;;  %v2017_v0 = vor.u32 %v2015_v59, %v2013_v35 }
  0x72   : > { %v716_v55 = vor.u32 %v714_v49, %v713_v48  ;;  %v718_v16 = vrot.slane %v713_v48, 4  ;;  %v725_v17 = vor.u32 %v723_v12, %v722_v11  ;;  %v745_v49 = vrot.slane %v740_v44, 4 }
  0x74   : > { %v717_v58 = vsel %vm9196_vm14, %v709_v52, %v716_v55  ;;  %v726_v24 = vsel %vm9196_vm14, %v718_v16, %v725_v17  ;;  %v768_v17 = vshll.u32 %v515_v6, 16 }
  0x75   : > { %865 = vst.msk [vmem:[#allocation2 + $0x5c] sm:$0xf] %vm386_vm8, %v717_v58  ;;  %v1496_v58 = vrot.slane %v1494_v51, 1 }
  0x76   : > { %866 = vst.msk [vmem:[#allocation2 + $0x60] sm:$0xf] %vm386_vm8, %v726_v24 }
  0x7b   : > { %7306 = vmatmul.msk.bf16.gmra.mxu1 %vm1559_vm2, %v1465_v1  ;;  %v479_v1 = vld [vmem:[%s9163_s15 + $0xb8] sm:$0xff] }
  0x7c   : > { %v511_v5 = vpack.c.bf16 %v479_v1, %v479_v1  ;;  %v8711_v54 = vld [vmem:[#allocation2 + $0x58] sm:$0xff]  ;;  %v482_v1 = vld [vmem:[%s9163_s15 + $0xd0] sm:$0xff] }
  0x7d   : > { %7286 = vmatmul.msk.bf16.gmra.mxu0 %vm1559_vm2, %v1473_v33  ;;  %v2019_v61 = vshll.u32 %v8711_v54, 16  ;;  %v2023_v35 = vshrl.u32 %v8711_v54, 16  ;;  %v9602_v28 = vld [vmem:[#allocation2 + $0x58] sm:$0xff] }
  0x7e   : > { %v729_v8 = vshrl.u32 %v511_v5, 16  ;;  %v732_v15 = vshll.u32 %v511_v5, 16  ;;  %v514_v5 = vpack.c.bf16 %v482_v1, %v482_v1 }
  0x7f   : > { %v2021_v4 = vrot.slane %v2019_v61, 1 }
  0x80   : > { %7388 = vmatmul.msk.bf16.gmra.mxu2 %vm1559_vm2, %v1998_v45  ;;  %v731_v13 = vrot.slane %v729_v8, 7  ;;  %v741_v45 = vshll.u32 %v512_v36, 16  ;;  %v756_v7 = vshrl.u32 %v514_v5, 16  ;;  %v9353_v8 = vld [vmem:[#allocation2 + $0x58] sm:$0xff] }
  0x81   : > { %v2022_v11 = vsel %vm1421_vm15, %v2017_v0, %v2021_v4 }
  0x82   : > { %v734_v22 = vor.u32 %v732_v15, %v731_v13  ;;  %v736_v48 = vrot.slane %v731_v13, 4  ;;  %v743_v52 = vor.u32 %v741_v45, %v740_v44  ;;  %v758_v13 = vrot.slane %v756_v7, 7  ;;  %v485_v44 = vld [vmem:[%s9163_s15 + $0xe8] sm:$0xff] }
  0x83   : > { %v759_v15 = vshll.u32 %v514_v5, 16 }
  0x84   : > { %v735_v25 = vsel %vm9196_vm14, %v727_v19, %v734_v22  ;;  %v744_v55 = vsel %vm9196_vm14, %v736_v48, %v743_v52  ;;  %v1498_v19 = vshrl.u32 %v8694_v40, 16  ;;  %v1502_v22 = vshll.u32 %v9353_v8, 16 }
  0x85   : > { %867 = vst.msk [vmem:[#allocation2 + $0x64] sm:$0xf] %vm386_vm8, %v735_v25  ;;  %v761_v23 = vor.u32 %v759_v15, %v758_v13  ;;  %v763_v24 = vrot.slane %v758_v13, 4  ;;  %v517_v48 = vpack.c.bf16 %v485_v44, %v485_v44 }
  0x86   : > { %868 = vst.msk [vmem:[#allocation2 + $0x68] sm:$0xf] %vm386_vm8, %v744_v55  ;;  %v1504_v34 = vrot.slane %v1502_v22, 1 }
  0x87   : > { %v786_v59 = vshll.u32 %v517_v48, 16 }
  0x8b   : > { %7307 = vmatmul.msk.bf16.gmra.mxu1 %vm1559_vm2, %v1473_v33  ;;  %v481_v33 = vld [vmem:[%s9163_s15 + $0xc8] sm:$0xff] }
  0x8c   : > { %v513_v37 = vpack.c.bf16 %v481_v33, %v481_v33  ;;  %v8712_v27 = vld [vmem:[#allocation2 + $0x60] sm:$0xff]  ;;  %v1500_v33 = vor.u32 %v1498_v19, %v1496_v58 }
  0x8d   : > { %7287 = vmatmul.msk.bf16.gmra.mxu0 %vm1559_vm2, %v1481_v63  ;;  %v9373_v52 = vld [vmem:[#allocation2 + $0x60] sm:$0xff] }
  0x8e   : > { %v747_v41 = vshrl.u32 %v513_v37, 16  ;;  %v750_v47 = vshll.u32 %v513_v37, 16  ;;  %v2027_v37 = vshll.u32 %v8712_v27, 16  ;;  %v1505_v40 = vsel %vm1421_vm15, %v1500_v33, %v1504_v34 }
  0x90   : > { %7389 = vmatmul.msk.bf16.gmra.mxu2 %vm1559_vm2, %v2006_v9  ;;  %v749_v46 = vrot.slane %v747_v41, 7  ;;  %v765_v9 = vshrl.u32 %v515_v6, 16  ;;  %v2025_v41 = vor.u32 %v2023_v35, %v2021_v4 }
  0x92   : > { %v752_v53 = vor.u32 %v750_v47, %v749_v46  ;;  %v767_v16 = vrot.slane %v765_v9, 7  ;;  %v754_v20 = vrot.slane %v749_v46, 4  ;;  %v2029_v46 = vrot.slane %v2027_v37, 1 }
  0x94   : > { %v753_v56 = vsel %vm9196_vm14, %v745_v49, %v752_v53  ;;  %v770_v25 = vor.u32 %v768_v17, %v767_v16  ;;  %v762_v29 = vsel %vm9196_vm14, %v754_v20, %v761_v23  ;;  %v783_v53 = vshrl.u32 %v517_v48, 16  ;;  %v486_v20 = vld [vmem:[%s9163_s15 + $0xf0] sm:$0xff] }
  0x95   : > { %869 = vst.msk [vmem:[#allocation2 + $0x6c] sm:$0xf] %vm386_vm8, %v753_v56  ;;  %v2030_v54 = vsel %vm1421_vm15, %v2025_v41, %v2029_v46  ;;  %v772_v61 = vrot.slane %v767_v16, 4 }
  0x96   : > { %v771_v30 = vsel %vm9196_vm14, %v763_v24, %v770_v25  ;;  %870 = vst.msk [vmem:[#allocation2 + $0x70] sm:$0xf] %vm386_vm8, %v762_v29  ;;  %v518_v24 = vpack.c.bf16 %v486_v20, %v486_v20 }
  0x97   : > { %871 = vst.msk [vmem:[#allocation2 + $0x74] sm:$0xf] %vm386_vm8, %v771_v30 }
  0x9b   : > { %7308 = vmatmul.msk.bf16.gmra.mxu1 %vm1559_vm2, %v1481_v63  ;;  %v1497_v63 = vsel %vm1421_vm15, %v1492_v57, %v1496_v58  ;;  %v785_v58 = vrot.slane %v783_v53, 7 }
  0x9c   : > { %v8713_v4 = vld [vmem:[#allocation2 + $0x68] sm:$0xff] }
  0x9d   : > { %7288 = vmatmul.msk.bf16.gmra.mxu0 %vm1559_vm2, %v1489_v31  ;;  %v788_v2 = vor.u32 %v786_v59, %v785_v58  ;;  %v2035_v15 = vshll.u32 %v8713_v4, 16  ;;  %v8697_v30 = vld [vmem:[#allocation2 + $0x68] sm:$0xff]  ;;  %v790_v41 = vrot.slane %v785_v58, 4  ;;  %v2039_v58 = vshrl.u32 %v8713_v4, 16 }
  0x9e   : > { %v1518_v44 = vshll.u32 %v8697_v30, 16  ;;  %v8698_v4 = vld [vmem:[#allocation2 + $0x70] sm:$0xff] }
  0x9f   : > { %v2037_v23 = vrot.slane %v2035_v15, 1  ;;  %v1526_v39 = vshll.u32 %v8698_v4, 16 }
  0xa0   : > { %7390 = vmatmul.msk.bf16.gmra.mxu2 %vm1559_vm2, %v2014_v42  ;;  %v484_v42 = vld [vmem:[%s9163_s15 + $0xe0] sm:$0xff] }
  0xa1   : > { %v516_v47 = vpack.c.bf16 %v484_v42, %v484_v42 }
  0xa3   : > { %v774_v50 = vshrl.u32 %v516_v47, 16  ;;  %v777_v57 = vshll.u32 %v516_v47, 16 }
  0xa5   : > { %v776_v56 = vrot.slane %v774_v50, 7 }
  0xa7   : > { %v779_v0 = vor.u32 %v777_v57, %v776_v56  ;;  %v781_v1 = vrot.slane %v776_v56, 4  ;;  %v1520_v56 = vrot.slane %v1518_v44, 1 }
  0xa8   : > { %v1748_v60 = vpop.f32.mrf.mxu1 }
  0xa9   : > { %v780_v5 = vsel %vm9196_vm14, %v772_v61, %v779_v0  ;;  %v789_v6 = vsel %vm9196_vm14, %v781_v1, %v788_v2  ;;  %v2041_v0 = vor.u32 %v2039_v58, %v2037_v23 }
  0xaa   : > { %v1624_v62 = vpop.f32.mrf.mxu0  ;;  %872 = vst.msk [vmem:[#allocation2 + $0x78] sm:$0xf] %vm386_vm8, %v780_v5 }
  0xab   : > { %7309 = vmatmul.msk.bf16.gmra.mxu1 %vm1559_vm2, %v1489_v31  ;;  %v1749_v3 = vadd.f32 %v1748_v60, %v1624_v62  ;;  %v1506_v60 = vshrl.u32 %v9353_v8, 16  ;;  %873 = vst.msk [vmem:[#allocation2 + $0x7c] sm:$0xf] %vm386_vm8, %v789_v6 }
  0xad   : > { %7289 = vmatmul.msk.bf16.gmra.mxu0 %vm1559_vm2, %v1497_v63  ;;  %v1508_v9 = vor.u32 %v1506_v60, %v1504_v34  ;;  %v398_v60 = vld [vmem:[#allocation2 + $0x88] sm:$0xf] }
  0xae   : > { %v399_v43 = vsel %vm9189_vm13, 0, %v398_v60  ;;  %vm3120_vm13 = vcmask 1046528  }
  0xaf   : > { %400 = vst [vmem:[#allocation2 + $0x88] sm:$0xf] %v399_v43 }
  0xb0   : > { %v1750_v12 = vpop.f32.mrf.mxu1  ;;  %7391 = vmatmul.msk.bf16.gmra.mxu2 %vm1559_vm2, %v2022_v11 }
  0xb2   : > { %v1626_v21 = vpop.f32.mrf.mxu0  ;;  %v8715_v15 = vld [vmem:[#allocation2 + $0x78] sm:$0xff] }
  0xb3   : > { %v1751_v26 = vadd.f32 %v1750_v12, %v1626_v21  ;;  %v2144_v31 = vpop.f32.mrf.mxu2  ;;  %v2031_v12 = vshrl.u32 %v8712_v27, 16  ;;  %v487_v21 = vld [vmem:[%s9163_s15 + $0xf8] sm:$0xff]  ;;  %v792_v27 = vshrl.u32 %v518_v24, 16 }
  0xb4   : > { %v9363_v32 = vadd.f32 %v2144_v31, %v1749_v3  ;;  %v519_v25 = vpack.c.bf16 %v487_v21, %v487_v21  ;;  %v1528_v21 = vrot.slane %v1526_v39, 1 }
  0xb5   : > { %v2033_v19 = vor.u32 %v2031_v12, %v2029_v46  ;;  %v794_v35 = vrot.slane %v792_v27, 7 }
  0xb6   : > { %v801_v31 = vshrl.u32 %v519_v25, 16  ;;  %v876_v12 = vld [vmem:[#allocation2 + $0x88] sm:$0x1] }
  0xb7   : > { %v2038_v33 = vsel %vm1421_vm15, %v2033_v19, %v2037_v23  ;;  %v799_v46 = vrot.slane %v794_v35, 4 }
  0xb8   : > { %v1753_v36 = vpop.f32.mrf.mxu1  ;;  %v803_v37 = vrot.slane %v801_v31, 7 }
  0xba   : > { %v1629_v38 = vpop.f32.mrf.mxu0 }
  0xbb   : > { %7310 = vmatmul.msk.bf16.gmra.mxu1 %vm1559_vm2, %v1497_v63  ;;  %v1754_v45 = vadd.f32 %v1753_v36, %v1629_v38  ;;  %v2146_v49 = vpop.f32.mrf.mxu2  ;;  %v1510_v63 = vshll.u32 %v9373_v52, 16  ;;  %v795_v36 = vshll.u32 %v518_v24, 16  ;;  %v804_v38 = vshll.u32 %v519_v25, 16 }
  0xbc   : > { %v9371_v51 = vadd.f32 %v2146_v49, %v1751_v26  ;;  %v8714_v49 = vld [vmem:[#allocation2 + $0x70] sm:$0xff]  ;;  %v2051_v24 = vshll.u32 %v8715_v15, 16 }
  0xbd   : > { %7290 = vmatmul.msk.bf16.gmra.mxu0 %vm1559_vm2, %v1505_v40  ;;  %v1512_v11 = vrot.slane %v1510_v63, 1  ;;  %v806_v47 = vor.u32 %v804_v38, %v803_v37  ;;  %v2043_v59 = vshll.u32 %v8714_v49, 16  ;;  %v2047_v23 = vshrl.u32 %v8714_v49, 16 }
  0xbe   : > { %v2053_v31 = vrot.slane %v2051_v24, 1  ;;  %v1530_v38 = vshrl.u32 %v8698_v4, 16  ;;  %v2055_v49 = vshrl.u32 %v8715_v15, 16  ;;  %v7601_v15 = vld [vmem:[%s11161_s1 + $0x28] sm:$0xf] }
  0xbf   : > { %v1513_v17 = vsel %vm1421_vm15, %v1508_v9, %v1512_v11  ;;  %v807_v53 = vsel %vm9196_vm14, %v799_v46, %v806_v47  ;;  %v2045_v1 = vrot.slane %v2043_v59, 1 }
  0xc0   : > { %v1755_v55 = vpop.f32.mrf.mxu1  ;;  %7392 = vmatmul.msk.bf16.gmra.mxu2 %vm1559_vm2, %v2030_v54  ;;  %875 = vst.msk [vmem:[#allocation2 + $0x84] sm:$0xf] %vm386_vm8, %v807_v53  ;;  %v1532_v46 = vor.u32 %v1530_v38, %v1528_v21  ;;  %v2057_v58 = vor.u32 %v2055_v49, %v2053_v31 }
  0xc1   : > { %v2046_v5 = vsel %vm1421_vm15, %v2041_v0, %v2045_v1 }
  0xc2   : > { %v1631_v62 = vpop.f32.mrf.mxu0 }
  0xc3   : > { %v1756_v3 = vadd.f32 %v1755_v55, %v1631_v62  ;;  %v2149_v7 = vpop.f32.mrf.mxu2 }
  0xc4   : > { %v9384_v8 = vadd.f32 %v2149_v7, %v1754_v45  ;;  %v797_v45 = vor.u32 %v795_v36, %v794_v35  ;;  %v808_v7 = vrot.slane %v803_v37, 4 }
  0xc6   : > { %v798_v50 = vsel %vm9196_vm14, %v790_v41, %v797_v45 }
  0xc7   : > { %874 = vst.msk [vmem:[#allocation2 + $0x80] sm:$0xf] %vm386_vm8, %v798_v50 }
  0xc8   : > { %v1758_v13 = vpop.f32.mrf.mxu1 }
  0xca   : > { %v1634_v16 = vpop.f32.mrf.mxu0 }
  0xcb   : > { %7311 = vmatmul.msk.bf16.gmra.mxu1 %vm1559_vm2, %v1505_v40  ;;  %v1759_v22 = vadd.f32 %v1758_v13, %v1634_v16  ;;  %v2151_v26 = vpop.f32.mrf.mxu2  ;;  %v1514_v40 = vshrl.u32 %v9373_v52, 16  ;;  %v877_v16 = vsel %vm9152_vm4, %v808_v7, %v876_v12 }
  0xcc   : > { %v9392_v29 = vadd.f32 %v2151_v26, %v1756_v3  ;;  %878 = vst [vmem:[#allocation2 + $0x88] sm:$0x1] %v877_v16  ;;  %v8756_v16 = vld [vmem:[%s11161_s1 + $0x28] sm:$0x10] }
  0xcd   : > { %7291 = vmatmul.msk.bf16.gmra.mxu0 %vm1559_vm2, %v1513_v17  ;;  %v1516_v55 = vor.u32 %v1514_v40, %v1512_v11  ;;  %v1522_v11 = vshrl.u32 %v8697_v30, 16  ;;  %v2049_v30 = vor.u32 %v2047_v23, %v2045_v1  ;;  %v9444_v1 = vld [vmem:[#allocation2 + $0x8] sm:$0xff] }
  0xcf   : > { %v1521_v62 = vsel %vm1421_vm15, %v1516_v55, %v1520_v56  ;;  %v1524_v20 = vor.u32 %v1522_v11, %v1520_v56  ;;  %v2054_v35 = vsel %vm1421_vm15, %v2049_v30, %v2053_v31  ;;  %v7467_v55 = vld [vmem:[%s11161_s1 + $0x18] sm:$0xf]  ;;  %v8737_v56 = vld [vmem:[%s11161_s1 + $0x18] sm:$0x10] }
  0xd0   : > { %v1760_v34 = vpop.f32.mrf.mxu1  ;;  %7393 = vmatmul.msk.bf16.gmra.mxu2 %vm1559_vm2, %v2038_v33  ;;  %v7468_v60 = vor.u32 %v8737_v56, %v7467_v55 }
  0xd1   : > { %v1529_v26 = vsel %vm1421_vm15, %v1524_v20, %v1528_v21 }
  0xd2   : > { %v1636_v42 = vpop.f32.mrf.mxu0  ;;  %v2461_v43 = vand.u32 %v7468_v60, %v9144_v10 }
  0xd3   : > { %v1761_v48 = vadd.f32 %v1760_v34, %v1636_v42  ;;  %v2154_v54 = vpop.f32.mrf.mxu2  ;;  %v8699_v34 = vld [vmem:[#allocation2 + $0x78] sm:$0xff]  ;;  %v8716_v42 = vld [vmem:[#allocation2 + $0x80] sm:$0xff]  ;;  %v9452_v7 = vld [vmem:[#allocation2 + $0x88] sm:$0xff] }
  0xd4   : > { %v9402_v52 = vadd.f32 %v2154_v54, %v1759_v22  ;;  %v1534_v40 = vshll.u32 %v8699_v34, 16  ;;  %v2059_v50 = vshll.u32 %v8716_v42, 16  ;;  %2470 = vmatpush.bf16.msra.mxu3 %v2461_v43  ;;  %v2063_v21 = vshrl.u32 %v8716_v42, 16  ;;  %v1334_v23 = vld [vmem:[#allocation2 + $0x88] sm:$0x1] }
  0xd5   : > { %v1860_v42 = vld [vmem:[#allocation2 + $0x90] sm:$0x1] }
  0xd6   : > { %v1536_v47 = vrot.slane %v1534_v40, 1  ;;  %v2061_v59 = vrot.slane %v2059_v50, 1  ;;  %v9486_v50 = vld [vmem:[#allocation2 + $0x10] sm:$0xff] }
  0xd7   : > { %7469 = vmatmul.msk.bf16.vlgmr.msra.gmra.mxu3 %vm1559_vm2, %v9444_v1 }
  0xd8   : > { %v1763_v57 = vpop.f32.mrf.mxu1  ;;  %v1537_v54 = vsel %vm1421_vm15, %v1532_v46, %v1536_v47  ;;  %v8754_v46 = vld [vmem:[%s11161_s1 + $0x30] sm:$0x10] }
  0xda   : > { %v1639_v61 = vpop.f32.mrf.mxu0 }
  0xdb   : > { %7312 = vmatmul.msk.bf16.gmra.mxu1 %vm1559_vm2, %v1513_v17  ;;  %v1764_v63 = vadd.f32 %v1763_v57, %v1639_v61  ;;  %v2156_v2 = vpop.f32.mrf.mxu2 }
  0xdc   : > { %v9410_v3 = vadd.f32 %v2156_v2, %v1761_v48 }
  0xdd   : > { %7292 = vmatmul.msk.bf16.gmra.mxu0 %vm1559_vm2, %v1521_v62 }
  0xe0   : > { %v1765_v6 = vpop.f32.mrf.mxu1  ;;  %7394 = vmatmul.msk.bf16.gmra.mxu2 %vm1559_vm2, %v2046_v5  ;;  %v1538_v5 = vshrl.u32 %v8699_v34, 16  ;;  %v1403_v34 = vunpack.c.l.b16 %v1334_v23 }
  0xe2   : > { %v1641_v9 = vpop.f32.mrf.mxu0  ;;  %v9484_v49 = vpack.c.b16 %v1403_v34, %v1403_v34 }
  0xe3   : > { %v1766_v13 = vadd.f32 %v1765_v6, %v1641_v9  ;;  %v2159_v17 = vpop.f32.mrf.mxu2  ;;  %v1328_v9 = vld [vmem:[#allocation2 + $0x80] sm:$0x1] }
  0xe4   : > { %v9416_v19 = vadd.f32 %v2159_v17, %v1764_v63  ;;  %v2062_v63 = vsel %vm1421_vm15, %v2057_v58, %v2061_v59  ;;  %v7621_v17 = vld [vmem:[%s11161_s1 + $0x10] sm:$0xf]  ;;  %v1709_v24 = vunpack.c.l.b16 %v1328_v9  ;;  %11195 = vst [vmem:[#allocation13_spill] sm:$0xff] %v9484_v49 }
  0xe6   : > { %v9473_v40 = vpack.c.b16 %v1709_v24, %v1709_v24 }
  0xe7   : > { %7470 = vmatmul.msk.bf16.gmra.mxu3 %vm1559_vm2, %v9486_v50 }
  0xe8   : > { %v1768_v22 = vpop.f32.mrf.mxu1  ;;  %11194 = vst [vmem:[#allocation12_spill] sm:$0xff] %v9473_v40  ;;  %v1721_v56 = vshll.u32 %v9473_v40, 16 }
  0xea   : > { %v1644_v25 = vpop.f32.mrf.mxu0 }
  0xeb   : > { %7313 = vmatmul.msk.bf16.gmra.mxu1 %vm1559_vm2, %v1521_v62  ;;  %v1769_v27 = vadd.f32 %v1768_v22, %v1644_v25  ;;  %v2161_v33 = vpop.f32.mrf.mxu2  ;;  %v9440_v62 = vld [vmem:[#allocation2 + $0x80] sm:$0xff]  ;;  %v2067_v22 = vshll.u32 %v9452_v7, 16  ;;  %v7602_v25 = vor.u32 %v8756_v16, %v7601_v15 }
  0xec   : > { %v9421_v14 = vadd.f32 %v2161_v33, %v1766_v13  ;;  %v1542_v2 = vshll.u32 %v9440_v62, 16  ;;  %v1540_v13 = vor.u32 %v1538_v5, %v1536_v47  ;;  %v1723_v5 = vrot.slane %v1721_v56, 1 }
  0xed   : > { %7293 = vmatmul.msk.bf16.gmra.mxu0 %vm1559_vm2, %v1529_v26  ;;  %v3208_v30 = vand.u32 %v7602_v25, %v9144_v10  ;;  %v2069_v38 = vrot.slane %v2067_v22, 1 }
  0xee   : > { %v1544_v39 = vrot.slane %v1542_v2, 1 }
  0xef   : > { %3217 = vmatpush.bf16.msrb.mxu2 %v3208_v30 }
  0xf0   : > { %v1770_v36 = vpop.f32.mrf.mxu1  ;;  %7395 = vmatmul.msk.bf16.gmra.mxu2 %vm1559_vm2, %v2054_v35  ;;  %v1545_v33 = vsel %vm1421_vm15, %v1540_v13, %v1544_v39 }
  0xf2   : > { %v1646_v37 = vpop.f32.mrf.mxu0 }
  0xf3   : > { %v9425_v41 = vadd.f32 %v1770_v36, %v1646_v37  ;;  %v2164_v44 = vpop.f32.mrf.mxu2  ;;  %v2065_v37 = vor.u32 %v2063_v21, %v2061_v59  ;;  %v8757_v59 = vld [vmem:[%s11161_s1 + $0x40] sm:$0x10]  ;;  %v2071_v21 = vshrl.u32 %v9452_v7, 16 }
  0xf4   : > { %v9427_v45 = vadd.f32 %v2164_v44, %v1769_v27  ;;  %v7577_v44 = vld [vmem:[%s11161_s1 + $0x30] sm:$0xf] }
  0xf5   : > { %v2073_v25 = vor.u32 %v2071_v21, %v2069_v38 }
  0xf8   : > { %v1773_v48 = vpop.f32.mrf.mxu1 }
  0xfa   : > { %v1649_v53 = vpop.f32.mrf.mxu0 }
  0xfb   : > { %7314 = vmatmul.msk.bf16.gmra.mxu1 %vm1559_vm2, %v1529_v26  ;;  %v1774_v57 = vadd.f32 %v1773_v48, %v1649_v53  ;;  %v9437_v61 = vpop.f32.mrf.mxu2  ;;  %v8755_v26 = vld [vmem:[%s11161_s1 + $0x10] sm:$0x10]  ;;  %v7578_v48 = vor.u32 %v8754_v46, %v7577_v44  ;;  %v7643_v53 = vld [vmem:[%s11161_s1 + $0x40] sm:$0xf] }
  0xfc   : > { %v7622_v27 = vor.u32 %v8755_v26, %v7621_v17  ;;  %v7644_v60 = vor.u32 %v8757_v59, %v7643_v53  ;;  %v8723_v46 = vld [vmem:[#allocation2 + $0x20] sm:$0xff] }
  0xfd   : > { %7294 = vmatmul.msk.bf16.gmra.mxu0 %vm1559_vm2, %v1537_v54  ;;  %v2826_v58 = vand.u32 %v7578_v48, %v9144_v10 }
  0xfe   : > { %v3323_v35 = vand.u32 %v7622_v27, %v9144_v10  ;;  %v3508_v2 = vand.u32 %v7644_v60, %v9144_v10 }
  0xff   : > { %2835 = vmatpush.bf16.msrb.mxu1 %v2826_v58 }
 0x100   : > { %v1775_v0 = vpop.f32.mrf.mxu1  ;;  %7396 = vmatmul.msk.bf16.gmra.mxu2 %vm1559_vm2, %v2062_v63  ;;  %3332 = vmatpush.bf16.msrb.mxu3 %v3323_v35  ;;  %v1546_v63 = vshrl.u32 %v9440_v62, 16  ;;  %v1724_v62 = vsel %vm1421_vm15, %v1540_v13, %v1723_v5  ;;  %v8738_v35 = vld [vmem:[#allocation2 + $0x10] sm:$0xff] }
 0x101   : > { %3517 = vmatpush.bf16.msra.mxu0 %v3508_v2 }
 0x102   : > { %v1651_v4 = vpop.f32.mrf.mxu0  ;;  %v1548_v16 = vor.u32 %v1546_v63, %v1544_v39  ;;  %v8722_v39 = vld [vmem:[#allocation2 + $0x18] sm:$0xff]  ;;  %v8724_v63 = vld [vmem:[#allocation2 + $0x28] sm:$0xff] }
 0x103   : > { %v9450_v6 = vadd.f32 %v1775_v0, %v1651_v4  ;;  %v2169_v11 = vpop.f32.mrf.mxu2  ;;  %v1550_v0 = vshll.u32 %v9484_v49, 16  ;;  %7471 = vmatmul.msk.bf16.gmra.mxu3 %vm1559_vm2, %v8722_v39 }
 0x104   : > { %v9454_v12 = vadd.f32 %v2169_v11, %v1774_v57  ;;  %v1929_v57 = vunpack.c.l.b16 %v1860_v42 }
 0x105   : > { %v1552_v17 = vrot.slane %v1550_v0, 1 }
 0x106   : > { %v9505_v9 = vpack.c.b16 %v1929_v57, %v1929_v57  ;;  %v8739_v57 = vld [vmem:[#allocation2 + $0x18] sm:$0xff] }
 0x107   : > { %v1553_v10 = vsel %vm1421_vm15, %v1548_v16, %v1552_v17  ;;  %v8740_v17 = vld [vmem:[#allocation2 + $0x20] sm:$0xff] }
 0x108   : > { %v1778_v20 = vpop.f32.mrf.mxu1  ;;  %11196 = vst [vmem:[#allocation14_spill] sm:$0xff] %v9505_v9  ;;  %v2075_v22 = vshll.u32 %v9505_v9, 16 }
 0x10a   : > { %v1654_v31 = vpop.f32.mrf.mxu0  ;;  %v2077_v26 = vrot.slane %v2075_v22, 1 }
 0x10b   : > { %7315 = vmatmul.msk.bf16.gmra.mxu1 %vm1559_vm2, %v1537_v54  ;;  %v1779_v36 = vadd.f32 %v1778_v20, %v1654_v31  ;;  %v9481_v47 = vpop.f32.mrf.mxu2  ;;  %v2070_v54 = vsel %vm1421_vm15, %v2065_v37, %v2069_v38  ;;  %v8719_v37 = vld [vmem:[#allocation2] sm:$0xff] }
 0x10c   : > { %v2078_v30 = vsel %vm1421_vm15, %v2073_v25, %v2077_v26 }
 0x10d   : > { %7295 = vmatmul.msk.bf16.gmra.mxu0 %vm1559_vm2, %v1545_v33 }
 0x110   : > { %v1780_v55 = vpop.f32.mrf.mxu1  ;;  %7397 = vmatmul.msk.bf16.gmra.mxu2 %vm1559_vm2, %v2070_v54 }
 0x112   : > { %v1656_v43 = vpop.f32.mrf.mxu0 }
 0x113   : > { %v9503_v4 = vadd.f32 %v1780_v55, %v1656_v43  ;;  %v2174_v11 = vpop.f32.mrf.mxu2  ;;  %7472 = vmatmul.msk.bf16.gmra.mxu3 %vm1559_vm2, %v8723_v46 }
 0x114   : > { %v9507_v15 = vadd.f32 %v2174_v11, %v1779_v36 }
 0x118   : > { %v1783_v20 = vpop.f32.mrf.mxu1 }
 0x11a   : > { %v1659_v23 = vpop.f32.mrf.mxu0 }
 0x11b   : > { %7316 = vmatmul.msk.bf16.gmra.mxu1 %vm1559_vm2, %v1724_v62  ;;  %v1784_v24 = vadd.f32 %v1783_v20, %v1659_v23  ;;  %v9514_v27 = vpop.f32.mrf.mxu2 }
 0x11d   : > { %7296 = vmatmul.msk.bf16.gmra.mxu0 %vm1559_vm2, %v1553_v10 }
 0x120   : > { %v1785_v13 = vpop.f32.mrf.mxu1  ;;  %7398 = vmatmul.msk.bf16.gmra.mxu2 %vm1559_vm2, %v2078_v30  ;;  %v8741_v30 = vld [vmem:[#allocation2 + $0x28] sm:$0xff] }
 0x122   : > { %v1661_v7 = vpop.f32.mrf.mxu0 }
 0x123   : > { %v9520_v31 = vadd.f32 %v1785_v13, %v1661_v7  ;;  %v2179_v33 = vpop.f32.mrf.mxu2  ;;  %7473 = vmatmul.msk.bf16.gmra.mxu3 %vm1559_vm2, %v8724_v63 }
 0x124   : > { %v9522_v34 = vadd.f32 %v2179_v33, %v1784_v24 }
 0x128   : > { %v1788_v36 = vpop.f32.mrf.mxu1 }
 0x12a   : > { %v1664_v38 = vpop.f32.mrf.mxu0 }
 0x12b   : > { %7579 = vmatmul.msk.bf16.vlgmr.msrb.gmra.mxu1 %vm1559_vm2, %v8738_v35  ;;  %v1789_v42 = vadd.f32 %v1788_v36, %v1664_v38  ;;  %v9525_v44 = vpop.f32.mrf.mxu2 }
 0x12d   : > { %7493 = vmatmul.msk.bf16.vlgmr.msrb.gmra.mxu0 %vm1559_vm2, %v8719_v37 }
 0x130   : > { %v1790_v48 = vpop.f32.mrf.mxu1 }
 0x132   : > { %v1666_v53 = vpop.f32.mrf.mxu0 }
 0x133   : > { %v9529_v54 = vadd.f32 %v1790_v48, %v1666_v53  ;;  %v2184_v55 = vpop.f32.mrf.mxu2  ;;  %v8742_v53 = vld [vmem:[#allocation2 + $0x30] sm:$0xff] }
 0x134   : > { %v9531_v56 = vadd.f32 %v2184_v55, %v1789_v42 }
 0x138   : > { %v1793_v58 = vpop.f32.mrf.mxu1 }
 0x13a   : > { %v1669_v59 = vpop.f32.mrf.mxu0 }
 0x13b   : > { %7580 = vmatmul.msk.bf16.gmra.mxu1 %vm1559_vm2, %v8739_v57  ;;  %v1794_v60 = vadd.f32 %v1793_v58, %v1669_v59  ;;  %v9534_v43 = vpop.f32.mrf.mxu2 }
 0x13d   : > { %7494 = vmatmul.msk.bf16.gmra.mxu0 %vm1559_vm2, %v9444_v1  ;;  %v8725_v1 = vld [vmem:[#allocation2 + $0x30] sm:$0xff] }
 0x13e   : > { %7474 = vmatmul.msk.bf16.gmra.mxu3 %vm1559_vm2, %v8725_v1 }
 0x140   : > { %v1795_v0 = vpop.f32.mrf.mxu1 }
 0x142   : > { %v1671_v2 = vpop.f32.mrf.mxu0 }
 0x143   : > { %v9539_v5 = vadd.f32 %v1795_v0, %v1671_v2  ;;  %v2189_v11 = vpop.f32.mrf.mxu2 }
 0x144   : > { %v9541_v16 = vadd.f32 %v2189_v11, %v1794_v60 }
 0x148   : > { %v1798_v20 = vpop.f32.mrf.mxu1 }
 0x14a   : > { %v1674_v62 = vpop.f32.mrf.mxu0 }
 0x14b   : > { %7581 = vmatmul.msk.bf16.gmra.mxu1 %vm1559_vm2, %v8740_v17  ;;  %v1799_v21 = vadd.f32 %v1798_v20, %v1674_v62  ;;  %v9544_v22 = vpop.f32.mrf.mxu2  ;;  %v8743_v20 = vld [vmem:[#allocation2 + $0x38] sm:$0xff] }
 0x14d   : > { %7495 = vmatmul.msk.bf16.gmra.mxu0 %vm1559_vm2, %v9486_v50  ;;  %v8726_v50 = vld [vmem:[#allocation2 + $0x38] sm:$0xff] }
 0x14e   : > { %7475 = vmatmul.msk.bf16.gmra.mxu3 %vm1559_vm2, %v8726_v50 }
 0x150   : > { %v1800_v23 = vpop.f32.mrf.mxu1 }
 0x152   : > { %v1676_v10 = vpop.f32.mrf.mxu0 }
 0x153   : > { %v9549_v24 = vadd.f32 %v1800_v23, %v1676_v10  ;;  %v2194_v25 = vpop.f32.mrf.mxu2 }
 0x154   : > { %v9551_v26 = vadd.f32 %v2194_v25, %v1799_v21 }
 0x158   : > { %v1803_v13 = vpop.f32.mrf.mxu1 }
 0x15a   : > { %v1679_v7 = vpop.f32.mrf.mxu0 }
 0x15b   : > { %7582 = vmatmul.msk.bf16.gmra.mxu1 %vm1559_vm2, %v8741_v30  ;;  %v1804_v33 = vadd.f32 %v1803_v13, %v1679_v7  ;;  %v9554_v35 = vpop.f32.mrf.mxu2 }
 0x15d   : > { %7496 = vmatmul.msk.bf16.gmra.mxu0 %vm1559_vm2, %v8722_v39  ;;  %v9566_v39 = vld [vmem:[#allocation2 + $0x40] sm:$0xff] }
 0x15e   : > { %7476 = vmatmul.msk.bf16.gmra.mxu3 %vm1559_vm2, %v9566_v39 }
 0x160   : > { %v1805_v36 = vpop.f32.mrf.mxu1 }
 0x162   : > { %v1681_v37 = vpop.f32.mrf.mxu0 }
 0x163   : > { %v9558_v38 = vadd.f32 %v1805_v36, %v1681_v37  ;;  %v2199_v42 = vpop.f32.mrf.mxu2  ;;  %v8744_v37 = vld [vmem:[#allocation2 + $0x40] sm:$0xff] }
 0x164   : > { %v9560_v48 = vadd.f32 %v2199_v42, %v1804_v33  ;;  %v2472_v33 = vpop.f32.mrf.mxu3 }
 0x168   : > { %v1808_v55 = vpop.f32.mrf.mxu1 }
 0x16a   : > { %v1684_v57 = vpop.f32.mrf.mxu0 }
 0x16b   : > { %7583 = vmatmul.msk.bf16.gmra.mxu1 %vm1559_vm2, %v8742_v53  ;;  %v1809_v58 = vadd.f32 %v1808_v55, %v1684_v57  ;;  %v9563_v59 = vpop.f32.mrf.mxu2 }
 0x16c   : > { %v2474_v57 = vpop.f32.mrf.mxu3 }
 0x16d   : > { %7497 = vmatmul.msk.bf16.gmra.mxu0 %vm1559_vm2, %v8723_v46  ;;  %v9578_v46 = vld [vmem:[#allocation2 + $0x48] sm:$0xff] }
 0x16e   : > { %7477 = vmatmul.msk.bf16.gmra.mxu3 %vm1559_vm2, %v9578_v46 }
 0x170   : > { %v1810_v60 = vpop.f32.mrf.mxu1 }
 0x172   : > { %v1686_v0 = vpop.f32.mrf.mxu0 }
 0x173   : > { %v9570_v2 = vadd.f32 %v1810_v60, %v1686_v0  ;;  %v2204_v11 = vpop.f32.mrf.mxu2  ;;  %v9590_v60 = vld [vmem:[#allocation2 + $0x50] sm:$0xff] }
 0x174   : > { %v9572_v17 = vadd.f32 %v2204_v11, %v1809_v58 }
 0x178   : > { %v1813_v62 = vpop.f32.mrf.mxu1 }
 0x17a   : > { %v1689_v21 = vpop.f32.mrf.mxu0 }
 0x17b   : > { %7584 = vmatmul.msk.bf16.gmra.mxu1 %vm1559_vm2, %v8743_v20  ;;  %v1814_v23 = vadd.f32 %v1813_v62, %v1689_v21  ;;  %v9575_v10 = vpop.f32.mrf.mxu2  ;;  %v2477_v62 = vpop.f32.mrf.mxu3 }
 0x17d   : > { %7498 = vmatmul.msk.bf16.gmra.mxu0 %vm1559_vm2, %v8724_v63 }
 0x17e   : > { %7478 = vmatmul.msk.bf16.gmra.mxu3 %vm1559_vm2, %v9590_v60 }
 0x180   : > { %v1815_v25 = vpop.f32.mrf.mxu1 }
 0x182   : > { %v1691_v30 = vpop.f32.mrf.mxu0 }
 0x183   : > { %v9582_v13 = vadd.f32 %v1815_v25, %v1691_v30  ;;  %v2209_v7 = vpop.f32.mrf.mxu2 }
 0x184   : > { %v9584_v36 = vadd.f32 %v2209_v7, %v1814_v23  ;;  %v8745_v23 = vld [vmem:[#allocation2 + $0x48] sm:$0xff] }
 0x188   : > { %v1818_v42 = vpop.f32.mrf.mxu1 }
 0x18a   : > { %v1694_v53 = vpop.f32.mrf.mxu0 }
 0x18b   : > { %7585 = vmatmul.msk.bf16.gmra.mxu1 %vm1559_vm2, %v8744_v37  ;;  %v1819_v55 = vadd.f32 %v1818_v42, %v1694_v53  ;;  %v9587_v63 = vpop.f32.mrf.mxu2  ;;  %v2479_v37 = vpop.f32.mrf.mxu3  ;;  %v879_v53 = vlaneseq }
 0x18d   : > { %7499 = vmatmul.msk.bf16.gmra.mxu0 %vm1559_vm2, %v8725_v1 }
 0x18e   : > { %7479 = vmatmul.msk.bf16.gmra.mxu3 %vm1559_vm2, %v9602_v28 }
 0x190   : > { %v1820_v58 = vpop.f32.mrf.mxu1 }
 0x192   : > { %v1696_v0 = vpop.f32.mrf.mxu0 }
 0x193   : > { %v9594_v11 = vadd.f32 %v1820_v58, %v1696_v0  ;;  %v2214_v20 = vpop.f32.mrf.mxu2  ;;  %v9608_v0 = vshrl.u32 %v879_v53, 7 }
 0x194   : > { %v9596_v21 = vadd.f32 %v2214_v20, %v1819_v55 }
 0x198   : > { %v1823_v25 = vpop.f32.mrf.mxu1 }
 0x19a   : > { %v1699_v30 = vpop.f32.mrf.mxu0 }
 0x19b   : > { %7586 = vmatmul.msk.bf16.gmra.mxu1 %vm1559_vm2, %v8745_v23  ;;  %v1824_v1 = vadd.f32 %v1823_v25, %v1699_v30  ;;  %v9599_v7 = vpop.f32.mrf.mxu2  ;;  %v2482_v23 = vpop.f32.mrf.mxu3  ;;  %v8746_v30 = vld [vmem:[#allocation2 + $0x50] sm:$0xff] }
 0x19d   : > { %7500 = vmatmul.msk.bf16.gmra.mxu0 %vm1559_vm2, %v8726_v50  ;;  %v916_v50 = vand.u32 15, %v9608_v0 }
 0x19f   : > { %vm2256_vm3 = vcmp.ne.s32.totalorder %v916_v50, 0 }
 0x1a0   : > { %v1825_v42 = vpop.f32.mrf.mxu1 }
 0x1a2   : > { %v1701_v58 = vpop.f32.mrf.mxu0 }
 0x1a3   : > { %v9606_v55 = vadd.f32 %v1825_v42, %v1701_v58  ;;  %v2219_v20 = vpop.f32.mrf.mxu2  ;;  %v2484_v42 = vpop.f32.mrf.mxu3 }
 0x1a4   : > { %v9610_v25 = vadd.f32 %v2219_v20, %v1824_v1  ;;  %v9619_v1 = vld [vmem:[#allocation2 + $0x60] sm:$0xff] }
 0x1a5   : > { %11197 = vst [vmem:[#allocation15_spill] sm:$0xff] %v9606_v55  ;;  %7480 = vmatmul.msk.bf16.gmra.mxu3 %vm1559_vm2, %v9619_v1 }
 0x1a6   : > { %11198 = vst [vmem:[#allocation16_spill] sm:$0xff] %v9610_v25 }
 0x1a8   : > { %v2837_v9 = vpop.f32.mrf.mxu1 }
 0x1aa   : > { %v2577_v40 = vpop.f32.mrf.mxu0 }
 0x1ab   : > { %7587 = vmatmul.msk.bf16.gmra.mxu1 %vm1559_vm2, %v8746_v30  ;;  %v2578_v49 = vadd.f32 %v2577_v40, %v2472_v33  ;;  %v9624_v40 = vadd.s32 16, %v9608_v0  ;;  %v8747_v33 = vld [vmem:[#allocation2 + $0x58] sm:$0xff] }
 0x1ad   : > { %v2917_v18 = vadd.f32 %v2837_v9, %v2578_v49  ;;  %7501 = vmatmul.msk.bf16.gmra.mxu0 %vm1559_vm2, %v9566_v39  ;;  %11199 = vst [vmem:[#allocation17_spill] sm:$0xff] %v9624_v40  ;;  %v2487_v9 = vpop.f32.mrf.mxu3 }
 0x1af   : > { %v3013_v53 = vsel %vm2256_vm3, %v2917_v18, 0.0 }
 0x1b0   : > { %v2839_v58 = vpop.f32.mrf.mxu1  ;;  %v9617_v55 = vadd.f32 %v3013_v53, %v9363_v32  ;;  %v930_v32 = vand.u32 15, %v9624_v40 }
 0x1b2   : > { %v2579_v20 = vpop.f32.mrf.mxu0  ;;  %vm2258_vm4 = vcmp.ne.s32.totalorder %v930_v32, 0  ;;  %v8748_v32 = vld [vmem:[#allocation2 + $0x60] sm:$0xff] }
 0x1b3   : > { %v2580_v25 = vadd.f32 %v2579_v20, %v2474_v57 }
 0x1b5   : > { %v2918_v49 = vadd.f32 %v2839_v58, %v2580_v25  ;;  %v2489_v57 = vpop.f32.mrf.mxu3 }
 0x1b7   : > { %v9627_v39 = vadd.f32 %v2918_v49, %v9371_v51  ;;  %v9636_v51 = vld [vmem:[#allocation2 + $0x68] sm:$0xff] }
 0x1b8   : > { %v2842_v18 = vpop.f32.mrf.mxu1  ;;  %7481 = vmatmul.msk.bf16.gmra.mxu3 %vm1559_vm2, %v9636_v51 }
 0x1ba   : > { %v2582_v30 = vpop.f32.mrf.mxu0 }
 0x1bb   : > { %7588 = vmatmul.msk.bf16.gmra.mxu1 %vm1559_vm2, %v8747_v33  ;;  %v2583_v50 = vadd.f32 %v2582_v30, %v2477_v62  ;;  %v9641_v62 = vadd.s32 32, %v9608_v0 }
 0x1bd   : > { %v2919_v53 = vadd.f32 %v2842_v18, %v2583_v50  ;;  %7502 = vmatmul.msk.bf16.gmra.mxu0 %vm1559_vm2, %v9578_v46  ;;  %11200 = vst [vmem:[#allocation18_spill] sm:$0xff] %v9641_v62  ;;  %v2492_v18 = vpop.f32.mrf.mxu3 }
 0x1bf   : > { %v3015_v20 = vsel %vm2258_vm4, %v2919_v53, 0.0 }
 0x1c0   : > { %v2844_v25 = vpop.f32.mrf.mxu1  ;;  %v9634_v58 = vadd.f32 %v3015_v20, %v9384_v8  ;;  %v944_v8 = vand.u32 15, %v9641_v62 }
 0x1c2   : > { %v2584_v49 = vpop.f32.mrf.mxu0  ;;  %vm2260_vm5 = vcmp.ne.s32.totalorder %v944_v8, 0  ;;  %v8749_v8 = vld [vmem:[#allocation2 + $0x68] sm:$0xff] }
 0x1c3   : > { %v2585_v40 = vadd.f32 %v2584_v49, %v2479_v37 }
 0x1c5   : > { %v2920_v33 = vadd.f32 %v2844_v25, %v2585_v40  ;;  %v2494_v37 = vpop.f32.mrf.mxu3 }
 0x1c7   : > { %v9644_v46 = vadd.f32 %v2920_v33, %v9392_v29  ;;  %v9653_v29 = vld [vmem:[#allocation2 + $0x70] sm:$0xff] }
 0x1c8   : > { %v2847_v30 = vpop.f32.mrf.mxu1  ;;  %7482 = vmatmul.msk.bf16.gmra.mxu3 %vm1559_vm2, %v9653_v29 }
 0x1ca   : > { %v2587_v50 = vpop.f32.mrf.mxu0 }
 0x1cb   : > { %7589 = vmatmul.msk.bf16.gmra.mxu1 %vm1559_vm2, %v8748_v32  ;;  %v2588_v53 = vadd.f32 %v2587_v50, %v2482_v23  ;;  %v9658_v23 = vadd.s32 48, %v9608_v0 }
 0x1cd   : > { %v2921_v20 = vadd.f32 %v2847_v30, %v2588_v53  ;;  %7503 = vmatmul.msk.bf16.gmra.mxu0 %vm1559_vm2, %v9590_v60  ;;  %11201 = vst [vmem:[#allocation19_spill] sm:$0xff] %v9658_v23  ;;  %v2497_v30 = vpop.f32.mrf.mxu3 }
 0x1cf   : > { %v3017_v49 = vsel %vm2260_vm5, %v2921_v20, 0.0 }
 0x1d0   : > { %v2849_v40 = vpop.f32.mrf.mxu1  ;;  %v9651_v25 = vadd.f32 %v3017_v49, %v9402_v52  ;;  %v958_v52 = vand.u32 15, %v9658_v23 }
 0x1d2   : > { %v2589_v33 = vpop.f32.mrf.mxu0  ;;  %vm2262_vm7 = vcmp.ne.s32.totalorder %v958_v52, 0 }
 0x1d3   : > { %v2590_v62 = vadd.f32 %v2589_v33, %v2484_v42 }
 0x1d5   : > { %v2922_v32 = vadd.f32 %v2849_v40, %v2590_v62  ;;  %v9667_v42 = vpop.f32.mrf.mxu3 }
 0x1d7   : > { %v9661_v60 = vadd.f32 %v2922_v32, %v9410_v3  ;;  %v9672_v3 = vld [vmem:[#allocation2 + $0x78] sm:$0xff] }
 0x1d8   : > { %v2852_v50 = vpop.f32.mrf.mxu1  ;;  %7483 = vmatmul.msk.bf16.gmra.mxu3 %vm1559_vm2, %v9672_v3 }
 0x1da   : > { %v2592_v53 = vpop.f32.mrf.mxu0 }
 0x1db   : > { %7590 = vmatmul.msk.bf16.gmra.mxu1 %vm1559_vm2, %v8749_v8  ;;  %v2593_v20 = vadd.f32 %v2592_v53, %v2487_v9  ;;  %v888_v9 = vadd.s32 64, %v9608_v0 }
 0x1dd   : > { %v2923_v49 = vadd.f32 %v2852_v50, %v2593_v20  ;;  %7504 = vmatmul.msk.bf16.gmra.mxu0 %vm1559_vm2, %v9602_v28  ;;  %v9677_v52 = vpop.f32.mrf.mxu3  ;;  %v8750_v28 = vld [vmem:[#allocation2 + $0x70] sm:$0xff] }
 0x1df   : > { %v3019_v62 = vsel %vm2262_vm7, %v2923_v49, 0.0  ;;  %v972_v49 = vand.u32 15, %v888_v9 }
 0x1e0   : > { %v2854_v40 = vpop.f32.mrf.mxu1  ;;  %v9670_v33 = vadd.f32 %v3019_v62, %v9416_v19 }
 0x1e1   : > { %vm2264_vm8 = vcmp.ne.s32.totalorder %v972_v49, 0 }
 0x1e2   : > { %v2594_v32 = vpop.f32.mrf.mxu0 }
 0x1e3   : > { %v2595_v8 = vadd.f32 %v2594_v32, %v2489_v57 }
 0x1e5   : > { %v2924_v50 = vadd.f32 %v2854_v40, %v2595_v8  ;;  %v9685_v57 = vpop.f32.mrf.mxu3 }
 0x1e7   : > { %v9680_v53 = vadd.f32 %v2924_v50, %v9421_v14  ;;  %v8736_v14 = vld [vmem:[#allocation2 + $0x80] sm:$0xff] }
 0x1e8   : > { %v2857_v20 = vpop.f32.mrf.mxu1  ;;  %7484 = vmatmul.msk.bf16.gmra.mxu3 %vm1559_vm2, %v8736_v14  ;;  %v8966_v14 = vld [vmem:[#allocation2 + $0x8] sm:$0xf0] }
 0x1e9   : > { %11202 = vst [vmem:[#allocation20_spill] sm:$0xff] %v9680_v53 }
 0x1ea   : > { %v2597_v19 = vpop.f32.mrf.mxu0 }
 0x1eb   : > { %7591 = vmatmul.msk.bf16.gmra.mxu1 %vm1559_vm2, %v8750_v28  ;;  %v2598_v62 = vadd.f32 %v2597_v19, %v2492_v18  ;;  %v890_v28 = vadd.s32 80, %v9608_v0  ;;  %v2233_v18 = vadd.f32 %v9437_v61, %v9425_v41 }
 0x1ed   : > { %v2925_v23 = vadd.f32 %v2857_v20, %v2598_v62  ;;  %7505 = vmatmul.msk.bf16.gmra.mxu0 %vm1559_vm2, %v9619_v1  ;;  %v9694_v49 = vpop.f32.mrf.mxu3  ;;  %v8751_v1 = vld [vmem:[#allocation2 + $0x78] sm:$0xff] }
 0x1ef   : > { %v3021_v40 = vsel %vm2264_vm8, %v2925_v23, 0.0  ;;  %v986_v23 = vand.u32 15, %v890_v28 }
 0x1f0   : > { %v2859_v32 = vpop.f32.mrf.mxu1  ;;  %v9688_v8 = vadd.f32 %v3021_v40, %v9427_v45 }
 0x1f1   : > { %vm2266_vm11 = vcmp.ne.s32.totalorder %v986_v23, 0  ;;  %v9012_v23 = vld [vmem:[#allocation2 + $0x8] sm:$0xff]  }
 0x1f2   : > { %11203 = vst [vmem:[#allocation21_spill] sm:$0xff] %v9688_v8  ;;  %v2599_v50 = vpop.f32.mrf.mxu0 }
 0x1f3   : > { %v2600_v9 = vadd.f32 %v2599_v50, %v2494_v37  ;;  %v8967_v37 = vld [vmem:[#allocation2 + $0x8] sm:$0xe]  ;;  %v8969_v50 = vld [vmem:[#allocation2] sm:$0xf0] }
 0x1f4   : > { %v8968_v61 = vor.u32 %v8967_v37, %v8966_v14 }
 0x1f5   : > { %v2926_v20 = vadd.f32 %v2859_v32, %v2600_v9  ;;  %v9701_v41 = vpop.f32.mrf.mxu3  ;;  %v8970_v32 = vld [vmem:[#allocation2] sm:$0xe] }
 0x1f6   : > { %v8971_v9 = vor.u32 %v8970_v32, %v8969_v50  ;;  %v8752_v50 = vld [vmem:[#allocation2 + $0x80] sm:$0xff] }
 0x1f7   : > { %v9696_v19 = vadd.f32 %v2926_v20, %v2233_v18  ;;  %v3121_v20 = vrot.slane %v8968_v61, 1 }
 0x1f8   : > { %v2862_v62 = vpop.f32.mrf.mxu1 }
 0x1f9   : > { %11204 = vst [vmem:[#allocation22_spill] sm:$0xff] %v9696_v19  ;;  %v9011_v19 = vld [vmem:[#allocation2 + $0x10] sm:$0xff] }
 0x1fa   : > { %v2602_v45 = vpop.f32.mrf.mxu0  ;;  %v3122_v53 = vrot.slane %v9011_v19, 1  ;;  %v892_v19 = vadd.s32 96, %v9608_v0 }
 0x1fb   : > { %7592 = vmatmul.msk.bf16.gmra.mxu1 %vm1559_vm2, %v8751_v1  ;;  %v2603_v40 = vadd.f32 %v2602_v45, %v2497_v30  ;;  %v3302_v1 = vrot.slane %v8971_v9, 1 }
 0x1fc   : > { %v3123_v45 = vsel %vm3120_vm13, %v3121_v20, %v3122_v53  ;;  %v1000_v9 = vand.u32 15, %v892_v19  ;;  %v2237_v19 = vadd.f32 %v9514_v27, %v9503_v4 }
 0x1fd   : > { %v2927_v8 = vadd.f32 %v2862_v62, %v2603_v40  ;;  %7506 = vmatmul.msk.bf16.gmra.mxu0 %vm1559_vm2, %v9636_v51  ;;  %v3303_v62 = vrot.slane %v9012_v23, 1  ;;  %7603 = vmatmul.msk.bf16.vlgmr.msrb.gmra.mxu2 %vm1559_vm2, %v3123_v45  ;;  %v9714_v37 = vpop.f32.mrf.mxu3 }
 0x1fe   : > { %vm2268_vm14 = vcmp.ne.s32.totalorder %v1000_v9, 0 }
 0x1ff   : > { %v3023_v18 = vsel %vm2266_vm11, %v2927_v8, 0.0  ;;  %v3304_v40 = vsel %vm3120_vm13, %v3302_v1, %v3303_v62 }
 0x200   : > { %v2864_v28 = vpop.f32.mrf.mxu1  ;;  %v9704_v30 = vadd.f32 %v3023_v18, %v9454_v12  ;;  %7623 = vmatmul.msk.bf16.vlgmr.msrb.gmra.mxu3 %vm1559_vm2, %v3304_v40  ;;  %v2235_v12 = vadd.f32 %v9481_v47, %v9450_v6 }
 0x202   : > { %v2604_v51 = vpop.f32.mrf.mxu0 }
 0x203   : > { %v2605_v8 = vadd.f32 %v2604_v51, %v9667_v42  ;;  %v3305_v51 = vsel %vm3120_vm13, %v3303_v62, %v3122_v53 }
 0x205   : > { %v2928_v14 = vadd.f32 %v2864_v28, %v2605_v8  ;;  %v9722_v1 = vpop.f32.mrf.mxu3  ;;  %v9013_v28 = vld [vmem:[#allocation2 + $0x18] sm:$0xff] }
 0x206   : > { %v3124_v23 = vrot.slane %v9013_v28, 1 }
 0x207   : > { %v9716_v61 = vadd.f32 %v2928_v14, %v2235_v12 }
 0x208   : > { %v2867_v32 = vpop.f32.mrf.mxu1  ;;  %v3125_v40 = vsel %vm3120_vm13, %v3122_v53, %v3124_v23 }
 0x20a   : > { %v2607_v18 = vpop.f32.mrf.mxu0 }
 0x20b   : > { %7593 = vmatmul.msk.bf16.gmra.mxu1 %vm1559_vm2, %v8752_v50  ;;  %v2608_v42 = vadd.f32 %v2607_v18, %v9677_v52 }
 0x20d   : > { %v2929_v20 = vadd.f32 %v2867_v32, %v2608_v42  ;;  %7507 = vmatmul.msk.bf16.gmra.mxu0 %vm1559_vm2, %v9653_v29  ;;  %7604 = vmatmul.msk.bf16.gmra.mxu2 %vm1559_vm2, %v3125_v40  ;;  %v894_v29 = vadd.s32 112, %v9608_v0  ;;  %v9735_v14 = vpop.f32.mrf.mxu3  ;;  %v8972_v42 = vld [vmem:[#allocation2 + $0x10] sm:$0xf0] }
 0x20f   : > { %v3025_v6 = vsel %vm2268_vm14, %v2929_v20, 0.0  ;;  %v1014_v53 = vand.u32 15, %v894_v29  ;;  %v8973_v20 = vld [vmem:[#allocation2 + $0x10] sm:$0xe]  ;;  %v2239_v29 = vadd.f32 %v9525_v44, %v9520_v31 }
 0x210   : > { %v2869_v47 = vpop.f32.mrf.mxu1  ;;  %v9725_v45 = vadd.f32 %v3025_v6, %v9507_v15  ;;  %7624 = vmatmul.msk.bf16.gmra.mxu3 %vm1559_vm2, %v3305_v51  ;;  %v8753_v15 = vld [vmem:[#allocation2 + $0x88] sm:$0xff]  ;;  %v9014_v6 = vld [vmem:[#allocation2 + $0x20] sm:$0xff] }
 0x211   : > { %vm2270_vm3 = vcmp.ne.s32.totalorder %v1014_v53, 0 }
 0x212   : > { %v2609_v8 = vpop.f32.mrf.mxu0 }
 0x213   : > { %v2610_v52 = vadd.f32 %v2609_v8, %v9685_v57 }
 0x215   : > { %v2930_v12 = vadd.f32 %v2869_v47, %v2610_v52  ;;  %v9743_v18 = vpop.f32.mrf.mxu3  ;;  %v3126_v47 = vrot.slane %v9014_v6, 1 }
 0x217   : > { %v9737_v50 = vadd.f32 %v2930_v12, %v2237_v19  ;;  %v3127_v51 = vsel %vm3120_vm13, %v3124_v23, %v3126_v47 }
 0x218   : > { %v2872_v62 = vpop.f32.mrf.mxu1 }
 0x21a   : > { %v2612_v32 = vpop.f32.mrf.mxu0 }
 0x21b   : > { %7594 = vmatmul.msk.bf16.gmra.mxu1 %vm1559_vm2, %v8753_v15  ;;  %v2613_v57 = vadd.f32 %v2612_v32, %v9694_v49  ;;  %v8974_v49 = vor.u32 %v8973_v20, %v8972_v42 }
 0x21d   : > { %v2931_v9 = vadd.f32 %v2872_v62, %v2613_v57  ;;  %7508 = vmatmul.msk.bf16.gmra.mxu0 %vm1559_vm2, %v9672_v3  ;;  %7605 = vmatmul.msk.bf16.gmra.mxu2 %vm1559_vm2, %v3127_v51  ;;  %v896_v3 = vadd.s32 128, %v9608_v0  ;;  %v2522_v12 = vpop.f32.mrf.mxu3  ;;  %v3421_v15 = vrot.slane %v8974_v49, 1 }
 0x21f   : > { %v3027_v4 = vsel %vm2270_vm3, %v2931_v9, 0.0  ;;  %v1028_v32 = vand.u32 15, %v896_v3 }
 0x220   : > { %v2874_v27 = vpop.f32.mrf.mxu1  ;;  %v9746_v28 = vadd.f32 %v3027_v4, %v9522_v34  ;;  %7625 = vmatmul.msk.bf16.gmra.mxu3 %vm1559_vm2, %v3125_v40  ;;  %v9015_v34 = vld [vmem:[#allocation2 + $0x18] sm:$0xff] }
 0x221   : > { %v3422_v62 = vrot.slane %v9015_v34, 1  ;;  %vm2272_vm4 = vcmp.ne.s32.totalorder %v1028_v32, 0 }
 0x222   : > { %v2614_v8 = vpop.f32.mrf.mxu0 }
 0x223   : > { %v2615_v52 = vadd.f32 %v2614_v8, %v9701_v41  ;;  %v3423_v9 = vsel %vm3120_vm13, %v3421_v15, %v3422_v62 }
 0x225   : > { %v2932_v19 = vadd.f32 %v2874_v27, %v2615_v52  ;;  %v2524_v4 = vpop.f32.mrf.mxu3  ;;  %v9016_v27 = vld [vmem:[#allocation2 + $0x28] sm:$0xff]  ;;  %v2241_v52 = vadd.f32 %v9534_v43, %v9529_v54  ;;  %v9018_v43 = vld [vmem:[#allocation2 + $0x30] sm:$0xff] }
 0x226   : > { %v3128_v42 = vrot.slane %v9016_v27, 1  ;;  %v2243_v27 = vadd.f32 %v9544_v22, %v9539_v5  ;;  %v9020_v5 = vld [vmem:[#allocation2 + $0x38] sm:$0xff] }
 0x227   : > { %v9755_v53 = vadd.f32 %v2932_v19, %v2239_v29  ;;  %v9017_v19 = vld [vmem:[#allocation2 + $0x20] sm:$0xff]  ;;  %v3132_v22 = vrot.slane %v9020_v5, 1 }
 0x228   : > { %v2877_v23 = vpop.f32.mrf.mxu1  ;;  %v3129_v6 = vsel %vm3120_vm13, %v3126_v47, %v3128_v42  ;;  %v3424_v15 = vrot.slane %v9017_v19, 1 }
 0x22a   : > { %v2617_v57 = vpop.f32.mrf.mxu0  ;;  %v3425_v32 = vsel %vm3120_vm13, %v3422_v62, %v3424_v15 }
 0x22b   : > { %v2618_v41 = vadd.f32 %v2617_v57, %v9714_v37  ;;  %v898_v37 = vadd.s32 144, %v9608_v0 }
 0x22d   : > { %v2933_v40 = vadd.f32 %v2877_v23, %v2618_v41  ;;  %7645 = vmatmul.msk.bf16.vlgmr.msra.gmra.mxu0 %vm1559_vm2, %v3423_v9  ;;  %7606 = vmatmul.msk.bf16.gmra.mxu2 %vm1559_vm2, %v3129_v6  ;;  %v2527_v29 = vpop.f32.mrf.mxu3  ;;  %v1042_v47 = vand.u32 15, %v898_v37  ;;  %v3130_v41 = vrot.slane %v9018_v43, 1  ;;  %v9019_v37 = vld [vmem:[#allocation2 + $0x28] sm:$0xff] }
 0x22f   : > { %v3029_v31 = vsel %vm2272_vm4, %v2933_v40, 0.0  ;;  %vm2274_vm5 = vcmp.ne.s32.totalorder %v1042_v47, 0 }
 0x230   : > { %v2879_v44 = vpop.f32.mrf.mxu1  ;;  %v9761_v20 = vadd.f32 %v3029_v31, %v9531_v56  ;;  %7626 = vmatmul.msk.bf16.gmra.mxu3 %vm1559_vm2, %v3127_v51  ;;  %v3131_v31 = vsel %vm3120_vm13, %v3128_v42, %v3130_v41 }
 0x232   : > { %v2619_v8 = vpop.f32.mrf.mxu0 }
 0x233   : > { %v2620_v49 = vadd.f32 %v2619_v8, %v9722_v1 }
 0x235   : > { %v2934_v3 = vadd.f32 %v2879_v44, %v2620_v49  ;;  %v2529_v57 = vpop.f32.mrf.mxu3 }
 0x237   : > { %v9770_v56 = vadd.f32 %v2934_v3, %v2241_v52  ;;  %v3426_v52 = vrot.slane %v9019_v37, 1 }
 0x238   : > { %v2882_v34 = vpop.f32.mrf.mxu1 }
 0x23a   : > { %v2622_v23 = vpop.f32.mrf.mxu0 }
 0x23b   : > { %v2623_v1 = vadd.f32 %v2622_v23, %v9735_v14  ;;  %v900_v14 = vadd.s32 160, %v9608_v0 }
 0x23d   : > { %v2935_v51 = vadd.f32 %v2882_v34, %v2623_v1  ;;  %7646 = vmatmul.msk.bf16.gmra.mxu0 %vm1559_vm2, %v3425_v32  ;;  %7607 = vmatmul.msk.bf16.gmra.mxu2 %vm1559_vm2, %v3131_v31  ;;  %v2532_v49 = vpop.f32.mrf.mxu3  ;;  %v1056_v42 = vand.u32 15, %v900_v14  ;;  %v3427_v34 = vsel %vm3120_vm13, %v3424_v15, %v3426_v52  ;;  %v2245_v15 = vadd.f32 %v9554_v35, %v9549_v24  ;;  %v9022_v24 = vld [vmem:[#allocation2 + $0x40] sm:$0xff] }
 0x23e   : > { %v3134_v35 = vrot.slane %v9022_v24, 1  ;;  %v9025_v24 = vld [vmem:[#allocation2 + $0x40] sm:$0xff] }
 0x23f   : > { %v3031_v9 = vsel %vm2274_vm5, %v2935_v51, 0.0  ;;  %vm2276_vm7 = vcmp.ne.s32.totalorder %v1056_v42, 0  ;;  %v3133_v51 = vsel %vm3120_vm13, %v3130_v41, %v3132_v22  ;;  %vm3827_vm5 = vcmask 261120  }
 0x240   : > { %v2884_v54 = vpop.f32.mrf.mxu1  ;;  %v9776_v40 = vadd.f32 %v3031_v9, %v9541_v16  ;;  %7627 = vmatmul.msk.bf16.gmra.mxu3 %vm1559_vm2, %v3129_v6 }
 0x242   : > { %v2624_v44 = vpop.f32.mrf.mxu0 }
 0x243   : > { %v2625_v62 = vadd.f32 %v2624_v44, %v9743_v18 }
 0x245   : > { %v2936_v8 = vadd.f32 %v2884_v54, %v2625_v62  ;;  %v2534_v6 = vpop.f32.mrf.mxu3  ;;  %v9021_v62 = vld [vmem:[#allocation2 + $0x30] sm:$0xff] }
 0x246   : > { %v3428_v14 = vrot.slane %v9021_v62, 1 }
 0x247   : > { %v9785_v16 = vadd.f32 %v2936_v8, %v2243_v27 }
 0x248   : > { %v2887_v3 = vpop.f32.mrf.mxu1  ;;  %v3429_v37 = vsel %vm3120_vm13, %v3426_v52, %v3428_v14  ;;  %v2247_v52 = vadd.f32 %v9563_v59, %v9558_v38 }
 0x24a   : > { %v2627_v19 = vpop.f32.mrf.mxu0 }
 0x24b   : > { %v2628_v47 = vadd.f32 %v2627_v19, %v2522_v12  ;;  %v902_v12 = vadd.s32 176, %v9608_v0 }
 0x24d   : > { %v2937_v18 = vadd.f32 %v2887_v3, %v2628_v47  ;;  %7647 = vmatmul.msk.bf16.gmra.mxu0 %vm1559_vm2, %v3427_v34  ;;  %7608 = vmatmul.msk.bf16.gmra.mxu2 %vm1559_vm2, %v3133_v51  ;;  %v2537_v44 = vpop.f32.mrf.mxu3  ;;  %v1070_v8 = vand.u32 15, %v902_v12  ;;  %v3135_v47 = vsel %vm3120_vm13, %v3132_v22, %v3134_v35 }
 0x24f   : > { %v3033_v23 = vsel %vm2276_vm7, %v2937_v18, 0.0  ;;  %vm2278_vm8 = vcmp.ne.s32.totalorder %v1070_v8, 0 }
 0x250   : > { %v2889_v32 = vpop.f32.mrf.mxu1  ;;  %v9790_v1 = vadd.f32 %v3033_v23, %v9551_v26  ;;  %7628 = vmatmul.msk.bf16.gmra.mxu3 %vm1559_vm2, %v3131_v31 }
 0x252   : > { %v2629_v9 = vpop.f32.mrf.mxu0 }
 0x253   : > { %v2630_v54 = vadd.f32 %v2629_v9, %v2524_v4  ;;  %v9023_v9 = vld [vmem:[#allocation2 + $0x38] sm:$0xff] }
 0x255   : > { %v2938_v43 = vadd.f32 %v2889_v32, %v2630_v54  ;;  %v2539_v31 = vpop.f32.mrf.mxu3  ;;  %v3430_v54 = vrot.slane %v9023_v9, 1 }
 0x257   : > { %v9798_v27 = vadd.f32 %v2938_v43, %v2245_v15  ;;  %v3431_v43 = vsel %vm3120_vm13, %v3428_v14, %v3430_v54 }
 0x258   : > { %v2892_v26 = vpop.f32.mrf.mxu1 }
 0x25a   : > { %v2632_v41 = vpop.f32.mrf.mxu0 }
 0x25b   : > { %v2633_v3 = vadd.f32 %v2632_v41, %v2527_v29  ;;  %v904_v29 = vadd.s32 192, %v9608_v0 }
 0x25d   : > { %v2939_v4 = vadd.f32 %v2892_v26, %v2633_v3  ;;  %7648 = vmatmul.msk.bf16.gmra.mxu0 %vm1559_vm2, %v3429_v37  ;;  %7609 = vmatmul.msk.bf16.gmra.mxu2 %vm1559_vm2, %v3135_v47  ;;  %v9811_v5 = vpop.f32.mrf.mxu3  ;;  %v1084_v22 = vand.u32 15, %v904_v29  ;;  %v9024_v26 = vld [vmem:[#allocation2 + $0x48] sm:$0xff] }
 0x25e   : > { %v3136_v8 = vrot.slane %v9024_v26, 1  ;;  %v9027_v26 = vld [vmem:[#allocation2 + $0x48] sm:$0xff] }
 0x25f   : > { %v3035_v42 = vsel %vm2278_vm8, %v2939_v4, 0.0  ;;  %vm2280_vm11 = vcmp.ne.s32.totalorder %v1084_v22, 0  ;;  %v2249_v4 = vadd.f32 %v9575_v10, %v9570_v2 }
 0x260   : > { %v2894_v19 = vpop.f32.mrf.mxu1  ;;  %v9803_v34 = vadd.f32 %v3035_v42, %v9560_v48  ;;  %7629 = vmatmul.msk.bf16.gmra.mxu3 %vm1559_vm2, %v3133_v51  ;;  %v3137_v37 = vsel %vm3120_vm13, %v3134_v35, %v3136_v8 }
 0x262   : > { %v2634_v18 = vpop.f32.mrf.mxu0 }
 0x263   : > { %v2635_v23 = vadd.f32 %v2634_v18, %v2529_v57  ;;  %v3432_v18 = vrot.slane %v9025_v24, 1 }
 0x265   : > { %v2940_v32 = vadd.f32 %v2894_v19, %v2635_v23  ;;  %v9817_v62 = vpop.f32.mrf.mxu3 }
 0x267   : > { %v9813_v48 = vadd.f32 %v2940_v32, %v2247_v52  ;;  %v3433_v52 = vsel %vm3120_vm13, %v3430_v54, %v3432_v18  ;;  %v908_v54 = vadd.s32 224, %v9608_v0 }
 0x268   : > { %v2897_v12 = vpop.f32.mrf.mxu1 }
 0x26a   : > { %v2637_v15 = vpop.f32.mrf.mxu0 }
 0x26b   : > { %v2638_v57 = vadd.f32 %v2637_v15, %v2532_v49  ;;  %v906_v49 = vadd.s32 208, %v9608_v0 }
 0x26d   : > { %v2941_v51 = vadd.f32 %v2897_v12, %v2638_v57  ;;  %7649 = vmatmul.msk.bf16.gmra.mxu0 %vm1559_vm2, %v3431_v43  ;;  %7610 = vmatmul.msk.bf16.gmra.mxu2 %vm1559_vm2, %v3137_v37  ;;  %v9828_v19 = vpop.f32.mrf.mxu3  ;;  %v1098_v35 = vand.u32 15, %v906_v49  ;;  %v9026_v12 = vld [vmem:[#allocation2 + $0x50] sm:$0xff]  ;;  %v1112_v49 = vand.u32 15, %v908_v54 }
 0x26e   : > { %v3138_v22 = vrot.slane %v9026_v12, 1 }
 0x26f   : > { %v3037_v38 = vsel %vm2280_vm11, %v2941_v51, 0.0  ;;  %vm2282_vm14 = vcmp.ne.s32.totalorder %v1098_v35, 0  ;;  %v2251_v51 = vadd.f32 %v9587_v63, %v9582_v13  ;;  %vm2284_vm3 = vcmp.ne.s32.totalorder %v1112_v49, 0  ;;  %v9028_v35 = vld [vmem:[#allocation2 + $0x58] sm:$0xff] }
 0x270   : > { %v2899_v59 = vpop.f32.mrf.mxu1  ;;  %v9820_v41 = vadd.f32 %v3037_v38, %v9572_v17  ;;  %7630 = vmatmul.msk.bf16.gmra.mxu3 %vm1559_vm2, %v3135_v47  ;;  %v9833_v47 = vpop.f32.mrf.mxu2  ;;  %v3139_v43 = vsel %vm3120_vm13, %v3136_v8, %v3138_v22 }
 0x272   : > { %v2639_v3 = vpop.f32.mrf.mxu0 }
 0x273   : > { %v2640_v14 = vadd.f32 %v2639_v3, %v2534_v6  ;;  %v3434_v3 = vrot.slane %v9027_v26, 1 }
 0x275   : > { %v2942_v42 = vadd.f32 %v2899_v59, %v2640_v14  ;;  %v9836_v2 = vpop.f32.mrf.mxu3 }
 0x277   : > { %v9830_v17 = vadd.f32 %v2942_v42, %v2249_v4 }
 0x278   : > { %v2902_v23 = vpop.f32.mrf.mxu1 }
 0x27a   : > { %v2642_v29 = vpop.f32.mrf.mxu0 }
 0x27b   : > { %v2643_v6 = vadd.f32 %v2642_v29, %v2537_v44  ;;  %v3140_v29 = vrot.slane %v9028_v35, 1 }
 0x27d   : > { %v2943_v32 = vadd.f32 %v2902_v23, %v2643_v6  ;;  %7650 = vmatmul.msk.bf16.gmra.mxu0 %vm1559_vm2, %v3433_v52  ;;  %7611 = vmatmul.msk.bf16.gmra.mxu2 %vm1559_vm2, %v3139_v43  ;;  %v3141_v6 = vsel %vm3120_vm13, %v3138_v22, %v3140_v29 }
 0x27f   : > { %v3039_v10 = vsel %vm2282_vm14, %v2943_v32, 0.0  ;;  %v8759_v32 = vld [vmem:[%s11163_s3 + $0x18] sm:$0xff]  ;;  %vm10000_vm14 = vmand %vm404_vm10, %vm396_vm9 }
 0x280   : > { %v2904_v9 = vpop.f32.mrf.mxu1  ;;  %v9839_v15 = vadd.f32 %v3039_v10, %v9584_v36  ;;  %7631 = vmatmul.msk.bf16.gmra.mxu3 %vm1559_vm2, %v3137_v37  ;;  %v9847_v59 = vpop.f32.mrf.mxu2  ;;  %v8766_v10 = vld [vmem:[%s11163_s3 + $0x78] sm:$0xff]  ;;  %4387 = vmatpush.bf16.msra.mxu2 %v8759_v32 }
 0x281   : > { %4513 = vmatpush.bf16.msra.mxu3 %v8766_v10 }
 0x282   : > { %v2644_v57 = vpop.f32.mrf.mxu0 }
 0x283   : > { %v2645_v44 = vadd.f32 %v2644_v57, %v2539_v31  ;;  %v3334_v36 = vpop.f32.mrf.mxu3  ;;  %v3435_v31 = vsel %vm3120_vm13, %v3432_v18, %v3434_v3 }
 0x285   : > { %v2944_v38 = vadd.f32 %v2904_v9, %v2645_v44  ;;  %v2253_v9 = vadd.f32 %v9599_v7, %v9594_v11 }
 0x287   : > { %v9849_v14 = vadd.f32 %v2944_v38, %v2251_v51 }
 0x288   : > { %v2907_v8 = vpop.f32.mrf.mxu1  ;;  %v9854_v13 = vpop.f32.mrf.mxu2 }
 0x28a   : > { %v2647_v4 = vpop.f32.mrf.mxu0 }
 0x28b   : > { %v2648_v37 = vadd.f32 %v2647_v4, %v9811_v5  ;;  %v9856_v63 = vpop.f32.mrf.mxu3 }
 0x28d   : > { %v2945_v42 = vadd.f32 %v2907_v8, %v2648_v37  ;;  %7651 = vmatmul.msk.bf16.gmra.mxu0 %vm1559_vm2, %v3435_v31  ;;  %7612 = vmatmul.msk.bf16.gmra.mxu2 %vm1559_vm2, %v3141_v6  ;;  %v9030_v31 = vld [vmem:[#allocation2 + $0x60] sm:$0xff] }
 0x28e   : > { %v3142_v37 = vrot.slane %v9030_v31, 1  ;;  %v3337_v31 = vadd.f32 %v9856_v63, %v9854_v13 }
 0x28f   : > { %v3041_v24 = vsel %vm2284_vm3, %v2945_v42, 0.0  ;;  %v11205_v42 = vld [vmem:[#allocation16_spill] sm:$0xff] }
 0x290   : > { %v2909_v23 = vpop.f32.mrf.mxu1  ;;  %v9859_v52 = vadd.f32 %v3041_v24, %v9596_v21  ;;  %7632 = vmatmul.msk.bf16.gmra.mxu3 %vm1559_vm2, %v3139_v43  ;;  %v910_v21 = vadd.s32 240, %v9608_v0  ;;  %v9874_v22 = vpop.f32.mrf.mxu2 }
 0x292   : > { %v2649_v18 = vpop.f32.mrf.mxu0  ;;  %v1126_v54 = vand.u32 15, %v910_v21 }
 0x293   : > { %v2650_v5 = vadd.f32 %v2649_v18, %v9817_v62  ;;  %v9029_v62 = vld [vmem:[#allocation2 + $0x50] sm:$0xff]  ;;  %v3339_v57 = vpop.f32.mrf.mxu3  ;;  %v8761_v18 = vld [vmem:[%s11163_s3 + $0x48] sm:$0xff] }
 0x294   : > { %v3436_v43 = vrot.slane %v9029_v62, 1  ;;  %vm2286_vm4 = vcmp.ne.s32.totalorder %v1126_v54, 0  ;;  %4289 = vmatpush.bf16.msra.mxu1 %v8761_v18  ;;  %v3335_v62 = vadd.f32 %v3334_v36, %v9847_v59  ;;  %v3340_v63 = vadd.f32 %v3339_v57, %v9874_v22 }
 0x295   : > { %v2946_v12 = vadd.f32 %v2909_v23, %v2650_v5  ;;  %v3143_v23 = vsel %vm3120_vm13, %v3140_v29, %v3142_v37  ;;  %v11206_v5 = vld [vmem:[#allocation15_spill] sm:$0xff] }
 0x296   : > { %v3437_v26 = vsel %vm3120_vm13, %v3434_v3, %v3436_v43  ;;  %v2255_v32 = vadd.f32 %v9833_v47, %v11206_v5  ;;  %v9911_v47 = vld [vmem:[%s11162_s2] ss:$0 sm:$0xff] }
 0x297   : > { %v9876_v44 = vadd.f32 %v2946_v12, %v2253_v9  ;;  %v9031_v9 = vld [vmem:[#allocation2 + $0x58] sm:$0xff] }
 0x298   : > { %v2912_v51 = vpop.f32.mrf.mxu1  ;;  %v9881_v11 = vpop.f32.mrf.mxu2  ;;  %v3438_v29 = vrot.slane %v9031_v9, 1 }
 0x29a   : > { %v2652_v38 = vpop.f32.mrf.mxu0  ;;  %v3439_v54 = vsel %vm3120_vm13, %v3436_v43, %v3438_v29 }
 0x29b   : > { %v2653_v8 = vadd.f32 %v2652_v38, %v9828_v19  ;;  %v9883_v7 = vpop.f32.mrf.mxu3 }
 0x29d   : > { %v2947_v49 = vadd.f32 %v2912_v51, %v2653_v8  ;;  %7652 = vmatmul.msk.bf16.gmra.mxu0 %vm1559_vm2, %v3437_v26  ;;  %7613 = vmatmul.msk.bf16.gmra.mxu2 %vm1559_vm2, %v3143_v23  ;;  %v9906_v51 = vadd.s32 8, %v9608_v0 }
 0x29f   : > { %v3043_v4 = vsel %vm2286_vm4, %v2947_v49, 0.0  ;;  %v923_v59 = vand.u32 15, %v9906_v51  ;;  %v9032_v49 = vld [vmem:[#allocation2 + $0x68] sm:$0xff] }
 0x2a0   : > { %v9886_v24 = vadd.f32 %v3043_v4, %v11205_v42  ;;  %v2914_v3 = vpop.f32.mrf.mxu1  ;;  %7633 = vmatmul.msk.bf16.gmra.mxu3 %vm1559_vm2, %v3141_v6  ;;  %v9897_v21 = vpop.f32.mrf.mxu2  ;;  %v3144_v4 = vrot.slane %v9032_v49, 1  ;;  %v9034_v49 = vld [vmem:[#allocation2 + $0x70] sm:$0xff] }
 0x2a1   : > { %vm3078_vm7 = vcmp.ne.s32.totalorder %v923_v59, 15 }
 0x2a2   : > { %v2654_v35 = vpop.f32.mrf.mxu0 }
 0x2a3   : > { %v2655_v19 = vadd.f32 %v2654_v35, %v9836_v2  ;;  %v9899_v12 = vpop.f32.mrf.mxu3  ;;  %v3145_v35 = vsel %vm3120_vm13, %v3142_v37, %v3144_v4 }
 0x2a5   : > { %v2948_v10 = vadd.f32 %v2914_v3, %v2655_v19 }
 0x2a7   : > { %v9902_v2 = vadd.f32 %v2948_v10, %v2255_v32  ;;  %v9033_v32 = vld [vmem:[#allocation2 + $0x60] sm:$0xff] }
 0x2a8   : > { %v9915_v8 = vpop.f32.mrf.mxu2  ;;  %v3440_v10 = vrot.slane %v9033_v32, 1 }
 0x2aa   : > { %v3519_v6 = vpop.f32.mrf.mxu0 }
 0x2ab   : > { %v3599_v38 = vadd.f32 %v3519_v6, %v3335_v62  ;;  %v9918_v36 = vpop.f32.mrf.mxu3  ;;  %v3441_v6 = vsel %vm3120_vm13, %v3438_v29, %v3440_v10 }
 0x2ad   : > { %v3727_v26 = vadd.f32 %v3599_v38, %v9617_v55  ;;  %7653 = vmatmul.msk.bf16.gmra.mxu0 %vm1559_vm2, %v3439_v54  ;;  %7614 = vmatmul.msk.bf16.gmra.mxu2 %vm1559_vm2, %v3145_v35  ;;  %v9936_v54 = vadd.s32 24, %v9608_v0  ;;  %v408_v38 = vld [vmem:[#allocation3 + $0x4] sm:$0x1] }
 0x2af   : > { %v3763_v43 = vadd.f32 %v9911_v47, %v3727_v26  ;;  %v409_v26 = vsel %vm9167_vm6, 0, %v408_v38  ;;  %v937_v57 = vand.u32 15, %v9936_v54 }
 0x2b0   : > { %7634 = vmatmul.msk.bf16.gmra.mxu3 %vm1559_vm2, %v3143_v23  ;;  %v9927_v18 = vpop.f32.mrf.mxu2  ;;  %410 = vst [vmem:[#allocation3 + $0x4] sm:$0x1] %v409_v26 }
 0x2b1   : > { %v3795_v42 = vmax.f32 %v3763_v43, 0.0  ;;  %vm3080_vm8 = vcmp.ne.s32.totalorder %v937_v57, 15  ;;  %v9036_v57 = vld [vmem:[#allocation2 + $0x78] sm:$0xff] }
 0x2b2   : > { %v3521_v55 = vpop.f32.mrf.mxu0 }
 0x2b3   : > { %3828 = vst.msk [vmem:[#allocation7] sm:$0xff] %vm3827_vm5, %v3795_v42  ;;  %v3600_v3 = vadd.f32 %v3521_v55, %v3337_v31  ;;  %v9930_v13 = vpop.f32.mrf.mxu3  ;;  %v3146_v31 = vrot.slane %v9034_v49, 1  ;;  %v3342_v42 = vadd.f32 %v9883_v7, %v9881_v11  ;;  %v3345_v7 = vadd.f32 %v9899_v12, %v9897_v21 }
 0x2b5   : > { %v3696_v19 = vsel %vm3078_vm7, %v3600_v3, 0.0  ;;  %v3147_v3 = vsel %vm3120_vm13, %v3144_v4, %v3146_v31 }
 0x2b6   : > { %v3728_v5 = vadd.f32 %v3696_v19, %v9627_v39 }
 0x2b8   : > { %v3764_v37 = vadd.f32 %v9911_v47, %v3728_v5  ;;  %v9943_v22 = vpop.f32.mrf.mxu2 }
 0x2ba   : > { %v3796_v9 = vmax.f32 %v3764_v37, 0.0  ;;  %v3524_v62 = vpop.f32.mrf.mxu0  ;;  %v9035_v37 = vld [vmem:[#allocation2 + $0x68] sm:$0xff] }
 0x2bb   : > { %v3601_v23 = vadd.f32 %v3524_v62, %v3340_v63  ;;  %v9946_v29 = vpop.f32.mrf.mxu3 }
 0x2bc   : > { %3829 = vst.msk [vmem:[#allocation7 + $0x8] sm:$0xff] %vm3827_vm5, %v3796_v9  ;;  %v3442_v9 = vrot.slane %v9035_v37, 1 }
 0x2bd   : > { %v3729_v59 = vadd.f32 %v3601_v23, %v9634_v58  ;;  %7654 = vmatmul.msk.bf16.gmra.mxu0 %vm1559_vm2, %v3441_v6  ;;  %7615 = vmatmul.msk.bf16.gmra.mxu2 %vm1559_vm2, %v3147_v3 }
 0x2be   : > { %v3443_v23 = vsel %vm3120_vm13, %v3440_v10, %v3442_v9  ;;  %v9976_v10 = vrot.slane %v9036_v57, 1 }
 0x2bf   : > { %v3765_v43 = vadd.f32 %v9911_v47, %v3729_v59 }
 0x2c0   : > { %7635 = vmatmul.msk.bf16.gmra.mxu3 %vm1559_vm2, %v3145_v35  ;;  %v9955_v32 = vpop.f32.mrf.mxu2  ;;  %v9965_v35 = vadd.s32 40, %v9608_v0 }
 0x2c1   : > { %v3797_v55 = vmax.f32 %v3765_v43, 0.0 }
 0x2c2   : > { %v3526_v58 = vpop.f32.mrf.mxu0  ;;  %v951_v21 = vand.u32 15, %v9965_v35 }
 0x2c3   : > { %3830 = vst.msk [vmem:[#allocation7 + $0x10] sm:$0xff] %vm3827_vm5, %v3797_v55  ;;  %v3602_v19 = vadd.f32 %v3526_v58, %v3342_v42  ;;  %v9958_v11 = vpop.f32.mrf.mxu3  ;;  %v3860_v43 = vld [vmem:[#allocation7] ss:$2 sm:$0xff]  ;;  %v3892_v49 = vld [vmem:[#allocation7 + $0x1] ss:$2 sm:$0xff]  ;;  %v3347_v42 = vadd.f32 %v9918_v36, %v9915_v8 }
 0x2c4   : > { %vm3082_vm11 = vcmp.ne.s32.totalorder %v951_v21, 15  ;;  %v3923_v37 = vmax.f32 %v3860_v43, %v3892_v49  ;;  %v9995_v49 = vadd.s32 56, %v9608_v0 }
 0x2c5   : > { %v3698_v5 = vsel %vm3080_vm8, %v3602_v19, 0.0 }
 0x2c6   : > { %v3730_v63 = vadd.f32 %v3698_v5, %v9644_v46 }
 0x2c8   : > { %v3766_v4 = vadd.f32 %v9911_v47, %v3730_v63  ;;  %v9970_v26 = vpop.f32.mrf.mxu2 }
 0x2ca   : > { %v3798_v62 = vmax.f32 %v3766_v4, 0.0  ;;  %v3529_v6 = vpop.f32.mrf.mxu0 }
 0x2cb   : > { %v3603_v38 = vadd.f32 %v3529_v6, %v3345_v7  ;;  %v9973_v12 = vpop.f32.mrf.mxu3 }
 0x2cc   : > { %3831 = vst.msk [vmem:[#allocation7 + $0x18] sm:$0xff] %vm3827_vm5, %v3798_v62 }
 0x2cd   : > { %v3731_v46 = vadd.f32 %v3603_v38, %v9651_v25  ;;  %7655 = vmatmul.msk.bf16.gmra.mxu0 %vm1559_vm2, %v3443_v23  ;;  %v3149_v25 = vsel %vm3120_vm13, %v3146_v31, %v9976_v10  ;;  %v9037_v31 = vld [vmem:[#allocation2 + $0x70] sm:$0xff]  ;;  %v3350_v38 = vadd.f32 %v9930_v13, %v9927_v18  ;;  %v3961_v13 = vld [vmem:[#allocation3 + $0x8] sm:$0x1] }
 0x2ce   : > { %7616 = vmatmul.msk.bf16.gmra.mxu2 %vm1559_vm2, %v3149_v25  ;;  %v3444_v6 = vrot.slane %v9037_v31, 1 }
 0x2cf   : > { %v3767_v59 = vadd.f32 %v9911_v47, %v3731_v46 }
 0x2d0   : > { %7636 = vmatmul.msk.bf16.gmra.mxu3 %vm1559_vm2, %v3147_v3  ;;  %v9985_v62 = vpop.f32.mrf.mxu2  ;;  %v3445_v43 = vsel %vm3120_vm13, %v3442_v9, %v3444_v6 }
 0x2d1   : > { %v3799_v55 = vmax.f32 %v3767_v59, 0.0 }
 0x2d2   : > { %v3531_v58 = vpop.f32.mrf.mxu0 }
 0x2d3   : > { %v3862_v19 = vld [vmem:[#allocation7 + $0x10] ss:$2 sm:$0xff]  ;;  %v3894_v5 = vld [vmem:[#allocation7 + $0x11] ss:$2 sm:$0xff]  ;;  %3832 = vst.msk [vmem:[#allocation7 + $0x20] sm:$0xff] %vm3827_vm5, %v3799_v55  ;;  %v3604_v63 = vadd.f32 %v3531_v58, %v3347_v42  ;;  %v9988_v23 = vpop.f32.mrf.mxu3 }
 0x2d4   : > { %v3924_v7 = vmax.f32 %v3862_v19, %v3894_v5  ;;  %v3958_v19 = vld [vmem:[#allocation3 + $0x4] sm:$0xf] }
 0x2d5   : > { %v3700_v4 = vsel %vm3082_vm11, %v3604_v63, 0.0 }
 0x2d6   : > { %v3939_v8 = vmax.f32 %v3923_v37, %v3924_v7  ;;  %v3732_v36 = vadd.f32 %v3700_v4, %v9661_v60  ;;  %v965_v37 = vand.u32 15, %v9995_v49 }
 0x2d8   : > { %v3947_v46 = vpack.c.bf16 %v3939_v8, %v3939_v8  ;;  %v3768_v21 = vadd.f32 %v9911_v47, %v3732_v36  ;;  %v10006_v9 = vpop.f32.mrf.mxu2  ;;  %v9038_v8 = vld [vmem:[#allocation2 + $0x80] sm:$0xff]  ;;  %vm3084_vm9 = vcmp.ne.s32.totalorder %v965_v37, 15 }
 0x2d9   : > { %v3150_v36 = vrot.slane %v9038_v8, 1 }
 0x2da   : > { %v3949_v59 = vshrl.u32 %v3947_v46, 16  ;;  %v3800_v3 = vmax.f32 %v3768_v21, 0.0  ;;  %v3534_v57 = vpop.f32.mrf.mxu0  ;;  %v3952_v55 = vshll.u32 %v3947_v46, 16 }
 0x2db   : > { %v3605_v42 = vadd.f32 %v3534_v57, %v3350_v38  ;;  %v10009_v7 = vpop.f32.mrf.mxu3  ;;  %v3352_v38 = vadd.f32 %v9946_v29, %v9943_v22  ;;  %v3151_v21 = vsel %vm3120_vm13, %v9976_v10, %v3150_v36  ;;  %v9039_v22 = vld [vmem:[#allocation2 + $0x78] sm:$0xff] }
 0x2dc   : > { %v3951_v60 = vrot.slane %v3949_v59, 7  ;;  %3833 = vst.msk [vmem:[#allocation7 + $0x28] sm:$0xff] %vm3827_vm5, %v3800_v3  ;;  %v3446_v29 = vrot.slane %v9039_v22, 1 }
 0x2dd   : > { %v3733_v58 = vadd.f32 %v3605_v42, %v9670_v33  ;;  %7656 = vmatmul.msk.bf16.gmra.mxu0 %vm1559_vm2, %v3445_v43  ;;  %v11210_v42 = vld [vmem:[#allocation20_spill] sm:$0xff] }
 0x2de   : > { %v3954_v5 = vor.u32 %v3952_v55, %v3951_v60  ;;  %v3955_v63 = vrot.slane %v3951_v60, 4  ;;  %7617 = vmatmul.msk.bf16.gmra.mxu2 %vm1559_vm2, %v3151_v21  ;;  %v11213_v21 = vld [vmem:[#allocation12_spill] sm:$0xff] }
 0x2df   : > { %v3769_v4 = vadd.f32 %v9911_v47, %v3733_v58 }
 0x2e0   : > { %v3962_v31 = vsel %vm9167_vm6, %v3955_v63, %v3961_v13  ;;  %v3959_v33 = vsel %vm10000_vm14, %v3954_v5, %v3958_v19  ;;  %7637 = vmatmul.msk.bf16.gmra.mxu3 %vm1559_vm2, %v3149_v25  ;;  %v10023_v43 = vpop.f32.mrf.mxu2  ;;  %v3355_v13 = vadd.f32 %v9958_v11, %v9955_v32  ;;  %v3447_v63 = vsel %vm3120_vm13, %v3444_v6, %v3446_v29  ;;  %v11212_v11 = vld [vmem:[#allocation13_spill] sm:$0xff] }
 0x2e1   : > { %3963 = vst [vmem:[#allocation3 + $0x8] sm:$0x1] %v3962_v31  ;;  %v3801_v46 = vmax.f32 %v3769_v4, 0.0  ;;  %v889_v25 = vadd.s32 72, %v9608_v0  ;;  %v11211_v4 = vld [vmem:[#allocation21_spill] sm:$0xff]  ;;  %v3306_v6 = vrot.slane %v11213_v21, 1 }
 0x2e2   : > { %v3536_v59 = vpop.f32.mrf.mxu0  ;;  %3960 = vst [vmem:[#allocation3 + $0x4] sm:$0xf] %v3959_v33 }
 0x2e3   : > { %3834 = vst.msk [vmem:[#allocation7 + $0x30] sm:$0xff] %vm3827_vm5, %v3801_v46  ;;  %v3606_v3 = vadd.f32 %v3536_v59, %v3352_v38  ;;  %v10026_v55 = vpop.f32.mrf.mxu3  ;;  %v979_v33 = vand.u32 15, %v889_v25  ;;  %v3152_v46 = vrot.slane %v11212_v11, 1  ;;  %v3864_v59 = vld [vmem:[#allocation7 + $0x20] ss:$2 sm:$0xff]  ;;  %v3307_v22 = vsel %vm3120_vm13, %v9976_v10, %v3306_v6 }
 0x2e4   : > { %v9040_v10 = vld [vmem:[#allocation2 + $0x80] sm:$0xff] }
 0x2e5   : > { %v3702_v57 = vsel %vm3084_vm9, %v3606_v3, 0.0  ;;  %v3896_v3 = vld [vmem:[#allocation7 + $0x21] ss:$2 sm:$0xff]  ;;  %vm3086_vm3 = vcmp.ne.s32.totalorder %v979_v33, 15 }
 0x2e6   : > { %v3734_v60 = vadd.f32 %v3702_v57, %v11210_v42  ;;  %v3357_v57 = vadd.f32 %v9973_v12, %v9970_v26 }
 0x2e8   : > { %v3770_v58 = vadd.f32 %v9911_v47, %v3734_v60  ;;  %v10036_v31 = vpop.f32.mrf.mxu2  ;;  %v3153_v60 = vsel %vm3120_vm13, %v3150_v36, %v3152_v46 }
 0x2ea   : > { %v3802_v19 = vmax.f32 %v3770_v58, 0.0  ;;  %v3539_v5 = vpop.f32.mrf.mxu0 }
 0x2eb   : > { %v3607_v37 = vadd.f32 %v3539_v5, %v3355_v13  ;;  %v10038_v38 = vpop.f32.mrf.mxu3 }
 0x2ec   : > { %3835 = vst.msk [vmem:[#allocation7 + $0x38] sm:$0xff] %vm3827_vm5, %v3802_v19 }
 0x2ed   : > { %v3735_v8 = vadd.f32 %v3607_v37, %v11211_v4  ;;  %7657 = vmatmul.msk.bf16.gmra.mxu0 %vm1559_vm2, %v3447_v63  ;;  %v3925_v63 = vmax.f32 %v3864_v59, %v3896_v3  ;;  %v11214_v37 = vld [vmem:[#allocation22_spill] sm:$0xff] }
 0x2ee   : > { %7618 = vmatmul.msk.bf16.gmra.mxu2 %vm1559_vm2, %v3153_v60 }
 0x2ef   : > { %v3771_v32 = vadd.f32 %v9911_v47, %v3735_v8  ;;  %v3448_v8 = vrot.slane %v9040_v10, 1 }
 0x2f0   : > { %7638 = vmatmul.msk.bf16.gmra.mxu3 %vm1559_vm2, %v3307_v22  ;;  %v10051_v12 = vpop.f32.mrf.mxu2 }
 0x2f1   : > { %v3803_v42 = vmax.f32 %v3771_v32, 0.0  ;;  %v3360_v32 = vadd.f32 %v9988_v23, %v9985_v62  ;;  %v3449_v3 = vsel %vm3120_vm13, %v3446_v29, %v3448_v8  ;;  %v3975_v29 = vld [vmem:[#allocation3 + $0x8] sm:$0xf] }
 0x2f2   : > { %v3541_v13 = vpop.f32.mrf.mxu0 }
 0x2f3   : > { %v3866_v58 = vld [vmem:[#allocation7 + $0x30] ss:$2 sm:$0xff]  ;;  %v3898_v19 = vld [vmem:[#allocation7 + $0x31] ss:$2 sm:$0xff]  ;;  %3836 = vst.msk [vmem:[#allocation7 + $0x40] sm:$0xff] %vm3827_vm5, %v3803_v42  ;;  %v3608_v5 = vadd.f32 %v3541_v13, %v3357_v57  ;;  %v10054_v33 = vpop.f32.mrf.mxu3  ;;  %v891_v57 = vadd.s32 88, %v9608_v0 }
 0x2f4   : > { %v3926_v25 = vmax.f32 %v3866_v58, %v3898_v19  ;;  %v3978_v13 = vld [vmem:[#allocation3 + $0xc] sm:$0x1] }
 0x2f5   : > { %v3704_v26 = vsel %vm3086_vm3, %v3608_v5, 0.0  ;;  %v993_v5 = vand.u32 15, %v891_v57 }
 0x2f6   : > { %v3940_v36 = vmax.f32 %v3925_v63, %v3926_v25  ;;  %v3736_v4 = vadd.f32 %v3704_v26, %v11214_v37 }
 0x2f7   : > { %vm3088_vm4 = vcmp.ne.s32.totalorder %v993_v5, 15 }
 0x2f8   : > { %v3964_v11 = vpack.c.bf16 %v3940_v36, %v3940_v36  ;;  %v3772_v46 = vadd.f32 %v9911_v47, %v3736_v4  ;;  %v10064_v62 = vpop.f32.mrf.mxu2 }
 0x2fa   : > { %v3966_v21 = vshrl.u32 %v3964_v11, 16  ;;  %v3804_v6 = vmax.f32 %v3772_v46, 0.0  ;;  %v3544_v59 = vpop.f32.mrf.mxu0  ;;  %v3969_v22 = vshll.u32 %v3964_v11, 16  ;;  %v9041_v46 = vld [vmem:[#allocation2 + $0x88] sm:$0xff] }
 0x2fb   : > { %v3609_v42 = vadd.f32 %v3544_v59, %v3360_v32  ;;  %v10066_v63 = vpop.f32.mrf.mxu3 }
 0x2fc   : > { %v3968_v60 = vrot.slane %v3966_v21, 7  ;;  %3837 = vst.msk [vmem:[#allocation7 + $0x48] sm:$0xff] %vm3827_vm5, %v3804_v6  ;;  %v3450_v21 = vrot.slane %v9041_v46, 1  ;;  %v3365_v6 = vadd.f32 %v10026_v55, %v10023_v43  ;;  %v8758_v55 = vld [vmem:[%s11163_s3 + $0x10] sm:$0xff] }
 0x2fd   : > { %v3737_v58 = vadd.f32 %v3609_v42, %v9704_v30  ;;  %7658 = vmatmul.msk.bf16.gmra.mxu0 %vm1559_vm2, %v3449_v3  ;;  %v3362_v30 = vadd.f32 %v10009_v7, %v10006_v9  ;;  %4388 = vmatpush.bf16.msra.mxu2 %v8758_v55 }
 0x2fe   : > { %v3971_v23 = vor.u32 %v3969_v22, %v3968_v60  ;;  %v3972_v19 = vrot.slane %v3968_v60, 4  ;;  %v3451_v42 = vsel %vm3120_vm13, %v3448_v8, %v3450_v21  ;;  %v893_v60 = vadd.s32 104, %v9608_v0 }
 0x2ff   : > { %v3773_v25 = vadd.f32 %v9911_v47, %v3737_v58  ;;  %v3367_v8 = vadd.f32 %v10038_v38, %v10036_v31  ;;  %v3370_v38 = vadd.f32 %v10054_v33, %v10051_v12  ;;  %v3995_v12 = vld [vmem:[#allocation3 + $0x10] sm:$0x1] }
 0x300   : > { %v3976_v26 = vsel %vm10000_vm14, %v3971_v23, %v3975_v29  ;;  %v3979_v36 = vsel %vm9167_vm6, %v3972_v19, %v3978_v13  ;;  %v10079_v59 = vpop.f32.mrf.mxu2  ;;  %v1007_v43 = vand.u32 15, %v893_v60  ;;  %v895_v60 = vadd.s32 120, %v9608_v0 }
 0x301   : > { %3980 = vst [vmem:[#allocation3 + $0xc] sm:$0x1] %v3979_v36  ;;  %v3805_v37 = vmax.f32 %v3773_v25, 0.0 }
 0x302   : > { %3977 = vst [vmem:[#allocation3 + $0x8] sm:$0xf] %v3976_v26  ;;  %v3546_v4 = vpop.f32.mrf.mxu0  ;;  %vm3090_vm7 = vcmp.ne.s32.totalorder %v1007_v43, 15 }
 0x303   : > { %3838 = vst.msk [vmem:[#allocation7 + $0x50] sm:$0xff] %vm3827_vm5, %v3805_v37  ;;  %v3610_v10 = vadd.f32 %v3546_v4, %v3362_v30  ;;  %v10082_v9 = vpop.f32.mrf.mxu3  ;;  %v3868_v58 = vld [vmem:[#allocation7 + $0x40] ss:$2 sm:$0xff]  ;;  %v3900_v23 = vld [vmem:[#allocation7 + $0x41] ss:$2 sm:$0xff] }
 0x304   : > { %v3927_v30 = vmax.f32 %v3868_v58, %v3900_v23  ;;  %v1021_v23 = vand.u32 15, %v895_v60  ;;  %v897_v60 = vadd.s32 136, %v9608_v0 }
 0x305   : > { %v3706_v32 = vsel %vm3088_vm4, %v3610_v10, 0.0 }
 0x306   : > { %v3738_v11 = vadd.f32 %v3706_v32, %v9716_v61 }
 0x308   : > { %v3774_v3 = vadd.f32 %v9911_v47, %v3738_v11  ;;  %v10095_v5 = vpop.f32.mrf.mxu2  ;;  %v11215_v11 = vld [vmem:[#allocation14_spill] sm:$0xff] }
 0x309   : > { %v3452_v31 = vrot.slane %v11215_v11, 1 }
 0x30a   : > { %v3806_v7 = vmax.f32 %v3774_v3, 0.0  ;;  %v3549_v57 = vpop.f32.mrf.mxu0 }
 0x30b   : > { %v3611_v22 = vadd.f32 %v3549_v57, %v3365_v6  ;;  %v10097_v29 = vpop.f32.mrf.mxu3 }
 0x30c   : > { %3839 = vst.msk [vmem:[#allocation7 + $0x58] sm:$0xff] %vm3827_vm5, %v3806_v7 }
 0x30d   : > { %v3739_v61 = vadd.f32 %v3611_v22, %v9725_v45  ;;  %7659 = vmatmul.msk.bf16.gmra.mxu0 %vm1559_vm2, %v3451_v42  ;;  %v3453_v42 = vsel %vm3120_vm13, %v3450_v21, %v3452_v31  ;;  %v3992_v21 = vld [vmem:[#allocation3 + $0xc] sm:$0xf]  ;;  %v3375_v31 = vadd.f32 %v10082_v9, %v10079_v59 }
 0x30f   : > { %v3775_v13 = vadd.f32 %v9911_v47, %v3739_v61 }
 0x310   : > { %v10107_v61 = vpop.f32.mrf.mxu2 }
 0x311   : > { %v3807_v19 = vmax.f32 %v3775_v13, 0.0 }
 0x312   : > { %v3551_v45 = vpop.f32.mrf.mxu0 }
 0x313   : > { %v3870_v25 = vld [vmem:[#allocation7 + $0x50] ss:$2 sm:$0xff]  ;;  %v3902_v26 = vld [vmem:[#allocation7 + $0x51] ss:$2 sm:$0xff]  ;;  %3840 = vst.msk [vmem:[#allocation7 + $0x60] sm:$0xff] %vm3827_vm5, %v3807_v19  ;;  %v3612_v36 = vadd.f32 %v3551_v45, %v3367_v8  ;;  %v10110_v55 = vpop.f32.mrf.mxu3 }
 0x314   : > { %v3928_v37 = vmax.f32 %v3870_v25, %v3902_v26  ;;  %v3372_v25 = vadd.f32 %v10066_v63, %v10064_v62  ;;  %v8760_v62 = vld [vmem:[%s11163_s3 + $0x40] sm:$0xff] }
 0x315   : > { %v3708_v4 = vsel %vm3090_vm7, %v3612_v36, 0.0  ;;  %v8765_v36 = vld [vmem:[%s11163_s3 + $0x70] sm:$0xff]  ;;  %4290 = vmatpush.bf16.msra.mxu1 %v8760_v62  ;;  %v3380_v62 = vadd.f32 %v10110_v55, %v10107_v61  ;;  %v4012_v61 = vld [vmem:[#allocation3 + $0x14] sm:$0x1] }
 0x316   : > { %v3941_v10 = vmax.f32 %v3927_v30, %v3928_v37  ;;  %v3740_v32 = vadd.f32 %v3708_v4, %v9737_v50  ;;  %4514 = vmatpush.bf16.msra.mxu3 %v8765_v36 }
 0x318   : > { %v3981_v46 = vpack.c.bf16 %v3941_v10, %v3941_v10  ;;  %v3776_v6 = vadd.f32 %v9911_v47, %v3740_v32  ;;  %v10131_v10 = vpop.f32.mrf.mxu2 }
 0x31a   : > { %v3983_v3 = vshrl.u32 %v3981_v46, 16  ;;  %v3808_v7 = vmax.f32 %v3776_v6, 0.0  ;;  %v3554_v57 = vpop.f32.mrf.mxu0  ;;  %v3986_v50 = vshll.u32 %v3981_v46, 16 }
 0x31b   : > { %v3613_v22 = vadd.f32 %v3554_v57, %v3370_v38  ;;  %v3381_v11 = vpop.f32.mrf.mxu3 }
 0x31c   : > { %v3985_v43 = vrot.slane %v3983_v3, 7  ;;  %3841 = vst.msk [vmem:[#allocation7 + $0x68] sm:$0xff] %vm3827_vm5, %v3808_v7 }
 0x31d   : > { %v3741_v33 = vadd.f32 %v3613_v22, %v9746_v28  ;;  %7660 = vmatmul.msk.bf16.gmra.mxu0 %vm1559_vm2, %v3453_v42  ;;  %v10121_v28 = vld [vmem:[#allocation3] sm:$0xff]   ;;  %vm3092_vm2 = vcmp.ne.s32.totalorder %v1021_v23, 15 }
 0x31e   : > { %v3988_v13 = vor.u32 %v3986_v50, %v3985_v43  ;;  %v3989_v58 = vrot.slane %v3985_v43, 4  ;;  %v4324_v4 = vshll.u32 %v10121_v28, 16  ;;  %v4322_v57 = vshrl.u32 %v10121_v28, 16 }
 0x31f   : > { %v3777_v8 = vadd.f32 %v9911_v47, %v3741_v33  ;;  %v1035_v50 = vand.u32 15, %v897_v60 }
 0x320   : > { %v3993_v19 = vsel %vm10000_vm14, %v3988_v13, %v3992_v21  ;;  %v3996_v45 = vsel %vm9167_vm6, %v3989_v58, %v3995_v12  ;;  %v4326_v46 = vrot.slane %v4324_v4, 1  ;;  %v3269_v33 = vpop.f32.mrf.mxu2  ;;  %v3377_v21 = vadd.f32 %v10097_v29, %v10095_v5 }
 0x321   : > { %3997 = vst [vmem:[#allocation3 + $0x10] sm:$0x1] %v3996_v45  ;;  %v3809_v26 = vmax.f32 %v3777_v8, 0.0  ;;  %vm3094_vm8 = vcmp.ne.s32.totalorder %v1035_v50, 15 }
 0x322   : > { %3994 = vst [vmem:[#allocation3 + $0xc] sm:$0xf] %v3993_v19  ;;  %v3556_v30 = vpop.f32.mrf.mxu0 }
 0x323   : > { %3842 = vst.msk [vmem:[#allocation7 + $0x70] sm:$0xff] %vm3827_vm5, %v3809_v26  ;;  %v3614_v37 = vadd.f32 %v3556_v30, %v3372_v25  ;;  %v3384_v13 = vpop.f32.mrf.mxu3  ;;  %v3872_v58 = vld [vmem:[#allocation7 + $0x60] ss:$2 sm:$0xff]  ;;  %v3904_v23 = vld [vmem:[#allocation7 + $0x61] ss:$2 sm:$0xff] }
 0x324   : > { %v3929_v26 = vmax.f32 %v3872_v58, %v3904_v23  ;;  %v3382_v23 = vadd.f32 %v3381_v11, %v10131_v10 }
 0x325   : > { %v3710_v63 = vsel %vm3092_vm2, %v3614_v37, 0.0 }
 0x326   : > { %v3742_v32 = vadd.f32 %v3710_v63, %v9755_v53  ;;  %v4327_v53 = vor.u32 %v4326_v46, %v4322_v57  ;;  %v899_v46 = vadd.s32 152, %v9608_v0 }
 0x328   : > { %v3778_v38 = vadd.f32 %v9911_v47, %v3742_v32  ;;  %v3271_v29 = vpop.f32.mrf.mxu2 }
 0x329   : > { %v10137_v6 = vld [vmem:[#allocation3 + $0x8] sm:$0xff]  }
 0x32a   : > { %v3810_v3 = vmax.f32 %v3778_v38, 0.0  ;;  %v3559_v7 = vpop.f32.mrf.mxu0  ;;  %v4329_v42 = vshll.u32 %v10137_v6, 16 }
 0x32b   : > { %v3615_v22 = vadd.f32 %v3559_v7, %v3375_v31 }
 0x32c   : > { %3843 = vst.msk [vmem:[#allocation7 + $0x78] sm:$0xff] %vm3827_vm5, %v3810_v3  ;;  %v10143_v43 = vrot.slane %v4329_v42, 1  ;;  %v3386_v3 = vpop.f32.mrf.mxu3 }
 0x32d   : > { %v3743_v59 = vadd.f32 %v3615_v22, %v9761_v20 }
 0x32e   : > { %v4332_v9 = vsel %vm1421_vm15, %v4327_v53, %v10143_v43  ;;  %v8943_v53 = vunpack.c.h.b16 %v10121_v28  ;;  %v8980_v28 = vld [vmem:[#allocation3 + $0x8] sm:$0xe] }
 0x32f   : > { %v3779_v12 = vadd.f32 %v9911_v47, %v3743_v59  ;;  %7689 = vmatmul.msk.bf16.vlgmr.msra.gmra.mxu2 %vm3827_vm5, %v4332_v9  ;;  %v1049_v59 = vand.u32 15, %v899_v46  ;;  %v4009_v9 = vld [vmem:[#allocation3 + $0x10] sm:$0xf] }
 0x331   : > { %v3811_v8 = vmax.f32 %v3779_v12, 0.0  ;;  %vm3096_vm11 = vcmp.ne.s32.totalorder %v1049_v59, 15 }
 0x332   : > { %v3561_v19 = vpop.f32.mrf.mxu0 }
 0x333   : > { %v3874_v45 = vld [vmem:[#allocation7 + $0x70] ss:$2 sm:$0xff]  ;;  %v3906_v20 = vld [vmem:[#allocation7 + $0x71] ss:$2 sm:$0xff]  ;;  %3844 = vst.msk [vmem:[#allocation7 + $0x80] sm:$0xff] %vm3827_vm5, %v3811_v8  ;;  %v3616_v25 = vadd.f32 %v3561_v19, %v3377_v21 }
 0x334   : > { %v3930_v36 = vmax.f32 %v3874_v45, %v3906_v20  ;;  %v3274_v45 = vpop.f32.mrf.mxu2  ;;  %v3389_v20 = vpop.f32.mrf.mxu3 }
 0x335   : > { %v3712_v30 = vsel %vm3094_vm8, %v3616_v25, 0.0 }
 0x336   : > { %v3942_v37 = vmax.f32 %v3929_v26, %v3930_v36  ;;  %v3744_v4 = vadd.f32 %v3712_v30, %v9770_v56  ;;  %v8946_v56 = vunpack.c.l.b16 %v10137_v6  ;;  %v3385_v30 = vadd.f32 %v3384_v13, %v3269_v33 }
 0x338   : > { %v3998_v63 = vpack.c.bf16 %v3942_v37, %v3942_v37  ;;  %v3780_v5 = vadd.f32 %v9911_v47, %v3744_v4  ;;  %v10169_v58 = vpack.c.b16 %v8946_v56, %v8943_v53 }
 0x33a   : > { %v4000_v32 = vshrl.u32 %v3998_v63, 16  ;;  %v3812_v31 = vmax.f32 %v3780_v5, 0.0  ;;  %v3564_v38 = vpop.f32.mrf.mxu0  ;;  %v4003_v42 = vshll.u32 %v3998_v63, 16  ;;  %v4226_v25 = vshll.u32 %v10169_v58, 16 }
 0x33b   : > { %v3617_v7 = vadd.f32 %v3564_v38, %v3380_v62  ;;  %v4224_v63 = vshrl.u32 %v10169_v58, 16 }
 0x33c   : > { %v4002_v57 = vrot.slane %v4000_v32, 7  ;;  %3845 = vst.msk [vmem:[#allocation7 + $0x88] sm:$0xff] %vm3827_vm5, %v3812_v31  ;;  %v4228_v10 = vrot.slane %v4226_v25, 1  ;;  %v901_v32 = vadd.s32 168, %v9608_v0  ;;  %v3276_v33 = vpop.f32.mrf.mxu2 }
 0x33d   : > { %v3745_v60 = vadd.f32 %v3617_v7, %v9776_v40 }
 0x33e   : > { %v4005_v55 = vor.u32 %v4003_v42, %v4002_v57  ;;  %v4006_v22 = vrot.slane %v4002_v57, 4  ;;  %v4229_v38 = vor.u32 %v4228_v10, %v4224_v63  ;;  %v1063_v7 = vand.u32 15, %v901_v32  ;;  %v3391_v57 = vpop.f32.mrf.mxu3 }
 0x33f   : > { %v3781_v50 = vadd.f32 %v9911_v47, %v3745_v60  ;;  %v903_v10 = vadd.s32 184, %v9608_v0 }
 0x340   : > { %v4010_v12 = vsel %vm10000_vm14, %v4005_v55, %v4009_v9  ;;  %v4013_v40 = vsel %vm9167_vm6, %v4006_v22, %v4012_v61  ;;  %v3387_v55 = vadd.f32 %v3386_v3, %v3271_v29  ;;  %vm3098_vm9 = vcmp.ne.s32.totalorder %v1063_v7, 15 }
 0x341   : > { %4011 = vst [vmem:[#allocation3 + $0x10] sm:$0xf] %v4010_v12  ;;  %v3813_v21 = vmax.f32 %v3781_v50, 0.0  ;;  %v3392_v7 = vadd.f32 %v3391_v57, %v3276_v33 }
 0x342   : > { %v3566_v8 = vpop.f32.mrf.mxu0  ;;  %4014 = vst [vmem:[#allocation3 + $0x14] sm:$0x1] %v4013_v40 }
 0x343   : > { %3846 = vst.msk [vmem:[#allocation7 + $0x90] sm:$0xff] %vm3827_vm5, %v3813_v21  ;;  %v3618_v19 = vadd.f32 %v3566_v8, %v3382_v23  ;;  %v3876_v60 = vld [vmem:[#allocation7 + $0x80] ss:$2 sm:$0xff]  ;;  %v3908_v61 = vld [vmem:[#allocation7 + $0x81] ss:$2 sm:$0xff] }
 0x344   : > { %v3931_v12 = vmax.f32 %v3876_v60, %v3908_v61  ;;  %v3279_v25 = vpop.f32.mrf.mxu2 }
 0x345   : > { %v3714_v26 = vsel %vm3096_vm11, %v3618_v19, 0.0  ;;  %v3390_v19 = vadd.f32 %v3389_v20, %v3274_v45  ;;  %v1077_v20 = vand.u32 15, %v903_v10  ;;  %vm5076_vm11 = vcmask 523264  }
 0x346   : > { %v3746_v36 = vadd.f32 %v3714_v26, %v9785_v16  ;;  %v3394_v29 = vpop.f32.mrf.mxu3 }
 0x347   : > { %vm3100_vm3 = vcmp.ne.s32.totalorder %v1077_v20, 15 }
 0x348   : > { %v3782_v37 = vadd.f32 %v9911_v47, %v3746_v36  ;;  %v10178_v4 = vld [vmem:[#allocation3 + $0xc] sm:$0xff]  }
 0x349   : > { %v4231_v5 = vshll.u32 %v10178_v4, 16 }
 0x34a   : > { %v3814_v11 = vmax.f32 %v3782_v37, 0.0  ;;  %v3569_v62 = vpop.f32.mrf.mxu0 }
 0x34b   : > { %v3619_v31 = vadd.f32 %v3569_v62, %v3385_v30  ;;  %v10184_v46 = vrot.slane %v4231_v5, 1  ;;  %v4029_v5 = vld [vmem:[#allocation3 + $0x18] sm:$0x1] }
 0x34c   : > { %3847 = vst.msk [vmem:[#allocation7 + $0x98] sm:$0xff] %vm3827_vm5, %v3814_v11  ;;  %v3281_v60 = vpop.f32.mrf.mxu2 }
 0x34d   : > { %v3747_v16 = vadd.f32 %v3619_v31, %v9790_v1  ;;  %v4234_v13 = vsel %vm1421_vm15, %v4229_v38, %v10184_v46  ;;  %v4026_v38 = vld [vmem:[#allocation3 + $0x14] sm:$0xf] }
 0x34e   : > { %7677 = vmatmul.msk.bf16.vlgmr.msra.gmra.mxu1 %vm3827_vm5, %v4234_v13 }
 0x34f   : > { %v3783_v42 = vadd.f32 %v9911_v47, %v3747_v16 }
 0x351   : > { %v3815_v22 = vmax.f32 %v3783_v42, 0.0 }
 0x352   : > { %v3571_v59 = vpop.f32.mrf.mxu0 }
 0x353   : > { %v3878_v9 = vld [vmem:[#allocation7 + $0x90] ss:$2 sm:$0xff]  ;;  %v3910_v50 = vld [vmem:[#allocation7 + $0x91] ss:$2 sm:$0xff]  ;;  %3848 = vst.msk [vmem:[#allocation7 + $0xa0] sm:$0xff] %vm3827_vm5, %v3815_v22  ;;  %v3620_v1 = vadd.f32 %v3571_v59, %v3387_v55  ;;  %v3396_v55 = vpop.f32.mrf.mxu3 }
 0x354   : > { %v3932_v40 = vmax.f32 %v3878_v9, %v3910_v50  ;;  %v3395_v9 = vadd.f32 %v3394_v29, %v3279_v25 }
 0x355   : > { %v3716_v23 = vsel %vm3098_vm9, %v3620_v1, 0.0 }
 0x356   : > { %v3943_v21 = vmax.f32 %v3931_v12, %v3932_v40  ;;  %v3748_v8 = vadd.f32 %v3716_v23, %v9798_v27  ;;  %v4333_v40 = vshrl.u32 %v10137_v6, 16 }
 0x358   : > { %v4015_v26 = vpack.c.bf16 %v3943_v21, %v3943_v21  ;;  %v3784_v36 = vadd.f32 %v9911_v47, %v3748_v8  ;;  %v905_v21 = vadd.s32 200, %v9608_v0 }
 0x35a   : > { %v4017_v3 = vshrl.u32 %v4015_v26, 16  ;;  %v3816_v30 = vmax.f32 %v3784_v36, 0.0  ;;  %v3574_v37 = vpop.f32.mrf.mxu0  ;;  %v4020_v63 = vshll.u32 %v4015_v26, 16 }
 0x35b   : > { %v3621_v11 = vadd.f32 %v3574_v37, %v3390_v19  ;;  %v3284_v19 = vpop.f32.mrf.mxu2  ;;  %v3399_v36 = vpop.f32.mrf.mxu3  ;;  %v1091_v37 = vand.u32 15, %v905_v21 }
 0x35c   : > { %v4019_v62 = vrot.slane %v4017_v3, 7  ;;  %3849 = vst.msk [vmem:[#allocation7 + $0xa8] sm:$0xff] %vm3827_vm5, %v3816_v30 }
 0x35d   : > { %v3749_v32 = vadd.f32 %v3621_v11, %v9803_v34  ;;  %vm3102_vm4 = vcmp.ne.s32.totalorder %v1091_v37, 15 }
 0x35e   : > { %v4022_v27 = vor.u32 %v4020_v63, %v4019_v62  ;;  %v4023_v45 = vrot.slane %v4019_v62, 4  ;;  %v3397_v63 = vadd.f32 %v3396_v55, %v3281_v60 }
 0x35f   : > { %v3785_v31 = vadd.f32 %v9911_v47, %v3749_v32 }
 0x360   : > { %v4030_v16 = vsel %vm9167_vm6, %v4023_v45, %v4029_v5  ;;  %v4027_v13 = vsel %vm10000_vm14, %v4022_v27, %v4026_v38 }
 0x361   : > { %4031 = vst [vmem:[#allocation3 + $0x18] sm:$0x1] %v4030_v16  ;;  %v3817_v42 = vmax.f32 %v3785_v31, 0.0 }
 0x362   : > { %v3576_v61 = vpop.f32.mrf.mxu0  ;;  %4028 = vst [vmem:[#allocation3 + $0x14] sm:$0xf] %v4027_v13 }
 0x363   : > { %3850 = vst.msk [vmem:[#allocation7 + $0xb0] sm:$0xff] %vm3827_vm5, %v3817_v42  ;;  %v3622_v34 = vadd.f32 %v3576_v61, %v3392_v7  ;;  %v3912_v62 = vld [vmem:[#allocation7 + $0xa1] ss:$2 sm:$0xff]  ;;  %v3286_v16 = vpop.f32.mrf.mxu2  ;;  %v3401_v42 = vpop.f32.mrf.mxu3  ;;  %v3400_v61 = vadd.f32 %v3399_v36, %v3284_v19 }
 0x364   : > { %v3402_v37 = vadd.f32 %v3401_v42, %v3286_v16  ;;  %v909_v16 = vadd.s32 232, %v9608_v0 }
 0x365   : > { %v3718_v22 = vsel %vm3100_vm3, %v3622_v34, 0.0 }
 0x366   : > { %v3750_v59 = vadd.f32 %v3718_v22, %v9813_v48  ;;  %v4335_v48 = vor.u32 %v4333_v40, %v10143_v43  ;;  %v3880_v43 = vld [vmem:[#allocation7 + $0xa0] ss:$2 sm:$0xff] }
 0x367   : > { %v3933_v20 = vmax.f32 %v3880_v43, %v3912_v62 }
 0x368   : > { %v3786_v50 = vadd.f32 %v9911_v47, %v3750_v59  ;;  %v4043_v19 = vld [vmem:[#allocation3 + $0x18] sm:$0xf] }
 0x369   : > { %v10205_v1 = vld [vmem:[#allocation3 + $0x10] sm:$0xff]  }
 0x36a   : > { %v10207_v12 = vld [vmem:[#allocation3 + $0x10] sm:$0xff]  ;;  %v3818_v33 = vmax.f32 %v3786_v50, 0.0  ;;  %v3579_v57 = vpop.f32.mrf.mxu0  ;;  %v4337_v23 = vshll.u32 %v10205_v1, 16 }
 0x36b   : > { %v3623_v8 = vadd.f32 %v3579_v57, %v3395_v9  ;;  %v4455_v26 = vshll.u32 %v10207_v12, 16  ;;  %v907_v9 = vadd.s32 216, %v9608_v0 }
 0x36c   : > { %3851 = vst.msk [vmem:[#allocation7 + $0xb8] sm:$0xff] %vm3827_vm5, %v3818_v33  ;;  %v10215_v25 = vrot.slane %v4337_v23, 1  ;;  %v4046_v23 = vld [vmem:[#allocation3 + $0x1c] sm:$0x1] }
 0x36d   : > { %v3751_v29 = vadd.f32 %v3623_v8, %v9820_v41  ;;  %v10218_v3 = vrot.slane %v4455_v26, 1  ;;  %v1105_v8 = vand.u32 15, %v907_v9 }
 0x36e   : > { %v4340_v30 = vsel %vm1421_vm15, %v4335_v48, %v10215_v25 }
 0x36f   : > { %v3787_v10 = vadd.f32 %v9911_v47, %v3751_v29  ;;  %7690 = vmatmul.msk.bf16.gmra.mxu2 %vm3827_vm5, %v4340_v30  ;;  %v4458_v11 = vsel %vm1421_vm15, %v4335_v48, %v10218_v3  ;;  %v3289_v48 = vpop.f32.mrf.mxu2  ;;  %v3404_v29 = vpop.f32.mrf.mxu3  ;;  %vm3104_vm7 = vcmp.ne.s32.totalorder %v1105_v8, 15 }
 0x370   : > { %7717 = vmatmul.msk.bf16.vlgmr.msra.gmra.mxu3 %vm3827_vm5, %v4458_v11 }
 0x371   : > { %v3819_v5 = vmax.f32 %v3787_v10, 0.0 }
 0x372   : > { %v3581_v41 = vpop.f32.mrf.mxu0 }
 0x373   : > { %v3882_v32 = vld [vmem:[#allocation7 + $0xb0] ss:$2 sm:$0xff]  ;;  %v3914_v27 = vld [vmem:[#allocation7 + $0xb1] ss:$2 sm:$0xff]  ;;  %3852 = vst.msk [vmem:[#allocation7 + $0xc0] sm:$0xff] %vm3827_vm5, %v3819_v5  ;;  %v3624_v45 = vadd.f32 %v3581_v41, %v3397_v63  ;;  %v3405_v63 = vadd.f32 %v3404_v29, %v3289_v48 }
 0x374   : > { %v3934_v31 = vmax.f32 %v3882_v32, %v3914_v27 }
 0x375   : > { %v3720_v38 = vsel %vm3102_vm4, %v3624_v45, 0.0 }
 0x376   : > { %v3944_v13 = vmax.f32 %v3933_v20, %v3934_v31  ;;  %v3752_v7 = vadd.f32 %v3720_v38, %v9830_v17  ;;  %v4235_v31 = vshrl.u32 %v10178_v4, 16 }
 0x377   : > { %v3291_v32 = vpop.f32.mrf.mxu2  ;;  %v3406_v45 = vpop.f32.mrf.mxu3 }
 0x378   : > { %v4032_v34 = vpack.c.bf16 %v3944_v13, %v3944_v13  ;;  %v3788_v60 = vadd.f32 %v9911_v47, %v3752_v7 }
 0x37a   : > { %v4034_v55 = vshrl.u32 %v4032_v34, 16  ;;  %v3820_v22 = vmax.f32 %v3788_v60, 0.0  ;;  %v3584_v59 = vpop.f32.mrf.mxu0  ;;  %v4037_v57 = vshll.u32 %v4032_v34, 16  ;;  %v9042_v34 = vld [vmem:[%s11162_s2] ss:$0 sm:$0xff] }
 0x37b   : > { %v3625_v50 = vadd.f32 %v3584_v59, %v3400_v61  ;;  %v1119_v61 = vand.u32 15, %v909_v16  ;;  %v3407_v59 = vadd.f32 %v3406_v45, %v3291_v32  ;;  %v8776_v16 = vld [vmem:[%s11163_s3 + $0x68] sm:$0xff] }
 0x37c   : > { %v4036_v33 = vrot.slane %v4034_v55, 7  ;;  %3853 = vst.msk [vmem:[#allocation7 + $0xc8] sm:$0xff] %vm3827_vm5, %v3820_v22  ;;  %4732 = vmatpush.bf16.msrb.mxu3 %v8776_v16 }
 0x37d   : > { %v3753_v40 = vadd.f32 %v3625_v50, %v9839_v15  ;;  %vm3106_vm2 = vcmp.ne.s32.totalorder %v1119_v61, 15 }
 0x37e   : > { %v4039_v21 = vor.u32 %v4037_v57, %v4036_v33  ;;  %v4040_v17 = vrot.slane %v4036_v33, 4 }
 0x37f   : > { %v3789_v26 = vadd.f32 %v9911_v47, %v3753_v40 }
 0x380   : > { %v4044_v36 = vsel %vm10000_vm14, %v4039_v21, %v4043_v19  ;;  %v4047_v30 = vsel %vm9167_vm6, %v4040_v17, %v4046_v23  ;;  %v3294_v23 = vpop.f32.mrf.mxu2  ;;  %v3409_v21 = vpop.f32.mrf.mxu3 }
 0x381   : > { %4045 = vst [vmem:[#allocation3 + $0x18] sm:$0xf] %v4044_v36  ;;  %v3821_v10 = vmax.f32 %v3789_v26, 0.0  ;;  %v3410_v26 = vadd.f32 %v3409_v21, %v3294_v23 }
 0x382   : > { %v3586_v15 = vpop.f32.mrf.mxu0  ;;  %4048 = vst [vmem:[#allocation3 + $0x1c] sm:$0x1] %v4047_v30 }
 0x383   : > { %3854 = vst.msk [vmem:[#allocation7 + $0xd0] sm:$0xff] %vm3827_vm5, %v3821_v10  ;;  %v3626_v11 = vadd.f32 %v3586_v15, %v3402_v37  ;;  %v3884_v55 = vld [vmem:[#allocation7 + $0xc0] ss:$2 sm:$0xff]  ;;  %v3916_v22 = vld [vmem:[#allocation7 + $0xc1] ss:$2 sm:$0xff]  ;;  %v911_v10 = vadd.s32 248, %v9608_v0 }
 0x384   : > { %v3935_v57 = vmax.f32 %v3884_v55, %v3916_v22 }
 0x385   : > { %v3722_v43 = vsel %vm3104_vm7, %v3626_v11, 0.0  ;;  %v413_v11 = vld [vmem:[#allocation3 + $0x24] sm:$0xf]  ;;  %vm418_vm7 = vcmask 518144  }
 0x386   : > { %v3754_v62 = vadd.f32 %v3722_v43, %v9849_v14  ;;  %v4237_v14 = vor.u32 %v4235_v31, %v10184_v46  ;;  %v1133_v31 = vand.u32 15, %v911_v10 }
 0x388   : > { %v3790_v5 = vadd.f32 %v9911_v47, %v3754_v62  ;;  %v10241_v41 = vld [vmem:[#allocation3 + $0x14] sm:$0xff]   ;;  %v3296_v45 = vpop.f32.mrf.mxu2  ;;  %vm3108_vm8 = vcmp.ne.s32.totalorder %v1133_v31, 15 }
 0x389   : > { %v4239_v38 = vshll.u32 %v10241_v41, 16 }
 0x38a   : > { %v3822_v27 = vmax.f32 %v3790_v5, 0.0  ;;  %v3589_v20 = vpop.f32.mrf.mxu0 }
 0x38b   : > { %v3627_v13 = vadd.f32 %v3589_v20, %v3405_v63  ;;  %v10248_v7 = vrot.slane %v4239_v38, 1  ;;  %v414_v63 = vsel %vm10000_vm14, 0, %v413_v11  ;;  %v3411_v20 = vpop.f32.mrf.mxu3  ;;  %v8772_v38 = vld [vmem:[%s11163_s3 + $0x8] sm:$0xff]  ;;  %v8773_v11 = vld [vmem:[%s11163_s3 + $0x30] sm:$0xff] }
 0x38c   : > { %3855 = vst.msk [vmem:[#allocation7 + $0xd8] sm:$0xff] %vm3827_vm5, %v3822_v27  ;;  %4673 = vmatpush.bf16.msrb.mxu2 %v8772_v38  ;;  %v3412_v61 = vadd.f32 %v3411_v20, %v3296_v45 }
 0x38d   : > { %v3755_v47 = vadd.f32 %v3627_v13, %v9859_v52  ;;  %v4242_v42 = vsel %vm1421_vm15, %v4237_v14, %v10248_v7  ;;  %415 = vst [vmem:[#allocation3 + $0x24] sm:$0xf] %v414_v63  ;;  %v8774_v13 = vld [vmem:[%s11163_s3 + $0x38] sm:$0xff]  ;;  %v4060_v14 = vld [vmem:[#allocation3 + $0x1c] sm:$0xf] }
 0x38e   : > { %7678 = vmatmul.msk.bf16.gmra.mxu1 %vm3827_vm5, %v4242_v42 }
 0x38f   : > { %v3791_v60 = vadd.f32 %v9042_v34, %v3755_v47  ;;  %4600 = vmatpush.bf16.msrb.mxu1 %v8774_v13 }
 0x391   : > { %v3823_v9 = vmax.f32 %v3791_v60, 0.0 }
 0x392   : > { %v3591_v46 = vpop.f32.mrf.mxu0 }
 0x393   : > { %v3886_v50 = vld [vmem:[#allocation7 + $0xd0] ss:$2 sm:$0xff]  ;;  %v3918_v33 = vld [vmem:[#allocation7 + $0xd1] ss:$2 sm:$0xff]  ;;  %3856 = vst.msk [vmem:[#allocation7 + $0xe0] sm:$0xff] %vm3827_vm5, %v3823_v9  ;;  %v3628_v52 = vadd.f32 %v3591_v46, %v3407_v59  ;;  %4601 = vmatpush.bf16.msrb.mxu1 %v8773_v11 }
 0x394   : > { %v3936_v40 = vmax.f32 %v3886_v50, %v3918_v33  ;;  %v4080_v45 = vld [vmem:[#allocation3 + $0x24] sm:$0x1] }
 0x395   : > { %v3724_v17 = vsel %vm3106_vm2, %v3628_v52, 0.0  ;;  %v4341_v52 = vshrl.u32 %v10205_v1, 16  ;;  %vm419_vm2 = vsmask.f32 2304 }
 0x396   : > { %v3945_v8 = vmax.f32 %v3935_v57, %v3936_v40  ;;  %v3756_v19 = vadd.f32 %v3724_v17, %v9876_v44  ;;  %v4063_v44 = vld [vmem:[#allocation3 + $0x20] sm:$0x1]  ;;  %v4459_v40 = vshrl.u32 %v10207_v12, 16  ;;  %v4955_v17 = vrot.slane %v10207_v12, 1 }
 0x397   : > { %v4821_v12 = vrot.slane %v10241_v41, 1 }
 0x398   : > { %v4049_v48 = vpack.c.bf16 %v3945_v8, %v3945_v8  ;;  %v3792_v36 = vadd.f32 %v9042_v34, %v3756_v19  ;;  %v4461_v19 = vor.u32 %v4459_v40, %v10218_v3  ;;  %v8775_v3 = vld [vmem:[%s11163_s3 + $0x60] sm:$0xff] }
 0x399   : > { %4733 = vmatpush.bf16.msrb.mxu3 %v8775_v3 }
 0x39a   : > { %v4051_v29 = vshrl.u32 %v4049_v48, 16  ;;  %v3824_v30 = vmax.f32 %v3792_v36, 0.0  ;;  %v3594_v37 = vpop.f32.mrf.mxu0  ;;  %v4054_v62 = vshll.u32 %v4049_v48, 16 }
 0x39b   : > { %v3629_v15 = vadd.f32 %v3594_v37, %v3410_v26 }
 0x39c   : > { %v4053_v43 = vrot.slane %v4051_v29, 7  ;;  %3857 = vst.msk [vmem:[#allocation7 + $0xe8] sm:$0xff] %vm3827_vm5, %v3824_v30 }
 0x39d   : > { %v3757_v5 = vadd.f32 %v3629_v15, %v9886_v24 }
 0x39e   : > { %v4056_v32 = vor.u32 %v4054_v62, %v4053_v43  ;;  %v4057_v27 = vrot.slane %v4053_v43, 4 }
 0x39f   : > { %v3793_v24 = vadd.f32 %v9042_v34, %v3757_v5 }
 0x3a0   : > { %v4061_v47 = vsel %vm10000_vm14, %v4056_v32, %v4060_v14  ;;  %v4064_v42 = vsel %vm9167_vm6, %v4057_v27, %v4063_v44  ;;  %v8778_v14 = vld [vmem:[%s11163_s3 + $0x28] sm:$0xff] }
 0x3a1   : > { %v3825_v60 = vmax.f32 %v3793_v24, 0.0  ;;  %4062 = vst [vmem:[#allocation3 + $0x1c] sm:$0xf] %v4061_v47  ;;  %v4418_v24 = vld [vmem:[#allocation3 + $0x28] sm:$0x1] }
 0x3a2   : > { %v3596_v55 = vpop.f32.mrf.mxu0  ;;  %4065 = vst [vmem:[#allocation3 + $0x20] sm:$0x1] %v4064_v42  ;;  %v4441_v47 = vunpack.c.l.b16 %v4418_v24 }
 0x3a3   : > { %3858 = vst.msk [vmem:[#allocation7 + $0xf0] sm:$0xff] %vm3827_vm5, %v3825_v60  ;;  %v3630_v22 = vadd.f32 %v3596_v55, %v3412_v61  ;;  %v3888_v30 = vld [vmem:[#allocation7 + $0xe0] ss:$2 sm:$0xff]  ;;  %v3920_v37 = vld [vmem:[#allocation7 + $0xe1] ss:$2 sm:$0xff] }
 0x3a4   : > { %v3937_v43 = vmax.f32 %v3888_v30, %v3920_v37  ;;  %v4446_v61 = vpack.c.b16 %v4441_v47, %v4441_v47 }
 0x3a5   : > { %v3726_v59 = vsel %vm3108_vm8, %v3630_v22, 0.0  ;;  %vm420_vm8 = vmand %vm418_vm7, %vm419_vm2 }
 0x3a6   : > { %v3758_v9 = vadd.f32 %v3726_v59, %v9902_v2  ;;  %v4343_v2 = vor.u32 %v4341_v52, %v10215_v25  ;;  %v8771_v25 = vld [vmem:[%s11163_s3] sm:$0xff] }
 0x3a7   : > { %4674 = vmatpush.bf16.msrb.mxu2 %v8771_v25  ;;  %v4961_v25 = vrot.slane %v4446_v61, 1 }
 0x3a8   : > { %v3794_v46 = vadd.f32 %v9042_v34, %v3758_v9  ;;  %v10279_v50 = vld [vmem:[#allocation3 + $0x18] sm:$0xff]  }
 0x3a9   : > { %v10281_v33 = vld [vmem:[#allocation3 + $0x18] sm:$0xff]  ;;  %v4345_v57 = vshll.u32 %v10279_v50, 16  ;;  %v4077_v38 = vld [vmem:[#allocation3 + $0x20] sm:$0xf]  ;;  %v8955_v39 = vunpack.c.h.b16 %v10279_v50 }
 0x3aa   : > { %v3826_v23 = vmax.f32 %v3794_v46, 0.0  ;;  %v4463_v21 = vshll.u32 %v10281_v33, 16  ;;  %v4957_v8 = vrot.slane %v10281_v33, 1  ;;  %v4467_v55 = vshrl.u32 %v10281_v33, 16 }
 0x3ab   : > { %v10290_v34 = vrot.slane %v4345_v57, 1  ;;  %4922 = vmatpush.bf16.msra.mxu2 %v8778_v14 }
 0x3ac   : > { %3859 = vst.msk [vmem:[#allocation7 + $0xf8] sm:$0xff] %vm3827_vm5, %v3826_v23  ;;  %v4465_v26 = vrot.slane %v4463_v21, 1  ;;  %v10299_v48 = vsel %vm3120_vm13, %v4955_v17, %v4957_v8  ;;  %v4349_v23 = vshrl.u32 %v10279_v50, 16 }
 0x3ad   : > { %v4348_v36 = vsel %vm1421_vm15, %v4343_v2, %v10290_v34 }
 0x3ae   : > { %7691 = vmatmul.msk.bf16.gmra.mxu2 %vm3827_vm5, %v4348_v36  ;;  %v4466_v29 = vsel %vm1421_vm15, %v4461_v19, %v4465_v26  ;;  %v4469_v52 = vor.u32 %v4467_v55, %v4465_v26  ;;  %v4243_v26 = vshrl.u32 %v10241_v41, 16  ;;  %v8767_v55 = vld [vmem:[#allocation3] sm:$0xff] }
 0x3af   : > { %7718 = vmatmul.msk.bf16.gmra.mxu3 %vm3827_vm5, %v4466_v29 }
 0x3b2   : > { %v4390_v21 = vpop.f32.mrf.mxu2 }
 0x3b3   : > { %v3890_v10 = vld [vmem:[#allocation7 + $0xf0] ss:$2 sm:$0xff]  ;;  %v3922_v15 = vld [vmem:[#allocation7 + $0xf1] ss:$2 sm:$0xff] }
 0x3b4   : > { %v3938_v62 = vmax.f32 %v3890_v10, %v3922_v15 }
 0x3b6   : > { %v3946_v63 = vmax.f32 %v3937_v43, %v3938_v62  ;;  %v4351_v43 = vor.u32 %v4349_v23, %v10290_v34 }
 0x3b8   : > { %v4066_v5 = vpack.c.bf16 %v3946_v63, %v3946_v63 }
 0x3ba   : > { %v4068_v44 = vshrl.u32 %v4066_v5, 16  ;;  %v4071_v27 = vshll.u32 %v4066_v5, 16  ;;  %v4245_v5 = vor.u32 %v4243_v26, %v10248_v7  ;;  %v10392_v23 = vpop.f32.mrf.mxu2 }
 0x3bc   : > { %v4070_v32 = vrot.slane %v4068_v44, 7 }
 0x3be   : > { %v4073_v20 = vor.u32 %v4071_v27, %v4070_v32  ;;  %v4074_v31 = vrot.slane %v4070_v32, 4  ;;  %v8782_v32 = vld [vmem:[%s11163_s3 + $0x88] sm:$0xff] }
 0x3bf   : > { %4993 = vmatpush.bf16.msra.mxu3 %v8782_v32 }
 0x3c0   : > { %v4078_v16 = vsel %vm10000_vm14, %v4073_v20, %v4077_v38  ;;  %v4081_v13 = vsel %vm9167_vm6, %v4074_v31, %v4080_v45  ;;  %v8780_v45 = vld [vmem:[%s11163_s3 + $0x58] sm:$0xff]  ;;  %v4479_v20 = vshll.u32 %v4446_v61, 16  ;;  %v8777_v61 = vld [vmem:[%s11163_s3 + $0x20] sm:$0xff] }
 0x3c1   : > { %4079 = vst [vmem:[#allocation3 + $0x20] sm:$0xf] %v4078_v16  ;;  %4857 = vmatpush.bf16.msra.mxu1 %v8780_v45  ;;  %4923 = vmatpush.bf16.msra.mxu2 %v8777_v61 }
 0x3c2   : > { %4082 = vst [vmem:[#allocation3 + $0x24] sm:$0x1] %v4081_v13  ;;  %v4481_v16 = vrot.slane %v4479_v20, 1 }
 0x3c8   : > { %v4187_v42 = vld [vmem:[#allocation3 + $0x20] sm:$0x1] }
 0x3c9   : > { %v8764_v60 = vld [vmem:[#allocation3 + $0x20] sm:$0xff]  ;;  %v4315_v18 = vunpack.c.l.b16 %v4187_v42 }
 0x3ca   : > { %v10323_v22 = vld [vmem:[#allocation3 + $0x20] sm:$0xff]   ;;  %v4471_v57 = vshll.u32 %v8764_v60, 16  ;;  %v4959_v36 = vrot.slane %v8764_v60, 1  ;;  %v4475_v31 = vshrl.u32 %v8764_v60, 16  ;;  %v8768_v60 = vld [vmem:[#allocation3 + $0x8] sm:$0xff] }
 0x3cb   : > { %v4194_v59 = vld [vmem:[#allocation3 + $0x24] sm:$0x1]  ;;  %v4216_v9 = vunpack.c.l.b16 %v10323_v22  ;;  %v10327_v40 = vpack.c.b16 %v4315_v18, %v4315_v18  ;;  %v4292_v2 = vpop.f32.mrf.mxu1 }
 0x3cc   : > { %v4217_v46 = vunpack.c.l.b16 %v4194_v59  ;;  %v4391_v29 = vadd.f32 %v4390_v21, %v4292_v2  ;;  %v4473_v3 = vrot.slane %v4471_v57, 1  ;;  %v10340_v15 = vsel %vm3120_vm13, %v4957_v8, %v4959_v36  ;;  %v8781_v59 = vld [vmem:[%s11163_s3 + $0x80] sm:$0xff] }
 0x3cd   : > { %v10332_v19 = vpack.c.b16 %v4216_v9, %v8955_v39  ;;  %v4353_v30 = vshll.u32 %v10327_v40, 16  ;;  %v10351_v33 = vsel %vm3120_vm13, %v4959_v36, %v4961_v25  ;;  %4994 = vmatpush.bf16.msra.mxu3 %v8781_v59  ;;  %v8769_v57 = vld [vmem:[#allocation3 + $0x10] sm:$0xff]  ;;  %v8770_v25 = vld [vmem:[#allocation3 + $0x18] sm:$0xff] }
 0x3ce   : > { %v4222_v37 = vpack.c.b16 %v4217_v46, %v4217_v46  ;;  %v4474_v11 = vsel %vm1421_vm15, %v4469_v52, %v4473_v3  ;;  %v4477_v38 = vor.u32 %v4475_v31, %v4473_v3  ;;  %v8779_v46 = vld [vmem:[%s11163_s3 + $0x50] sm:$0xff] }
 0x3cf   : > { %v4247_v10 = vshll.u32 %v10332_v19, 16  ;;  %v4355_v62 = vrot.slane %v4353_v30, 1  ;;  %v4823_v63 = vrot.slane %v10332_v19, 1  ;;  %7719 = vmatmul.msk.bf16.gmra.mxu3 %vm3827_vm5, %v4474_v11  ;;  %v4251_v13 = vshrl.u32 %v10332_v19, 16  ;;  %4858 = vmatpush.bf16.msra.mxu1 %v8779_v46  ;;  %v4564_v30 = vld [vmem:[#allocation3 + $0x20] sm:$0xf] }
 0x3d0   : > { %v4825_v27 = vrot.slane %v4222_v37, 1  ;;  %v4255_v24 = vshll.u32 %v4222_v37, 16  ;;  %v4482_v47 = vsel %vm1421_vm15, %v4477_v38, %v4481_v16  ;;  %v4571_v26 = vunpack.c.l.b16 %v4564_v30 }
 0x3d1   : > { %v4249_v44 = vrot.slane %v4247_v10, 1  ;;  %v4356_v8 = vsel %vm1421_vm15, %v4351_v43, %v4355_v62  ;;  %v4884_v10 = vrot.slane %v10137_v6, 1 }
 0x3d2   : > { %7692 = vmatmul.msk.bf16.gmra.mxu2 %vm3827_vm5, %v4356_v8  ;;  %v10360_v7 = vsel %vm3120_vm13, %v4823_v63, %v4825_v27  ;;  %v4257_v42 = vrot.slane %v4255_v24, 1  ;;  %v4572_v43 = vpack.c.b16 %v4571_v26, %v8955_v39  ;;  %v4819_v39 = vrot.slane %v10178_v4, 1 }
 0x3d3   : > { %v4250_v34 = vsel %vm1421_vm15, %v4245_v5, %v4249_v44  ;;  %v4253_v14 = vor.u32 %v4251_v13, %v4249_v44  ;;  %v8979_v5 = vld [vmem:[#allocation3 + $0x8] sm:$0xf0]  ;;  %v4809_v44 = vld [vmem:[#allocation3 + $0x4] sm:$0xe] }
 0x3d4   : > { %7679 = vmatmul.msk.bf16.gmra.mxu1 %vm3827_vm5, %v4250_v34  ;;  %v4816_v8 = vunpack.c.l.b16 %v4809_v44  ;;  %v4886_v34 = vrot.slane %v10205_v1, 1  ;;  %v4822_v16 = vsel %vm3120_vm13, %v4819_v39, %v4821_v12 }
 0x3d5   : > { %v4258_v18 = vsel %vm1421_vm15, %v4253_v14, %v4257_v42 }
 0x3d6   : > { %v4817_v27 = vpack.c.b16 %v8946_v56, %v4816_v8  ;;  %v4887_v31 = vsel %vm3120_vm13, %v4884_v10, %v4886_v34 }
 0x3d8   : > { %v4818_v20 = vrot.slane %v4817_v27, 1 }
 0x3da   : > { %v4820_v38 = vsel %vm3120_vm13, %v4818_v20, %v4819_v39 }
 0x3df   : > { %7720 = vmatmul.msk.bf16.gmra.mxu3 %vm3827_vm5, %v4482_v47 }
 0x3e2   : > { %7761 = vmatmul.msk.bf16.vlgmr.msrb.gmra.mxu2 %vm3827_vm5, %v8767_v55  ;;  %v4824_v55 = vsel %vm3120_vm13, %v4821_v12, %v4823_v63 }
 0x3e4   : > { %7680 = vmatmul.msk.bf16.gmra.mxu1 %vm3827_vm5, %v4258_v18 }
 0x3ef   : > { %7777 = vmatmul.msk.bf16.vlgmr.msrb.gmra.mxu3 %vm3827_vm5, %v10137_v6 }
 0x3f2   : > { %7762 = vmatmul.msk.bf16.gmra.mxu2 %vm3827_vm5, %v8768_v60  ;;  %v4395_v21 = vpop.f32.mrf.mxu2 }
 0x3f3   : > { %v4516_v9 = vpop.f32.mrf.mxu3 }
 0x3f4   : > { %7733 = vmatmul.msk.bf16.vlgmr.msrb.gmra.mxu1 %vm3827_vm5, %v10169_v58  ;;  %v10385_v52 = vadd.f32 %v4516_v9, %v4391_v29  ;;  %v10394_v58 = vpop.f32.mrf.mxu1  ;;  %v4803_v29 = vld [vmem:[#allocation3] sm:$0xe] }
 0x3f5   : > { %v4881_v3 = vunpack.c.l.b16 %v4803_v29 }
 0x3f7   : > { %v4882_v37 = vpack.c.b16 %v8943_v53, %v4881_v3  ;;  %v8981_v53 = vor.u32 %v8980_v28, %v8979_v5 }
 0x3f9   : > { %v4883_v11 = vrot.slane %v4882_v37, 1 }
 0x3fb   : > { %v4885_v62 = vsel %vm3120_vm13, %v4883_v11, %v4884_v10  ;;  %v10411_v32 = vpop.f32.mrf.mxu3 }
 0x3ff   : > { %7778 = vmatmul.msk.bf16.gmra.mxu3 %vm3827_vm5, %v10205_v1  ;;  %v10427_v1 = vpop.f32.mrf.mxu2 }
 0x402   : > { %7763 = vmatmul.msk.bf16.gmra.mxu2 %vm3827_vm5, %v8769_v57 }
 0x404   : > { %7734 = vmatmul.msk.bf16.gmra.mxu1 %vm3827_vm5, %v10178_v4  ;;  %v4888_v4 = vrot.slane %v10279_v50, 1 }
 0x40b   : > { %v4297_v2 = vpop.f32.mrf.mxu1 }
 0x40c   : > { %v4396_v36 = vadd.f32 %v4395_v21, %v4297_v2 }
 0x40f   : > { %7779 = vmatmul.msk.bf16.gmra.mxu3 %vm3827_vm5, %v10279_v50 }
 0x412   : > { %7764 = vmatmul.msk.bf16.gmra.mxu2 %vm3827_vm5, %v8770_v25 }
 0x413   : > { %v10437_v24 = vpop.f32.mrf.mxu1 }
 0x414   : > { %7735 = vmatmul.msk.bf16.gmra.mxu1 %vm3827_vm5, %v10241_v41  ;;  %v4890_v41 = vrot.slane %v10327_v40, 1 }
 0x416   : > { %v4891_v42 = vsel %vm3120_vm13, %v4888_v4, %v4890_v41  ;;  %v4094_v41 = vand.u32 7, %v9906_v51 }
 0x418   : > { %vm4545_vm14 = vcmp.ne.s32.totalorder %v4094_v41, 0  ;;  %vm4796_vm9 = vcmp.ne.s32.totalorder %v4094_v41, 7 }
 0x41f   : > { %7780 = vmatmul.msk.bf16.gmra.mxu3 %vm3827_vm5, %v10323_v22  ;;  %v4954_v22 = vrot.slane %v8981_v53, 1 }
 0x421   : > { %v4956_v45 = vsel %vm3120_vm13, %v4954_v22, %v4955_v17  ;;  %v4889_v17 = vsel %vm3120_vm13, %v4886_v34, %v4888_v4 }
 0x422   : > { %7809 = vmatmul.msk.bf16.vlgmr.msra.gmra.mxu2 %vm3827_vm5, %v4885_v62 }
 0x424   : > { %7736 = vmatmul.msk.bf16.gmra.mxu1 %vm3827_vm5, %v4572_v43 }
 0x42f   : > { %7825 = vmatmul.msk.bf16.vlgmr.msra.gmra.mxu3 %vm3827_vm5, %v4956_v45 }
 0x431   : > { %v4400_v13 = vpop.f32.mrf.mxu2 }
 0x432   : > { %7810 = vmatmul.msk.bf16.gmra.mxu2 %vm3827_vm5, %v4887_v31  ;;  %v4521_v6 = vpop.f32.mrf.mxu3  ;;  %v4087_v31 = vand.u32 7, %v9608_v0 }
 0x433   : > { %v10425_v56 = vadd.f32 %v4521_v6, %v4396_v36 }
 0x434   : > { %7797 = vmatmul.msk.bf16.vlgmr.msra.gmra.mxu1 %vm3827_vm5, %v4820_v38  ;;  %vm4544_vm6 = vcmp.ne.s32.totalorder %v4087_v31, 0 }
 0x439   : > { %v10441_v47 = vpop.f32.mrf.mxu2 }
 0x43a   : > { %v10439_v14 = vpop.f32.mrf.mxu3 }
 0x43f   : > { %7826 = vmatmul.msk.bf16.gmra.mxu3 %vm3827_vm5, %v10299_v48 }
 0x442   : > { %7811 = vmatmul.msk.bf16.gmra.mxu2 %vm3827_vm5, %v4889_v17 }
 0x444   : > { %7798 = vmatmul.msk.bf16.gmra.mxu1 %vm3827_vm5, %v4822_v16 }
 0x44f   : > { %7827 = vmatmul.msk.bf16.gmra.mxu3 %vm3827_vm5, %v10340_v15 }
 0x451   : > { %v4302_v50 = vpop.f32.mrf.mxu1 }
 0x452   : > { %v4401_v48 = vadd.f32 %v4400_v13, %v4302_v50  ;;  %7812 = vmatmul.msk.bf16.gmra.mxu2 %vm3827_vm5, %v4891_v42  ;;  %v4526_v18 = vpop.f32.mrf.mxu3 }
 0x454   : > { %7799 = vmatmul.msk.bf16.gmra.mxu1 %vm3827_vm5, %v4824_v55  ;;  %v10452_v61 = vadd.f32 %v4526_v18, %v4401_v48  ;;  %v10502_v55 = vld [vmem:[%s11164_s4] ss:$0 sm:$0xff] }
 0x455   : > { %v4405_v60 = vpop.f32.mrf.mxu2 }
 0x459   : > { %v10454_v40 = vpop.f32.mrf.mxu1 }
 0x45a   : > { %v10456_v59 = vpop.f32.mrf.mxu3 }
 0x45d   : > { %v10458_v15 = vpop.f32.mrf.mxu2 }
 0x45f   : > { %7828 = vmatmul.msk.bf16.gmra.mxu3 %vm3827_vm5, %v10351_v33 }
 0x461   : > { %v4307_v9 = vpop.f32.mrf.mxu1 }
 0x462   : > { %v4406_v19 = vadd.f32 %v4405_v60, %v4307_v9  ;;  %v4531_v63 = vpop.f32.mrf.mxu3 }
 0x464   : > { %7800 = vmatmul.msk.bf16.gmra.mxu1 %vm3827_vm5, %v10360_v7  ;;  %v10464_v46 = vadd.f32 %v4531_v63, %v4406_v19  ;;  %vm4795_vm5 = vcmp.ne.s32.totalorder %v4087_v31, 7 }
 0x465   : > { %v4676_v57 = vpop.f32.mrf.mxu2 }
 0x469   : > { %v10466_v21 = vpop.f32.mrf.mxu1 }
 0x46a   : > { %v10468_v2 = vpop.f32.mrf.mxu3 }
 0x46d   : > { %v4678_v36 = vpop.f32.mrf.mxu2 }
 0x471   : > { %v4603_v25 = vpop.f32.mrf.mxu1 }
 0x472   : > { %v4735_v29 = vpop.f32.mrf.mxu3  ;;  %v4677_v20 = vadd.f32 %v4676_v57, %v4603_v25  ;;  %v4393_v57 = vadd.f32 %v10392_v23, %v10394_v58 }
 0x474   : > { %v4755_v4 = vadd.f32 %v4735_v29, %v4677_v20 }
 0x475   : > { %v4681_v3 = vpop.f32.mrf.mxu2 }
 0x476   : > { %v4779_v16 = vsel %vm4544_vm6, %v4755_v4, 0.0 }
 0x477   : > { %v4787_v42 = vadd.f32 %v4779_v16, %v10385_v52  ;;  %v4537_v52 = vadd.f32 %v10411_v32, %v4393_v57 }
 0x479   : > { %v4605_v30 = vpop.f32.mrf.mxu1 }
 0x47a   : > { %v4737_v37 = vpop.f32.mrf.mxu3  ;;  %v4679_v13 = vadd.f32 %v4678_v36, %v4605_v30 }
 0x47c   : > { %v4756_v18 = vadd.f32 %v4737_v37, %v4679_v13 }
 0x47d   : > { %v4683_v26 = vpop.f32.mrf.mxu2 }
 0x47e   : > { %v4780_v29 = vsel %vm4545_vm14, %v4756_v18, 0.0 }
 0x481   : > { %v4608_v33 = vpop.f32.mrf.mxu1 }
 0x482   : > { %v4740_v10 = vpop.f32.mrf.mxu3  ;;  %v4682_v30 = vadd.f32 %v4681_v3, %v4608_v33 }
 0x485   : > { %v10470_v11 = vpop.f32.mrf.mxu2 }
 0x489   : > { %v4610_v7 = vpop.f32.mrf.mxu1 }
 0x48a   : > { %v10472_v43 = vpop.f32.mrf.mxu3  ;;  %v4684_v32 = vadd.f32 %v4683_v26, %v4610_v7  ;;  %v427_v26 = vld [vmem:[#allocation4 + $0x8] sm:$0xc] }
 0x48d   : > { %v10474_v62 = vpop.f32.mrf.mxu2 }
 0x491   : > { %v10476_v5 = vpop.f32.mrf.mxu1 }
 0x492   : > { %v10478_v44 = vpop.f32.mrf.mxu3 }
 0x495   : > { %v10480_v28 = vpop.f32.mrf.mxu2 }
 0x499   : > { %v10482_v53 = vpop.f32.mrf.mxu1 }
 0x49a   : > { %v10484_v8 = vpop.f32.mrf.mxu3 }
 0x49d   : > { %v10486_v27 = vpop.f32.mrf.mxu2 }
 0x4a1   : > { %v10488_v22 = vpop.f32.mrf.mxu1 }
 0x4a2   : > { %v10490_v34 = vpop.f32.mrf.mxu3 }
 0x4a5   : > { %v4925_v39 = vpop.f32.mrf.mxu2 }
 0x4a9   : > { %v10492_v45 = vpop.f32.mrf.mxu1 }
 0x4aa   : > { %v10495_v38 = vpop.f32.mrf.mxu3 }
 0x4ad   : > { %v4927_v6 = vpop.f32.mrf.mxu2 }
 0x4b1   : > { %v4860_v12 = vpop.f32.mrf.mxu1 }
 0x4b2   : > { %v4926_v17 = vadd.f32 %v4925_v39, %v4860_v12  ;;  %v4996_v50 = vpop.f32.mrf.mxu3  ;;  %v11216_v39 = vld [vmem:[#allocation17_spill] sm:$0xff]  ;;  %v4788_v12 = vadd.f32 %v4780_v29, %v4537_v52 }
 0x4b3   : > { %v4101_v20 = vand.u32 7, %v11216_v39 }
 0x4b4   : > { %v5016_v48 = vadd.f32 %v4996_v50, %v4926_v17  ;;  %v4757_v17 = vadd.f32 %v4740_v10, %v4682_v30  ;;  %v4108_v50 = vand.u32 7, %v9936_v54  ;;  %v4758_v10 = vadd.f32 %v10472_v43, %v4684_v32  ;;  %v11219_v30 = vld [vmem:[#allocation18_spill] sm:$0xff] }
 0x4b5   : > { %v4930_v9 = vpop.f32.mrf.mxu2  ;;  %vm4546_vm3 = vcmp.ne.s32.totalorder %v4101_v20, 0  ;;  %vm4797_vm4 = vcmp.ne.s32.totalorder %v4101_v20, 7  ;;  %v4115_v52 = vand.u32 7, %v11219_v30  ;;  %v8784_v30 = vld [vmem:[%s11165_s5 + $0x28] sm:$0xff] }
 0x4b6   : > { %v5040_v60 = vsel %vm4795_vm5, %v5016_v48, 0.0  ;;  %v4781_v13 = vsel %vm4546_vm3, %v4757_v17, 0.0  ;;  %vm10516_vm6 = vcmp.ne.s32.totalorder %v4108_v50, 0  ;;  %vm4798_vm5 = vcmp.ne.s32.totalorder %v4108_v50, 7 }
 0x4b7   : > { %v5048_v19 = vadd.f32 %v5040_v60, %v4787_v42  ;;  %v4789_v18 = vadd.f32 %v4781_v13, %v10425_v56  ;;  %v4398_v56 = vadd.f32 %v10427_v1, %v10437_v24  ;;  %v4782_v43 = vsel %vm10516_vm6, %v4758_v10, 0.0 }
 0x4b8   : > { %vm4548_vm14 = vcmp.ne.s32.totalorder %v4115_v52, 0  ;;  %vm424_vm3 = vcmask 519170  }
 0x4b9   : > { %v4862_v63 = vpop.f32.mrf.mxu1  ;;  %v5060_v36 = vadd.f32 %v10502_v55, %v5048_v19  ;;  %v4539_v29 = vadd.f32 %v10439_v14, %v4398_v56  ;;  %v4689_v14 = vadd.f32 %v10474_v62, %v10482_v53 }
 0x4ba   : > { %v4928_v25 = vadd.f32 %v4927_v6, %v4862_v63  ;;  %v4998_v37 = vpop.f32.mrf.mxu3 }
 0x4bb   : > { %v5068_v31 = vmax.f32 %v5060_v36, 0.0  ;;  %v4687_v36 = vadd.f32 %v10470_v11, %v10476_v5  ;;  %v4760_v13 = vadd.f32 %v10484_v8, %v4689_v14 }
 0x4bc   : > { %v5017_v4 = vadd.f32 %v4998_v37, %v4928_v25  ;;  %v4790_v37 = vadd.f32 %v4782_v43, %v4539_v29 }
 0x4bd   : > { %5077 = vst.msk [vmem:[#allocation8] sm:$0xff] %vm5076_vm11, %v5068_v31  ;;  %v4932_v58 = vpop.f32.mrf.mxu2  ;;  %v4759_v1 = vadd.f32 %v10478_v44, %v4687_v36  ;;  %v4403_v44 = vadd.f32 %v10441_v47, %v10454_v40 }
 0x4be   : > { %v5041_v16 = vsel %vm4796_vm9, %v5017_v4, 0.0  ;;  %vm4799_vm9 = vcmp.ne.s32.totalorder %v4115_v52, 7 }
 0x4bf   : > { %v5049_v23 = vadd.f32 %v5041_v16, %v4788_v12  ;;  %v4783_v17 = vsel %vm4548_vm14, %v4759_v1, 0.0  ;;  %v4122_v16 = vand.u32 7, %v9965_v35  ;;  %v4541_v40 = vadd.f32 %v10456_v59, %v4403_v44 }
 0x4c1   : > { %v4865_v6 = vpop.f32.mrf.mxu1  ;;  %v5061_v3 = vadd.f32 %v10502_v55, %v5049_v23  ;;  %vm10540_vm2 = vcmp.ne.s32.totalorder %v4122_v16, 0  ;;  %vm10561_vm6 = vcmp.ne.s32.totalorder %v4122_v16, 7 }
 0x4c2   : > { %v4931_v33 = vadd.f32 %v4930_v9, %v4865_v6  ;;  %v5001_v41 = vpop.f32.mrf.mxu3  ;;  %v421_v9 = vld [vmem:[#allocation4] sm:$0x7]  ;;  %v4784_v8 = vsel %vm10540_vm2, %v4760_v13, 0.0 }
 0x4c3   : > { %v5069_v48 = vmax.f32 %v5061_v3, 0.0  ;;  %v422_v7 = vsel %vm420_vm8, 0, %v421_v9  ;;  %v8794_v9 = vld [vmem:[%s11165_s5 + $0xf8] sm:$0xff] }
 0x4c4   : > { %v5018_v42 = vadd.f32 %v5001_v41, %v4931_v33  ;;  %423 = vst [vmem:[#allocation4] sm:$0x7] %v422_v7  ;;  %v4791_v33 = vadd.f32 %v4783_v17, %v10452_v61  ;;  %5423 = vmatpush.bf16.msrb.mxu3 %v8794_v9  ;;  %v8797_v61 = vld [vmem:[%s11165_s5 + $0x8] sm:$0xff] }
 0x4c5   : > { %5078 = vst.msk [vmem:[#allocation8 + $0x8] sm:$0xff] %vm5076_vm11, %v5069_v48  ;;  %v4935_v25 = vpop.f32.mrf.mxu2 }
 0x4c6   : > { %v5042_v60 = vsel %vm4797_vm4, %v5018_v42, 0.0  ;;  %vm425_vm4 = vsmask.f32 7946  ;;  %v4692_v42 = vadd.f32 %v10480_v28, %v10488_v22 }
 0x4c7   : > { %v5050_v54 = vadd.f32 %v5042_v60, %v4789_v18  ;;  %vm10545_vm8 = vmand %vm424_vm3, %vm425_vm4  ;;  %v11224_v18 = vld [vmem:[#allocation19_spill] sm:$0xff]  ;;  %vm5152_vm4 = vsmask.f32 2306 }
 0x4c8   : > { %v4129_v10 = vand.u32 7, %v11224_v18  ;;  %v8786_v60 = vld [vmem:[%s11165_s5 + $0x38] sm:$0xff]  ;;  %v428_v28 = vsel %vm10545_vm8, 0, %v427_v26  ;;  %v4761_v36 = vadd.f32 %v10490_v34, %v4692_v42  ;;  %vm10622_vm2 = vmand %vm418_vm7, %vm5152_vm4  ;;  %vm433_vm7 = vsmask.f32 1280 }
 0x4c9   : > { %v4867_v19 = vpop.f32.mrf.mxu1  ;;  %v5062_v63 = vadd.f32 %v10502_v55, %v5050_v54  ;;  %5350 = vmatpush.bf16.msrb.mxu2 %v8786_v60  ;;  %429 = vst [vmem:[#allocation4 + $0x8] sm:$0xc] %v428_v28  ;;  %vm5827_vm4 = vcmask 1042433  }
 0x4ca   : > { %v4933_v57 = vadd.f32 %v4932_v58, %v4867_v19  ;;  %v5003_v20 = vpop.f32.mrf.mxu3  ;;  %vm4801_vm14 = vcmp.ne.s32.totalorder %v4129_v10, 7 }
 0x4cb   : > { %v5070_v39 = vmax.f32 %v5062_v63, 0.0 }
 0x4cc   : > { %v5019_v31 = vadd.f32 %v5003_v20, %v4933_v57  ;;  %v5085_v53 = vld [vmem:[#allocation8] ss:$2 sm:$0xff]  ;;  %v5093_v50 = vld [vmem:[#allocation8 + $0x1] ss:$2 sm:$0xff]  ;;  %v4792_v57 = vadd.f32 %v4784_v8, %v4541_v40 }
 0x4cd   : > { %5079 = vst.msk [vmem:[#allocation8 + $0x10] sm:$0xff] %vm5076_vm11, %v5070_v39  ;;  %v4937_v6 = vpop.f32.mrf.mxu2  ;;  %v5100_v54 = vmax.f32 %v5085_v53, %v5093_v50  ;;  %v5135_v53 = vld [vmem:[#allocation4] sm:$0xc] }
 0x4ce   : > { %v5043_v24 = vsel %vm4798_vm5, %v5019_v31, 0.0  ;;  %vm10571_vm5 = vcmp.ne.s32.totalorder %v4129_v10, 0  ;;  %v8796_v10 = vld [vmem:[%s11165_s5] sm:$0xff] }
 0x4cf   : > { %v5051_v4 = vadd.f32 %v5043_v24, %v4790_v37  ;;  %v5108_v52 = vrot.slane %v5100_v54, 4  ;;  %v4785_v34 = vsel %vm10571_vm5, %v4761_v36, 0.0  ;;  %v8785_v36 = vld [vmem:[%s11165_s5 + $0x30] sm:$0xff] }
 0x4d0   : > { %5351 = vmatpush.bf16.msrb.mxu2 %v8785_v36 }
 0x4d1   : > { %v4870_v12 = vpop.f32.mrf.mxu1  ;;  %v5063_v11 = vadd.f32 %v10502_v55, %v5051_v4  ;;  %v4694_v4 = vadd.f32 %v10486_v27, %v10492_v45  ;;  %v4408_v27 = vadd.f32 %v10458_v15, %v10466_v21  ;;  %v8799_v45 = vld [vmem:[%s11165_s5 + $0x18] sm:$0xff] }
 0x4d2   : > { %v4936_v5 = vadd.f32 %v4935_v25, %v4870_v12  ;;  %v5006_v58 = vpop.f32.mrf.mxu3 }
 0x4d3   : > { %v5071_v23 = vmax.f32 %v5063_v11, 0.0  ;;  %v4136_v11 = vand.u32 7, %v9995_v49  ;;  %v4543_v15 = vadd.f32 %v10468_v2, %v4408_v27 }
 0x4d4   : > { %v5020_v3 = vadd.f32 %v5006_v58, %v4936_v5  ;;  %v4762_v58 = vadd.f32 %v10495_v38, %v4694_v4  ;;  %v5140_v38 = vld [vmem:[#allocation4 + $0x4] sm:$0x1]  ;;  %5352 = vmatpush.bf16.msrb.mxu2 %v8784_v30 }
 0x4d5   : > { %5080 = vst.msk [vmem:[#allocation8 + $0x18] sm:$0xff] %vm5076_vm11, %v5071_v23  ;;  %v4940_v25 = vpop.f32.mrf.mxu2  ;;  %v4793_v23 = vadd.f32 %v4785_v34, %v10464_v46  ;;  %vm4802_vm3 = vcmp.ne.s32.totalorder %v4136_v11, 7  ;;  %v8783_v4 = vld [vmem:[%s11165_s5 + $0x20] sm:$0xff] }
 0x4d6   : > { %v5044_v32 = vsel %vm4799_vm9, %v5020_v3, 0.0  ;;  %vm10587_vm9 = vcmp.ne.s32.totalorder %v4136_v11, 0 }
 0x4d7   : > { %v5052_v35 = vadd.f32 %v5044_v32, %v4791_v33  ;;  %v4786_v50 = vsel %vm10587_vm9, %v4762_v58, 0.0  ;;  %vm439_vm9 = vsmask.f32 7950 }
 0x4d8   : > { %v4794_v9 = vadd.f32 %v4786_v50, %v4543_v15  ;;  %5353 = vmatpush.bf16.msrb.mxu2 %v8783_v4  ;;  %v8806_v15 = vld [vmem:[%s11165_s5 + $0xd0] sm:$0xff] }
 0x4d9   : > { %v4872_v48 = vpop.f32.mrf.mxu1  ;;  %v5064_v41 = vadd.f32 %v10502_v55, %v5052_v35 }
 0x4da   : > { %v4938_v47 = vadd.f32 %v4937_v6, %v4872_v48  ;;  %v5008_v19 = vpop.f32.mrf.mxu3 }
 0x4db   : > { %v5072_v7 = vmax.f32 %v5064_v41, 0.0 }
 0x4dc   : > { %v5087_v22 = vld [vmem:[#allocation8 + $0x10] ss:$2 sm:$0xff]  ;;  %v5095_v56 = vld [vmem:[#allocation8 + $0x11] ss:$2 sm:$0xff]  ;;  %v5021_v63 = vadd.f32 %v5008_v19, %v4938_v47  ;;  %5541 = vmatpush.bf16.msra.mxu2 %v8799_v45 }
 0x4dd   : > { %v5101_v43 = vmax.f32 %v5087_v22, %v5095_v56  ;;  %5081 = vst.msk [vmem:[#allocation8 + $0x20] sm:$0xff] %vm5076_vm11, %v5072_v7  ;;  %v4942_v32 = vpop.f32.mrf.mxu2 }
 0x4de   : > { %v5045_v29 = vsel %vm10561_vm6, %v5021_v63, 0.0 }
 0x4df   : > { %v5109_v39 = vrot.slane %v5101_v43, 4  ;;  %v5053_v20 = vadd.f32 %v5045_v29, %v4792_v57  ;;  %v8790_v57 = vld [vmem:[%s11165_s5 + $0x98] sm:$0xff]  ;;  %v8789_v29 = vld [vmem:[%s11165_s5 + $0x90] sm:$0xff] }
 0x4e0   : > { %5291 = vmatpush.bf16.msrb.mxu1 %v8790_v57 }
 0x4e1   : > { %v4875_v31 = vpop.f32.mrf.mxu1  ;;  %v5110_v37 = vsel %vm1608_vm0, %v5108_v52, %v5109_v39  ;;  %v5065_v1 = vadd.f32 %v10502_v55, %v5053_v20  ;;  %v8835_v52 = vld [vmem:[%s11167_s7 + $0x138] sm:$0xff]  ;;  %v8792_v20 = vld [vmem:[%s11165_s5 + $0xe8] sm:$0xff] }
 0x4e2   : > { %v4941_v24 = vadd.f32 %v4940_v25, %v4875_v31  ;;  %v5119_v12 = vmax.f32 %v5100_v54, %v5110_v37  ;;  %v5011_v17 = vpop.f32.mrf.mxu3  ;;  %v8793_v25 = vld [vmem:[%s11165_s5 + $0xf0] sm:$0xff]  ;;  %5950 = vmatpush.bf16.msrb.mxu0 %v8835_v52  ;;  %v8788_v37 = vld [vmem:[%s11165_s5 + $0x88] sm:$0xff] }
 0x4e3   : > { %v5073_v5 = vmax.f32 %v5065_v1, 0.0  ;;  %5424 = vmatpush.bf16.msrb.mxu3 %v8793_v25 }
 0x4e4   : > { %v5123_v14 = vpack.c.bf16 %v5119_v12, %v5119_v12  ;;  %v5022_v16 = vadd.f32 %v5011_v17, %v4941_v24  ;;  %5292 = vmatpush.bf16.msrb.mxu1 %v8789_v29 }
 0x4e5   : > { %5082 = vst.msk [vmem:[#allocation8 + $0x28] sm:$0xff] %vm5076_vm11, %v5073_v5  ;;  %v8791_v5 = vld [vmem:[%s11165_s5 + $0xe0] sm:$0xff] }
 0x4e6   : > { %v5125_v6 = vshrl.u32 %v5123_v14, 16  ;;  %v5128_v3 = vshll.u32 %v5123_v14, 16  ;;  %v5046_v44 = vsel %vm4801_vm14, %v5022_v16, 0.0  ;;  %v8787_v14 = vld [vmem:[%s11165_s5 + $0x80] sm:$0xff]  ;;  %vm438_vm14 = vcmask 1043459  }
 0x4e7   : > { %v5054_v49 = vadd.f32 %v5046_v44, %v4793_v23  ;;  %5425 = vmatpush.bf16.msrb.mxu3 %v8792_v20 }
 0x4e8   : > { %v5127_v33 = vrot.slane %v5125_v6, 5  ;;  %v5130_v13 = vrot.slane %v5128_v3, 6  ;;  %5293 = vmatpush.bf16.msrb.mxu1 %v8788_v37 }
 0x4e9   : > { %v4877_v62 = vpop.f32.mrf.mxu1  ;;  %v5066_v46 = vadd.f32 %v10502_v55, %v5054_v49 }
 0x4ea   : > { %v4943_v35 = vadd.f32 %v4942_v32, %v4877_v62  ;;  %v5131_v48 = vor.u32 %v5130_v13, %v5127_v33  ;;  %v5132_v41 = vrot.slane %v5127_v33, 4  ;;  %v5013_v47 = vpop.f32.mrf.mxu3  ;;  %v5172_v13 = vld [vmem:[#allocation4 + $0x8] sm:$0x1] }
 0x4eb   : > { %v5074_v21 = vmax.f32 %v5066_v46, 0.0  ;;  %5426 = vmatpush.bf16.msrb.mxu3 %v8791_v5  ;;  %v8807_v46 = vld [vmem:[%s11165_s5 + $0xd8] sm:$0xff] }
 0x4ec   : > { %v5089_v40 = vld [vmem:[#allocation8 + $0x20] ss:$2 sm:$0xff]  ;;  %v5097_v8 = vld [vmem:[#allocation8 + $0x21] ss:$2 sm:$0xff]  ;;  %v5023_v42 = vadd.f32 %v5013_v47, %v4943_v35  ;;  %v5136_v18 = vsel %vm10545_vm8, %v5131_v48, %v5135_v53  ;;  %v5141_v60 = vsel %vm9178_vm12, %v5132_v41, %v5140_v38  ;;  %5294 = vmatpush.bf16.msrb.mxu1 %v8787_v14  ;;  %v8803_v35 = vld [vmem:[%s11165_s5 + $0x78] sm:$0xff] }
 0x4ed   : > { %v5102_v26 = vmax.f32 %v5089_v40, %v5097_v8  ;;  %5083 = vst.msk [vmem:[#allocation8 + $0x30] sm:$0xff] %vm5076_vm11, %v5074_v21  ;;  %v8798_v53 = vld [vmem:[%s11165_s5 + $0x10] sm:$0xff]  ;;  %v8805_v8 = vld [vmem:[%s11165_s5 + $0xc8] sm:$0xff] }
 0x4ee   : > { %v5047_v54 = vsel %vm4802_vm3, %v5023_v42, 0.0  ;;  %5137 = vst [vmem:[#allocation4] sm:$0xc] %v5136_v18  ;;  %v8802_v21 = vld [vmem:[%s11165_s5 + $0x70] sm:$0xff]  ;;  %5542 = vmatpush.bf16.msra.mxu2 %v8798_v53  ;;  %v8801_v42 = vld [vmem:[%s11165_s5 + $0x68] sm:$0xff]  ;;  %vm440_vm3 = vmand %vm438_vm14, %vm439_vm9 }
 0x4ef   : > { %v5111_v7 = vrot.slane %v5102_v26, 4  ;;  %v5055_v2 = vadd.f32 %v5047_v54, %v4794_v9  ;;  %5142 = vst [vmem:[#allocation4 + $0x4] sm:$0x1] %v5141_v60  ;;  %5595 = vmatpush.bf16.msra.mxu3 %v8807_v46  ;;  %v8834_v47 = vld [vmem:[%s11167_s7 + $0x130] sm:$0xff]  ;;  %v8804_v54 = vld [vmem:[%s11165_s5 + $0xc0] sm:$0xff]  ;;  %v8819_v46 = vld [vmem:[%s11165_s5 + $0x118] sm:$0xff] }
 0x4f0   : > { %5495 = vmatpush.bf16.msra.mxu1 %v8803_v35  ;;  %5951 = vmatpush.bf16.msrb.mxu0 %v8834_v47  ;;  %v8810_v53 = vld [vmem:[%s11165_s5 + $0x50] sm:$0xff]  ;;  %v8809_v47 = vld [vmem:[%s11165_s5 + $0x48] sm:$0xff] }
 0x4f1   : > { %v5112_v59 = vsel %vm1608_vm0, %v5109_v39, %v5111_v7  ;;  %v5067_v19 = vadd.f32 %v10502_v55, %v5055_v2 }
 0x4f2   : > { %v5120_v28 = vmax.f32 %v5101_v43, %v5112_v59  ;;  %5543 = vmatpush.bf16.msra.mxu2 %v8797_v61  ;;  %v8832_v61 = vld [vmem:[%s11167_s7 + $0x120] sm:$0xff] }
 0x4f3   : > { %v5075_v22 = vmax.f32 %v5067_v19, 0.0  ;;  %5596 = vmatpush.bf16.msra.mxu3 %v8806_v15  ;;  %v8818_v15 = vld [vmem:[%s11165_s5 + $0x110] sm:$0xff] }
 0x4f4   : > { %v5143_v56 = vpack.c.bf16 %v5120_v28, %v5120_v28  ;;  %5496 = vmatpush.bf16.msra.mxu1 %v8802_v21 }
 0x4f5   : > { %5084 = vst.msk [vmem:[#allocation8 + $0x38] sm:$0xff] %vm5076_vm11, %v5075_v22  ;;  %v5223_v9 = vld [vmem:[#allocation4] sm:$0xc]  ;;  %v5362_v22 = vld [vmem:[#allocation4 + $0xc] sm:$0x1] }
 0x4f6   : > { %v5145_v63 = vshrl.u32 %v5143_v56, 16  ;;  %v5148_v43 = vshll.u32 %v5143_v56, 16  ;;  %v5154_v1 = vld [vmem:[#allocation4 + $0x4] sm:$0x7]  ;;  %5544 = vmatpush.bf16.msra.mxu2 %v8796_v10  ;;  %v5237_v28 = vunpack.c.l.b16 %v5223_v9  ;;  %v8831_v10 = vld [vmem:[%s11167_s7 + $0x118] sm:$0xff] }
 0x4f7   : > { %5597 = vmatpush.bf16.msra.mxu3 %v8805_v8  ;;  %v8817_v8 = vld [vmem:[%s11165_s5 + $0x108] sm:$0xff]  ;;  %v8812_v9 = vld [vmem:[%s11165_s5 + $0xa0] sm:$0xff] }
 0x4f8   : > { %v5147_v55 = vrot.slane %v5145_v63, 7  ;;  %5497 = vmatpush.bf16.msra.mxu1 %v8801_v42  ;;  %v5377_v63 = vunpack.c.l.b16 %v5362_v22 }
 0x4fa   : > { %v5150_v31 = vor.u32 %v5148_v43, %v5147_v55  ;;  %v10698_v20 = vpack.c.b16 %v5377_v63, %v5377_v63  ;;  %v5617_v63 = vld [vmem:[#allocation4] sm:$0xe] }
 0x4fb   : > { %5598 = vmatpush.bf16.msra.mxu3 %v8804_v54 }
 0x4fc   : > { %v5091_v24 = vld [vmem:[#allocation8 + $0x30] ss:$2 sm:$0xff]  ;;  %v5099_v34 = vld [vmem:[#allocation8 + $0x31] ss:$2 sm:$0xff]  ;;  %v5155_v12 = vsel %vm10622_vm2, %v5150_v31, %v5154_v1  ;;  %v5388_v4 = vshll.u32 %v10698_v20, 16 }
 0x4fd   : > { %v5103_v11 = vmax.f32 %v5091_v24, %v5099_v34  ;;  %5156 = vst [vmem:[#allocation4 + $0x4] sm:$0x7] %v5155_v12 }
 0x4fe   : > { %v5390_v45 = vrot.slane %v5388_v4, 1 }
 0x4ff   : > { %v5113_v17 = vrot.slane %v5103_v11, 4 }
 0x501   : > { %v5114_v16 = vsel %vm1608_vm0, %v5111_v7, %v5113_v17  ;;  %v5122_v58 = vmax.f32 %v5103_v11, %v5113_v17  ;;  %v8800_v7 = vld [vmem:[%s11165_s5 + $0x60] sm:$0xff]  ;;  %vm5242_vm0 = vsmask.f32 5376 }
 0x502   : > { %v5121_v23 = vmax.f32 %v5102_v26, %v5114_v16  ;;  %5498 = vmatpush.bf16.msra.mxu1 %v8800_v7 }
 0x503   : > { %v5175_v27 = vpack.c.bf16 %v5122_v58, %v5122_v58 }
 0x504   : > { %v5157_v6 = vpack.c.bf16 %v5121_v23, %v5121_v23  ;;  %v5169_v50 = vld [vmem:[#allocation4 + $0x4] sm:$0xc] }
 0x505   : > { %v5177_v38 = vshrl.u32 %v5175_v27, 16  ;;  %v5180_v18 = vshll.u32 %v5175_v27, 16 }
 0x506   : > { %v5159_v3 = vshrl.u32 %v5157_v6, 16  ;;  %v5162_v44 = vshll.u32 %v5157_v6, 16 }
 0x507   : > { %v5179_v40 = vrot.slane %v5177_v38, 7 }
 0x508   : > { %v5161_v49 = vrot.slane %v5159_v3, 5  ;;  %v5164_v33 = vrot.slane %v5162_v44, 6  ;;  %v8811_v3 = vld [vmem:[%s11165_s5 + $0x58] sm:$0xff] }
 0x509   : > { %v5182_v60 = vor.u32 %v5180_v18, %v5179_v40  ;;  %v8813_v40 = vld [vmem:[%s11165_s5 + $0xa8] sm:$0xff]  ;;  %v8808_v18 = vld [vmem:[%s11165_s5 + $0x40] sm:$0xff] }
 0x50a   : > { %v5165_v32 = vor.u32 %v5164_v33, %v5161_v49  ;;  %v5166_v62 = vrot.slane %v5161_v49, 4 }
 0x50c   : > { %v5173_v48 = vsel %vm9178_vm12, %v5166_v62, %v5172_v13  ;;  %v5170_v41 = vsel %vm10545_vm8, %v5165_v32, %v5169_v50  ;;  %v8815_v32 = vld [vmem:[%s11165_s5 + $0xb8] sm:$0xff]  ;;  %vm5460_vm12 = vcmask 1045504  }
 0x50d   : > { %5174 = vst [vmem:[#allocation4 + $0x8] sm:$0x1] %v5173_v48  ;;  %v8814_v48 = vld [vmem:[%s11165_s5 + $0xb0] sm:$0xff] }
 0x50e   : > { %5171 = vst [vmem:[#allocation4 + $0x4] sm:$0xc] %v5170_v41  ;;  %v8833_v41 = vld [vmem:[%s11167_s7 + $0x128] sm:$0xff] }
 0x50f   : > { %5952 = vmatpush.bf16.msrb.mxu0 %v8833_v41 }
 0x513   : > { %5953 = vmatpush.bf16.msrb.mxu0 %v8832_v61  ;;  %v8857_v61 = vld [vmem:[%s11167_s7 + $0xe8] sm:$0xff] }
 0x514   : > { %v5184_v26 = vld [vmem:[#allocation4 + $0x8] sm:$0x7] }
 0x515   : > { %v5185_v2 = vsel %vm10622_vm2, %v5182_v60, %v5184_v26  ;;  %v8961_v59 = vld [vmem:[#allocation4] sm:$0xff]   ;;  %vm5828_vm2 = vsmask.f32 2310 }
 0x516   : > { %5186 = vst [vmem:[#allocation4 + $0x8] sm:$0x7] %v5185_v2  ;;  %v10689_v19 = vunpack.c.h.b16 %v8961_v59  ;;  %v5310_v57 = vshll.u32 %v8961_v59, 16  ;;  %v5308_v24 = vshrl.u32 %v8961_v59, 16  ;;  %v8816_v26 = vld [vmem:[%s11165_s5 + $0x100] sm:$0xff] }
 0x517   : > { %5954 = vmatpush.bf16.msrb.mxu0 %v8831_v10  ;;  %v8795_v2 = vld [vmem:[#allocation4] sm:$0xff] }
 0x518   : > { %v10692_v56 = vpack.c.b16 %v10689_v19, %v5237_v28  ;;  %v5312_v37 = vrot.slane %v5310_v57, 1  ;;  %v9044_v57 = vld [vmem:[#allocation4 + $0x4] sm:$0xe] }
 0x51a   : > { %v5244_v55 = vshrl.u32 %v10692_v56, 16  ;;  %v5247_v39 = vshll.u32 %v10692_v56, 16  ;;  %v5313_v16 = vor.u32 %v5312_v37, %v5308_v24  ;;  %v5461_v59 = vrot.slane %v10692_v56, 2 }
 0x51c   : > { %v5246_v34 = vrot.slane %v5244_v55, 2  ;;  %v5249_v11 = vrot.slane %v5247_v39, 3 }
 0x51d   : > { %v5213_v36 = vld [vmem:[#allocation4 + $0x8] sm:$0x1] }
 0x51e   : > { %v5224_v25 = vld [vmem:[#allocation4 + $0x8] sm:$0x7]  ;;  %v5304_v30 = vunpack.c.l.b16 %v5213_v36  ;;  %v5250_v33 = vor.u32 %v5249_v11, %v5246_v34  ;;  %v5627_v36 = vld [vmem:[#allocation4] sm:$0x8]  ;;  %v5746_v34 = vrot.slane %v10698_v20, 1 }
 0x51f   : > { %v5360_v43 = vld [vmem:[#allocation4 + $0x4] sm:$0xff]   ;;  %v5239_v52 = vunpack.c.l.b16 %v5224_v25  ;;  %v5686_v25 = vunpack.c.l.b16 %v5617_v63  ;;  %v435_v63 = vld [vmem:[#allocation5] sm:$0x3] }
 0x520   : > { %v10695_v29 = vld [vmem:[#allocation4 + $0x4] sm:$0xf0]  ;;  %v10700_v31 = vpack.c.b16 %v5304_v30, %v5304_v30  ;;  %v5383_v14 = vshll.u32 %v5360_v43, 16  ;;  %v5381_v44 = vshrl.u32 %v5360_v43, 16  ;;  %v5638_v43 = vunpack.c.l.b16 %v5627_v36 }
 0x521   : > { %v10702_v1 = vpack.c.b16 %v5239_v52, %v5239_v52  ;;  %v5447_v50 = vld [vmem:[#allocation4 + $0x8] sm:$0x3]  ;;  %v5687_v55 = vpack.c.b16 %v10689_v19, %v5686_v25  ;;  %v9045_v56 = vor.u32 %v9044_v57, %v10695_v29 }
 0x522   : > { %v5315_v12 = vshll.u32 %v10700_v31, 16  ;;  %v5385_v27 = vrot.slane %v5383_v14, 1  ;;  %v5458_v21 = vunpack.c.l.b16 %v5447_v50  ;;  %v5551_v60 = vld [vmem:[#allocation4 + $0x8] sm:$0xf]  ;;  %v5689_v30 = vrot.slane %v10700_v31, 1 }
 0x523   : > { %v5252_v5 = vshrl.u32 %v10702_v1, 16  ;;  %v5255_v17 = vshll.u32 %v10702_v1, 16  ;;  %v5562_v7 = vunpack.c.l.b16 %v5551_v60  ;;  %v5639_v52 = vpack.c.b16 %v10689_v19, %v5638_v43 }
 0x524   : > { %v5317_v23 = vrot.slane %v5315_v12, 1  ;;  %v5386_v62 = vor.u32 %v5385_v27, %v5381_v44  ;;  %v5459_v42 = vpack.c.b16 %v5458_v21, %v5458_v21  ;;  %v5688_v39 = vrot.slane %v5687_v55, 1  ;;  %v8826_v21 = vld [vmem:[%s11167_s7 + $0x70] sm:$0xff] }
 0x525   : > { %v5254_v58 = vrot.slane %v5252_v5, 2  ;;  %v5257_v6 = vrot.slane %v5255_v17, 3  ;;  %v5563_v22 = vpack.c.b16 %v5562_v7, %v10689_v19  ;;  %v5642_v37 = vrot.slane %v10702_v1, 3  ;;  %v8830_v19 = vld [vmem:[%s11167_s7 + $0x110] sm:$0xff]  ;;  %v8841_v7 = vld [vmem:[%s11167_s7 + $0x1e8] sm:$0xff] }
 0x526   : > { %v5318_v49 = vsel %vm1421_vm15, %v5313_v16, %v5317_v23  ;;  %v5391_v38 = vsel %vm1421_vm15, %v5386_v62, %v5390_v45  ;;  %v5462_v54 = vrot.slane %v5459_v42, 2  ;;  %v5745_v24 = vrot.slane %v9045_v56, 1  ;;  %5955 = vmatpush.bf16.msrb.mxu0 %v8830_v19  ;;  %v8829_v23 = vld [vmem:[%s11167_s7 + $0x108] sm:$0xff]  ;;  %v8859_v45 = vld [vmem:[%s11167_s7 + $0xf8] sm:$0xff]  ;;  %v8828_v56 = vld [vmem:[%s11167_s7 + $0x100] sm:$0xff] }
 0x527   : > { %v5258_v13 = vor.u32 %v5257_v6, %v5254_v58  ;;  %7878 = vmatmul.msk.bf16.vlgmr.msrb.gmra.mxu2 %vm5076_vm11, %v5318_v49  ;;  %7903 = vmatmul.msk.bf16.vlgmr.msrb.gmra.mxu3 %vm5076_vm11, %v5391_v38  ;;  %v5690_v4 = vsel %vm3120_vm13, %v5688_v39, %v5689_v30  ;;  %v5641_v12 = vrot.slane %v5639_v52, 3  ;;  %v5191_v49 = vand.u32 3, %v9608_v0  ;;  %v8827_v62 = vld [vmem:[%s11167_s7 + $0x78] sm:$0xff]  ;;  %v8824_v30 = vld [vmem:[%s11167_s7 + $0x60] sm:$0xff] }
 0x528   : > { %5722 = vmatpush.bf16.msrb.mxu2 %v8811_v3  ;;  %5779 = vmatpush.bf16.msrb.mxu3 %v8819_v46  ;;  %v5463_v28 = vsel %vm5460_vm12, %v5461_v59, %v5462_v54  ;;  %v5747_v29 = vsel %vm3120_vm13, %v5745_v24, %v5746_v34  ;;  %v8843_v46 = vld [vmem:[%s11167_s7 + $0x1f8] sm:$0xff]  ;;  %vm432_vm13 = vcmask 1041408   ;;  %v8825_v54 = vld [vmem:[%s11167_s7 + $0x68] sm:$0xff]  ;;  %v8840_v52 = vld [vmem:[%s11167_s7 + $0x1e0] sm:$0xff]  ;;  %vm5836_vm12 = vcmask 1043458  }
 0x529   : > { %v5259_v35 = vsel %vm5242_vm0, %v5250_v33, %v5258_v13  ;;  %v5643_v11 = vsel %vm1609_vm1, %v5641_v12, %v5642_v37  ;;  %vm10796_vm1 = vcmp.ne.s32.totalorder %v5191_v49, 0  ;;  %vm10812_vm15 = vcmp.ne.s32.totalorder %v5191_v49, 3  ;;  %vm434_vm6 = vmand %vm432_vm13, %vm433_vm7  ;;  %v8855_v37 = vld [vmem:[%s11167_s7 + $0xd8] sm:$0xff]  ;;  %v8837_v49 = vld [vmem:[%s11167_s7 + $0x1c8] sm:$0xff] }
 0x52a   : > { %7861 = vmatmul.msk.bf16.vlgmr.msrb.gmra.mxu1 %vm5076_vm11, %v5259_v35  ;;  %5956 = vmatpush.bf16.msrb.mxu0 %v8829_v23  ;;  %v8858_v35 = vld [vmem:[%s11167_s7 + $0xf0] sm:$0xff]  ;;  %v436_v25 = vsel %vm434_vm6, 0, %v435_v63  ;;  %v8823_v19 = vld [vmem:[%s11167_s7 + $0x58] sm:$0xff]  ;;  %vm5829_vm0 = vmand %vm5827_vm4, %vm5828_vm2  ;;  %vm445_vm13 = vcmask 517120  }
 0x52b   : > { %5675 = vmatpush.bf16.msrb.mxu1 %v8815_v32  ;;  %437 = vst [vmem:[#allocation5] sm:$0x3] %v436_v25  ;;  %v8838_v23 = vld [vmem:[%s11167_s7 + $0x1d0] sm:$0xff]  ;;  %v8883_v38 = vld [vmem:[%s11167_s7 + $0x178] sm:$0xff]  ;;  %vm446_vm6 = vmand %vm445_vm13, %vm433_vm7 }
 0x52c   : > { %5723 = vmatpush.bf16.msrb.mxu2 %v8810_v53  ;;  %5780 = vmatpush.bf16.msrb.mxu3 %v8818_v15 }
 0x52e   : > { %5957 = vmatpush.bf16.msrb.mxu0 %v8828_v56  ;;  %v8870_v56 = vld [vmem:[%s11167_s7 + $0x90] sm:$0xff] }
 0x52f   : > { %5676 = vmatpush.bf16.msrb.mxu1 %v8814_v48 }
 0x530   : > { %5724 = vmatpush.bf16.msrb.mxu2 %v8809_v47  ;;  %5781 = vmatpush.bf16.msrb.mxu3 %v8817_v8  ;;  %v8842_v47 = vld [vmem:[%s11167_s7 + $0x1f0] sm:$0xff]  ;;  %v5198_v8 = vand.u32 3, %v9906_v51 }
 0x532   : > { %vm10830_vm8 = vcmp.ne.s32.totalorder %v5198_v8, 0  ;;  %vm10850_vm5 = vcmp.ne.s32.totalorder %v5198_v8, 3  ;;  %v8846_v8 = vld [vmem:[%s11167_s7 + $0x10] sm:$0xff] }
 0x533   : > { %5677 = vmatpush.bf16.msrb.mxu1 %v8813_v40 }
 0x534   : > { %5725 = vmatpush.bf16.msrb.mxu2 %v8808_v18  ;;  %5782 = vmatpush.bf16.msrb.mxu3 %v8816_v26 }
 0x537   : > { %5678 = vmatpush.bf16.msrb.mxu1 %v8812_v9  ;;  %7949 = vmatmul.msk.bf16.vlgmr.msra.gmra.mxu2 %vm5076_vm11, %v8795_v2  ;;  %v9008_v9 = vld [vmem:[%s11166_s6] ss:$0 sm:$0xff] }
 0x538   : > { %7974 = vmatmul.msk.bf16.vlgmr.msra.gmra.mxu3 %vm5076_vm11, %v5563_v22  ;;  %6116 = vmatpush.bf16.msra.mxu2 %v8843_v46  ;;  %v8856_v2 = vld [vmem:[%s11167_s7 + $0xe0] sm:$0xff] }
 0x539   : > { %6219 = vmatpush.bf16.msra.mxu3 %v8859_v45  ;;  %v8821_v45 = vld [vmem:[%s11167_s7 + $0x48] sm:$0xff]  ;;  %v8820_v46 = vld [vmem:[%s11167_s7 + $0x40] sm:$0xff] }
 0x53a   : > { %7928 = vmatmul.msk.bf16.vlgmr.msra.gmra.mxu1 %vm5076_vm11, %v5463_v28  ;;  %v8871_v28 = vld [vmem:[%s11167_s7 + $0x98] sm:$0xff] }
 0x53b   : > { %6022 = vmatpush.bf16.msra.mxu1 %v8827_v62  ;;  %v8875_v62 = vld [vmem:[%s11167_s7 + $0xb8] sm:$0xff] }
 0x53c   : > { %6117 = vmatpush.bf16.msra.mxu2 %v8842_v47  ;;  %v8866_v47 = vld [vmem:[%s11167_s7 + $0x1b0] sm:$0xff] }
 0x53d   : > { %6220 = vmatpush.bf16.msra.mxu3 %v8858_v35  ;;  %v8836_v35 = vld [vmem:[%s11167_s7 + $0x1c0] sm:$0xff] }
 0x53f   : > { %6023 = vmatpush.bf16.msra.mxu1 %v8826_v21 }
 0x540   : > { %6118 = vmatpush.bf16.msra.mxu2 %v8841_v7 }
 0x541   : > { %6221 = vmatpush.bf16.msra.mxu3 %v8857_v61  ;;  %v8882_v61 = vld [vmem:[%s11167_s7 + $0x170] sm:$0xff] }
 0x543   : > { %6024 = vmatpush.bf16.msra.mxu1 %v8825_v54 }
 0x544   : > { %6119 = vmatpush.bf16.msra.mxu2 %v8840_v52  ;;  %v8862_v52 = vld [vmem:[%s11167_s7 + $0x190] sm:$0xff] }
 0x545   : > { %6222 = vmatpush.bf16.msra.mxu3 %v8856_v2  ;;  %v8864_v2 = vld [vmem:[%s11167_s7 + $0x1a0] sm:$0xff] }
 0x547   : > { %8024 = vmatmul.msk.bf16.vlgmr.msrb.gmra.mxu2 %vm5076_vm11, %v5690_v4  ;;  %6025 = vmatpush.bf16.msra.mxu1 %v8824_v30  ;;  %v8877_v4 = vld [vmem:[%s11167_s7 + $0x148] sm:$0xff] }
 0x548   : > { %8049 = vmatmul.msk.bf16.vlgmr.msrb.gmra.mxu3 %vm5076_vm11, %v5747_v29 }
 0x549   : > { %6223 = vmatpush.bf16.msra.mxu3 %v8855_v37 }
 0x54a   : > { %8007 = vmatmul.msk.bf16.vlgmr.msrb.gmra.mxu1 %vm5076_vm11, %v5643_v11  ;;  %v8851_v11 = vld [vmem:[%s11167_s7 + $0x38] sm:$0xff] }
 0x54b   : > { %6280 = vmatpush.bf16.msra.mxu0 %v8851_v11  ;;  %6026 = vmatpush.bf16.msra.mxu1 %v8823_v19  ;;  %v8868_v11 = vld [vmem:[%s11167_s7 + $0x80] sm:$0xff] }
 0x5a7   : > { %v5296_v31 = vpop.f32.mrf.mxu1 }
 0x5aa   : > { %v5355_v20 = vpop.f32.mrf.mxu2  ;;  %v5428_v1 = vpop.f32.mrf.mxu3 }
 0x5ab   : > { %v5356_v53 = vadd.f32 %v5355_v20, %v5296_v31  ;;  %v8839_v31 = vld [vmem:[%s11167_s7 + $0x1d8] sm:$0xff] }
 0x5ac   : > { %6120 = vmatpush.bf16.msra.mxu2 %v8839_v31  ;;  %v8860_v31 = vld [vmem:[%s11167_s7 + $0x180] sm:$0xff] }
 0x5ad   : > { %v5433_v40 = vadd.f32 %v5428_v1, %v5356_v53  ;;  %v8854_v1 = vld [vmem:[%s11167_s7 + $0xd0] sm:$0xff]  ;;  %v8867_v53 = vld [vmem:[%s11167_s7 + $0x1b8] sm:$0xff] }
 0x5ae   : > { %6224 = vmatpush.bf16.msra.mxu3 %v8854_v1  ;;  %v6036_v1 = vld [vmem:[#allocation5 + $0x4] sm:$0x1] }
 0x5af   : > { %v5298_v5 = vpop.f32.mrf.mxu1 }
 0x5b0   : > { %6121 = vmatpush.bf16.msra.mxu2 %v8838_v23 }
 0x5b2   : > { %v5357_v17 = vpop.f32.mrf.mxu2  ;;  %v10778_v14 = vpop.f32.mrf.mxu3 }
 0x5b3   : > { %v5358_v59 = vadd.f32 %v5357_v17, %v5298_v5  ;;  %v8850_v5 = vld [vmem:[%s11167_s7 + $0x30] sm:$0xff] }
 0x5b4   : > { %6281 = vmatpush.bf16.msra.mxu0 %v8850_v5  ;;  %6122 = vmatpush.bf16.msra.mxu2 %v8837_v49 }
 0x5b5   : > { %v5434_v24 = vadd.f32 %v10778_v14, %v5358_v59  ;;  %v8880_v59 = vld [vmem:[%s11167_s7 + $0x160] sm:$0xff] }
 0x5b7   : > { %v5500_v16 = vpop.f32.mrf.mxu1 }
 0x5b8   : > { %6123 = vmatpush.bf16.msra.mxu2 %v8836_v35 }
 0x5ba   : > { %v5546_v58 = vpop.f32.mrf.mxu2 }
 0x5bb   : > { %v5600_v6 = vpop.f32.mrf.mxu3  ;;  %v5547_v27 = vadd.f32 %v5546_v58, %v5500_v16  ;;  %v8822_v16 = vld [vmem:[%s11167_s7 + $0x50] sm:$0xff] }
 0x5bc   : > { %6027 = vmatpush.bf16.msra.mxu1 %v8822_v16  ;;  %6465 = vmatpush.bf16.msrb.mxu2 %v8883_v38  ;;  %v6057_v16 = vunpack.c.l.b16 %v6036_v1  ;;  %v8899_v1 = vld [vmem:[%s11169_s9 + $0x98] sm:$0xff] }
 0x5bd   : > { %v5605_v13 = vadd.f32 %v5600_v6, %v5547_v27  ;;  %v8853_v6 = vld [vmem:[%s11167_s7 + $0xc8] sm:$0xff]  ;;  %v441_v27 = vld [vmem:[#allocation5] sm:$0x8] }
 0x5be   : > { %6225 = vmatpush.bf16.msra.mxu3 %v8853_v6 }
 0x5bf   : > { %v5502_v3 = vpop.f32.mrf.mxu1  ;;  %v5611_v41 = vsel %vm10796_vm1, %v5605_v13, 0.0  ;;  %v8852_v13 = vld [vmem:[%s11167_s7 + $0xc0] sm:$0xff]  ;;  %vm5837_vm1 = vsmask.f32 3338 }
 0x5c0   : > { %v5613_v60 = vadd.f32 %v5611_v41, %v5433_v40  ;;  %6028 = vmatpush.bf16.msra.mxu1 %v8821_v45  ;;  %v8873_v40 = vld [vmem:[%s11167_s7 + $0xa8] sm:$0xff]  ;;  %6466 = vmatpush.bf16.msrb.mxu2 %v8882_v61  ;;  %v8891_v61 = vld [vmem:[%s11167_s7 + $0x238] sm:$0xff] }
 0x5c2   : > { %v5548_v44 = vpop.f32.mrf.mxu2  ;;  %6226 = vmatpush.bf16.msra.mxu3 %v8852_v13 }
 0x5c3   : > { %v5602_v33 = vpop.f32.mrf.mxu3  ;;  %v5549_v15 = vadd.f32 %v5548_v44, %v5502_v3  ;;  %v8849_v3 = vld [vmem:[%s11167_s7 + $0x28] sm:$0xff] }
 0x5c4   : > { %6282 = vmatpush.bf16.msra.mxu0 %v8849_v3  ;;  %6029 = vmatpush.bf16.msra.mxu1 %v8820_v46 }
 0x5c5   : > { %v5606_v26 = vadd.f32 %v5602_v33, %v5549_v15  ;;  %v442_v33 = vsel %vm440_vm3, 0, %v441_v27  ;;  %vm6645_vm3 = vsmask.f32 3334 }
 0x5c6   : > { %443 = vst [vmem:[#allocation5] sm:$0x8] %v442_v33  ;;  %6526 = vmatpush.bf16.msrb.mxu3 %v8875_v62 }
 0x5c7   : > { %v5680_v32 = vpop.f32.mrf.mxu1  ;;  %v5612_v39 = vsel %vm10830_vm8, %v5606_v26, 0.0  ;;  %vm450_vm8 = vcmask 519171  }
 0x5c8   : > { %v5614_v20 = vadd.f32 %v5612_v39, %v5434_v24  ;;  %6364 = vmatpush.bf16.msrb.mxu1 %v8867_v53  ;;  %v8878_v39 = vld [vmem:[%s11167_s7 + $0x150] sm:$0xff]  ;;  %v8869_v24 = vld [vmem:[%s11167_s7 + $0x88] sm:$0xff] }
 0x5ca   : > { %v5727_v50 = vpop.f32.mrf.mxu2 }
 0x5cb   : > { %v5728_v48 = vadd.f32 %v5727_v50, %v5680_v32  ;;  %v5784_v18 = vpop.f32.mrf.mxu3  ;;  %v8848_v32 = vld [vmem:[%s11167_s7 + $0x20] sm:$0xff]  ;;  %v8874_v50 = vld [vmem:[%s11167_s7 + $0xb0] sm:$0xff] }
 0x5cc   : > { %6283 = vmatpush.bf16.msra.mxu0 %v8848_v32  ;;  %6527 = vmatpush.bf16.msrb.mxu3 %v8874_v50 }
 0x5cd   : > { %v5789_v10 = vadd.f32 %v5784_v18, %v5728_v48  ;;  %v8847_v48 = vld [vmem:[%s11167_s7 + $0x18] sm:$0xff]  ;;  %6365 = vmatpush.bf16.msrb.mxu1 %v8866_v47 }
 0x5cf   : > { %v5795_v51 = vsel %vm10812_vm15, %v5789_v10, 0.0  ;;  %v5682_v57 = vpop.f32.mrf.mxu1  ;;  %v8865_v10 = vld [vmem:[%s11167_s7 + $0x1a8] sm:$0xff]  ;;  %vm5838_vm15 = vmand %vm5836_vm12, %vm5837_vm1 }
 0x5d0   : > { %v5797_v22 = vadd.f32 %v5795_v51, %v5613_v60  ;;  %6284 = vmatpush.bf16.msra.mxu0 %v8847_v48  ;;  %v8881_v60 = vld [vmem:[%s11167_s7 + $0x168] sm:$0xff]  ;;  %6528 = vmatpush.bf16.msrb.mxu3 %v8873_v40 }
 0x5d1   : > { %v8845_v51 = vld [vmem:[%s11167_s7 + $0x8] sm:$0xff]  ;;  %6366 = vmatpush.bf16.msrb.mxu1 %v8865_v10  ;;  %6467 = vmatpush.bf16.msrb.mxu2 %v8881_v60 }
 0x5d2   : > { %v5729_v36 = vpop.f32.mrf.mxu2  ;;  %v5803_v55 = vadd.f32 %v9008_v9, %v5797_v22  ;;  %v8889_v10 = vld [vmem:[%s11167_s7 + $0x228] sm:$0xff] }
 0x5d3   : > { %v5730_v43 = vadd.f32 %v5729_v36, %v5682_v57  ;;  %v5786_v12 = vpop.f32.mrf.mxu3  ;;  %v5830_v57 = vld [vmem:[#allocation5] sm:$0x6]  ;;  %v8844_v36 = vld [vmem:[%s11167_s7] sm:$0xff] }
 0x5d4   : > { %v5805_v34 = vmax.f32 %v5803_v55, 0.0  ;;  %6285 = vmatpush.bf16.msra.mxu0 %v8846_v8  ;;  %v8863_v55 = vld [vmem:[%s11167_s7 + $0x198] sm:$0xff] }
 0x5d5   : > { %v5790_v29 = vadd.f32 %v5786_v12, %v5730_v43  ;;  %6367 = vmatpush.bf16.msrb.mxu1 %v8864_v2  ;;  %6468 = vmatpush.bf16.msrb.mxu2 %v8880_v59  ;;  %v8879_v43 = vld [vmem:[%s11167_s7 + $0x158] sm:$0xff]  ;;  %v8886_v2 = vld [vmem:[%s11167_s7 + $0x210] sm:$0xff] }
 0x5d6   : > { %5807 = vst [vmem:[#allocation9] sm:$0xff] %v5805_v34  ;;  %v8861_v34 = vld [vmem:[%s11167_s7 + $0x188] sm:$0xff] }
 0x5d7   : > { %v5796_v17 = vsel %vm10850_vm5, %v5790_v29, 0.0  ;;  %vm451_vm5 = vmand %vm450_vm8, %vm439_vm9  ;;  %vm6644_vm9 = vcmask 519169  }
 0x5d8   : > { %v5798_v14 = vadd.f32 %v5796_v17, %v5614_v20  ;;  %6286 = vmatpush.bf16.msra.mxu0 %v8845_v51  ;;  %v8876_v20 = vld [vmem:[%s11167_s7 + $0x140] sm:$0xff]  ;;  %v8887_v51 = vld [vmem:[%s11167_s7 + $0x218] sm:$0xff]  ;;  %vm6646_vm4 = vmand %vm6644_vm9, %vm6645_vm3 }
 0x5d9   : > { %6368 = vmatpush.bf16.msrb.mxu1 %v8863_v55  ;;  %6469 = vmatpush.bf16.msrb.mxu2 %v8879_v43  ;;  %v452_v55 = vld [vmem:[#allocation6] sm:$0x8] }
 0x5da   : > { %v5804_v58 = vadd.f32 %v9008_v9, %v5798_v14  ;;  %v8872_v9 = vld [vmem:[%s11167_s7 + $0xa0] sm:$0xff] }
 0x5db   : > { %6529 = vmatpush.bf16.msrb.mxu3 %v8872_v9  ;;  %v8888_v9 = vld [vmem:[%s11167_s7 + $0x220] sm:$0xff] }
 0x5dc   : > { %v5806_v44 = vmax.f32 %v5804_v58, 0.0  ;;  %6287 = vmatpush.bf16.msra.mxu0 %v8844_v36 }
 0x5dd   : > { %6369 = vmatpush.bf16.msrb.mxu1 %v8862_v52  ;;  %6470 = vmatpush.bf16.msrb.mxu2 %v8878_v39  ;;  %v453_v39 = vsel %vm451_vm5, 0, %v452_v55  ;;  %v8913_v55 = vld [vmem:[%s11169_s9 + $0xc8] sm:$0xff] }
 0x5de   : > { %5808 = vst [vmem:[#allocation9 + $0x8] sm:$0xff] %v5806_v44 }
 0x5df   : > { %6530 = vmatpush.bf16.msrb.mxu3 %v8871_v28  ;;  %v8885_v28 = vld [vmem:[%s11167_s7 + $0x208] sm:$0xff]  ;;  %454 = vst [vmem:[#allocation6] sm:$0x8] %v453_v39  ;;  %v8904_v39 = vld [vmem:[%s11169_s9] sm:$0xff] }
 0x5e1   : > { %6370 = vmatpush.bf16.msrb.mxu1 %v8861_v34  ;;  %6471 = vmatpush.bf16.msrb.mxu2 %v8877_v4 }
 0x5e3   : > { %6531 = vmatpush.bf16.msrb.mxu3 %v8870_v56 }
 0x5e5   : > { %v5809_v41 = vld [vmem:[#allocation9] ss:$2 sm:$0xff]  ;;  %v5811_v15 = vld [vmem:[#allocation9 + $0x1] ss:$2 sm:$0xff]  ;;  %6371 = vmatpush.bf16.msrb.mxu1 %v8860_v31  ;;  %6472 = vmatpush.bf16.msrb.mxu2 %v8876_v20  ;;  %v8923_v31 = vld [vmem:[%s11169_s9 + $0xb8] sm:$0xff] }
 0x5e6   : > { %v5812_v21 = vmax.f32 %v5809_v41, %v5811_v15  ;;  %v8895_v20 = vld [vmem:[%s11169_s9 + $0x38] sm:$0xff] }
 0x5e7   : > { %6532 = vmatpush.bf16.msrb.mxu3 %v8869_v24 }
 0x5e8   : > { %v5814_v42 = vrot.slane %v5812_v21, 2 }
 0x5ea   : > { %v5816_v18 = vmax.f32 %v5812_v21, %v5814_v42  ;;  %v8890_v42 = vld [vmem:[%s11167_s7 + $0x230] sm:$0xff] }
 0x5eb   : > { %6533 = vmatpush.bf16.msrb.mxu3 %v8868_v11 }
 0x5ec   : > { %v5817_v26 = vpack.c.bf16 %v5816_v18, %v5816_v18 }
 0x5ee   : > { %v5819_v54 = vshrl.u32 %v5817_v26, 16  ;;  %v5822_v7 = vshll.u32 %v5817_v26, 16 }
 0x5f0   : > { %v5821_v22 = vrot.slane %v5819_v54, 6  ;;  %v5824_v63 = vrot.slane %v5822_v7, 7  ;;  %v5833_v37 = vrot.slane %v5819_v54, 7 }
 0x5f2   : > { %v5825_v25 = vor.u32 %v5824_v63, %v5821_v22  ;;  %v5834_v12 = vor.u32 %v5833_v37, %v5822_v7  ;;  %v8884_v63 = vld [vmem:[%s11167_s7 + $0x200] sm:$0xff] }
 0x5f4   : > { %v5831_v30 = vsel %vm5829_vm0, %v5825_v25, %v5830_v57  ;;  %v447_v25 = vld [vmem:[#allocation6] sm:$0x3] }
 0x5f5   : > { %5832 = vst [vmem:[#allocation5] sm:$0x6] %v5831_v30  ;;  %v448_v30 = vsel %vm446_vm6, 0, %v447_v25  ;;  %v8909_v25 = vld [vmem:[%s11169_s9 + $0x68] sm:$0xff] }
 0x5f6   : > { %449 = vst [vmem:[#allocation6] sm:$0x3] %v448_v30 }
 0x5fc   : > { %v5839_v29 = vld [vmem:[#allocation5] sm:$0xc]  ;;  %v6131_v54 = vld [vmem:[#allocation5] sm:$0x3] }
 0x5fd   : > { %v5840_v19 = vsel %vm5838_vm15, %v5834_v12, %v5839_v29  ;;  %v6647_v30 = vld [vmem:[#allocation6] sm:$0xe] }
 0x5fe   : > { %5841 = vst [vmem:[#allocation5] sm:$0xc] %v5840_v19 }
 0x605   : > { %v6148_v5 = vld [vmem:[#allocation5] sm:$0x6]  ;;  %v6539_v59 = vld [vmem:[#allocation5] sm:$0x8] }
 0x606   : > { %v5872_v17 = vld [vmem:[#allocation5] sm:$0xe]  ;;  %v6167_v23 = vunpack.c.l.b16 %v6148_v5  ;;  %v6558_v22 = vunpack.c.l.b16 %v6539_v59  ;;  %v8903_v5 = vld [vmem:[%s11169_s9 + $0xf8] sm:$0xff] }
 0x607   : > { %v5854_v14 = vld [vmem:[#allocation5] sm:$0x7]  ;;  %v5891_v58 = vunpack.c.l.b16 %v5872_v17 }
 0x608   : > { %v5964_v6 = vunpack.c.l.b16 %v5854_v14  ;;  %v6035_v3 = vld [vmem:[#allocation5] sm:$0xc]  ;;  %v6168_v27 = vpack.c.b16 %v6167_v23, %v6167_v23  ;;  %v6559_v57 = vpack.c.b16 %v6057_v16, %v6558_v22 }
 0x609   : > { %v6056_v44 = vunpack.c.l.b16 %v6035_v3  ;;  %v5892_v45 = vpack.c.b16 %v5891_v58, %v5891_v58  ;;  %v6293_v18 = vld [vmem:[#allocation5] sm:$0xc] }
 0x60a   : > { %v5965_v49 = vpack.c.b16 %v5964_v6, %v5964_v6  ;;  %v6169_v13 = vrot.slane %v6168_v27, 1  ;;  %v6312_v60 = vunpack.c.l.b16 %v6293_v18  ;;  %v6560_v36 = vrot.slane %v6559_v57, 3  ;;  %v8922_v17 = vld [vmem:[%s11169_s9 + $0xb0] sm:$0xff] }
 0x60b   : > { %v6058_v33 = vpack.c.b16 %v6057_v16, %v6056_v44  ;;  %v5894_v32 = vshrl.u32 %v5892_v45, 16  ;;  %v5897_v62 = vshll.u32 %v5892_v45, 16  ;;  %v8894_v14 = vld [vmem:[%s11169_s9 + $0x30] sm:$0xff]  ;;  %v5846_v44 = vand.u32 1, %v9608_v0  ;;  %v8901_v0 = vld [vmem:[%s11169_s9 + $0xe8] sm:$0xff] }
 0x60c   : > { %v5969_v46 = vshll.u32 %v5965_v49, 16  ;;  %6227 = vmatmul.bf16.vlgmr.msra.gmra.mxu3 %v6169_v13  ;;  %v5967_v48 = vshrl.u32 %v5965_v49, 16  ;;  %v6313_v26 = vpack.c.b16 %v6312_v60, %v6312_v60  ;;  %v8898_v23 = vld [vmem:[%s11169_s9 + $0x90] sm:$0xff]  ;;  %v8921_v49 = vld [vmem:[%s11169_s9 + $0xa8] sm:$0xff] }
 0x60d   : > { %v6060_v35 = vshrl.u32 %v6058_v33, 16  ;;  %v6063_v53 = vshll.u32 %v6058_v33, 16  ;;  %v5896_v38 = vrot.slane %v5894_v32, 1  ;;  %v5899_v50 = vrot.slane %v5897_v62, 2  ;;  %6826 = vmatpush.bf16.msra.mxu3 %v8903_v5  ;;  %v8902_v58 = vld [vmem:[%s11169_s9 + $0xf0] sm:$0xff]  ;;  %v8893_v33 = vld [vmem:[%s11169_s9 + $0x28] sm:$0xff] }
 0x60e   : > { %v5971_v41 = vrot.slane %v5969_v46, 1  ;;  %v6314_v7 = vrot.slane %v6313_v26, 2  ;;  %vm11049_vm7 = vcmp.ne.s32.totalorder %v5846_v44, 0  ;;  %v8920_v46 = vld [vmem:[%s11169_s9 + $0xa0] sm:$0xff]  ;;  %vm11061_vm14 = vcmp.ne.s32.totalorder %v5846_v44, 1  ;;  %v8911_v26 = vld [vmem:[%s11169_s9 + $0x78] sm:$0xff] }
 0x60f   : > { %v6062_v15 = vrot.slane %v6060_v35, 2  ;;  %v6065_v21 = vrot.slane %v6063_v53, 3  ;;  %v5900_v47 = vor.u32 %v5899_v50, %v5896_v38  ;;  %v8892_v35 = vld [vmem:[%s11169_s9 + $0x20] sm:$0xff]  ;;  %v8910_v59 = vld [vmem:[%s11169_s9 + $0x70] sm:$0xff] }
 0x610   : > { %v5972_v40 = vor.u32 %v5971_v41, %v5967_v48 }
 0x611   : > { %v6066_v8 = vor.u32 %v6065_v21, %v6062_v15  ;;  %5958 = vmatmul.bf16.vlgmr.msrb.gmra.mxu0 %v5900_v47  ;;  %6827 = vmatpush.bf16.msra.mxu3 %v8902_v58 }
 0x612   : > { %6030 = vmatmul.bf16.vlgmr.msra.gmra.mxu1 %v5972_v40  ;;  %6610 = vmatpush.bf16.msrb.mxu0 %v8891_v61  ;;  %v8896_v61 = vld [vmem:[%s11169_s9 + $0x80] sm:$0xff] }
 0x613   : > { %6124 = vmatmul.bf16.vlgmr.msra.gmra.mxu2 %v6066_v8  ;;  %6712 = vmatpush.bf16.msra.mxu1 %v8899_v1  ;;  %v8900_v40 = vld [vmem:[%s11169_s9 + $0xe0] sm:$0xff] }
 0x614   : > { %6762 = vmatpush.bf16.msra.mxu2 %v8895_v20 }
 0x615   : > { %6828 = vmatpush.bf16.msra.mxu3 %v8901_v0 }
 0x616   : > { %6611 = vmatpush.bf16.msrb.mxu0 %v8890_v42  ;;  %v9009_v42 = vld [vmem:[%s11168_s8] ss:$0 sm:$0xff] }
 0x617   : > { %6713 = vmatpush.bf16.msra.mxu1 %v8898_v23 }
 0x618   : > { %6763 = vmatpush.bf16.msra.mxu2 %v8894_v14 }
 0x619   : > { %6829 = vmatpush.bf16.msra.mxu3 %v8900_v40 }
 0x61a   : > { %6612 = vmatpush.bf16.msrb.mxu0 %v8889_v10 }
 0x61c   : > { %6534 = vmatmul.bf16.vlgmr.msrb.gmra.mxu3 %v6169_v13  ;;  %v8897_v13 = vld [vmem:[%s11169_s9 + $0x88] sm:$0xff]  ;;  %6764 = vmatpush.bf16.msra.mxu2 %v8893_v33 }
 0x61d   : > { %6714 = vmatpush.bf16.msra.mxu1 %v8897_v13 }
 0x61e   : > { %6613 = vmatpush.bf16.msrb.mxu0 %v8888_v9  ;;  %v8907_v9 = vld [vmem:[%s11169_s9 + $0x18] sm:$0xff] }
 0x620   : > { %6765 = vmatpush.bf16.msra.mxu2 %v8892_v35 }
 0x621   : > { %6288 = vmatmul.bf16.vlgmr.msra.gmra.mxu0 %v6131_v54  ;;  %6715 = vmatpush.bf16.msra.mxu1 %v8896_v61 }
 0x622   : > { %6372 = vmatmul.bf16.vlgmr.msrb.gmra.mxu1 %v6314_v7  ;;  %6614 = vmatpush.bf16.msrb.mxu0 %v8887_v51  ;;  %v8915_v51 = vld [vmem:[%s11169_s9 + $0xd8] sm:$0xff] }
 0x623   : > { %6473 = vmatmul.bf16.vlgmr.msrb.gmra.mxu2 %v6314_v7  ;;  %6984 = vmatpush.bf16.msrb.mxu3 %v8915_v51 }
 0x624   : > { %6930 = vmatpush.bf16.msrb.mxu2 %v8907_v9 }
 0x625   : > { %6890 = vmatpush.bf16.msrb.mxu1 %v8911_v26 }
 0x626   : > { %6615 = vmatpush.bf16.msrb.mxu0 %v8886_v2  ;;  %v8906_v2 = vld [vmem:[%s11169_s9 + $0x10] sm:$0xff] }
 0x628   : > { %6931 = vmatpush.bf16.msrb.mxu2 %v8906_v2 }
 0x629   : > { %6891 = vmatpush.bf16.msrb.mxu1 %v8910_v59 }
 0x62a   : > { %6616 = vmatpush.bf16.msrb.mxu0 %v8885_v28  ;;  %v8914_v28 = vld [vmem:[%s11169_s9 + $0xd0] sm:$0xff] }
 0x62b   : > { %6985 = vmatpush.bf16.msrb.mxu3 %v8914_v28 }
 0x62d   : > { %6892 = vmatpush.bf16.msrb.mxu1 %v8909_v25 }
 0x62e   : > { %6617 = vmatpush.bf16.msrb.mxu0 %v8884_v63 }
 0x62f   : > { %6986 = vmatpush.bf16.msrb.mxu3 %v8913_v55 }
 0x631   : > { %6618 = vmatmul.bf16.vlgmr.msrb.gmra.mxu0 %v6560_v36  ;;  %v8905_v36 = vld [vmem:[%s11169_s9 + $0x8] sm:$0xff] }
 0x632   : > { %7042 = vmatpush.bf16.msra.mxu0 %v8923_v31  ;;  %6932 = vmatpush.bf16.msrb.mxu2 %v8905_v36 }
 0x636   : > { %7043 = vmatpush.bf16.msra.mxu0 %v8922_v17  ;;  %6933 = vmatpush.bf16.msrb.mxu2 %v8904_v39 }
 0x63a   : > { %7044 = vmatpush.bf16.msra.mxu0 %v8921_v49 }
 0x63e   : > { %7045 = vmatpush.bf16.msra.mxu0 %v8920_v46 }
 0x68e   : > { %v5959_v43 = vpop.f32.mrf.mxu0 }
 0x68f   : > { %v6031_v56 = vpop.f32.mrf.mxu1  ;;  %v6228_v52 = vpop.f32.mrf.mxu3 }
 0x690   : > { %v6032_v53 = vadd.f32 %v6031_v56, %v5959_v43 }
 0x696   : > { %v6125_v37 = vpop.f32.mrf.mxu2  ;;  %v5961_v24 = vpop.f32.mrf.mxu0 }
 0x697   : > { %v6033_v34 = vpop.f32.mrf.mxu1  ;;  %v6230_v4 = vpop.f32.mrf.mxu3  ;;  %v6129_v41 = vadd.f32 %v6125_v37, %v6032_v53  ;;  %v8908_v37 = vld [vmem:[%s11169_s9 + $0x60] sm:$0xff] }
 0x698   : > { %v8912_v24 = vld [vmem:[%s11169_s9 + $0xc0] sm:$0xff]  ;;  %6893 = vmatpush.bf16.msrb.mxu1 %v8908_v37  ;;  %v6772_v4 = vld [vmem:[#allocation6 + $0x4] sm:$0x1] }
 0x699   : > { %6987 = vmatpush.bf16.msrb.mxu3 %v8912_v24 }
 0x69e   : > { %v6127_v12 = vpop.f32.mrf.mxu2  ;;  %v6289_v11 = vpop.f32.mrf.mxu0 }
 0x69f   : > { %v6373_v29 = vpop.f32.mrf.mxu1  ;;  %v6535_v19 = vpop.f32.mrf.mxu3  ;;  %v6290_v6 = vadd.f32 %v6289_v11, %v6228_v52 }
 0x6a1   : > { %v6377_v32 = vadd.f32 %v6373_v29, %v6290_v6 }
 0x6a3   : > { %v6380_v50 = vsel %vm11049_vm7, %v6377_v32, 0.0 }
 0x6a4   : > { %v6381_v8 = vadd.f32 %v6380_v50, %v6129_v41  ;;  %v8919_v50 = vld [vmem:[%s11169_s9 + $0x58] sm:$0xff] }
 0x6a6   : > { %v6474_v16 = vpop.f32.mrf.mxu2  ;;  %v6291_v3 = vpop.f32.mrf.mxu0 }
 0x6a7   : > { %v6375_v27 = vpop.f32.mrf.mxu1  ;;  %v6537_v45 = vpop.f32.mrf.mxu3  ;;  %v6536_v48 = vadd.f32 %v6535_v19, %v6474_v16  ;;  %v6785_v19 = vunpack.c.l.b16 %v6772_v4 }
 0x6ae   : > { %v6476_v38 = vpop.f32.mrf.mxu2  ;;  %v6619_v21 = vpop.f32.mrf.mxu0 }
 0x6af   : > { %v6623_v47 = vadd.f32 %v6619_v21, %v6536_v48  ;;  %v8927_v38 = vld [vmem:[%s11169_s9 + $0x118] sm:$0xff]  ;;  %v8926_v21 = vld [vmem:[%s11169_s9 + $0x110] sm:$0xff] }
 0x6b1   : > { %v6626_v18 = vsel %vm11061_vm14, %v6623_v47, 0.0  ;;  %v8918_v47 = vld [vmem:[%s11169_s9 + $0x50] sm:$0xff] }
 0x6b2   : > { %v6627_v10 = vadd.f32 %v6626_v18, %v6381_v8  ;;  %v8925_v8 = vld [vmem:[%s11169_s9 + $0x108] sm:$0xff] }
 0x6b4   : > { %v6632_v60 = vadd.f32 %v9009_v42, %v6627_v10  ;;  %v8917_v42 = vld [vmem:[%s11169_s9 + $0x48] sm:$0xff]  ;;  %v8924_v10 = vld [vmem:[%s11169_s9 + $0x100] sm:$0xff] }
 0x6b6   : > { %v6633_v54 = vmax.f32 %v6632_v60, 0.0  ;;  %v6621_v7 = vpop.f32.mrf.mxu0  ;;  %v8916_v60 = vld [vmem:[%s11169_s9 + $0x40] sm:$0xff] }
 0x6b8   : > { %v6634_v22 = vpack.c.bf16 %v6633_v54, %v6633_v54 }
 0x6ba   : > { %v6636_v63 = vshrl.u32 %v6634_v22, 16  ;;  %v6639_v57 = vshll.u32 %v6634_v22, 16 }
 0x6bc   : > { %v6638_v43 = vrot.slane %v6636_v63, 6  ;;  %v6641_v56 = vrot.slane %v6639_v57, 7 }
 0x6be   : > { %v6642_v52 = vor.u32 %v6641_v56, %v6638_v43 }
 0x6c0   : > { %v6648_v34 = vsel %vm6646_vm4, %v6642_v52, %v6647_v30 }
 0x6c1   : > { %6649 = vst [vmem:[#allocation6] sm:$0xe] %v6648_v34 }
 0x6c8   : > { %v6939_v12 = vld [vmem:[#allocation6] sm:$0xc]  ;;  %v6836_v26 = vld [vmem:[#allocation6] sm:$0x3] }
 0x6c9   : > { %v6660_v11 = vld [vmem:[#allocation6] sm:$0xe]  ;;  %v6950_v31 = vunpack.c.l.b16 %v6939_v12 }
 0x6ca   : > { %v6650_v29 = vld [vmem:[#allocation6] sm:$0x7]  ;;  %v6671_v20 = vunpack.c.l.b16 %v6660_v11  ;;  %v7088_v51 = vld [vmem:[#allocation6] sm:$0x8] }
 0x6cb   : > { %v6722_v1 = vunpack.c.l.b16 %v6650_v29  ;;  %v6771_v5 = vld [vmem:[#allocation6] sm:$0xc]  ;;  %v6951_v14 = vpack.c.b16 %v6950_v31, %v6950_v31  ;;  %v7099_v54 = vunpack.c.l.b16 %v7088_v51 }
 0x6cc   : > { %v6784_v17 = vunpack.c.l.b16 %v6771_v5  ;;  %v6672_v16 = vpack.c.b16 %v6671_v20, %v6671_v20  ;;  %v6845_v61 = vld [vmem:[#allocation6] sm:$0x6] }
 0x6cd   : > { %v6723_v23 = vpack.c.b16 %v6722_v1, %v6722_v1  ;;  %v6952_v6 = vrot.slane %v6951_v14, 2  ;;  %v6856_v40 = vunpack.c.l.b16 %v6845_v61  ;;  %v7100_v7 = vpack.c.b16 %v6785_v19, %v7099_v54 }
 0x6ce   : > { %v6786_v58 = vpack.c.b16 %v6785_v19, %v6784_v17  ;;  %v6674_v3 = vshrl.u32 %v6672_v16, 16  ;;  %v6677_v44 = vshll.u32 %v6672_v16, 16  ;;  %v9010_v17 = vld [vmem:[%s11170_s10] ss:$0 sm:$0xff] }
 0x6cf   : > { %v6727_v27 = vshll.u32 %v6723_v23, 16  ;;  %8640 = vmatmul.msk.bf16.vlgmr.msra.gmra.mxu0 %vm5076_vm11, %v6952_v6  ;;  %v6725_v0 = vshrl.u32 %v6723_v23, 16  ;;  %v6857_v18 = vpack.c.b16 %v6856_v40, %v6856_v40  ;;  %v7101_v2 = vrot.slane %v7100_v7, 3 }
 0x6d0   : > { %v6788_v45 = vshrl.u32 %v6786_v58, 16  ;;  %v6791_v49 = vshll.u32 %v6786_v58, 16  ;;  %v6676_v33 = vrot.slane %v6674_v3, 1  ;;  %v6679_v13 = vrot.slane %v6677_v44, 2 }
 0x6d1   : > { %v6729_v32 = vrot.slane %v6727_v27, 1  ;;  %v6858_v9 = vrot.slane %v6857_v18, 1 }
 0x6d2   : > { %v6790_v46 = vrot.slane %v6788_v45, 2  ;;  %v6793_v35 = vrot.slane %v6791_v49, 3  ;;  %v6680_v53 = vor.u32 %v6679_v13, %v6676_v33 }
 0x6d3   : > { %v6730_v48 = vor.u32 %v6729_v32, %v6725_v0 }
 0x6d4   : > { %v6794_v41 = vor.u32 %v6793_v35, %v6790_v46  ;;  %8498 = vmatmul.msk.bf16.vlgmr.msra.gmra.mxu1 %vm5076_vm11, %v6680_v53 }
 0x6d5   : > { %8515 = vmatmul.msk.bf16.vlgmr.msra.gmra.mxu2 %vm5076_vm11, %v6730_v48  ;;  %7079 = vmatpush.bf16.msra.mxu1 %v8919_v50 }
 0x6d6   : > { %8540 = vmatmul.msk.bf16.vlgmr.msra.gmra.mxu3 %vm5076_vm11, %v6794_v41  ;;  %7133 = vmatpush.bf16.msra.mxu2 %v8927_v38 }
 0x6d9   : > { %7080 = vmatpush.bf16.msra.mxu1 %v8918_v47 }
 0x6da   : > { %7134 = vmatpush.bf16.msra.mxu2 %v8926_v21 }
 0x6dd   : > { %7081 = vmatpush.bf16.msra.mxu1 %v8917_v42 }
 0x6de   : > { %7135 = vmatpush.bf16.msra.mxu2 %v8925_v8 }
 0x6e1   : > { %7082 = vmatpush.bf16.msra.mxu1 %v8916_v60 }
 0x6e2   : > { %7136 = vmatpush.bf16.msra.mxu2 %v8924_v10 }
 0x6e4   : > { %8565 = vmatmul.msk.bf16.vlgmr.msrb.gmra.mxu1 %vm5076_vm11, %v6858_v9 }
 0x6e5   : > { %8582 = vmatmul.msk.bf16.vlgmr.msrb.gmra.mxu2 %vm5076_vm11, %v6836_v26 }
 0x6e6   : > { %8607 = vmatmul.msk.bf16.vlgmr.msrb.gmra.mxu3 %vm5076_vm11, %v6952_v6 }
 0x6f4   : > { %8657 = vmatmul.msk.bf16.vlgmr.msra.gmra.mxu1 %vm5076_vm11, %v6858_v9 }
 0x6f5   : > { %8682 = vmatmul.msk.bf16.vlgmr.msra.gmra.mxu2 %vm5076_vm11, %v7101_v2 }
 0x74c   : > { %v7047_v59 = vpop.f32.mrf.mxu0 }
 0x751   : > { %v6717_v28 = vpop.f32.mrf.mxu1 }
 0x754   : > { %v7049_v22 = vpop.f32.mrf.mxu0 }
 0x758   : > { %v6767_v63 = vpop.f32.mrf.mxu2 }
 0x759   : > { %v6831_v57 = vpop.f32.mrf.mxu3  ;;  %v6719_v36 = vpop.f32.mrf.mxu1  ;;  %v6768_v12 = vadd.f32 %v6767_v63, %v6717_v28 }
 0x75b   : > { %v6835_v19 = vadd.f32 %v6831_v57, %v6768_v12 }
 0x760   : > { %v6769_v25 = vpop.f32.mrf.mxu2 }
 0x761   : > { %v6833_v55 = vpop.f32.mrf.mxu3  ;;  %v6895_v43 = vpop.f32.mrf.mxu1 }
 0x768   : > { %v6935_v56 = vpop.f32.mrf.mxu2 }
 0x769   : > { %v6989_v30 = vpop.f32.mrf.mxu3  ;;  %v6897_v52 = vpop.f32.mrf.mxu1  ;;  %v6936_v39 = vadd.f32 %v6935_v56, %v6895_v43 }
 0x76b   : > { %v6993_v4 = vadd.f32 %v6989_v30, %v6936_v39 }
 0x76d   : > { %v6994_v11 = vsel %vm11049_vm7, %v6993_v4, 0.0 }
 0x76e   : > { %v6995_v5 = vadd.f32 %v6994_v11, %v6835_v19 }
 0x770   : > { %v6937_v37 = vpop.f32.mrf.mxu2 }
 0x771   : > { %v6991_v24 = vpop.f32.mrf.mxu3  ;;  %v7084_v34 = vpop.f32.mrf.mxu1 }
 0x772   : > { %v7085_v29 = vadd.f32 %v7084_v34, %v7047_v59 }
 0x778   : > { %v7138_v31 = vpop.f32.mrf.mxu2 }
 0x779   : > { %v7142_v20 = vadd.f32 %v7138_v31, %v7085_v29  ;;  %v7086_v1 = vpop.f32.mrf.mxu1 }
 0x77b   : > { %v7143_v14 = vsel %vm11061_vm14, %v7142_v20, 0.0 }
 0x77c   : > { %v7144_v16 = vadd.f32 %v7143_v14, %v6995_v5 }
 0x77e   : > { %v7149_v23 = vadd.f32 %v9010_v17, %v7144_v16 }
 0x780   : > { %v7150_v62 = vmax.f32 %v7149_v23, 0.0  ;;  %v7140_v58 = vpop.f32.mrf.mxu2 }
 0x782   : > { %7151 = vst.msk [vmem:[%s384_s24] sm:$0xf] %vm404_vm10, %v7150_v62 }
 0x783 PF: > { %s21_s17 = sadd.s32 1, %s9052_s17  }
 0x784   : > { %p18_p4 = scmp.ge.s32.totalorder %s21_s17, 4  }
 0x786   :  { %20 = sbr.rel (!%p18_p4) target bundleno = 1 (0x1), region = 173 }

</bundles_post_ra>
